<compile_context>
chip_gen: v6e
topology: v6e:2x2x1
jax: 0.10.0
libtpu: 0.0.40
codegen_flags: <defaults>
</compile_context>

<pallas_src>
import functools

import jax
import jax.numpy as jnp
import numpy as np
from jax.experimental import pallas as pl
from jax.experimental.pallas import tpu as pltpu


def _round_up(x, m):
    return (x + m - 1) // m * m


def _resblock_kernel(xpad_ref, w1_ref, s1_ref, b1_ref, w2_ref, s2_ref, b2_ref,
                     out_ref, hpad_ref, *, Nb, H, W, C, Cp, K, pad, lpad, dil):
    """One batch-chunk of Nb images per grid step.

    xpad_ref : (Nb, H + 2*pad, Wsc, Cp)  bf16 padded input (left W-pad = lpad, 16-aligned)
    w*_ref   : (K*K*Cp, Cp)              bf16 im2col-layout weights
    s*/b*    : (1, Cp)                   f32 folded BN affine
    out_ref  : (Nb, H, W, C)             f32 output (unpadded channels)
    hpad_ref : VMEM bf16 scratch, same shape as xpad_ref, holds the padded conv1 activation.
    """
    Hp = H + 2 * pad
    Wsc = hpad_ref.shape[2]
    M = Nb * H * W
    wo = lpad - pad                      # column of the first (kw = 0) conv window

    def conv(src_ref, w_ref):
        # Per-window accumulating matmuls: each is a full 128-deep x 128-wide contraction,
        # bf16 operands, f32 accumulation.  No im2col LHS is ever materialized.
        acc = jnp.zeros((M, Cp), jnp.float32)
        for kh in range(K):
            for kw in range(K):
                j = kh * K + kw
                patch = src_ref[:, kh * dil:kh * dil + H,
                                wo + kw * dil:wo + kw * dil + W, :]
                acc = acc + jnp.dot(patch.reshape(M, Cp),
                                    w_ref[j * Cp:(j + 1) * Cp, :],
                                    preferred_element_type=jnp.float32)
        return acc

    # ---- conv1 + folded BN1 affine + ReLU (f32 epilogue) ----
    h1 = jnp.maximum(conv(xpad_ref, w1_ref) * s1_ref[...] + b1_ref[...], 0.0)

    # ---- stage h1 (bf16) into the padded conv2 buffer.
    # Zero only the halo border each step (aligned slabs; re-done every step so the scratch
    # is safe when the batch grid axis is sharded across TensorCores), then one aligned
    # interior store (lpad is a multiple of 16 for the bf16 packing).
    if pad > 0:
        zrow = jnp.zeros((Nb, pad, Wsc, Cp), hpad_ref.dtype)
        hpad_ref[:, 0:pad, :, :] = zrow
        hpad_ref[:, pad + H:Hp, :, :] = zrow
        hpad_ref[:, :, 0:lpad, :] = jnp.zeros((Nb, Hp, lpad, Cp), hpad_ref.dtype)
        hpad_ref[:, :, lpad + W:Wsc, :] = jnp.zeros(
            (Nb, Hp, Wsc - lpad - W, Cp), hpad_ref.dtype)
    hpad_ref[:, pad:pad + H, lpad:lpad + W, :] = (
        h1.astype(hpad_ref.dtype).reshape(Nb, H, W, Cp))

    # ---- conv2 + folded BN2 affine ----
    res = conv(hpad_ref, w2_ref) * s2_ref[...] + b2_ref[...]

    # ---- residual add (f32) + final ReLU; store only the C real channels ----
    identity = xpad_ref[:, pad:pad + H, lpad:lpad + W, :].reshape(M, Cp).astype(jnp.float32)
    out = jnp.maximum(res + identity, 0.0)
    out_ref[...] = out[:, :C].reshape(Nb, H, W, C)


def _step_vmem_bytes(nb, *, H, W, C, Cp, Hp, Wsc, K):
    """Per-grid-step VMEM footprint estimate (double-buffered blocks + scratch + live values)."""
    M = nb * H * W
    in_blk = nb * Hp * Wsc * Cp * 2          # bf16 input block
    out_blk = nb * H * W * C * 4             # f32 output block
    hpad = nb * Hp * Wsc * Cp * 2            # bf16 scratch
    wgts = 2 * (K * K * Cp) * Cp * 2         # two bf16 weights
    live = 4 * M * Cp * 4                    # acc / h1 / res / identity f32 values
    return 2 * in_blk + 2 * out_blk + hpad + 2 * wgts + live


def _pick_block_batch(N, step_bytes, budget_bytes=10 << 20, target_steps=4):
    """Largest divisor of N that fits the VMEM budget AND leaves enough grid steps
    (>= 4 when possible, >= 2 when N >= 2) for pipeline overlap and v7x's 2 TensorCores."""
    divisors = [d for d in range(1, N + 1) if N % d == 0]
    fitting = [d for d in divisors if step_bytes(d) <= budget_bytes]
    if not fitting:
        return 1
    want = min(target_steps, N)
    for min_steps in (want, 2, 1):
        cands = [d for d in fitting if N // d >= min_steps]
        if cands:
            return max(cands)
    return 1


def resblock_forward(x_nhwc, params, *, size=3, dil=1):
    """Eval-mode ResBlock forward on NHWC input; returns NHWC float32 of shape (N, H, W, C)."""
    if dil != 1:
        # TODO(synk): dilation > 1 makes the PyTorch module's residual add shape-mismatch
        # (padding=(size-1)//2 is not 'same' for dil > 1); only dil = 1 is supported.
        raise NotImplementedError("ResBlock Pallas kernel supports dil=1 only.")
    if size % 2 != 1:
        raise NotImplementedError("ResBlock Pallas kernel supports odd kernel sizes only.")

    N, H, W, C = x_nhwc.shape
    K = size
    pad = (K - 1) // 2
    Cp = _round_up(C, 128)                       # lane-dense channel dimension
    SUB = 16                                     # bf16 sublane packing alignment
    lpad = _round_up(pad, SUB) if pad > 0 else 0
    Hp = H + 2 * pad
    Wsc = _round_up(lpad + W + pad, SUB)         # scratch width, aligned right halo slab
    eps = 1e-5

    # Pad: H symmetric, left W pad rounded to 16 (aligned residual read + aligned interior
    # store of the conv2 buffer), channels zero-padded to a multiple of 128.  bf16 halves
    # the input HBM bytes; best layout when W % 8 == 0 (otherwise correct but slower).
    xpad = jnp.pad(x_nhwc.astype(jnp.bfloat16),
                   ((0, 0), (pad, pad), (lpad, Wsc - lpad - W), (0, Cp - C)))

    def fold(conv_b, gamma, beta, mean, var):
        # BN(conv(x) + conv_b) == conv(x) * scale + bias   (eval-mode BN)
        scale = gamma / jnp.sqrt(var + eps)
        bias = (conv_b - mean) * scale + beta
        scale = jnp.pad(scale.astype(jnp.float32), (0, Cp - C))
        bias = jnp.pad(bias.astype(jnp.float32), (0, Cp - C))
        return scale.reshape(1, Cp), bias.reshape(1, Cp)

    def fold_w(w):  # (K, K, Cin, Cout) HWIO -> (K*K*Cp, Cp) im2col-layout bf16 weight
        w = jnp.pad(w.astype(jnp.float32), ((0, 0), (0, 0), (0, Cp - C), (0, Cp - C)))
        return w.reshape(K * K * Cp, Cp).astype(jnp.bfloat16)

    s1, b1 = fold(params["b1"], params["g1"], params["beta1"], params["m1"], params["v1"])
    s2, b2 = fold(params["b2"], params["g2"], params["beta2"], params["m2"], params["v2"])
    w1 = fold_w(params["w1"])
    w2 = fold_w(params["w2"])

    step_bytes = functools.partial(_step_vmem_bytes, H=H, W=W, C=C, Cp=Cp,
                                   Hp=Hp, Wsc=Wsc, K=K)
    Nb = _pick_block_batch(N, step_bytes)

    kernel = functools.partial(_resblock_kernel, Nb=Nb, H=H, W=W, C=C, Cp=Cp, K=K,
                               pad=pad, lpad=lpad, dil=dil)

    # Advisory cost estimate: two convs (2 flops per MAC), input/weight/output bytes.
    flops = 4 * N * H * W * (K * K * Cp) * Cp
    bytes_accessed = (xpad.size * 2 + 2 * (K * K * Cp) * Cp * 2
                      + 4 * Cp * 4 + N * H * W * C * 4)

    out = pl.pallas_call(
        kernel,
        out_shape=jax.ShapeDtypeStruct((N, H, W, C), jnp.float32),
        grid_spec=pltpu.PrefetchScalarGridSpec(
            num_scalar_prefetch=0,
            grid=(N // Nb,),
            in_specs=[
                pl.BlockSpec((Nb, Hp, Wsc, Cp), lambda n: (n, 0, 0, 0)),   # padded input (bf16)
                pl.BlockSpec((K * K * Cp, Cp), lambda n: (0, 0)),          # w1 (im2col, bf16)
                pl.BlockSpec((1, Cp), lambda n: (0, 0)),                   # scale1 (f32)
                pl.BlockSpec((1, Cp), lambda n: (0, 0)),                   # bias1  (f32)
                pl.BlockSpec((K * K * Cp, Cp), lambda n: (0, 0)),          # w2 (im2col, bf16)
                pl.BlockSpec((1, Cp), lambda n: (0, 0)),                   # scale2 (f32)
                pl.BlockSpec((1, Cp), lambda n: (0, 0)),                   # bias2  (f32)
            ],
            out_specs=pl.BlockSpec((Nb, H, W, C), lambda n: (n, 0, 0, 0)),
            scratch_shapes=[pltpu.VMEM((Nb, Hp, Wsc, Cp), jnp.bfloat16)],
        ),
        compiler_params=pltpu.CompilerParams(
            dimension_semantics=("parallel",),      # independent images -> 2 TCs on v7x
            vmem_limit_bytes=32 * 1024 * 1024),
        cost_estimate=pl.CostEstimate(flops=flops, transcendentals=0,
                                      bytes_accessed=bytes_accessed),
    )(xpad, w1, s1, b1, w2, s2, b2)

    return out


def _reference(x_nhwc, params, *, size=3, dil=1):
    """Pure-JAX f32 reference (eval-mode BN), used to validate the kernel."""
    pad = (size - 1) // 2
    eps = 1e-5

    def conv(x, w, b):
        y = jax.lax.conv_general_dilated(
            x, w, window_strides=(1, 1), padding=[(pad, pad), (pad, pad)],
            rhs_dilation=(dil, dil), dimension_numbers=("NHWC", "HWIO", "NHWC"),
            precision=jax.lax.Precision.HIGHEST)
        return y + b

    def bn(x, g, bb, m, v):
        return (x - m) / jnp.sqrt(v + eps) * g + bb

    h = jax.nn.relu(bn(conv(x_nhwc, params["w1"], params["b1"]),
                       params["g1"], params["beta1"], params["m1"], params["v1"]))
    r = bn(conv(h, params["w2"], params["b2"]),
           params["g2"], params["beta2"], params["m2"], params["v2"])
    return jax.nn.relu(r + x_nhwc)


if __name__ == "__main__":
    key = jax.random.PRNGKey(0)
    N, C, H, W = 2, 64, 16, 16     # hidden=64 (module default), small spatial
    size, dil = 3, 1
    ks = jax.random.split(key, 13)

    # Input in PyTorch NCHW convention, then transposed to the kernel's NHWC layout.
    x_nchw = jax.random.normal(ks[0], (N, C, H, W), jnp.float32)
    x_nhwc = jnp.transpose(x_nchw, (0, 2, 3, 1))

    params = {
        # conv weights generated directly in HWIO = (K, K, Cin, Cout)
        "w1": 0.05 * jax.random.normal(ks[1], (size, size, C, C), jnp.float32),
        "b1": 0.1 * jax.random.normal(ks[2], (C,), jnp.float32),
        "g1": 1.0 + 0.1 * jax.random.normal(ks[3], (C,), jnp.float32),
        "beta1": 0.1 * jax.random.normal(ks[4], (C,), jnp.float32),
        "m1": 0.1 * jax.random.normal(ks[5], (C,), jnp.float32),
        "v1": 0.5 + jax.random.uniform(ks[6], (C,), jnp.float32),
        "w2": 0.05 * jax.random.normal(ks[7], (size, size, C, C), jnp.float32),
        "b2": 0.1 * jax.random.normal(ks[8], (C,), jnp.float32),
        "g2": 1.0 + 0.1 * jax.random.normal(ks[9], (C,), jnp.float32),
        "beta2": 0.1 * jax.random.normal(ks[10], (C,), jnp.float32),
        "m2": 0.1 * jax.random.normal(ks[11], (C,), jnp.float32),
        "v2": 0.5 + jax.random.uniform(ks[12], (C,), jnp.float32),
    }

    out = jax.block_until_ready(resblock_forward(x_nhwc, params, size=size, dil=dil))
    ref = jax.block_until_ready(_reference(x_nhwc, params, size=size, dil=dil))

    assert out.shape == (N, H, W, C)
    # bf16 MXU operands with f32 accumulation across two chained 3x3x64 convs: tolerance
    # loosened accordingly (reference is computed at Precision.HIGHEST).
    np.testing.assert_allclose(np.asarray(out), np.asarray(ref), atol=8e-2, rtol=5e-2)
    print("KERNEL_OK")
</pallas_src>

<mosaic_0001>
module attributes {stable_mosaic.version = 11 : i64} {
  func.func @_resblock_kernel(%arg0: i32, %arg1: memref<1x18x48x128xbf16, #tpu.memory_space<vmem>>, %arg2: memref<1152x128xbf16, #tpu.memory_space<vmem>>, %arg3: memref<1x128xf32, #tpu.memory_space<vmem>>, %arg4: memref<1x128xf32, #tpu.memory_space<vmem>>, %arg5: memref<1152x128xbf16, #tpu.memory_space<vmem>>, %arg6: memref<1x128xf32, #tpu.memory_space<vmem>>, %arg7: memref<1x128xf32, #tpu.memory_space<vmem>>, %arg8: memref<1x16x16x64xf32, #tpu.memory_space<vmem>>, %arg9: memref<1x18x48x128xbf16, #tpu.memory_space<vmem>>) attributes {dimension_semantics = [#tpu.dimension_semantics<parallel>], iteration_bounds = array<i64: 2>, scalar_prefetch = 0 : i64, scratch_operands = 1 : i64, tpu.core_type = #tpu.core_type<tc>, window_params = [{transform_indices = @transform_0, window_bounds = array<i64: 1, 18, 48, 128>}, {pipeline_mode = #tpu.pipeline_mode<synchronous>, transform_indices = @transform_1, window_bounds = array<i64: 1152, 128>}, {pipeline_mode = #tpu.pipeline_mode<synchronous>, transform_indices = @transform_2, window_bounds = array<i64: 1, 128>}, {pipeline_mode = #tpu.pipeline_mode<synchronous>, transform_indices = @transform_3, window_bounds = array<i64: 1, 128>}, {pipeline_mode = #tpu.pipeline_mode<synchronous>, transform_indices = @transform_4, window_bounds = array<i64: 1152, 128>}, {pipeline_mode = #tpu.pipeline_mode<synchronous>, transform_indices = @transform_5, window_bounds = array<i64: 1, 128>}, {pipeline_mode = #tpu.pipeline_mode<synchronous>, transform_indices = @transform_6, window_bounds = array<i64: 1, 128>}, {transform_indices = @transform_7, window_bounds = array<i64: 1, 16, 16, 64>}]} {
    %cst = arith.constant 0.000000e+00 : f32
    %0 = vector.broadcast %cst : f32 to vector<256x128xf32>
    %c0 = arith.constant 0 : index
    %c0_0 = arith.constant 0 : index
    %c15 = arith.constant 15 : index
    %c0_1 = arith.constant 0 : index
    %1 = vector.load %arg1[%c0, %c0_0, %c15, %c0_1] : memref<1x18x48x128xbf16, #tpu.memory_space<vmem>>, vector<1x16x16x128xbf16>
    %2 = vector.shape_cast %1 : vector<1x16x16x128xbf16> to vector<256x128xbf16>
    %c0_2 = arith.constant 0 : index
    %c0_3 = arith.constant 0 : index
    %3 = vector.load %arg2[%c0_2, %c0_3] : memref<1152x128xbf16, #tpu.memory_space<vmem>>, vector<128x128xbf16>
    %cst_4 = arith.constant dense<0.000000e+00> : vector<256x128xf32>
    %4 = tpu.matmul %2, %3, %cst_4 {dimension_numbers = #tpu.dot_dimension_numbers<[1], [0], [0], [1], [0, 0, 1, 1], [], []>} : vector<256x128xbf16>, vector<128x128xbf16>, vector<256x128xf32> -> vector<256x128xf32>
    %5 = arith.addf %0, %4 : vector<256x128xf32>
    %c0_5 = arith.constant 0 : index
    %c0_6 = arith.constant 0 : index
    %c16 = arith.constant 16 : index
    %c0_7 = arith.constant 0 : index
    %6 = vector.load %arg1[%c0_5, %c0_6, %c16, %c0_7] : memref<1x18x48x128xbf16, #tpu.memory_space<vmem>>, vector<1x16x16x128xbf16>
    %7 = vector.shape_cast %6 : vector<1x16x16x128xbf16> to vector<256x128xbf16>
    %c128 = arith.constant 128 : index
    %c0_8 = arith.constant 0 : index
    %8 = vector.load %arg2[%c128, %c0_8] : memref<1152x128xbf16, #tpu.memory_space<vmem>>, vector<128x128xbf16>
    %cst_9 = arith.constant dense<0.000000e+00> : vector<256x128xf32>
    %9 = tpu.matmul %7, %8, %cst_9 {dimension_numbers = #tpu.dot_dimension_numbers<[1], [0], [0], [1], [0, 0, 1, 1], [], []>} : vector<256x128xbf16>, vector<128x128xbf16>, vector<256x128xf32> -> vector<256x128xf32>
    %10 = arith.addf %5, %9 : vector<256x128xf32>
    %c0_10 = arith.constant 0 : index
    %c0_11 = arith.constant 0 : index
    %c17 = arith.constant 17 : index
    %c0_12 = arith.constant 0 : index
    %11 = vector.load %arg1[%c0_10, %c0_11, %c17, %c0_12] : memref<1x18x48x128xbf16, #tpu.memory_space<vmem>>, vector<1x16x16x128xbf16>
    %12 = vector.shape_cast %11 : vector<1x16x16x128xbf16> to vector<256x128xbf16>
    %c256 = arith.constant 256 : index
    %c0_13 = arith.constant 0 : index
    %13 = vector.load %arg2[%c256, %c0_13] : memref<1152x128xbf16, #tpu.memory_space<vmem>>, vector<128x128xbf16>
    %cst_14 = arith.constant dense<0.000000e+00> : vector<256x128xf32>
    %14 = tpu.matmul %12, %13, %cst_14 {dimension_numbers = #tpu.dot_dimension_numbers<[1], [0], [0], [1], [0, 0, 1, 1], [], []>} : vector<256x128xbf16>, vector<128x128xbf16>, vector<256x128xf32> -> vector<256x128xf32>
    %15 = arith.addf %10, %14 : vector<256x128xf32>
    %c0_15 = arith.constant 0 : index
    %c1 = arith.constant 1 : index
    %c15_16 = arith.constant 15 : index
    %c0_17 = arith.constant 0 : index
    %16 = vector.load %arg1[%c0_15, %c1, %c15_16, %c0_17] : memref<1x18x48x128xbf16, #tpu.memory_space<vmem>>, vector<1x16x16x128xbf16>
    %17 = vector.shape_cast %16 : vector<1x16x16x128xbf16> to vector<256x128xbf16>
    %c384 = arith.constant 384 : index
    %c0_18 = arith.constant 0 : index
    %18 = vector.load %arg2[%c384, %c0_18] : memref<1152x128xbf16, #tpu.memory_space<vmem>>, vector<128x128xbf16>
    %cst_19 = arith.constant dense<0.000000e+00> : vector<256x128xf32>
    %19 = tpu.matmul %17, %18, %cst_19 {dimension_numbers = #tpu.dot_dimension_numbers<[1], [0], [0], [1], [0, 0, 1, 1], [], []>} : vector<256x128xbf16>, vector<128x128xbf16>, vector<256x128xf32> -> vector<256x128xf32>
    %20 = arith.addf %15, %19 : vector<256x128xf32>
    %c0_20 = arith.constant 0 : index
    %c1_21 = arith.constant 1 : index
    %c16_22 = arith.constant 16 : index
    %c0_23 = arith.constant 0 : index
    %21 = vector.load %arg1[%c0_20, %c1_21, %c16_22, %c0_23] : memref<1x18x48x128xbf16, #tpu.memory_space<vmem>>, vector<1x16x16x128xbf16>
    %22 = vector.shape_cast %21 : vector<1x16x16x128xbf16> to vector<256x128xbf16>
    %c512 = arith.constant 512 : index
    %c0_24 = arith.constant 0 : index
    %23 = vector.load %arg2[%c512, %c0_24] : memref<1152x128xbf16, #tpu.memory_space<vmem>>, vector<128x128xbf16>
    %cst_25 = arith.constant dense<0.000000e+00> : vector<256x128xf32>
    %24 = tpu.matmul %22, %23, %cst_25 {dimension_numbers = #tpu.dot_dimension_numbers<[1], [0], [0], [1], [0, 0, 1, 1], [], []>} : vector<256x128xbf16>, vector<128x128xbf16>, vector<256x128xf32> -> vector<256x128xf32>
    %25 = arith.addf %20, %24 : vector<256x128xf32>
    %c0_26 = arith.constant 0 : index
    %c1_27 = arith.constant 1 : index
    %c17_28 = arith.constant 17 : index
    %c0_29 = arith.constant 0 : index
    %26 = vector.load %arg1[%c0_26, %c1_27, %c17_28, %c0_29] : memref<1x18x48x128xbf16, #tpu.memory_space<vmem>>, vector<1x16x16x128xbf16>
    %27 = vector.shape_cast %26 : vector<1x16x16x128xbf16> to vector<256x128xbf16>
    %c640 = arith.constant 640 : index
    %c0_30 = arith.constant 0 : index
    %28 = vector.load %arg2[%c640, %c0_30] : memref<1152x128xbf16, #tpu.memory_space<vmem>>, vector<128x128xbf16>
    %cst_31 = arith.constant dense<0.000000e+00> : vector<256x128xf32>
    %29 = tpu.matmul %27, %28, %cst_31 {dimension_numbers = #tpu.dot_dimension_numbers<[1], [0], [0], [1], [0, 0, 1, 1], [], []>} : vector<256x128xbf16>, vector<128x128xbf16>, vector<256x128xf32> -> vector<256x128xf32>
    %30 = arith.addf %25, %29 : vector<256x128xf32>
    %c0_32 = arith.constant 0 : index
    %c2 = arith.constant 2 : index
    %c15_33 = arith.constant 15 : index
    %c0_34 = arith.constant 0 : index
    %31 = vector.load %arg1[%c0_32, %c2, %c15_33, %c0_34] : memref<1x18x48x128xbf16, #tpu.memory_space<vmem>>, vector<1x16x16x128xbf16>
    %32 = vector.shape_cast %31 : vector<1x16x16x128xbf16> to vector<256x128xbf16>
    %c768 = arith.constant 768 : index
    %c0_35 = arith.constant 0 : index
    %33 = vector.load %arg2[%c768, %c0_35] : memref<1152x128xbf16, #tpu.memory_space<vmem>>, vector<128x128xbf16>
    %cst_36 = arith.constant dense<0.000000e+00> : vector<256x128xf32>
    %34 = tpu.matmul %32, %33, %cst_36 {dimension_numbers = #tpu.dot_dimension_numbers<[1], [0], [0], [1], [0, 0, 1, 1], [], []>} : vector<256x128xbf16>, vector<128x128xbf16>, vector<256x128xf32> -> vector<256x128xf32>
    %35 = arith.addf %30, %34 : vector<256x128xf32>
    %c0_37 = arith.constant 0 : index
    %c2_38 = arith.constant 2 : index
    %c16_39 = arith.constant 16 : index
    %c0_40 = arith.constant 0 : index
    %36 = vector.load %arg1[%c0_37, %c2_38, %c16_39, %c0_40] : memref<1x18x48x128xbf16, #tpu.memory_space<vmem>>, vector<1x16x16x128xbf16>
    %37 = vector.shape_cast %36 : vector<1x16x16x128xbf16> to vector<256x128xbf16>
    %c896 = arith.constant 896 : index
    %c0_41 = arith.constant 0 : index
    %38 = vector.load %arg2[%c896, %c0_41] : memref<1152x128xbf16, #tpu.memory_space<vmem>>, vector<128x128xbf16>
    %cst_42 = arith.constant dense<0.000000e+00> : vector<256x128xf32>
    %39 = tpu.matmul %37, %38, %cst_42 {dimension_numbers = #tpu.dot_dimension_numbers<[1], [0], [0], [1], [0, 0, 1, 1], [], []>} : vector<256x128xbf16>, vector<128x128xbf16>, vector<256x128xf32> -> vector<256x128xf32>
    %40 = arith.addf %35, %39 : vector<256x128xf32>
    %c0_43 = arith.constant 0 : index
    %c2_44 = arith.constant 2 : index
    %c17_45 = arith.constant 17 : index
    %c0_46 = arith.constant 0 : index
    %41 = vector.load %arg1[%c0_43, %c2_44, %c17_45, %c0_46] : memref<1x18x48x128xbf16, #tpu.memory_space<vmem>>, vector<1x16x16x128xbf16>
    %42 = vector.shape_cast %41 : vector<1x16x16x128xbf16> to vector<256x128xbf16>
    %c1024 = arith.constant 1024 : index
    %c0_47 = arith.constant 0 : index
    %43 = vector.load %arg2[%c1024, %c0_47] : memref<1152x128xbf16, #tpu.memory_space<vmem>>, vector<128x128xbf16>
    %cst_48 = arith.constant dense<0.000000e+00> : vector<256x128xf32>
    %44 = tpu.matmul %42, %43, %cst_48 {dimension_numbers = #tpu.dot_dimension_numbers<[1], [0], [0], [1], [0, 0, 1, 1], [], []>} : vector<256x128xbf16>, vector<128x128xbf16>, vector<256x128xf32> -> vector<256x128xf32>
    %45 = arith.addf %40, %44 : vector<256x128xf32>
    %c0_49 = arith.constant 0 : index
    %c0_50 = arith.constant 0 : index
    %46 = vector.load %arg3[%c0_49, %c0_50] : memref<1x128xf32, #tpu.memory_space<vmem>>, vector<1x128xf32>
    %47 = vector.broadcast %46 : vector<1x128xf32> to vector<256x128xf32>
    %48 = arith.mulf %45, %47 : vector<256x128xf32>
    %c0_51 = arith.constant 0 : index
    %c0_52 = arith.constant 0 : index
    %49 = vector.load %arg4[%c0_51, %c0_52] : memref<1x128xf32, #tpu.memory_space<vmem>>, vector<1x128xf32>
    %50 = vector.broadcast %49 : vector<1x128xf32> to vector<256x128xf32>
    %51 = arith.addf %48, %50 : vector<256x128xf32>
    %cst_53 = arith.constant 0.000000e+00 : f32
    %52 = vector.broadcast %cst_53 : f32 to vector<256x128xf32>
    %53 = arith.maximumf %51, %52 : vector<256x128xf32>
    %cst_54 = arith.constant 0.000000e+00 : bf16
    %54 = vector.broadcast %cst_54 : bf16 to vector<1x1x48x128xbf16>
    %c0_55 = arith.constant 0 : index
    %c0_56 = arith.constant 0 : index
    %c0_57 = arith.constant 0 : index
    %c0_58 = arith.constant 0 : index
    %55 = vector.load %arg9[%c0_55, %c0_56, %c0_57, %c0_58] : memref<1x18x48x128xbf16, #tpu.memory_space<vmem>>, vector<1x1x48x128xbf16>
    tpu.vector_store %arg9[%c0_55, %c0_56, %c0_57, %c0_58], %54 {strides = array<i32>} : memref<1x18x48x128xbf16, #tpu.memory_space<vmem>>, vector<1x1x48x128xbf16>,
    %c0_59 = arith.constant 0 : index
    %c17_60 = arith.constant 17 : index
    %c0_61 = arith.constant 0 : index
    %c0_62 = arith.constant 0 : index
    %56 = vector.load %arg9[%c0_59, %c17_60, %c0_61, %c0_62] : memref<1x18x48x128xbf16, #tpu.memory_space<vmem>>, vector<1x1x48x128xbf16>
    tpu.vector_store %arg9[%c0_59, %c17_60, %c0_61, %c0_62], %54 {strides = array<i32>} : memref<1x18x48x128xbf16, #tpu.memory_space<vmem>>, vector<1x1x48x128xbf16>,
    %cst_63 = arith.constant 0.000000e+00 : bf16
    %57 = vector.broadcast %cst_63 : bf16 to vector<1x18x16x128xbf16>
    %c0_64 = arith.constant 0 : index
    %c0_65 = arith.constant 0 : index
    %c0_66 = arith.constant 0 : index
    %c0_67 = arith.constant 0 : index
    %58 = vector.load %arg9[%c0_64, %c0_65, %c0_66, %c0_67] : memref<1x18x48x128xbf16, #tpu.memory_space<vmem>>, vector<1x18x16x128xbf16>
    tpu.vector_store %arg9[%c0_64, %c0_65, %c0_66, %c0_67], %57 {strides = array<i32>} : memref<1x18x48x128xbf16, #tpu.memory_space<vmem>>, vector<1x18x16x128xbf16>,
    %cst_68 = arith.constant 0.000000e+00 : bf16
    %59 = vector.broadcast %cst_68 : bf16 to vector<1x18x16x128xbf16>
    %c0_69 = arith.constant 0 : index
    %c0_70 = arith.constant 0 : index
    %c32 = arith.constant 32 : index
    %c0_71 = arith.constant 0 : index
    %60 = vector.load %arg9[%c0_69, %c0_70, %c32, %c0_71] : memref<1x18x48x128xbf16, #tpu.memory_space<vmem>>, vector<1x18x16x128xbf16>
    tpu.vector_store %arg9[%c0_69, %c0_70, %c32, %c0_71], %59 {strides = array<i32>} : memref<1x18x48x128xbf16, #tpu.memory_space<vmem>>, vector<1x18x16x128xbf16>,
    %61 = arith.truncf %53 : vector<256x128xf32> to vector<256x128xbf16>
    %62 = vector.shape_cast %61 : vector<256x128xbf16> to vector<1x16x16x128xbf16>
    %c0_72 = arith.constant 0 : index
    %c1_73 = arith.constant 1 : index
    %c16_74 = arith.constant 16 : index
    %c0_75 = arith.constant 0 : index
    %63 = vector.load %arg9[%c0_72, %c1_73, %c16_74, %c0_75] : memref<1x18x48x128xbf16, #tpu.memory_space<vmem>>, vector<1x16x16x128xbf16>
    tpu.vector_store %arg9[%c0_72, %c1_73, %c16_74, %c0_75], %62 {strides = array<i32>} : memref<1x18x48x128xbf16, #tpu.memory_space<vmem>>, vector<1x16x16x128xbf16>,
    %cst_76 = arith.constant 0.000000e+00 : f32
    %64 = vector.broadcast %cst_76 : f32 to vector<256x128xf32>
    %c0_77 = arith.constant 0 : index
    %c0_78 = arith.constant 0 : index
    %c15_79 = arith.constant 15 : index
    %c0_80 = arith.constant 0 : index
    %65 = vector.load %arg9[%c0_77, %c0_78, %c15_79, %c0_80] : memref<1x18x48x128xbf16, #tpu.memory_space<vmem>>, vector<1x16x16x128xbf16>
    %66 = vector.shape_cast %65 : vector<1x16x16x128xbf16> to vector<256x128xbf16>
    %c0_81 = arith.constant 0 : index
    %c0_82 = arith.constant 0 : index
    %67 = vector.load %arg5[%c0_81, %c0_82] : memref<1152x128xbf16, #tpu.memory_space<vmem>>, vector<128x128xbf16>
    %cst_83 = arith.constant dense<0.000000e+00> : vector<256x128xf32>
    %68 = tpu.matmul %66, %67, %cst_83 {dimension_numbers = #tpu.dot_dimension_numbers<[1], [0], [0], [1], [0, 0, 1, 1], [], []>} : vector<256x128xbf16>, vector<128x128xbf16>, vector<256x128xf32> -> vector<256x128xf32>
    %69 = arith.addf %64, %68 : vector<256x128xf32>
    %c0_84 = arith.constant 0 : index
    %c0_85 = arith.constant 0 : index
    %c16_86 = arith.constant 16 : index
    %c0_87 = arith.constant 0 : index
    %70 = vector.load %arg9[%c0_84, %c0_85, %c16_86, %c0_87] : memref<1x18x48x128xbf16, #tpu.memory_space<vmem>>, vector<1x16x16x128xbf16>
    %71 = vector.shape_cast %70 : vector<1x16x16x128xbf16> to vector<256x128xbf16>
    %c128_88 = arith.constant 128 : index
    %c0_89 = arith.constant 0 : index
    %72 = vector.load %arg5[%c128_88, %c0_89] : memref<1152x128xbf16, #tpu.memory_space<vmem>>, vector<128x128xbf16>
    %cst_90 = arith.constant dense<0.000000e+00> : vector<256x128xf32>
    %73 = tpu.matmul %71, %72, %cst_90 {dimension_numbers = #tpu.dot_dimension_numbers<[1], [0], [0], [1], [0, 0, 1, 1], [], []>} : vector<256x128xbf16>, vector<128x128xbf16>, vector<256x128xf32> -> vector<256x128xf32>
    %74 = arith.addf %69, %73 : vector<256x128xf32>
    %c0_91 = arith.constant 0 : index
    %c0_92 = arith.constant 0 : index
    %c17_93 = arith.constant 17 : index
    %c0_94 = arith.constant 0 : index
    %75 = vector.load %arg9[%c0_91, %c0_92, %c17_93, %c0_94] : memref<1x18x48x128xbf16, #tpu.memory_space<vmem>>, vector<1x16x16x128xbf16>
    %76 = vector.shape_cast %75 : vector<1x16x16x128xbf16> to vector<256x128xbf16>
    %c256_95 = arith.constant 256 : index
    %c0_96 = arith.constant 0 : index
    %77 = vector.load %arg5[%c256_95, %c0_96] : memref<1152x128xbf16, #tpu.memory_space<vmem>>, vector<128x128xbf16>
    %cst_97 = arith.constant dense<0.000000e+00> : vector<256x128xf32>
    %78 = tpu.matmul %76, %77, %cst_97 {dimension_numbers = #tpu.dot_dimension_numbers<[1], [0], [0], [1], [0, 0, 1, 1], [], []>} : vector<256x128xbf16>, vector<128x128xbf16>, vector<256x128xf32> -> vector<256x128xf32>
    %79 = arith.addf %74, %78 : vector<256x128xf32>
    %c0_98 = arith.constant 0 : index
    %c1_99 = arith.constant 1 : index
    %c15_100 = arith.constant 15 : index
    %c0_101 = arith.constant 0 : index
    %80 = vector.load %arg9[%c0_98, %c1_99, %c15_100, %c0_101] : memref<1x18x48x128xbf16, #tpu.memory_space<vmem>>, vector<1x16x16x128xbf16>
    %81 = vector.shape_cast %80 : vector<1x16x16x128xbf16> to vector<256x128xbf16>
    %c384_102 = arith.constant 384 : index
    %c0_103 = arith.constant 0 : index
    %82 = vector.load %arg5[%c384_102, %c0_103] : memref<1152x128xbf16, #tpu.memory_space<vmem>>, vector<128x128xbf16>
    %cst_104 = arith.constant dense<0.000000e+00> : vector<256x128xf32>
    %83 = tpu.matmul %81, %82, %cst_104 {dimension_numbers = #tpu.dot_dimension_numbers<[1], [0], [0], [1], [0, 0, 1, 1], [], []>} : vector<256x128xbf16>, vector<128x128xbf16>, vector<256x128xf32> -> vector<256x128xf32>
    %84 = arith.addf %79, %83 : vector<256x128xf32>
    %c0_105 = arith.constant 0 : index
    %c1_106 = arith.constant 1 : index
    %c16_107 = arith.constant 16 : index
    %c0_108 = arith.constant 0 : index
    %85 = vector.load %arg9[%c0_105, %c1_106, %c16_107, %c0_108] : memref<1x18x48x128xbf16, #tpu.memory_space<vmem>>, vector<1x16x16x128xbf16>
    %86 = vector.shape_cast %85 : vector<1x16x16x128xbf16> to vector<256x128xbf16>
    %c512_109 = arith.constant 512 : index
    %c0_110 = arith.constant 0 : index
    %87 = vector.load %arg5[%c512_109, %c0_110] : memref<1152x128xbf16, #tpu.memory_space<vmem>>, vector<128x128xbf16>
    %cst_111 = arith.constant dense<0.000000e+00> : vector<256x128xf32>
    %88 = tpu.matmul %86, %87, %cst_111 {dimension_numbers = #tpu.dot_dimension_numbers<[1], [0], [0], [1], [0, 0, 1, 1], [], []>} : vector<256x128xbf16>, vector<128x128xbf16>, vector<256x128xf32> -> vector<256x128xf32>
    %89 = arith.addf %84, %88 : vector<256x128xf32>
    %c0_112 = arith.constant 0 : index
    %c1_113 = arith.constant 1 : index
    %c17_114 = arith.constant 17 : index
    %c0_115 = arith.constant 0 : index
    %90 = vector.load %arg9[%c0_112, %c1_113, %c17_114, %c0_115] : memref<1x18x48x128xbf16, #tpu.memory_space<vmem>>, vector<1x16x16x128xbf16>
    %91 = vector.shape_cast %90 : vector<1x16x16x128xbf16> to vector<256x128xbf16>
    %c640_116 = arith.constant 640 : index
    %c0_117 = arith.constant 0 : index
    %92 = vector.load %arg5[%c640_116, %c0_117] : memref<1152x128xbf16, #tpu.memory_space<vmem>>, vector<128x128xbf16>
    %cst_118 = arith.constant dense<0.000000e+00> : vector<256x128xf32>
    %93 = tpu.matmul %91, %92, %cst_118 {dimension_numbers = #tpu.dot_dimension_numbers<[1], [0], [0], [1], [0, 0, 1, 1], [], []>} : vector<256x128xbf16>, vector<128x128xbf16>, vector<256x128xf32> -> vector<256x128xf32>
    %94 = arith.addf %89, %93 : vector<256x128xf32>
    %c0_119 = arith.constant 0 : index
    %c2_120 = arith.constant 2 : index
    %c15_121 = arith.constant 15 : index
    %c0_122 = arith.constant 0 : index
    %95 = vector.load %arg9[%c0_119, %c2_120, %c15_121, %c0_122] : memref<1x18x48x128xbf16, #tpu.memory_space<vmem>>, vector<1x16x16x128xbf16>
    %96 = vector.shape_cast %95 : vector<1x16x16x128xbf16> to vector<256x128xbf16>
    %c768_123 = arith.constant 768 : index
    %c0_124 = arith.constant 0 : index
    %97 = vector.load %arg5[%c768_123, %c0_124] : memref<1152x128xbf16, #tpu.memory_space<vmem>>, vector<128x128xbf16>
    %cst_125 = arith.constant dense<0.000000e+00> : vector<256x128xf32>
    %98 = tpu.matmul %96, %97, %cst_125 {dimension_numbers = #tpu.dot_dimension_numbers<[1], [0], [0], [1], [0, 0, 1, 1], [], []>} : vector<256x128xbf16>, vector<128x128xbf16>, vector<256x128xf32> -> vector<256x128xf32>
    %99 = arith.addf %94, %98 : vector<256x128xf32>
    %c0_126 = arith.constant 0 : index
    %c2_127 = arith.constant 2 : index
    %c16_128 = arith.constant 16 : index
    %c0_129 = arith.constant 0 : index
    %100 = vector.load %arg9[%c0_126, %c2_127, %c16_128, %c0_129] : memref<1x18x48x128xbf16, #tpu.memory_space<vmem>>, vector<1x16x16x128xbf16>
    %101 = vector.shape_cast %100 : vector<1x16x16x128xbf16> to vector<256x128xbf16>
    %c896_130 = arith.constant 896 : index
    %c0_131 = arith.constant 0 : index
    %102 = vector.load %arg5[%c896_130, %c0_131] : memref<1152x128xbf16, #tpu.memory_space<vmem>>, vector<128x128xbf16>
    %cst_132 = arith.constant dense<0.000000e+00> : vector<256x128xf32>
    %103 = tpu.matmul %101, %102, %cst_132 {dimension_numbers = #tpu.dot_dimension_numbers<[1], [0], [0], [1], [0, 0, 1, 1], [], []>} : vector<256x128xbf16>, vector<128x128xbf16>, vector<256x128xf32> -> vector<256x128xf32>
    %104 = arith.addf %99, %103 : vector<256x128xf32>
    %c0_133 = arith.constant 0 : index
    %c2_134 = arith.constant 2 : index
    %c17_135 = arith.constant 17 : index
    %c0_136 = arith.constant 0 : index
    %105 = vector.load %arg9[%c0_133, %c2_134, %c17_135, %c0_136] : memref<1x18x48x128xbf16, #tpu.memory_space<vmem>>, vector<1x16x16x128xbf16>
    %106 = vector.shape_cast %105 : vector<1x16x16x128xbf16> to vector<256x128xbf16>
    %c1024_137 = arith.constant 1024 : index
    %c0_138 = arith.constant 0 : index
    %107 = vector.load %arg5[%c1024_137, %c0_138] : memref<1152x128xbf16, #tpu.memory_space<vmem>>, vector<128x128xbf16>
    %cst_139 = arith.constant dense<0.000000e+00> : vector<256x128xf32>
    %108 = tpu.matmul %106, %107, %cst_139 {dimension_numbers = #tpu.dot_dimension_numbers<[1], [0], [0], [1], [0, 0, 1, 1], [], []>} : vector<256x128xbf16>, vector<128x128xbf16>, vector<256x128xf32> -> vector<256x128xf32>
    %109 = arith.addf %104, %108 : vector<256x128xf32>
    %c0_140 = arith.constant 0 : index
    %c0_141 = arith.constant 0 : index
    %110 = vector.load %arg6[%c0_140, %c0_141] : memref<1x128xf32, #tpu.memory_space<vmem>>, vector<1x128xf32>
    %111 = vector.broadcast %110 : vector<1x128xf32> to vector<256x128xf32>
    %112 = arith.mulf %109, %111 : vector<256x128xf32>
    %c0_142 = arith.constant 0 : index
    %c0_143 = arith.constant 0 : index
    %113 = vector.load %arg7[%c0_142, %c0_143] : memref<1x128xf32, #tpu.memory_space<vmem>>, vector<1x128xf32>
    %114 = vector.broadcast %113 : vector<1x128xf32> to vector<256x128xf32>
    %115 = arith.addf %112, %114 : vector<256x128xf32>
    %c0_144 = arith.constant 0 : index
    %c1_145 = arith.constant 1 : index
    %c16_146 = arith.constant 16 : index
    %c0_147 = arith.constant 0 : index
    %116 = vector.load %arg1[%c0_144, %c1_145, %c16_146, %c0_147] : memref<1x18x48x128xbf16, #tpu.memory_space<vmem>>, vector<1x16x16x128xbf16>
    %117 = vector.shape_cast %116 : vector<1x16x16x128xbf16> to vector<256x128xbf16>
    %118 = arith.extf %117 : vector<256x128xbf16> to vector<256x128xf32>
    %119 = arith.addf %115, %118 : vector<256x128xf32>
    %cst_148 = arith.constant 0.000000e+00 : f32
    %120 = vector.broadcast %cst_148 : f32 to vector<256x128xf32>
    %121 = arith.maximumf %119, %120 : vector<256x128xf32>
    %122 = vector.extract_strided_slice %121 {offsets = [0, 0], sizes = [256, 64], strides = [1, 1]} : vector<256x128xf32> to vector<256x64xf32>
    %123 = vector.shape_cast %122 : vector<256x64xf32> to vector<1x16x16x64xf32>
    %c0_149 = arith.constant 0 : index
    %c0_150 = arith.constant 0 : index
    %c0_151 = arith.constant 0 : index
    %c0_152 = arith.constant 0 : index
    %124 = vector.load %arg8[%c0_149, %c0_150, %c0_151, %c0_152] : memref<1x16x16x64xf32, #tpu.memory_space<vmem>>, vector<1x16x16x64xf32>
    tpu.vector_store %arg8[%c0_149, %c0_150, %c0_151, %c0_152], %123 {strides = array<i32>} : memref<1x16x16x64xf32, #tpu.memory_space<vmem>>, vector<1x16x16x64xf32>,
    return
  }
  func.func @transform_0(%arg0: i32) -> (i32, i32, i32, i32) {
    %c0_i32 = arith.constant 0 : i32
    %c0_i32_0 = arith.constant 0 : i32
    %c0_i32_1 = arith.constant 0 : i32
    %c0_i32_2 = arith.constant 0 : i32
    return %arg0, %c0_i32, %c0_i32_0, %c0_i32_1 : i32, i32, i32, i32
  }
  func.func @transform_1(%arg0: i32) -> (i32, i32) {
    %c0_i32 = arith.constant 0 : i32
    %c0_i32_0 = arith.constant 0 : i32
    %c0_i32_1 = arith.constant 0 : i32
    return %c0_i32, %c0_i32_0 : i32, i32
  }
  func.func @transform_2(%arg0: i32) -> (i32, i32) {
    %c0_i32 = arith.constant 0 : i32
    %c0_i32_0 = arith.constant 0 : i32
    %c0_i32_1 = arith.constant 0 : i32
    return %c0_i32, %c0_i32_0 : i32, i32
  }
  func.func @transform_3(%arg0: i32) -> (i32, i32) {
    %c0_i32 = arith.constant 0 : i32
    %c0_i32_0 = arith.constant 0 : i32
    %c0_i32_1 = arith.constant 0 : i32
    return %c0_i32, %c0_i32_0 : i32, i32
  }
  func.func @transform_4(%arg0: i32) -> (i32, i32) {
    %c0_i32 = arith.constant 0 : i32
    %c0_i32_0 = arith.constant 0 : i32
    %c0_i32_1 = arith.constant 0 : i32
    return %c0_i32, %c0_i32_0 : i32, i32
  }
  func.func @transform_5(%arg0: i32) -> (i32, i32) {
    %c0_i32 = arith.constant 0 : i32
    %c0_i32_0 = arith.constant 0 : i32
    %c0_i32_1 = arith.constant 0 : i32
    return %c0_i32, %c0_i32_0 : i32, i32
  }
  func.func @transform_6(%arg0: i32) -> (i32, i32) {
    %c0_i32 = arith.constant 0 : i32
    %c0_i32_0 = arith.constant 0 : i32
    %c0_i32_1 = arith.constant 0 : i32
    return %c0_i32, %c0_i32_0 : i32, i32
  }
  func.func @transform_7(%arg0: i32) -> (i32, i32, i32, i32) {
    %c0_i32 = arith.constant 0 : i32
    %c0_i32_0 = arith.constant 0 : i32
    %c0_i32_1 = arith.constant 0 : i32
    %c0_i32_2 = arith.constant 0 : i32
    return %arg0, %c0_i32, %c0_i32_0, %c0_i32_1 : i32, i32, i32, i32
  }
}

</mosaic_0001>

<bundles_post_ra>
// kernel: tpu_custom_call.1
= control target key start
LH: loop header
LB: loop body
LE: loop exit
PB: predicated region body
PF: predicated region fallthrough
CT: control target
= control target key end

     0   :  { %s18928_s0 = inlined_call_operand.hbm [shape: bf16[2,18,48,128], index: 0, kind: input, shape index: {}]   ;;  %s18929_s1 = inlined_call_operand.hbm [shape: bf16[1152,128], index: 1, kind: input, shape index: {}]   ;;  %s18930_s2 = inlined_call_operand.vmem [shape: f32[1,128], index: 2, kind: input, shape index: {}]   ;;  %s18931_s3 = inlined_call_operand.vmem [shape: f32[1,128], index: 3, kind: input, shape index: {}]   ;;  %s18932_s4 = inlined_call_operand.hbm [shape: bf16[1152,128], index: 4, kind: input, shape index: {}]   ;;  %s18933_s5 = inlined_call_operand.vmem [shape: f32[1,128], index: 5, kind: input, shape index: {}]   ;;  %s18934_s6 = inlined_call_operand.vmem [shape: f32[1,128], index: 6, kind: input, shape index: {}]   ;;  %s18935_s7 = inlined_call_operand.hbm [shape: f32[2,16,16,64], index: 7, kind: output, shape index: {}]  }
   0x1   :  { %18952 = sst [smem:[#allocation77_spill]] %s18929_s1 }
   0x2   :  { %12 = vsyncpa [#allocation4], 0 }
   0x3   :  { %14 = vsyncpa [#allocation4 + $0x1], 0 }
   0x4   :  { %15 = vsyncpa [#allocation7], 0 }
   0x5   :  { %16 = vsyncpa [#allocation5], 0 }
   0x6   :  { %18 = vsyncpa [#allocation5 + $0x1], 0  ;;  %s14726_s24 = smov 0   ;;  %s14728_s25 = smov 0  }
   0x7   :  { %s14730_s26 = smov 0   ;;  %s14732_s27 = smov 0  }
   0x8 LB: > { %s14747_s28 = sadd.s32 4294967295, %s14675_s27   ;;  %s11871_s29 = sadd.s32 4294967294, %s14675_s27   ;;  %s14675_s27 = sphi %s14732_s27, %s19345_s27   ;;  %s14671_s26 = sphi %s14730_s26, %s19344_s26   ;;  %s14667_s25 = sphi %s14728_s25, %s19343_s25   ;;  %s14663_s24 = sphi %s14726_s24, %s19342_s24  }
   0x9   : > { %p44_p0 = scmp.ne.s32.totalorder %s14667_s25, %s14663_s24  ;;  %p18938_p1 = scmp.eq.s32.totalorder %s14747_s28, 0 }
   0xa   : > { %p194_p2 = scmp.eq.s32.totalorder %s14747_s28, 1  ;;  %p200_p3 = scmp.eq.s32.totalorder %s11871_s29, 1 }
   0xb   : > { %p14756_p4 = por %p18938_p1, %p44_p0  ;;  %p11872_p5 = scmp.ge.s32.totalorder %s14675_s27, 1 }
   0xc   : > { %p14761_p6 = por %p200_p3, %p44_p0  ;;  %p207_p7 = scmp.lt.s32.totalorder %s14675_s27, 3 }
   0xd   : > { %s18953_s30 = scalar_select %p14756_p4, 1, 0 }
   0xe   : > { %s18954_s8 = scalar_select %p14761_p6, 1, 0 }
   0xf   : > { %p14766_p8 = pnand %p11872_p5, %p207_p7  ;;  %s14677_s10 = smov [#allocation6]  }
  0x10   : > { %s219_s11 = sshll.u32 %s14677_s10, 4  ;;  %s14678_s13 = smov [#allocation8]   ;;  %s220_s11 = int_to_ptr.vmem [resolvable:$true] %s219_s11 }
  0x11   : > { %s18955_s9 = scalar_select %p14766_p8, 1, 0 }
  0x12   : > { %p14194_p9 = pneg %p14766_p8  ;;  %s238_s14 = sshll.u32 %s14678_s13, 4  ;;  %s239_s14 = int_to_ptr.vmem [resolvable:$true] %s238_s14 }
  0x13   : > { %s14538_s15 = scalar_lea.vmem %s220_s11, 9216  ;;  %p14546_p5 = scmp.lt.s32.totalorder %s220_s11, %s220_s11 }
  0x14   : > { %p14775_p11 = pnand %p14194_p9, %p18938_p1  ;;  %p14539_p13 = scmp.ne.s32.totalorder %s220_s11, %s14538_s15 }
  0x15   : > { %p14547_p7 = scmp.lt.s32.totalorder %s14538_s15, %s14538_s15 }
  0x16   : > { %p14529_p12 = pneg %p14775_p11 }
  0x17   : > { %p14548_p10 = por %p14547_p7, %p14546_p5 }
  0x18   : > { %p14541_p0 = pnand %p14539_p13, %p14529_p12 }
  0x1a   : > { %p14542_p3 = pneg %p14541_p0 }
  0x1c   : > { %p14549_p9 = pnand %p14548_p10, %p14542_p3 }
  0x1e   : > { %14552 = shalt.err (!%p14549_p9)
}
  0x1f   : > { %s18936_s16 = smov 64   ;;  %s18937_s17 = smov 4  }
  0x20   : > { %s18957_s1 = sld [smem:[#allocation77_spill]]  ;;  %s14564_s20 = scalar_lea.vmem %s239_s14, 9216 }
  0x21   : > { %p14565_p13 = scmp.ne.s32.totalorder %s239_s14, %s14564_s20  ;;  %p14572_p10 = scmp.lt.s32.totalorder %s239_s14, %s239_s14 }
  0x22   : > { %p14573_p3 = scmp.lt.s32.totalorder %s14564_s20, %s14564_s20 }
  0x23   : > { %p14567_p0 = pnand %p14565_p13, %p14529_p12 }
  0x24   : > { %p14574_p7 = por %p14573_p3, %p14572_p10 }
  0x25   : > { %p14568_p5 = pneg %p14567_p0 }
  0x26   : > { %14197 = dma.hbm_to_vmem [thread:$0]  (!%p14775_p11), %s18957_s1, 9216, %s220_s11, [#allocation7], %s18936_s16, %s18936_s16, %s18937_s17  }
  0x27   : > { %p14575_p9 = pnand %p14574_p7, %p14568_p5 }
  0x29   : > { %14578 = shalt.err (!%p14575_p9)
}
  0x2a   : > { %14200 = dma.hbm_to_vmem [thread:$0]  (!%p14775_p11), %s18932_s4, 9216, %s239_s14, [#allocation7], %s18936_s16, %s18936_s16, %s18937_s17  }
  0x2b   : > { %s14804_s23 = sadd.s32 1, %s14675_s27   ;;  %s31_s29 = sadd.s32 1, %s14671_s26 }
  0x2c   : > { %s28_s10 = ssub.s32 %s14675_s27, %s14804_s23  ;;  %p38_p12 = scmp.ne.s32.totalorder %s14671_s26, %s14667_s25 }
  0x2d   : > { %p29_p13 = scmp.eq.s32.totalorder %s28_s10, 0  ;;  %p39_p0 = scmp.eq.s32.totalorder %s14675_s27, 0 }
  0x2e   : > { %p14814_p5 = por %p194_p2, %p38_p12  ;;  %p14211_p10 = scmp.lt.s32.totalorder %s14675_s27, 2 }
  0x2f   : > { %s14820_s12 = scalar_select %p29_p13, %s14671_s26, %s31_s29  }
  0x30   : > { %s18958_s11 = scalar_select %p14814_p5, 1, 0 }
  0x31   : > { %p40_p3 = por %p39_p0, %p38_p12  ;;  %s258_s13 = sand.u32 1, %s14671_s26  }
  0x32   : > { %s14179_s15 = smul.u32 432, %s258_s13  ;;  %s14835_s10 = scalar_lea.sflag [#allocation4], %s258_s13 }
  0x33   : > { %s14180_s14 = smul.u32 6912, %s14675_s27  ;;  %p14824_p11 = pnand %p14211_p10, %p40_p3 }
  0x34   : > { %s262_s22 = scalar_lea.vmem [#allocation3], %s14179_s15 }
  0x35   : > { %s14831_s21 = scalar_lea.hbm %s18928_s0, %s14180_s14  ;;  %s269_s29 = sshll.u32 %s262_s22, 4  ;;  %s14833_s29 = int_to_ptr.vmem [resolvable:$true] %s269_s29 }
  0x36   : > { %s14579_s16 = scalar_lea.hbm %s14831_s21, 6912  ;;  %p14581_p7 = pneg %p14824_p11 }
  0x37   : > { %p14580_p2 = scmp.ne.s32.totalorder %s14831_s21, %s14579_s16  ;;  %s14584_s14 = scalar_lea.hbm %s18928_s0, 13824 }
  0x38   : > { %p14585_p13 = scmp.lt.s32.totalorder %s14831_s21, %s18928_s0  ;;  %p14586_p0 = scmp.lt.s32.totalorder %s14584_s14, %s14579_s16 }
  0x39   : > { %p14582_p9 = pnand %p14581_p7, %p14580_p2 }
  0x3a   : > { %p14587_p10 = por %p14586_p0, %p14585_p13 }
  0x3b   : > { %p14583_p12 = pneg %p14582_p9 }
  0x3d   : > { %p14588_p3 = pnand %p14587_p10, %p14583_p12 }
  0x3f   : > { %14591 = shalt.err (!%p14588_p3)
}
  0x40   : > { %s14592_s13 = scalar_lea.vmem %s14833_s29, 6912  ;;  %s14681_s15 = smov [#allocation3]  }
  0x41   : > { %p14593_p1 = scmp.ne.s32.totalorder %s14833_s29, %s14592_s13  ;;  %s14597_s22 = sshll.u32 %s14681_s15, 4  ;;  %s14598_s22 = int_to_ptr.vmem [resolvable:$false] %s14597_s22 }
  0x42   : > { %s14599_s17 = scalar_lea.vmem %s14598_s22, 13824  ;;  %p14600_p9 = scmp.lt.s32.totalorder %s14833_s29, %s14598_s22 }
  0x43   : > { %p14595_p6 = pnand %p14593_p1, %p14581_p7  ;;  %p14601_p5 = scmp.lt.s32.totalorder %s14599_s17, %s14592_s13 }
  0x45   : > { %p14596_p2 = pneg %p14595_p6  ;;  %p14602_p4 = por %p14601_p5, %p14600_p9 }
  0x47   : > { %p14603_p8 = pnand %p14602_p4, %p14596_p2 }
  0x49   : > { %14606 = shalt.err (!%p14603_p8)
}
  0x4a   : > { %s18960_s1 = smov 4   ;;  %s18961_s16 = smov 64  }
  0x4b   : > { %14204 = dma.hbm_to_vmem [thread:$0]  (!%p14824_p11), %s14831_s21, 6912, %s14833_s29, %s14835_s10, %s18961_s16, %s18961_s16, %s18960_s1  }
  0x4c   : > { %p18962_p1 = scmp.ne.s32.totalorder %s18955_s9, 0 }
  0x4e   : > { %281 = sbr.rel (%p18962_p1) target bundleno = 1301 (0x515), region = 48 }
  0x53   : > { %s14862_s19 = sand.u32 1, %s14667_s25   ;;  %p18963_p4 = scmp.ne.s32.totalorder %s18953_s30, 0 }
  0x54   : > { %s14181_s14 = smul.u32 432, %s14862_s19  ;;  %s284_s20 = scalar_lea.sflag [#allocation4], %s14862_s19 }
  0x56   : > { %s14866_s13 = scalar_lea.vmem [#allocation3], %s14181_s14 }
  0x57   : > { %14650 = dma.done.wait (%p18963_p4), %s284_s20, 6912  }
  0x58   : > { %14652 = vsyncadd (%p18963_p4), %s284_s20, 4294960384  ;;  %p18964_p6 = scmp.eq.s32.totalorder %s14747_s28, 0 }
  0x5a   : > { %14654 = dma.done.wait (%p18964_p6), [#allocation7], 18432   ;;  %p18965_p8 = pmov %p18964_p6 }
  0x5b   : > { %v14682_v0 = vmov 0   ;;  %v14254_v1 = vld [vmem:[#allocation6 + $0x78] sm:$0xff]   ;;  %v14256_v3 = vld [vmem:[#allocation6 + $0x70] sm:$0xff]   ;;  %v14258_v5 = vld [vmem:[#allocation6 + $0x68] sm:$0xff]   ;;  %vm375_vm0 = vsmask.f32 256 }
  0x5c   : > { %14656 = vsyncadd (%p18965_p8), [#allocation7], 4294948864  ;;  %5863 = vst [vmem:[#allocation2 + $0x4] sm:$0xf] %v14682_v0  ;;  %v14255_v2 = vld [vmem:[#allocation6 + $0x38] sm:$0xff]   ;;  %13315 = vmatprep.subr.bf16.mxu0 %v14254_v1  ;;  %v14257_v4 = vld [vmem:[#allocation6 + $0x30] sm:$0xff]  }
  0x5d   : > { %5864 = vst [vmem:[#allocation2 + $0x8] sm:$0xf] %v14682_v0  ;;  %5865 = vst [vmem:[#allocation2 + $0xc] sm:$0xf] %v14682_v0  ;;  %13363 = vmatprep.subr.bf16.mxu1 %v14255_v2  ;;  %13316 = vmatpush3.bf16.msra.mxu0 %v14254_v1  ;;  %v14259_v6 = vld [vmem:[#allocation6 + $0x28] sm:$0xff]   ;;  %v14260_v7 = vld [vmem:[#allocation6 + $0x60] sm:$0xff]  }
  0x5e   : > { %5866 = vst [vmem:[#allocation2 + $0x10] sm:$0xf] %v14682_v0  ;;  %5870 = vst [vmem:[#allocation2 + $0x19c] sm:$0xf] %v14682_v0  ;;  %13364 = vmatpush3.bf16.msra.mxu1 %v14255_v2  ;;  %13317 = vmatprep.subr.bf16.mxu0 %v14256_v3  ;;  %v14261_v8 = vld [vmem:[#allocation6 + $0x20] sm:$0xff]   ;;  %v14262_v9 = vld [vmem:[#allocation6 + $0x58] sm:$0xff]  }
  0x5f   : > { %5871 = vst [vmem:[#allocation2 + $0x1a0] sm:$0xf] %v14682_v0  ;;  %5872 = vst [vmem:[#allocation2 + $0x1a4] sm:$0xf] %v14682_v0  ;;  %13365 = vmatprep.subr.bf16.mxu1 %v14257_v4  ;;  %vm376_vm1 = vsmask.f32 4368 }
  0x60   : > { %5873 = vst [vmem:[#allocation2 + $0x1a8] sm:$0xf] %v14682_v0  ;;  %5878 = vst [vmem:[#allocation2 + $0x1c] sm:$0xf] %v14682_v0  ;;  %v14263_v10 = vld [vmem:[#allocation6 + $0x18] sm:$0xff]   ;;  %v14264_v11 = vld [vmem:[#allocation6 + $0x50] sm:$0xff]  }
  0x61   : > { %5880 = vst [vmem:[#allocation2 + $0x34] sm:$0xf] %v14682_v0  ;;  %5882 = vst [vmem:[#allocation2 + $0x4c] sm:$0xf] %v14682_v0  ;;  %13318 = vmatpush3.bf16.msra.mxu0 %v14256_v3  ;;  %v14265_v12 = vld [vmem:[#allocation6 + $0x10] sm:$0xff]   ;;  %v14266_v21 = vld [vmem:[#allocation6 + $0x48] sm:$0xff]  }
  0x62   : > { %5884 = vst [vmem:[#allocation2 + $0x64] sm:$0xf] %v14682_v0  ;;  %5886 = vst [vmem:[#allocation2 + $0x7c] sm:$0xf] %v14682_v0  ;;  %13366 = vmatpush3.bf16.msra.mxu1 %v14257_v4  ;;  %13319 = vmatprep.subr.bf16.mxu0 %v14258_v5  ;;  %v328_v13 = vld [vmem:[%s14866_s13 + $0x8] sm:$0xf] }
  0x63   : > { %5888 = vst [vmem:[#allocation2 + $0x94] sm:$0xf] %v14682_v0  ;;  %5890 = vst [vmem:[#allocation2 + $0xac] sm:$0xf] %v14682_v0  ;;  %13367 = vmatprep.subr.bf16.mxu1 %v14259_v6  ;;  %v329_v14 = vld [vmem:[%s14866_s13 + $0xc] sm:$0xf] }
  0x64   : > { %5892 = vst [vmem:[#allocation2 + $0xc4] sm:$0xf] %v14682_v0  ;;  %5894 = vst [vmem:[#allocation2 + $0xdc] sm:$0xf] %v14682_v0  ;;  %v327_v15 = vld [vmem:[%s14866_s13 + $0x4] sm:$0x8]  ;;  %v11897_v22 = vcombine.low %v328_v13, %v329_v14 }
  0x65   : > { %5896 = vst [vmem:[#allocation2 + $0xf4] sm:$0xf] %v14682_v0  ;;  %5898 = vst [vmem:[#allocation2 + $0x10c] sm:$0xf] %v14682_v0  ;;  %13320 = vmatpush3.bf16.msra.mxu0 %v14258_v5  ;;  %v384_v16 = vshrl.u32 %v328_v13, 16  ;;  %v387_v17 = vshll.u32 %v328_v13, 16 }
  0x66   : > { %5900 = vst [vmem:[#allocation2 + $0x124] sm:$0xf] %v14682_v0  ;;  %5902 = vst [vmem:[#allocation2 + $0x13c] sm:$0xf] %v14682_v0  ;;  %13368 = vmatpush3.bf16.msra.mxu1 %v14259_v6  ;;  %13321 = vmatprep.subr.bf16.mxu0 %v14260_v7  ;;  %v393_v18 = vshrl.u32 %v329_v14, 16  ;;  %v396_v19 = vshll.u32 %v329_v14, 16 }
  0x67   : > { %5904 = vst [vmem:[#allocation2 + $0x154] sm:$0xf] %v14682_v0  ;;  %5906 = vst [vmem:[#allocation2 + $0x16c] sm:$0xf] %v14682_v0  ;;  %13369 = vmatprep.subr.bf16.mxu1 %v14261_v8  ;;  %v14880_v20 = vld [vmem:[%s14866_s13 + $0x20] sm:$0xf]  ;;  %13331 = vmatprep.mubr.bf16.mxu0 %v11897_v22 }
  0x68   : > { %5908 = vst [vmem:[#allocation2 + $0x184] sm:$0xf] %v14682_v0  ;;  %5913 = vst [vmem:[#allocation2 + $0x28] sm:$0xf] %v14682_v0  ;;  %v379_v23 = vshrl.u32 %v327_v15, 16  ;;  %v406_v25 = vshrl.u32 %v14880_v20, 16 }
  0x69   : > { %5915 = vst [vmem:[#allocation2 + $0x40] sm:$0xf] %v14682_v0  ;;  %5917 = vst [vmem:[#allocation2 + $0x58] sm:$0xf] %v14682_v0  ;;  %13322 = vmatpush3.bf16.msra.mxu0 %v14260_v7  ;;  %v14883_v24 = vld [vmem:[%s14866_s13 + $0x24] sm:$0xf] }
  0x6a   : > { %5919 = vst [vmem:[#allocation2 + $0x70] sm:$0xf] %v14682_v0  ;;  %5921 = vst [vmem:[#allocation2 + $0x88] sm:$0xf] %v14682_v0  ;;  %13370 = vmatpush3.bf16.msra.mxu1 %v14261_v8  ;;  %13323 = vmatprep.subr.bf16.mxu0 %v14262_v9  ;;  %v409_v26 = vshll.u32 %v14880_v20, 16  ;;  %v386_v27 = vrot.slane %v384_v16, 7  ;;  %v11898_v36 = vcombine.low %v14880_v20, %v14883_v24 }
  0x6b   : > { %5923 = vst [vmem:[#allocation2 + $0xa0] sm:$0xf] %v14682_v0  ;;  %5925 = vst [vmem:[#allocation2 + $0xb8] sm:$0xf] %v14682_v0  ;;  %13371 = vmatprep.subr.bf16.mxu1 %v14263_v10  ;;  %v395_v28 = vrot.slane %v393_v18, 7  ;;  %v415_v29 = vshrl.u32 %v14883_v24, 16 }
  0x6c   : > { %5927 = vst [vmem:[#allocation2 + $0xd0] sm:$0xf] %v14682_v0  ;;  %5929 = vst [vmem:[#allocation2 + $0xe8] sm:$0xf] %v14682_v0  ;;  %v418_v30 = vshll.u32 %v14883_v24, 16  ;;  %v14267_v32 = vld [vmem:[#allocation6 + $0x8] sm:$0xff]   ;;  %v389_v38 = vor.u32 %v387_v17, %v386_v27 }
  0x6d   : > { %5931 = vst [vmem:[#allocation2 + $0x100] sm:$0xf] %v14682_v0  ;;  %5933 = vst [vmem:[#allocation2 + $0x118] sm:$0xf] %v14682_v0  ;;  %13324 = vmatpush3.bf16.msra.mxu0 %v14262_v9  ;;  %v330_v31 = vld [vmem:[%s14866_s13 + $0x1c] sm:$0x8]  ;;  %v398_v40 = vor.u32 %v396_v19, %v395_v28 }
  0x6e   : > { %5935 = vst [vmem:[#allocation2 + $0x130] sm:$0xf] %v14682_v0  ;;  %5937 = vst [vmem:[#allocation2 + $0x148] sm:$0xf] %v14682_v0  ;;  %13372 = vmatpush3.bf16.msra.mxu1 %v14263_v10  ;;  %13325 = vmatprep.subr.bf16.mxu0 %v14264_v11  ;;  %v18966_v33 = vmov 0  ;;  %v11881_v34 = vrot.slane %v379_v23, 11 }
  0x6f   : > { %5939 = vst [vmem:[#allocation2 + $0x160] sm:$0xf] %v14682_v0  ;;  %5941 = vst [vmem:[#allocation2 + $0x178] sm:$0xf] %v14682_v0  ;;  %v408_v35 = vrot.slane %v406_v25, 7  ;;  %v401_v37 = vshrl.u32 %v330_v31, 16  ;;  %13373 = vmatprep.subr.bf16.mxu1 %v14265_v12 }
  0x70   : > { %5943 = vst [vmem:[#allocation2 + $0x190] sm:$0xf] %v14682_v0  ;;  %5876 = vst [vmem:[#allocation2 + $0x4] sm:$0xf] %v14682_v0  ;;  %v391_v39 = vrot.slane %v386_v27, 4  ;;  %v417_v41 = vrot.slane %v415_v29, 7 }
  0x71   : > { %5910 = vst [vmem:[#allocation2 + $0x19c] sm:$0xf] %v14682_v0  ;;  %5911 = vst [vmem:[#allocation2 + $0x10] sm:$0xf] %v14682_v0  ;;  %v14899_v42 = vld [vmem:[%s14866_s13 + $0x38] sm:$0xf]  ;;  %v411_v45 = vor.u32 %v409_v26, %v408_v35  ;;  %13326 = vmatpush3.bf16.msra.mxu0 %v14264_v11 }
  0x72   : > { %5945 = vst [vmem:[#allocation2 + $0x1a8] sm:$0xf] %v14682_v0  ;;  %vm14892_vm2 = vmor %vm375_vm0, %vm376_vm1  ;;  %v14268_v43 = vld [vmem:[#allocation6 + $0x40] sm:$0xff]   ;;  %v11882_v44 = vrot.slane %v401_v37, 11  ;;  %v413_v46 = vrot.slane %v408_v35, 4  ;;  %v428_v48 = vshrl.u32 %v14899_v42, 16  ;;  %v420_v52 = vor.u32 %v418_v30, %v417_v41  ;;  %13374 = vmatpush3.bf16.msra.mxu1 %v14265_v12  ;;  %13327 = vmatprep.subr.bf16.mxu0 %v14266_v21 }
  0x73   : > { %v18967_v33 = vsel %vm14892_vm2, 4294967295, %v18966_v33  ;;  %v14902_v47 = vld [vmem:[%s14866_s13 + $0x3c] sm:$0xf]  ;;  %v14269_v49 = vld [vmem:[#allocation6] sm:$0xff]   ;;  %v390_v50 = vsel %vm14892_vm2, %v11881_v34, %v389_v38  ;;  %v399_v51 = vsel %vm14892_vm2, %v391_v39, %v398_v40  ;;  %v431_v53 = vshll.u32 %v14899_v42, 16  ;;  %13375 = vmatprep.subr.bf16.mxu1 %v14267_v32  ;;  %s11880_s17 = sshll.u32 %s14862_s19, 8 }
  0x74   : > { %18968 = vst [vmem:[#allocation13_spill] sm:$0xff] %v18967_v33  ;;  %v333_v54 = vld [vmem:[%s14866_s13 + $0x34] sm:$0x8]  ;;  %v14912_v55 = vld [vmem:[%s14866_s13 + $0x50] sm:$0xf]  ;;  %v11921_v56 = vcombine.low %v390_v50, %v399_v51  ;;  %v412_v57 = vsel %vm14892_vm2, %v11882_v44, %v411_v45  ;;  %v430_v58 = vrot.slane %v428_v48, 7  ;;  %v421_v62 = vsel %vm14892_vm2, %v413_v46, %v420_v52 }
  0x75   : > { %v437_v59 = vshrl.u32 %v14902_v47, 16  ;;  %v14918_v60 = vld [vmem:[%s14866_s13 + $0x54] sm:$0xf]  ;;  %v336_v61 = vld [vmem:[%s14866_s13 + $0x4c] sm:$0x8]  ;;  %v440_v63 = vshll.u32 %v14902_v47, 16  ;;  %v11899_v0 = vcombine.low %v14899_v42, %v14902_v47  ;;  %v11922_v2 = vcombine.low %v412_v57, %v421_v62  ;;  %13328 = vmatpush3.bf16.msra.mxu0 %v14266_v21 }
  0x76   : > { %v423_v1 = vshrl.u32 %v333_v54, 16  ;;  %13379 = vmatprep.mubr.bf16.mxu1 %v11921_v56  ;;  %v433_v4 = vor.u32 %v431_v53, %v430_v58  ;;  %v435_v5 = vrot.slane %v430_v58, 4  ;;  %v14927_v6 = vld [vmem:[%s14866_s13 + $0x68] sm:$0xf]  ;;  %v450_v8 = vshrl.u32 %v14912_v55, 16  ;;  %13376 = vmatpush3.bf16.msra.mxu1 %v14267_v32  ;;  %v14275_v44 = vld [vmem:[#allocation6 + $0xb0] sm:$0xff]  }
  0x77   : > { %v439_v3 = vrot.slane %v437_v59, 7  ;;  %v453_v9 = vshll.u32 %v14912_v55, 16  ;;  %v459_v10 = vshrl.u32 %v14918_v60, 16  ;;  %v14933_v11 = vld [vmem:[%s14866_s13 + $0x6c] sm:$0xf]  ;;  %13329 = vmatprep.subr.bf16.mxu0 %v14268_v43  ;;  %v462_v14 = vshll.u32 %v14918_v60, 16  ;;  %13377 = vmatprep.subr.bf16.mxu1 %v14269_v49 }
  0x78   : > { %v11883_v7 = vrot.slane %v423_v1, 11  ;;  %v14272_v12 = vld [vmem:[#allocation6 + $0xb8] sm:$0xff]   ;;  %v11900_v15 = vcombine.low %v14912_v55, %v14918_v60  ;;  %v445_v16 = vshrl.u32 %v336_v61, 16  ;;  %v339_v17 = vld [vmem:[%s14866_s13 + $0x64] sm:$0x8]  ;;  %v452_v19 = vrot.slane %v450_v8, 7 }
  0x79   : > { %v442_v13 = vor.u32 %v440_v63, %v439_v3  ;;  %v461_v21 = vrot.slane %v459_v10, 7  ;;  %v472_v22 = vshrl.u32 %v14927_v6, 16  ;;  %v14943_v23 = vld [vmem:[%s14866_s13 + $0x80] sm:$0xf]  ;;  %v475_v27 = vshll.u32 %v14927_v6, 16  ;;  %v14285_v29 = vld [vmem:[#allocation6 + $0xf8] sm:$0xff]   ;;  %13330 = vmatpush3.bf16.msra.mxu0 %v14268_v43 }
  0x7a   : > { %v434_v18 = vsel %vm14892_vm2, %v11883_v7, %v433_v4  ;;  %v11884_v26 = vrot.slane %v445_v16, 11  ;;  %v481_v28 = vshrl.u32 %v14933_v11, 16  ;;  %v455_v31 = vor.u32 %v453_v9, %v452_v19  ;;  %13378 = vmatpush3.bf16.msra.mxu1 %v14269_v49  ;;  %13411 = vmatprep.subr.bf16.mxu0 %v14272_v12  ;;  %v14953_v40 = vld [vmem:[%s14866_s13 + $0x84] sm:$0xf]  ;;  %v342_v48 = vld [vmem:[%s14866_s13 + $0x7c] sm:$0x8] }
  0x7b   : > { %v443_v25 = vsel %vm14892_vm2, %v435_v5, %v442_v13  ;;  %v457_v32 = vrot.slane %v452_v19, 4  ;;  %v464_v34 = vor.u32 %v462_v14, %v461_v21  ;;  %v474_v35 = vrot.slane %v472_v22, 7  ;;  %13459 = vmatprep.subr.bf16.mxu1 %v14285_v29  ;;  %v14964_v53 = vld [vmem:[#allocation6 + $0xa8] sm:$0xff]   ;;  %v14286_v56 = vld [vmem:[#allocation6 + $0xf0] sm:$0xff]   ;;  %s18683_s1 = scalar_lea.vmem [#allocation9], %s11880_s17  ;;  %s12706_s16 = sshll.u32 %s14747_s28, 12 }
  0x7c   : > { %v11923_v30 = vcombine.low %v434_v18, %v443_v25  ;;  %v483_v37 = vrot.slane %v481_v28, 7  ;;  %v484_v38 = vshll.u32 %v14933_v11, 16  ;;  %v11901_v39 = vcombine.low %v14927_v6, %v14933_v11  ;;  %13332 = vmatmul.mubr.bf16.vlgmr.msra.gmra.mxu0 %v11898_v36  ;;  %v14967_v54 = vld [vmem:[%s14866_s13 + $0x98] sm:$0xf]  ;;  %v14980_v63 = vld [vmem:[%s14866_s13 + $0x9c] sm:$0xf]  ;;  %s18879_s30 = scalar_lea.hbm %s18935_s7, %s12706_s16 }
  0x7d   : > { %v456_v41 = vsel %vm14892_vm2, %v11884_v26, %v455_v31  ;;  %v465_v43 = vsel %vm14892_vm2, %v457_v32, %v464_v34  ;;  %v467_v45 = vshrl.u32 %v339_v17, 16  ;;  %v494_v46 = vshrl.u32 %v14943_v23, 16  ;;  %13380 = vmatmul.mubr.bf16.vlgmr.msra.gmra.mxu1 %v11922_v2  ;;  %13412 = vmatpush3.bf16.msra.mxu0 %v14272_v12  ;;  %v14986_v3 = vld [vmem:[%s14866_s13 + $0xb0] sm:$0xf]  ;;  %v14991_v9 = vld [vmem:[%s14866_s13 + $0xb4] sm:$0xf] }
  0x7e   : > { %v11924_v49 = vcombine.low %v456_v41, %v465_v43  ;;  %v477_v50 = vor.u32 %v475_v27, %v474_v35  ;;  %v479_v51 = vrot.slane %v474_v35, 4  ;;  %v486_v52 = vor.u32 %v484_v38, %v483_v37  ;;  %13335 = vmatprep.mubr.bf16.mxu0 %v11899_v0  ;;  %13383 = vmatprep.mubr.bf16.mxu1 %v11923_v30  ;;  %v345_v0 = vld [vmem:[%s14866_s13 + $0x94] sm:$0x8]  ;;  %v14290_v10 = vld [vmem:[#allocation6 + $0xe8] sm:$0xff]   ;;  %v351_v11 = vld [vmem:[%s14866_s13 + $0xc4] sm:$0x8] }
  0x7f   : > { %v11885_v57 = vrot.slane %v467_v45, 11  ;;  %v496_v58 = vrot.slane %v494_v46, 7  ;;  %v497_v59 = vshll.u32 %v14943_v23, 16  ;;  %v503_v20 = vshrl.u32 %v14953_v40, 16  ;;  %13413 = vmatprep.subr.bf16.mxu0 %v14275_v44  ;;  %13460 = vmatpush3.bf16.msra.mxu1 %v14285_v29  ;;  %v348_v17 = vld [vmem:[%s14866_s13 + $0xac] sm:$0x8] }
  0x80   : > { %v487_v24 = vsel %vm14892_vm2, %v479_v51, %v486_v52  ;;  %v506_v36 = vshll.u32 %v14953_v40, 16  ;;  %v11902_v61 = vcombine.low %v14943_v23, %v14953_v40  ;;  %v489_v62 = vshrl.u32 %v342_v48, 16  ;;  %13461 = vmatprep.subr.bf16.mxu1 %v14286_v56  ;;  %v14999_v18 = vld [vmem:[%s14866_s13 + $0xc8] sm:$0xf]  ;;  %v14281_v26 = vld [vmem:[#allocation6 + $0xa0] sm:$0xff]   ;;  %s11779_s14 = sshll.u32 %s18683_s1, 4  ;;  %s18881_s14 = int_to_ptr.vmem [resolvable:$true] %s11779_s14 }
  0x81   : > { %v478_v1 = vsel %vm14892_vm2, %v11885_v57, %v477_v50  ;;  %v505_v2 = vrot.slane %v503_v20, 7  ;;  %v499_v42 = vor.u32 %v497_v59, %v496_v58  ;;  %v501_v47 = vrot.slane %v496_v58, 4  ;;  %13414 = vmatpush3.bf16.msra.mxu0 %v14275_v44  ;;  %v14291_v31 = vld [vmem:[#allocation6 + $0xe0] sm:$0xff]   ;;  %v15013_v38 = vld [vmem:[%s14866_s13 + $0xcc] sm:$0xf]  ;;  %s11766_s28 = scalar_lea.sflag [#allocation5], %s14862_s19 }
  0x82   : > { %v11925_v4 = vcombine.low %v478_v1, %v487_v24  ;;  %v11886_v5 = vrot.slane %v489_v62, 11  ;;  %v516_v7 = vshrl.u32 %v14967_v54, 16  ;;  %v519_v8 = vshll.u32 %v14967_v54, 16  ;;  %13415 = vmatprep.subr.bf16.mxu0 %v14964_v53  ;;  %v15029_v50 = vld [vmem:[%s14866_s13 + $0xe0] sm:$0xf]  ;;  %v14284_v52 = vld [vmem:[#allocation6 + $0x98] sm:$0xff]  }
  0x83   : > { %v508_v12 = vor.u32 %v506_v36, %v505_v2  ;;  %v525_v13 = vshrl.u32 %v14980_v63, 16  ;;  %v528_v14 = vshll.u32 %v14980_v63, 16  ;;  %v11903_v16 = vcombine.low %v14967_v54, %v14980_v63  ;;  %13462 = vmatpush3.bf16.msra.mxu1 %v14286_v56  ;;  %v15032_v51 = vld [vmem:[%s14866_s13 + $0xe4] sm:$0xf]  ;;  %v354_v59 = vld [vmem:[%s14866_s13 + $0xdc] sm:$0x8] }
  0x84   : > { %v500_v19 = vsel %vm14892_vm2, %v11886_v5, %v499_v42  ;;  %v518_v21 = vrot.slane %v516_v7, 7  ;;  %v511_v22 = vshrl.u32 %v345_v0, 16  ;;  %v538_v25 = vshrl.u32 %v14986_v3, 16  ;;  %13336 = vmatmul.mubr.bf16.gmra.mxu0 %v11900_v15  ;;  %13463 = vmatprep.subr.bf16.mxu1 %v14290_v10  ;;  %v14295_v20 = vld [vmem:[#allocation6 + $0xd8] sm:$0xff]   ;;  %s14607_s9 = scalar_lea.vmem %s18881_s14, 4096  ;;  %p19339_p11 = scmp.ne.s32.totalorder %s18958_s11, 0 }
  0x85   : > { %v509_v27 = vsel %vm14892_vm2, %v501_v47, %v508_v12  ;;  %v527_v28 = vrot.slane %v525_v13, 7  ;;  %v541_v29 = vshll.u32 %v14986_v3, 16  ;;  %v547_v30 = vshrl.u32 %v14991_v9, 16  ;;  %13384 = vmatmul.mubr.bf16.gmra.mxu1 %v11924_v49  ;;  %13339 = vmatprep.mubr.bf16.mxu0 %v11901_v39  ;;  %v15043_v2 = vld [vmem:[%s14866_s13 + $0xf8] sm:$0xf]  ;;  %v14289_v13 = vld [vmem:[#allocation6 + $0x90] sm:$0xff]   ;;  %p14608_p5 = scmp.ne.s32.totalorder %s18881_s14, %s14607_s9 }
  0x86   : > { %v11926_v32 = vcombine.low %v500_v19, %v509_v27  ;;  %v11887_v34 = vrot.slane %v511_v22, 11  ;;  %v521_v35 = vor.u32 %v519_v8, %v518_v21  ;;  %v523_v37 = vrot.slane %v518_v21, 4  ;;  %13387 = vmatprep.mubr.bf16.mxu1 %v11925_v4  ;;  %13416 = vmatpush3.bf16.msra.mxu0 %v14964_v53  ;;  %v15046_v42 = vld [vmem:[%s14866_s13 + $0xfc] sm:$0xf]  ;;  %v357_v22 = vld [vmem:[%s14866_s13 + $0xf4] sm:$0x8] }
  0x87   : > { %v530_v41 = vor.u32 %v528_v14, %v527_v28  ;;  %v540_v43 = vrot.slane %v538_v25, 7  ;;  %v549_v44 = vrot.slane %v547_v30, 7  ;;  %v550_v55 = vshll.u32 %v14991_v9, 16  ;;  %13417 = vmatprep.subr.bf16.mxu0 %v14281_v26  ;;  %13464 = vmatpush3.bf16.msra.mxu1 %v14290_v10  ;;  %v14296_v25 = vld [vmem:[#allocation6 + $0xd0] sm:$0xff]   ;;  %p14609_p7 = pnand %p14608_p5, %p19339_p11  ;;  %s14683_s18 = smov [#allocation9]  }
  0x88   : > { %v522_v60 = vsel %vm14892_vm2, %v11887_v34, %v521_v35  ;;  %v11904_v15 = vcombine.low %v14986_v3, %v14991_v9  ;;  %v533_v45 = vshrl.u32 %v348_v17, 16  ;;  %v560_v6 = vshrl.u32 %v14999_v18, 16  ;;  %13465 = vmatprep.subr.bf16.mxu1 %v14291_v31  ;;  %v14294_v34 = vld [vmem:[#allocation6 + $0x88] sm:$0xff]   ;;  %s14611_s21 = sshll.u32 %s14683_s18, 4  ;;  %s14612_s21 = int_to_ptr.vmem [resolvable:$false] %s14611_s21 }
  0x89   : > { %v531_v39 = vsel %vm14892_vm2, %v523_v37, %v530_v41  ;;  %v543_v46 = vor.u32 %v541_v29, %v540_v43  ;;  %v545_v48 = vrot.slane %v540_v43, 4  ;;  %v552_v49 = vor.u32 %v550_v55, %v549_v44  ;;  %v15076_v44 = vld [vmem:[%s14866_s13 + $0x114] sm:$0xf]  ;;  %v14300_v55 = vld [vmem:[#allocation6 + $0xc8] sm:$0xff]   ;;  %p14610_p12 = pneg %p14609_p7  ;;  %s14613_s29 = scalar_lea.vmem %s14612_s21, 8192 }
  0x8a   : > { %v11927_v53 = vcombine.low %v522_v60, %v531_v39  ;;  %v11888_v56 = vrot.slane %v533_v45, 11  ;;  %v562_v57 = vrot.slane %v560_v6, 7  ;;  %v563_v58 = vshll.u32 %v14999_v18, 16  ;;  %13418 = vmatpush3.bf16.msra.mxu0 %v14281_v26  ;;  %v360_v39 = vld [vmem:[%s14866_s13 + $0x10c] sm:$0x8]  ;;  %p14614_p13 = scmp.lt.s32.totalorder %s18881_s14, %s14612_s21  ;;  %p14615_p0 = scmp.lt.s32.totalorder %s14613_s29, %s14607_s9 }
  0x8b   : > { %v553_v24 = vsel %vm14892_vm2, %v545_v48, %v552_v49  ;;  %v569_v36 = vshrl.u32 %v15013_v38, 16  ;;  %v572_v62 = vshll.u32 %v15013_v38, 16  ;;  %v11905_v1 = vcombine.low %v14999_v18, %v15013_v38  ;;  %13419 = vmatprep.subr.bf16.mxu0 %v14284_v52  ;;  %13466 = vmatpush3.bf16.msra.mxu1 %v14291_v31  ;;  %v14299_v48 = vld [vmem:[#allocation6 + $0x80] sm:$0xff]   ;;  %v15116_v38 = vld [vmem:[#allocation6 + $0x138] sm:$0xff]  }
  0x8c   : > { %v544_v47 = vsel %vm14892_vm2, %v11888_v56, %v543_v46  ;;  %v555_v0 = vshrl.u32 %v351_v11, 16  ;;  %v565_v4 = vor.u32 %v563_v58, %v562_v57  ;;  %v567_v5 = vrot.slane %v562_v57, 4  ;;  %13340 = vmatmul.mubr.bf16.gmra.mxu0 %v11902_v61  ;;  %13467 = vmatprep.subr.bf16.mxu1 %v14295_v20  ;;  %v15085_v46 = vld [vmem:[%s14866_s13 + $0x128] sm:$0xf]  ;;  %v15091_v57 = vld [vmem:[%s14866_s13 + $0x12c] sm:$0xf]  ;;  %p14616_p10 = por %p14615_p0, %p14614_p13 }
  0x8d   : > { %v15050_v7 = vcombine.low %v544_v47, %v553_v24  ;;  %v571_v8 = vrot.slane %v569_v36, 7  ;;  %v582_v10 = vshrl.u32 %v15029_v50, 16  ;;  %v585_v12 = vshll.u32 %v15029_v50, 16  ;;  %13388 = vmatmul.mubr.bf16.gmra.mxu1 %v11926_v32  ;;  %13343 = vmatprep.mubr.bf16.mxu0 %v11903_v16  ;;  %v15073_v32 = vld [vmem:[%s14866_s13 + $0x110] sm:$0xf] }
  0x8e   : > { %v11889_v14 = vrot.slane %v555_v0, 11  ;;  %v591_v17 = vshrl.u32 %v15032_v51, 16  ;;  %v594_v19 = vshll.u32 %v15032_v51, 16  ;;  %v11906_v21 = vcombine.low %v15029_v50, %v15032_v51  ;;  %13391 = vmatprep.mubr.bf16.mxu1 %v11927_v53  ;;  %13420 = vmatpush3.bf16.msra.mxu0 %v14284_v52  ;;  %v15114_v18 = vld [vmem:[%s14866_s13 + $0x140] sm:$0xf]  ;;  %p14617_p3 = pnand %p14616_p10, %p14610_p12 }
  0x8f   : > { %v574_v26 = vor.u32 %v572_v62, %v571_v8  ;;  %v584_v23 = vrot.slane %v582_v10, 7  ;;  %v577_v40 = vshrl.u32 %v354_v59, 16  ;;  %v604_v61 = vshrl.u32 %v15043_v2, 16  ;;  %13421 = vmatprep.subr.bf16.mxu0 %v14289_v13  ;;  %13468 = vmatpush3.bf16.msra.mxu1 %v14295_v20  ;;  %v363_v8 = vld [vmem:[%s14866_s13 + $0x124] sm:$0x8] }
  0x90   : > { %v566_v27 = vsel %vm14892_vm2, %v11889_v14, %v565_v4  ;;  %v593_v28 = vrot.slane %v591_v17, 7  ;;  %v607_v29 = vshll.u32 %v15043_v2, 16  ;;  %v613_v30 = vshrl.u32 %v15046_v42, 16  ;;  %13469 = vmatprep.subr.bf16.mxu1 %v14296_v25  ;;  %v14301_v4 = vld [vmem:[#allocation6 + $0xc0] sm:$0xff]  }
  0x91   : > { %v575_v54 = vsel %vm14892_vm2, %v567_v5, %v574_v26  ;;  %v11890_v63 = vrot.slane %v577_v40, 11  ;;  %v587_v16 = vor.u32 %v585_v12, %v584_v23  ;;  %v589_v31 = vrot.slane %v584_v23, 4 }
  0x92   : > { %v11929_v35 = vcombine.low %v566_v27, %v575_v54  ;;  %v596_v37 = vor.u32 %v594_v19, %v593_v28  ;;  %v606_v41 = vrot.slane %v604_v61, 7  ;;  %v615_v43 = vrot.slane %v613_v30, 7  ;;  %13422 = vmatpush3.bf16.msra.mxu0 %v14289_v13  ;;  %v366_v61 = vld [vmem:[%s14866_s13 + $0x13c] sm:$0x8]  ;;  %v15128_v27 = vld [vmem:[%s14866_s13 + $0x158] sm:$0xf] }
  0x93   : > { %v588_v60 = vsel %vm14892_vm2, %v11890_v63, %v587_v16  ;;  %v616_v45 = vshll.u32 %v15046_v42, 16  ;;  %v11907_v6 = vcombine.low %v15043_v2, %v15046_v42  ;;  %v599_v11 = vshrl.u32 %v357_v22, 16  ;;  %13423 = vmatprep.subr.bf16.mxu0 %v14294_v34  ;;  %13470 = vmatpush3.bf16.msra.mxu1 %v14296_v25  ;;  %v15121_v22 = vld [vmem:[%s14866_s13 + $0x144] sm:$0xf] }
  0x94   : > { %v597_v49 = vsel %vm14892_vm2, %v589_v31, %v596_v37  ;;  %v609_v52 = vor.u32 %v607_v29, %v606_v41  ;;  %v611_v53 = vrot.slane %v606_v41, 4  ;;  %v626_v56 = vshrl.u32 %v15073_v32, 16  ;;  %13344 = vmatmul.mubr.bf16.gmra.mxu0 %v11904_v15  ;;  %13471 = vmatprep.subr.bf16.mxu1 %v14300_v55 }
  0x95   : > { %v15093_v58 = vcombine.low %v588_v60, %v597_v49  ;;  %v11891_v59 = vrot.slane %v599_v11, 11  ;;  %v618_v20 = vor.u32 %v616_v45, %v615_v43  ;;  %v629_v24 = vshll.u32 %v15073_v32, 16  ;;  %13392 = vmatmul.mubr.bf16.gmra.mxu1 %v15050_v7  ;;  %13347 = vmatprep.mubr.bf16.mxu0 %v11905_v1 }
  0x96   : > { %v628_v36 = vrot.slane %v626_v56, 7  ;;  %v635_v62 = vshrl.u32 %v15076_v44, 16  ;;  %v638_v47 = vshll.u32 %v15076_v44, 16  ;;  %v11908_v0 = vcombine.low %v15073_v32, %v15076_v44  ;;  %13395 = vmatprep.mubr.bf16.mxu1 %v11929_v35  ;;  %13424 = vmatpush3.bf16.msra.mxu0 %v14294_v34  ;;  %v15137_v35 = vld [vmem:[%s14866_s13 + $0x15c] sm:$0xf] }
  0x97   : > { %v610_v3 = vsel %vm14892_vm2, %v11891_v59, %v609_v52  ;;  %v619_v9 = vsel %vm14892_vm2, %v611_v53, %v618_v20  ;;  %v621_v15 = vshrl.u32 %v360_v39, 16  ;;  %v648_v5 = vshrl.u32 %v15085_v46, 16  ;;  %13425 = vmatprep.subr.bf16.mxu0 %v14299_v48  ;;  %13472 = vmatpush3.bf16.msra.mxu1 %v14300_v55  ;;  %v15159_v52 = vld [vmem:[%s14866_s13 + $0x170] sm:$0xf]  ;;  %v15161_v53 = vld [vmem:[#allocation6 + $0x178] sm:$0xff]  }
  0x98   : > { %v11931_v10 = vcombine.low %v610_v3, %v619_v9  ;;  %v637_v12 = vrot.slane %v635_v62, 7  ;;  %v631_v13 = vor.u32 %v629_v24, %v628_v36  ;;  %v633_v7 = vrot.slane %v628_v36, 4  ;;  %13473 = vmatprep.subr.bf16.mxu1 %v14301_v4  ;;  %v1343_v44 = vld [vmem:[%s14866_s13 + $0x20] sm:$0xf] }
  0x99   : > { %v11892_v1 = vrot.slane %v621_v15, 11  ;;  %v650_v14 = vrot.slane %v648_v5, 7  ;;  %v651_v17 = vshll.u32 %v15085_v46, 16  ;;  %v657_v19 = vshrl.u32 %v15091_v57, 16 }
  0x9a   : > { %v640_v25 = vor.u32 %v638_v47, %v637_v12  ;;  %v660_v26 = vshll.u32 %v15091_v57, 16  ;;  %v11909_v23 = vcombine.low %v15085_v46, %v15091_v57  ;;  %v643_v40 = vshrl.u32 %v363_v8, 16  ;;  %13426 = vmatpush3.bf16.msra.mxu0 %v14299_v48  ;;  %v369_v48 = vld [vmem:[%s14866_s13 + $0x154] sm:$0x8] }
  0x9b   : > { %v632_v28 = vsel %vm14892_vm2, %v11892_v1, %v631_v13  ;;  %v659_v29 = vrot.slane %v657_v19, 7  ;;  %v653_v30 = vor.u32 %v651_v17, %v650_v14  ;;  %v655_v54 = vrot.slane %v650_v14, 4  ;;  %13474 = vmatpush3.bf16.msra.mxu1 %v14301_v4  ;;  %13507 = vmatprep.subr.bf16.mxu0 %v15116_v38  ;;  %v15171_v4 = vld [vmem:[%s14866_s13 + $0x174] sm:$0xf]  ;;  %v1340_v14 = vld [vmem:[%s14866_s13 + $0x8] sm:$0xf] }
  0x9c   : > { %v641_v63 = vsel %vm14892_vm2, %v633_v7, %v640_v25  ;;  %v11893_v16 = vrot.slane %v643_v40, 11  ;;  %v670_v31 = vshrl.u32 %v15114_v18, 16  ;;  %v673_v34 = vshll.u32 %v15114_v18, 16  ;;  %13348 = vmatmul.mubr.bf16.gmra.mxu0 %v11906_v21  ;;  %13555 = vmatprep.subr.bf16.mxu1 %v15161_v53  ;;  %v1341_v40 = vld [vmem:[%s14866_s13 + $0xc] sm:$0xf] }
  0x9d   : > { %v11932_v37 = vcombine.low %v632_v28, %v641_v63  ;;  %v662_v41 = vor.u32 %v660_v26, %v659_v29  ;;  %v679_v43 = vshrl.u32 %v15121_v22, 16  ;;  %v682_v55 = vshll.u32 %v15121_v22, 16  ;;  %13396 = vmatmul.mubr.bf16.gmra.mxu1 %v15093_v58  ;;  %13351 = vmatprep.mubr.bf16.mxu0 %v11907_v6 }
  0x9e   : > { %v654_v60 = vsel %vm14892_vm2, %v11893_v16, %v653_v30  ;;  %v672_v45 = vrot.slane %v670_v31, 7  ;;  %v11910_v11 = vcombine.low %v15114_v18, %v15121_v22  ;;  %v665_v39 = vshrl.u32 %v366_v61, 16  ;;  %13399 = vmatprep.mubr.bf16.mxu1 %v11931_v10  ;;  %v372_v10 = vld [vmem:[%s14866_s13 + $0x16c] sm:$0x8]  ;;  %v11972_v18 = vld [vmem:[%s14866_s13 + $0x34] sm:$0x8] }
  0x9f   : > { %v663_v49 = vsel %vm14892_vm2, %v655_v54, %v662_v41  ;;  %v681_v50 = vrot.slane %v679_v43, 7  ;;  %v692_v51 = vshrl.u32 %v15128_v27, 16  ;;  %v695_v21 = vshll.u32 %v15128_v27, 16  ;;  %v1342_v54 = vld [vmem:[%s14866_s13 + $0x10] sm:$0x1] }
  0xa0   : > { %v11933_v56 = vcombine.low %v654_v60, %v663_v49  ;;  %v11894_v58 = vrot.slane %v665_v39, 11  ;;  %v675_v59 = vor.u32 %v673_v34, %v672_v45  ;;  %v677_v20 = vrot.slane %v672_v45, 4 }
  0xa1   : > { %v684_v2 = vor.u32 %v682_v55, %v681_v50  ;;  %v694_v42 = vrot.slane %v692_v51, 7  ;;  %v701_v6 = vshrl.u32 %v15137_v35, 16  ;;  %v704_v24 = vshll.u32 %v15137_v35, 16 }
  0xa2   : > { %vm1388_vm3 = vsmask.f32 3328  ;;  %vm1389_vm4 = vsmask.f32 7440  ;;  %v676_v36 = vsel %vm14892_vm2, %v11894_v58, %v675_v59  ;;  %v11911_v62 = vcombine.low %v15128_v27, %v15137_v35  ;;  %v11969_v58 = vld [vmem:[%s14866_s13 + $0x1c] sm:$0x8] }
  0xa3   : > { %v687_v47 = vshrl.u32 %v369_v48, 16  ;;  %v714_v3 = vshrl.u32 %v15159_v52, 16  ;;  %v685_v9 = vsel %vm14892_vm2, %v677_v20, %v684_v2  ;;  %v703_v15 = vrot.slane %v701_v6, 7  ;;  %v1345_v48 = vld [vmem:[%s14866_s13 + $0x28] sm:$0x1]  ;;  %vm15206_vm5 = vmor %vm1388_vm3, %vm1389_vm4 }
  0xa4   : > { %v697_v5 = vor.u32 %v695_v21, %v694_v42  ;;  %v699_v8 = vrot.slane %v694_v42, 4  ;;  %v11934_v12 = vcombine.low %v676_v36, %v685_v9  ;;  %v717_v1 = vshll.u32 %v15159_v52, 16  ;;  %13352 = vmatmul.mubr.bf16.gmra.mxu0 %v11908_v0  ;;  %v11970_v59 = vld [vmem:[%s14866_s13 + $0x20] sm:$0xf] }
  0xa5   : > { %v11895_v13 = vrot.slane %v687_v47, 11  ;;  %v716_v7 = vrot.slane %v714_v3, 7  ;;  %v706_v17 = vor.u32 %v704_v24, %v703_v15  ;;  %v723_v19 = vshrl.u32 %v15171_v4, 16  ;;  %13400 = vmatmul.mubr.bf16.gmra.mxu1 %v11932_v37  ;;  %13355 = vmatprep.mubr.bf16.mxu0 %v11909_v23  ;;  %v1344_v23 = vld [vmem:[%s14866_s13 + $0x24] sm:$0xf] }
  0xa6   : > { %v726_v25 = vshll.u32 %v15171_v4, 16  ;;  %v11912_v26 = vcombine.low %v15159_v52, %v15171_v4  ;;  %v709_v28 = vshrl.u32 %v372_v10, 16  ;;  %v1392_v31 = vshrl.u32 %v1340_v14, 16  ;;  %13403 = vmatprep.mubr.bf16.mxu1 %v11933_v56 }
  0xa7   : > { %v698_v61 = vsel %vm14892_vm2, %v11895_v13, %v697_v5  ;;  %v719_v29 = vor.u32 %v717_v1, %v716_v7  ;;  %v721_v30 = vrot.slane %v716_v7, 4  ;;  %v707_v63 = vsel %vm14892_vm2, %v699_v8, %v706_v17  ;;  %v11971_v8 = vld [vmem:[%s14866_s13 + $0x24] sm:$0xf] }
  0xa8   : > { %v725_v16 = vrot.slane %v723_v19, 7  ;;  %v1395_v32 = vshll.u32 %v1340_v14, 16  ;;  %v11935_v0 = vcombine.low %v698_v61, %v707_v63  ;;  %v11896_v34 = vrot.slane %v709_v28, 11  ;;  %v11974_v61 = vld [vmem:[%s14866_s13 + $0x3c] sm:$0xf] }
  0xa9   : > { %v1401_v41 = vshll.u32 %v1341_v40, 16  ;;  %v1405_v43 = vshrl.u32 %v1341_v40, 16  ;;  %v1394_v55 = vrot.slane %v1392_v31, 4  ;;  %v1411_v57 = vshll.u32 %v1342_v54, 16 }
  0xaa   : > { %v728_v37 = vor.u32 %v726_v25, %v725_v16  ;;  %v1397_v46 = vrot.slane %v1395_v32, 5  ;;  %v720_v60 = vsel %vm14892_vm2, %v11896_v34, %v719_v29  ;;  %v1416_v49 = vshrl.u32 %v1343_v44, 16  ;;  %v11973_v25 = vld [vmem:[%s14866_s13 + $0x38] sm:$0xf] }
  0xab   : > { %v1403_v45 = vrot.slane %v1401_v41, 5  ;;  %v1407_v39 = vrot.slane %v1405_v43, 4  ;;  %v1413_v21 = vrot.slane %v1411_v57, 5  ;;  %v1419_v56 = vshll.u32 %v1343_v44, 16  ;;  %v1346_v44 = vld [vmem:[%s14866_s13 + $0x38] sm:$0xf] }
  0xac   : > { %v729_v50 = vsel %vm14892_vm2, %v721_v30, %v728_v37  ;;  %v1398_v51 = vor.u32 %v1397_v46, %v1394_v55  ;;  %v18969_v2 = vmov 0  ;;  %v1418_v6 = vrot.slane %v1416_v49, 4  ;;  %13356 = vmatmul.mubr.bf16.gmra.mxu0 %v11910_v11  ;;  %v1347_v37 = vld [vmem:[%s14866_s13 + $0x3c] sm:$0xf] }
  0xad   : > { %v11936_v20 = vcombine.low %v720_v60, %v729_v50  ;;  %v18970_v2 = vsel %vm15206_vm5, 4294967295, %v18969_v2  ;;  %v1408_v42 = vor.u32 %v1407_v39, %v1403_v45  ;;  %v1425_v24 = vshll.u32 %v1344_v23, 16  ;;  %13404 = vmatmul.mubr.bf16.gmra.mxu1 %v11934_v12  ;;  %13359 = vmatprep.mubr.bf16.mxu0 %v11911_v62  ;;  %v1348_v60 = vld [vmem:[%s14866_s13 + $0x40] sm:$0x1] }
  0xae   : > { %18971 = vst [vmem:[#allocation14_spill] sm:$0xff] %v18970_v2  ;;  %v1399_v36 = vrot.slane %v1398_v51, 4  ;;  %v1421_v47 = vrot.slane %v1419_v56, 5  ;;  %v1429_v3 = vshrl.u32 %v1344_v23, 16  ;;  %v1435_v9 = vshll.u32 %v1345_v48, 16  ;;  %13407 = vmatprep.mubr.bf16.mxu1 %v11935_v0 }
  0xaf   : > { %v1409_v15 = vrot.slane %v1408_v42, 4  ;;  %v1427_v5 = vrot.slane %v1425_v24, 5  ;;  %v2146_v10 = vshrl.u32 %v11969_v58, 16  ;;  %v2151_v13 = vshrl.u32 %v11970_v59, 16  ;;  %v1349_v58 = vld [vmem:[%s14866_s13 + $0x50] sm:$0xf] }
  0xb0   : > { %v1404_v7 = vsel %vm15206_vm5, %v1399_v36, %v1403_v45  ;;  %v1422_v1 = vor.u32 %v1421_v47, %v1418_v6  ;;  %v1431_v14 = vrot.slane %v1429_v3, 4  ;;  %v1437_v17 = vrot.slane %v1435_v9, 5  ;;  %v1351_v9 = vld [vmem:[%s14866_s13 + $0x58] sm:$0x1] }
  0xb1   : > { %v1414_v22 = vsel %vm15206_vm5, %v1409_v15, %v1413_v21  ;;  %v12017_v11 = vrot.slane %v2146_v10, 11  ;;  %v2153_v19 = vrot.slane %v2151_v13, 7  ;;  %v2154_v12 = vshll.u32 %v11970_v59, 16 }
  0xb2   : > { %v11945_v40 = vcombine.low %v1404_v7, %v1414_v22  ;;  %v1423_v27 = vrot.slane %v1422_v1, 4  ;;  %v1432_v35 = vor.u32 %v1431_v14, %v1427_v5  ;;  %v2160_v62 = vshrl.u32 %v11971_v8, 16  ;;  %v11976_v14 = vld [vmem:[%s14866_s13 + $0x50] sm:$0xf] }
  0xb3   : > { %v2156_v28 = vor.u32 %v2154_v12, %v2153_v19  ;;  %v2158_v29 = vrot.slane %v2153_v19, 4  ;;  %v2163_v30 = vshll.u32 %v11971_v8, 16  ;;  %v2168_v54 = vshrl.u32 %v11972_v18, 16  ;;  %v11975_v8 = vld [vmem:[%s14866_s13 + $0x4c] sm:$0x8]  ;;  %v14303_v19 = vld [vmem:[#allocation6 + $0x130] sm:$0xff]  }
  0xb4   : > { %v1428_v63 = vsel %vm15206_vm5, %v1423_v27, %v1427_v5  ;;  %v1433_v16 = vrot.slane %v1432_v35, 4  ;;  %v2162_v31 = vrot.slane %v2160_v62, 7  ;;  %v2173_v32 = vshrl.u32 %v11973_v25, 16  ;;  %13360 = vmatmul.mubr.bf16.gmra.mxu0 %v11912_v26  ;;  %v1350_v26 = vld [vmem:[%s14866_s13 + $0x54] sm:$0xf] }
  0xb5   : > { %v2157_v0 = vsel %vm14892_vm2, %v12017_v11, %v2156_v28  ;;  %v12018_v34 = vrot.slane %v2168_v54, 11  ;;  %v2176_v41 = vshll.u32 %v11973_v25, 16  ;;  %v2182_v43 = vshrl.u32 %v11974_v61, 16  ;;  %13408 = vmatmul.mubr.bf16.gmra.mxu1 %v11936_v20  ;;  %13427 = vmatprep.mubr.bf16.mxu0 %v11945_v40  ;;  %v11977_v27 = vld [vmem:[%s14866_s13 + $0x54] sm:$0xf] }
  0xb6   : > { %v1438_v55 = vsel %vm15206_vm5, %v1433_v16, %v1437_v17  ;;  %v2165_v46 = vor.u32 %v2163_v30, %v2162_v31  ;;  %v2175_v57 = vrot.slane %v2173_v32, 7  ;;  %v2185_v23 = vshll.u32 %v11974_v61, 16  ;;  %v14308_v62 = vld [vmem:[#allocation6 + $0x170] sm:$0xff]  }
  0xb7   : > { %v11946_v45 = vcombine.low %v1428_v63, %v1438_v55  ;;  %v2184_v39 = vrot.slane %v2182_v43, 7  ;;  %v1440_v48 = vshrl.u32 %v1346_v44, 16  ;;  %v1443_v49 = vshll.u32 %v1346_v44, 16  ;;  %v11978_v54 = vld [vmem:[%s14866_s13 + $0x64] sm:$0x8]  ;;  %v14304_v55 = vld [vmem:[#allocation6 + $0x128] sm:$0xff]  }
  0xb8   : > { %v2166_v50 = vsel %vm14892_vm2, %v2158_v29, %v2165_v46  ;;  %v2178_v51 = vor.u32 %v2176_v41, %v2175_v57  ;;  %v2180_v21 = vrot.slane %v2175_v57, 4  ;;  %v1449_v56 = vshll.u32 %v1347_v37, 16  ;;  %v11979_v63 = vld [vmem:[%s14866_s13 + $0x68] sm:$0xf] }
  0xb9   : > { %v12033_v59 = vcombine.low %v2157_v0, %v2166_v50  ;;  %v2187_v42 = vor.u32 %v2185_v23, %v2184_v39  ;;  %v1442_v52 = vrot.slane %v1440_v48, 4  ;;  %v1445_v4 = vrot.slane %v1443_v49, 5  ;;  %v11980_v0 = vld [vmem:[%s14866_s13 + $0x6c] sm:$0xf] }
  0xba   : > { %v2179_v6 = vsel %vm14892_vm2, %v12018_v34, %v2178_v51  ;;  %v1451_v20 = vrot.slane %v1449_v56, 5  ;;  %v1453_v24 = vshrl.u32 %v1347_v37, 16  ;;  %v1459_v36 = vshll.u32 %v1348_v60, 16  ;;  %v14310_v49 = vld [vmem:[#allocation6 + $0x168] sm:$0xff]  }
  0xbb   : > { %13475 = vmatprep.mubr.bf16.mxu1 %v12033_v59  ;;  %v2188_v47 = vsel %vm14892_vm2, %v2180_v21, %v2187_v42  ;;  %v1446_v3 = vor.u32 %v1445_v4, %v1442_v52  ;;  %v1464_v15 = vshrl.u32 %v1349_v58, 16  ;;  %v1467_v5 = vshll.u32 %v1349_v58, 16  ;;  %v1352_v56 = vld [vmem:[%s14866_s13 + $0x68] sm:$0xf]  ;;  %v1353_v4 = vld [vmem:[%s14866_s13 + $0x6c] sm:$0xf] }
  0xbc   : > { %v12034_v10 = vcombine.low %v2179_v6, %v2188_v47  ;;  %v1455_v13 = vrot.slane %v1453_v24, 4  ;;  %v1461_v7 = vrot.slane %v1459_v36, 5  ;;  %v1473_v1 = vshll.u32 %v1350_v26, 16  ;;  %13428 = vmatmul.mubr.bf16.vlgmr.msra.gmra.mxu0 %v11946_v45  ;;  %v14305_v47 = vld [vmem:[#allocation6 + $0x120] sm:$0xff]  }
  0xbd   : > { %v1447_v17 = vrot.slane %v1446_v3, 4  ;;  %v1466_v18 = vrot.slane %v1464_v15, 4  ;;  %v1469_v22 = vrot.slane %v1467_v5, 5  ;;  %v1477_v11 = vshrl.u32 %v1350_v26, 16  ;;  %13508 = vmatpush3.bf16.msra.mxu0 %v15116_v38  ;;  %v1354_v26 = vld [vmem:[%s14866_s13 + $0x70] sm:$0x1] }
  0xbe   : > { %v1456_v12 = vor.u32 %v1455_v13, %v1451_v20  ;;  %v1475_v25 = vrot.slane %v1473_v1, 5  ;;  %v1483_v40 = vshll.u32 %v1351_v9, 16  ;;  %v2190_v35 = vshrl.u32 %v11975_v8, 16  ;;  %13476 = vmatmul.mubr.bf16.vlgmr.msra.gmra.mxu1 %v12034_v10  ;;  %13509 = vmatprep.subr.bf16.mxu0 %v14303_v19  ;;  %v1355_v8 = vld [vmem:[%s14866_s13 + $0x80] sm:$0xf] }
  0xbf   : > { %v1452_v61 = vsel %vm15206_vm5, %v1447_v17, %v1451_v20  ;;  %v1470_v28 = vor.u32 %v1469_v22, %v1466_v18  ;;  %v1479_v29 = vrot.slane %v1477_v11, 4  ;;  %v2195_v30 = vshrl.u32 %v11976_v14, 16  ;;  %13556 = vmatpush3.bf16.msra.mxu1 %v15161_v53  ;;  %v14311_v10 = vld [vmem:[#allocation6 + $0x160] sm:$0xff]  }
  0xc0   : > { %v1457_v16 = vrot.slane %v1456_v12, 4  ;;  %v1485_v31 = vrot.slane %v1483_v40, 5  ;;  %v12019_v32 = vrot.slane %v2190_v35, 11  ;;  %v2198_v44 = vshll.u32 %v11976_v14, 16  ;;  %13557 = vmatprep.subr.bf16.mxu1 %v14308_v62  ;;  %v1356_v17 = vld [vmem:[%s14866_s13 + $0x84] sm:$0xf] }
  0xc1   : > { %v1471_v34 = vrot.slane %v1470_v28, 4  ;;  %v1480_v41 = vor.u32 %v1479_v29, %v1475_v25  ;;  %v2197_v43 = vrot.slane %v2195_v30, 7  ;;  %v2204_v37 = vshrl.u32 %v11977_v27, 16  ;;  %13510 = vmatpush3.bf16.msra.mxu0 %v14303_v19  ;;  %v1357_v12 = vld [vmem:[%s14866_s13 + $0x88] sm:$0x1] }
  0xc2   : > { %v1462_v46 = vsel %vm15206_vm5, %v1457_v16, %v1461_v7  ;;  %v2207_v57 = vshll.u32 %v11977_v27, 16  ;;  %v2212_v38 = vshrl.u32 %v11978_v54, 16  ;;  %v2217_v23 = vshrl.u32 %v11979_v63, 16  ;;  %13511 = vmatprep.subr.bf16.mxu0 %v14304_v55 }
  0xc3   : > { %v11947_v60 = vcombine.low %v1452_v61, %v1462_v46  ;;  %v1476_v45 = vsel %vm15206_vm5, %v1471_v34, %v1475_v25  ;;  %v1481_v39 = vrot.slane %v1480_v41, 4  ;;  %v2200_v48 = vor.u32 %v2198_v44, %v2197_v43  ;;  %13558 = vmatpush3.bf16.msra.mxu1 %v14308_v62  ;;  %v14306_v25 = vld [vmem:[#allocation6 + $0x118] sm:$0xff]   ;;  %v11982_v44 = vld [vmem:[%s14866_s13 + $0x80] sm:$0xf]  ;;  %v11983_v46 = vld [vmem:[%s14866_s13 + $0x84] sm:$0xf] }
  0xc4   : > { %v2202_v50 = vrot.slane %v2197_v43, 4  ;;  %v2206_v51 = vrot.slane %v2204_v37, 7  ;;  %v12020_v53 = vrot.slane %v2212_v38, 11  ;;  %v2219_v21 = vrot.slane %v2217_v23, 7  ;;  %13559 = vmatprep.subr.bf16.mxu1 %v14310_v49  ;;  %v11981_v61 = vld [vmem:[%s14866_s13 + $0x7c] sm:$0x8] }
  0xc5   : > { %13431 = vmatprep.mubr.bf16.mxu0 %v11947_v60  ;;  %v1486_v58 = vsel %vm15206_vm5, %v1481_v39, %v1485_v31  ;;  %v2201_v59 = vsel %vm14892_vm2, %v12019_v32, %v2200_v48  ;;  %v2220_v42 = vshll.u32 %v11979_v63, 16  ;;  %v2226_v52 = vshrl.u32 %v11980_v0, 16  ;;  %13512 = vmatpush3.bf16.msra.mxu0 %v14304_v55  ;;  %v14313_v34 = vld [vmem:[#allocation6 + $0x158] sm:$0xff]  }
  0xc6   : > { %v11948_v6 = vcombine.low %v1476_v45, %v1486_v58  ;;  %v2209_v20 = vor.u32 %v2207_v57, %v2206_v51  ;;  %v2224_v24 = vrot.slane %v2219_v21, 4  ;;  %v2229_v36 = vshll.u32 %v11980_v0, 16  ;;  %13513 = vmatprep.subr.bf16.mxu0 %v14305_v47  ;;  %v14309_v0 = vld [vmem:[#allocation6 + $0x110] sm:$0xff]   ;;  %v11985_v51 = vld [vmem:[%s14866_s13 + $0x98] sm:$0xf] }
  0xc7   : > { %v2222_v3 = vor.u32 %v2220_v42, %v2219_v21  ;;  %v2228_v9 = vrot.slane %v2226_v52, 7  ;;  %v1488_v15 = vshrl.u32 %v1352_v56, 16  ;;  %v1491_v5 = vshll.u32 %v1352_v56, 16  ;;  %13560 = vmatpush3.bf16.msra.mxu1 %v14310_v49  ;;  %v11984_v45 = vld [vmem:[%s14866_s13 + $0x94] sm:$0x8] }
  0xc8   : > { %13432 = vmatmul.mubr.bf16.gmra.mxu0 %v11948_v6  ;;  %v2210_v13 = vsel %vm14892_vm2, %v2202_v50, %v2209_v20  ;;  %v1497_v7 = vshll.u32 %v1353_v4, 16  ;;  %v1501_v1 = vshrl.u32 %v1353_v4, 16  ;;  %v1507_v14 = vshll.u32 %v1354_v26, 16  ;;  %13561 = vmatprep.subr.bf16.mxu1 %v14311_v10  ;;  %v14314_v42 = vld [vmem:[#allocation6 + $0x150] sm:$0xff]   ;;  %v1358_v20 = vld [vmem:[%s14866_s13 + $0x98] sm:$0xf] }
  0xc9   : > { %v12035_v18 = vcombine.low %v2201_v59, %v2210_v13  ;;  %v2223_v22 = vsel %vm14892_vm2, %v12020_v53, %v2222_v3  ;;  %v2231_v11 = vor.u32 %v2229_v36, %v2228_v9  ;;  %v1490_v19 = vrot.slane %v1488_v15, 4  ;;  %13514 = vmatpush3.bf16.msra.mxu0 %v14305_v47  ;;  %v11986_v59 = vld [vmem:[%s14866_s13 + $0x9c] sm:$0xf] }
  0xca   : > { %v1493_v40 = vrot.slane %v1491_v5, 5  ;;  %v1499_v27 = vrot.slane %v1497_v7, 5  ;;  %v1503_v35 = vrot.slane %v1501_v1, 4  ;;  %v1509_v62 = vrot.slane %v1507_v14, 5  ;;  %13515 = vmatprep.subr.bf16.mxu0 %v14306_v25 }
  0xcb   : > { %13479 = vmatprep.mubr.bf16.mxu1 %v12035_v18  ;;  %v2232_v28 = vsel %vm14892_vm2, %v2224_v24, %v2231_v11  ;;  %v1512_v29 = vshrl.u32 %v1355_v8, 16  ;;  %v1515_v30 = vshll.u32 %v1355_v8, 16  ;;  %v1521_v54 = vshll.u32 %v1356_v17, 16  ;;  %13562 = vmatpush3.bf16.msra.mxu1 %v14311_v10  ;;  %v14312_v24 = vld [vmem:[#allocation6 + $0x108] sm:$0xff]  }
  0xcc   : > { %v12036_v63 = vcombine.low %v2223_v22, %v2232_v28  ;;  %v1494_v16 = vor.u32 %v1493_v40, %v1490_v19  ;;  %v1504_v31 = vor.u32 %v1503_v35, %v1499_v27  ;;  %v1525_v32 = vshrl.u32 %v1356_v17, 16  ;;  %13563 = vmatprep.subr.bf16.mxu1 %v14313_v34  ;;  %v1359_v17 = vld [vmem:[%s14866_s13 + $0x9c] sm:$0xf]  ;;  %v14315_v28 = vld [vmem:[#allocation6 + $0x100] sm:$0xff]  }
  0xcd   : > { %v1514_v41 = vrot.slane %v1512_v29, 4  ;;  %v1517_v43 = vrot.slane %v1515_v30, 5  ;;  %v1523_v37 = vrot.slane %v1521_v54, 5  ;;  %v1531_v55 = vshll.u32 %v1357_v12, 16  ;;  %13516 = vmatpush3.bf16.msra.mxu0 %v14306_v25  ;;  %v14316_v18 = vld [vmem:[#allocation6 + $0x148] sm:$0xff]  }
  0xce   : > { %13480 = vmatmul.mubr.bf16.gmra.mxu1 %v12036_v63  ;;  %v1495_v57 = vrot.slane %v1494_v16, 4  ;;  %v1505_v38 = vrot.slane %v1504_v31, 4  ;;  %v1527_v23 = vrot.slane %v1525_v32, 4  ;;  %v2234_v60 = vshrl.u32 %v11981_v61, 16  ;;  %13517 = vmatprep.subr.bf16.mxu0 %v14309_v0  ;;  %v1360_v25 = vld [vmem:[%s14866_s13 + $0xa0] sm:$0x1] }
  0xcf   : > { %v1518_v39 = vor.u32 %v1517_v43, %v1514_v41  ;;  %v1533_v48 = vrot.slane %v1531_v55, 5  ;;  %v2239_v49 = vshrl.u32 %v11982_v44, 16  ;;  %v2242_v50 = vshll.u32 %v11982_v44, 16  ;;  %13564 = vmatpush3.bf16.msra.mxu1 %v14313_v34  ;;  %v1361_v61 = vld [vmem:[%s14866_s13 + $0xb0] sm:$0xf] }
  0xd0   : > { %v1500_v53 = vsel %vm15206_vm5, %v1495_v57, %v1499_v27  ;;  %v1510_v21 = vsel %vm15206_vm5, %v1505_v38, %v1509_v62  ;;  %v1528_v56 = vor.u32 %v1527_v23, %v1523_v37  ;;  %v12021_v58 = vrot.slane %v2234_v60, 11  ;;  %13565 = vmatprep.subr.bf16.mxu1 %v14314_v42  ;;  %v1362_v16 = vld [vmem:[%s14866_s13 + $0xb4] sm:$0xf]  ;;  %v1363_v38 = vld [vmem:[%s14866_s13 + $0xb8] sm:$0x1] }
  0xd1   : > { %v11949_v52 = vcombine.low %v1500_v53, %v1510_v21  ;;  %v1519_v4 = vrot.slane %v1518_v39, 4  ;;  %v2241_v26 = vrot.slane %v2239_v49, 7  ;;  %v2248_v6 = vshrl.u32 %v11983_v46, 16  ;;  %13518 = vmatpush3.bf16.msra.mxu0 %v14309_v0  ;;  %v14317_v34 = vld [vmem:[#allocation6 + $0x140] sm:$0xff]  }
  0xd2   : > { %v1529_v36 = vrot.slane %v1528_v56, 4  ;;  %v2251_v47 = vshll.u32 %v11983_v46, 16  ;;  %v2256_v3 = vshrl.u32 %v11984_v45, 16  ;;  %v2261_v9 = vshrl.u32 %v11985_v51, 16  ;;  %13519 = vmatprep.subr.bf16.mxu0 %v14312_v24  ;;  %v15300_v46 = vld [vmem:[#allocation6 + $0x1b8] sm:$0xff]  }
  0xd3   : > { %13435 = vmatprep.mubr.bf16.mxu0 %v11949_v52  ;;  %v1524_v15 = vsel %vm15206_vm5, %v1519_v4, %v1523_v37  ;;  %v2244_v5 = vor.u32 %v2242_v50, %v2241_v26  ;;  %v2246_v8 = vrot.slane %v2241_v26, 4  ;;  %v2250_v10 = vrot.slane %v2248_v6, 7  ;;  %13566 = vmatpush3.bf16.msra.mxu1 %v14314_v42  ;;  %v11988_v53 = vld [vmem:[%s14866_s13 + $0xb0] sm:$0xf]  ;;  %v11989_v42 = vld [vmem:[%s14866_s13 + $0xb4] sm:$0xf] }
  0xd4   : > { %v1534_v13 = vsel %vm15206_vm5, %v1529_v36, %v1533_v48  ;;  %v12022_v7 = vrot.slane %v2256_v3, 11  ;;  %v2263_v1 = vrot.slane %v2261_v9, 7  ;;  %v2264_v14 = vshll.u32 %v11985_v51, 16  ;;  %13567 = vmatprep.subr.bf16.mxu1 %v14316_v18  ;;  %v11987_v51 = vld [vmem:[%s14866_s13 + $0xac] sm:$0x8] }
  0xd5   : > { %v11950_v22 = vcombine.low %v1524_v15, %v1534_v13  ;;  %v2245_v11 = vsel %vm14892_vm2, %v12021_v58, %v2244_v5  ;;  %v2253_v19 = vor.u32 %v2251_v47, %v2250_v10  ;;  %v2270_v12 = vshrl.u32 %v11986_v59, 16  ;;  %13520 = vmatpush3.bf16.msra.mxu0 %v14312_v24  ;;  %v14333_v52 = vld [vmem:[#allocation6 + $0x1f8] sm:$0xff]   ;;  %v11990_v24 = vld [vmem:[%s14866_s13 + $0xc4] sm:$0x8] }
  0xd6   : > { %v2266_v40 = vor.u32 %v2264_v14, %v2263_v1  ;;  %v2268_v27 = vrot.slane %v2263_v1, 4  ;;  %v2273_v35 = vshll.u32 %v11986_v59, 16  ;;  %v1536_v62 = vshrl.u32 %v1358_v20, 16  ;;  %13521 = vmatprep.subr.bf16.mxu0 %v14315_v28  ;;  %v11991_v15 = vld [vmem:[%s14866_s13 + $0xc8] sm:$0xf] }
  0xd7   : > { %13436 = vmatmul.mubr.bf16.gmra.mxu0 %v11950_v22  ;;  %v2254_v29 = vsel %vm14892_vm2, %v2246_v8, %v2253_v19  ;;  %v2272_v30 = vrot.slane %v2270_v12, 7  ;;  %v1539_v54 = vshll.u32 %v1358_v20, 16  ;;  %v1545_v63 = vshll.u32 %v1359_v17, 16  ;;  %13568 = vmatpush3.bf16.msra.mxu1 %v14316_v18  ;;  %v11992_v12 = vld [vmem:[%s14866_s13 + $0xcc] sm:$0xf] }
  0xd8   : > { %v12037_v31 = vcombine.low %v2245_v11, %v2254_v29  ;;  %v2267_v32 = vsel %vm14892_vm2, %v12022_v7, %v2266_v40  ;;  %v1538_v44 = vrot.slane %v1536_v62, 4  ;;  %v1549_v0 = vshrl.u32 %v1359_v17, 16  ;;  %13569 = vmatprep.subr.bf16.mxu1 %v14317_v34  ;;  %v1364_v62 = vld [vmem:[%s14866_s13 + $0xc8] sm:$0xf] }
  0xd9   : > { %v2275_v41 = vor.u32 %v2273_v35, %v2272_v30  ;;  %v1541_v43 = vrot.slane %v1539_v54, 5  ;;  %v1547_v37 = vrot.slane %v1545_v63, 5  ;;  %v1555_v55 = vshll.u32 %v1360_v25, 16  ;;  %13522 = vmatpush3.bf16.msra.mxu0 %v14315_v28  ;;  %v1365_v54 = vld [vmem:[%s14866_s13 + $0xcc] sm:$0xf] }
  0xda   : > { %13483 = vmatprep.mubr.bf16.mxu1 %v12037_v31  ;;  %v1551_v57 = vrot.slane %v1549_v0, 4  ;;  %v1560_v23 = vshrl.u32 %v1361_v61, 16  ;;  %v1563_v60 = vshll.u32 %v1361_v61, 16  ;;  %v1569_v45 = vshll.u32 %v1362_v16, 16  ;;  %13603 = vmatprep.subr.bf16.mxu0 %v15300_v46  ;;  %v1367_v0 = vld [vmem:[%s14866_s13 + $0xe0] sm:$0xf] }
  0xdb   : > { %v2276_v39 = vsel %vm14892_vm2, %v2268_v27, %v2275_v41  ;;  %v1542_v48 = vor.u32 %v1541_v43, %v1538_v44  ;;  %v1557_v49 = vrot.slane %v1555_v55, 5  ;;  %v1573_v50 = vshrl.u32 %v1362_v16, 16  ;;  %13570 = vmatpush3.bf16.msra.mxu1 %v14317_v34  ;;  %v1366_v44 = vld [vmem:[%s14866_s13 + $0xd0] sm:$0x1] }
  0xdc   : > { %v12038_v21 = vcombine.low %v2267_v32, %v2276_v39  ;;  %v1552_v56 = vor.u32 %v1551_v57, %v1547_v37  ;;  %v1562_v58 = vrot.slane %v1560_v23, 4  ;;  %v1565_v59 = vrot.slane %v1563_v60, 5  ;;  %13651 = vmatprep.subr.bf16.mxu1 %v14333_v52 }
  0xdd   : > { %v1543_v4 = vrot.slane %v1542_v48, 4  ;;  %v1571_v26 = vrot.slane %v1569_v45, 5  ;;  %v1575_v6 = vrot.slane %v1573_v50, 4  ;;  %v1579_v20 = vshll.u32 %v1363_v38, 16 }
  0xde   : > { %13484 = vmatmul.mubr.bf16.gmra.mxu1 %v12038_v21  ;;  %v1553_v36 = vrot.slane %v1552_v56, 4  ;;  %v1566_v47 = vor.u32 %v1565_v59, %v1562_v58  ;;  %v2278_v3 = vshrl.u32 %v11987_v51, 16  ;;  %v2283_v9 = vshrl.u32 %v11988_v53, 16  ;;  %v1369_v56 = vld [vmem:[%s14866_s13 + $0xe8] sm:$0x1] }
  0xdf   : > { %v1548_v5 = vsel %vm15206_vm5, %v1543_v4, %v1547_v37  ;;  %v1576_v8 = vor.u32 %v1575_v6, %v1571_v26  ;;  %v1581_v10 = vrot.slane %v1579_v20, 5  ;;  %v2286_v13 = vshll.u32 %v11988_v53, 16  ;;  %v11993_v4 = vld [vmem:[%s14866_s13 + $0xdc] sm:$0x8] }
  0xe0   : > { %v1558_v7 = vsel %vm15206_vm5, %v1553_v36, %v1557_v49  ;;  %v1567_v1 = vrot.slane %v1566_v47, 4  ;;  %v12023_v14 = vrot.slane %v2278_v3, 11  ;;  %v2285_v17 = vrot.slane %v2283_v9, 7  ;;  %v1368_v49 = vld [vmem:[%s14866_s13 + $0xe4] sm:$0xf] }
  0xe1   : > { %v11951_v18 = vcombine.low %v1548_v5, %v1558_v7  ;;  %v1577_v22 = vrot.slane %v1576_v8, 4  ;;  %v2292_v11 = vshrl.u32 %v11989_v42, 16  ;;  %v2295_v19 = vshll.u32 %v11989_v42, 16  ;;  %v11994_v36 = vld [vmem:[%s14866_s13 + $0xe0] sm:$0xf] }
  0xe2   : > { %v1572_v25 = vsel %vm15206_vm5, %v1567_v1, %v1571_v26  ;;  %v2288_v40 = vor.u32 %v2286_v13, %v2285_v17  ;;  %v2290_v27 = vrot.slane %v2285_v17, 4  ;;  %v2300_v35 = vshrl.u32 %v11990_v24, 16 }
  0xe3   : > { %13439 = vmatprep.mubr.bf16.mxu0 %v11951_v18  ;;  %v1582_v61 = vsel %vm15206_vm5, %v1577_v22, %v1581_v10  ;;  %v2294_v28 = vrot.slane %v2292_v11, 7  ;;  %v2305_v29 = vshrl.u32 %v11991_v15, 16  ;;  %v2308_v30 = vshll.u32 %v11991_v15, 16 }
  0xe4   : > { %v11952_v63 = vcombine.low %v1572_v25, %v1582_v61  ;;  %v2289_v16 = vsel %vm14892_vm2, %v12023_v14, %v2288_v40  ;;  %v12024_v31 = vrot.slane %v2300_v35, 11  ;;  %v2314_v32 = vshrl.u32 %v11992_v12, 16  ;;  %v11995_v14 = vld [vmem:[%s14866_s13 + $0xe4] sm:$0xf]  ;;  %v11996_v25 = vld [vmem:[%s14866_s13 + $0xf4] sm:$0x8] }
  0xe5   : > { %v2297_v34 = vor.u32 %v2295_v19, %v2294_v28  ;;  %v2307_v41 = vrot.slane %v2305_v29, 7  ;;  %v2317_v43 = vshll.u32 %v11992_v12, 16  ;;  %v1584_v37 = vshrl.u32 %v1364_v62, 16  ;;  %v11997_v61 = vld [vmem:[%s14866_s13 + $0xf8] sm:$0xf] }
  0xe6   : > { %13440 = vmatmul.mubr.bf16.gmra.mxu0 %v11952_v63  ;;  %v2316_v55 = vrot.slane %v2314_v32, 7  ;;  %v1587_v57 = vshll.u32 %v1364_v62, 16  ;;  %v1593_v38 = vshll.u32 %v1365_v54, 16  ;;  %v1597_v23 = vshrl.u32 %v1365_v54, 16  ;;  %v11998_v63 = vld [vmem:[%s14866_s13 + $0xfc] sm:$0xf] }
  0xe7   : > { %v2298_v60 = vsel %vm14892_vm2, %v2290_v27, %v2297_v34  ;;  %v2310_v45 = vor.u32 %v2308_v30, %v2307_v41  ;;  %v2312_v39 = vrot.slane %v2307_v41, 4  ;;  %v1586_v48 = vrot.slane %v1584_v37, 4 }
  0xe8   : > { %v12039_v50 = vcombine.low %v2289_v16, %v2298_v60  ;;  %v2319_v51 = vor.u32 %v2317_v43, %v2316_v55  ;;  %v1589_v53 = vrot.slane %v1587_v57, 5  ;;  %v1595_v21 = vrot.slane %v1593_v38, 5  ;;  %v1370_v16 = vld [vmem:[%s14866_s13 + $0xf8] sm:$0xf]  ;;  %v1371_v60 = vld [vmem:[%s14866_s13 + $0xfc] sm:$0xf] }
  0xe9   : > { %v2311_v58 = vsel %vm14892_vm2, %v12024_v31, %v2310_v45  ;;  %v1599_v59 = vrot.slane %v1597_v23, 4  ;;  %v1603_v42 = vshll.u32 %v1366_v44, 16  ;;  %v1608_v52 = vshrl.u32 %v1367_v0, 16 }
  0xea   : > { %13487 = vmatprep.mubr.bf16.mxu1 %v12039_v50  ;;  %v2320_v26 = vsel %vm14892_vm2, %v2312_v39, %v2319_v51  ;;  %v1590_v6 = vor.u32 %v1589_v53, %v1586_v48  ;;  %v1611_v20 = vshll.u32 %v1367_v0, 16  ;;  %v1617_v24 = vshll.u32 %v1368_v49, 16  ;;  %v1372_v53 = vld [vmem:[%s14866_s13 + $0x100] sm:$0x1] }
  0xeb   : > { %v12040_v47 = vcombine.low %v2311_v58, %v2320_v26  ;;  %v1600_v3 = vor.u32 %v1599_v59, %v1595_v21  ;;  %v1605_v9 = vrot.slane %v1603_v42, 5  ;;  %v1610_v15 = vrot.slane %v1608_v52, 4  ;;  %v1374_v26 = vld [vmem:[%s14866_s13 + $0x114] sm:$0xf] }
  0xec   : > { %v1591_v5 = vrot.slane %v1590_v6, 4  ;;  %v1613_v8 = vrot.slane %v1611_v20, 5  ;;  %v1619_v10 = vrot.slane %v1617_v24, 5  ;;  %v1621_v13 = vshrl.u32 %v1368_v49, 16 }
  0xed   : > { %13488 = vmatmul.mubr.bf16.gmra.mxu1 %v12040_v47  ;;  %v1601_v7 = vrot.slane %v1600_v3, 4  ;;  %v1627_v1 = vshll.u32 %v1369_v56, 16  ;;  %v2322_v17 = vshrl.u32 %v11993_v4, 16  ;;  %v2327_v18 = vshrl.u32 %v11994_v36, 16  ;;  %v1373_v4 = vld [vmem:[%s14866_s13 + $0x110] sm:$0xf] }
  0xee   : > { %v1596_v22 = vsel %vm15206_vm5, %v1591_v5, %v1595_v21  ;;  %v1614_v11 = vor.u32 %v1613_v8, %v1610_v15  ;;  %v1623_v19 = vrot.slane %v1621_v13, 4  ;;  %v2330_v12 = vshll.u32 %v11994_v36, 16  ;;  %v1375_v47 = vld [vmem:[%s14866_s13 + $0x118] sm:$0x1]  ;;  %v11999_v3 = vld [vmem:[%s14866_s13 + $0x10c] sm:$0x8] }
  0xef   : > { %v1606_v40 = vsel %vm15206_vm5, %v1601_v7, %v1605_v9  ;;  %v1629_v27 = vrot.slane %v1627_v1, 5  ;;  %v12025_v35 = vrot.slane %v2322_v17, 11  ;;  %v2329_v62 = vrot.slane %v2327_v18, 7 }
  0xf0   : > { %v11953_v28 = vcombine.low %v1596_v22, %v1606_v40  ;;  %v1615_v29 = vrot.slane %v1614_v11, 4  ;;  %v1624_v30 = vor.u32 %v1623_v19, %v1619_v10  ;;  %v2336_v54 = vshrl.u32 %v11995_v14, 16 }
  0xf1   : > { %v2332_v31 = vor.u32 %v2330_v12, %v2329_v62  ;;  %v2334_v32 = vrot.slane %v2329_v62, 4  ;;  %v2339_v44 = vshll.u32 %v11995_v14, 16  ;;  %v2344_v0 = vshrl.u32 %v11996_v25, 16 }
  0xf2   : > { %13443 = vmatprep.mubr.bf16.mxu0 %v11953_v28  ;;  %v1620_v34 = vsel %vm15206_vm5, %v1615_v29, %v1619_v10  ;;  %v1625_v41 = vrot.slane %v1624_v30, 4  ;;  %v2338_v43 = vrot.slane %v2336_v54, 7  ;;  %v2349_v37 = vshrl.u32 %v11997_v61, 16  ;;  %v12000_v10 = vld [vmem:[%s14866_s13 + $0x110] sm:$0xf] }
  0xf3   : > { %v2333_v55 = vsel %vm14892_vm2, %v12025_v35, %v2332_v31  ;;  %v12026_v57 = vrot.slane %v2344_v0, 11  ;;  %v2352_v38 = vshll.u32 %v11997_v61, 16  ;;  %v2358_v23 = vshrl.u32 %v11998_v63, 16  ;;  %v12001_v61 = vld [vmem:[%s14866_s13 + $0x114] sm:$0xf] }
  0xf4   : > { %v1630_v45 = vsel %vm15206_vm5, %v1625_v41, %v1629_v27  ;;  %v2341_v39 = vor.u32 %v2339_v44, %v2338_v43  ;;  %v2351_v48 = vrot.slane %v2349_v37, 7  ;;  %v2361_v49 = vshll.u32 %v11998_v63, 16  ;;  %v12003_v31 = vld [vmem:[%s14866_s13 + $0x128] sm:$0xf] }
  0xf5   : > { %v11954_v50 = vcombine.low %v1620_v34, %v1630_v45  ;;  %v2360_v51 = vrot.slane %v2358_v23, 7  ;;  %v1632_v21 = vshrl.u32 %v1370_v16, 16  ;;  %v1635_v56 = vshll.u32 %v1370_v16, 16  ;;  %v12002_v16 = vld [vmem:[%s14866_s13 + $0x124] sm:$0x8] }
  0xf6   : > { %v2342_v58 = vsel %vm14892_vm2, %v2334_v32, %v2341_v39  ;;  %v2354_v59 = vor.u32 %v2352_v38, %v2351_v48  ;;  %v2356_v42 = vrot.slane %v2351_v48, 4  ;;  %v1641_v52 = vshll.u32 %v1371_v60, 16 }
  0xf7   : > { %13444 = vmatmul.mubr.bf16.gmra.mxu0 %v11954_v50  ;;  %v12041_v6 = vcombine.low %v2333_v55, %v2342_v58  ;;  %v2363_v20 = vor.u32 %v2361_v49, %v2360_v51  ;;  %v1634_v24 = vrot.slane %v1632_v21, 4  ;;  %v1637_v36 = vrot.slane %v1635_v56, 5  ;;  %v1376_v58 = vld [vmem:[%s14866_s13 + $0x128] sm:$0xf] }
  0xf8   : > { %v2355_v9 = vsel %vm14892_vm2, %v12026_v57, %v2354_v59  ;;  %v1643_v15 = vrot.slane %v1641_v52, 5  ;;  %v1645_v5 = vshrl.u32 %v1371_v60, 16  ;;  %v1651_v8 = vshll.u32 %v1372_v53, 16  ;;  %v15370_v57 = vld [vmem:[%s14866_s13 + $0x12c] sm:$0xf] }
  0xf9   : > { %13491 = vmatprep.mubr.bf16.mxu1 %v12041_v6  ;;  %v2364_v13 = vsel %vm14892_vm2, %v2356_v42, %v2363_v20  ;;  %v1638_v7 = vor.u32 %v1637_v36, %v1634_v24  ;;  %v1656_v1 = vshrl.u32 %v1373_v4, 16  ;;  %v1659_v14 = vshll.u32 %v1373_v4, 16  ;;  %v1378_v6 = vld [vmem:[%s14866_s13 + $0x130] sm:$0x1] }
  0xfa   : > { %v12042_v17 = vcombine.low %v2355_v9, %v2364_v13  ;;  %v1647_v18 = vrot.slane %v1645_v5, 4  ;;  %v1653_v22 = vrot.slane %v1651_v8, 5  ;;  %v1665_v11 = vshll.u32 %v1374_v26, 16  ;;  %v1380_v9 = vld [vmem:[%s14866_s13 + $0x144] sm:$0xf] }
  0xfb   : > { %v1639_v19 = vrot.slane %v1638_v7, 4  ;;  %v1658_v12 = vrot.slane %v1656_v1, 4  ;;  %v1661_v25 = vrot.slane %v1659_v14, 5  ;;  %v1669_v40 = vshrl.u32 %v1374_v26, 16  ;;  %v1377_v26 = vld [vmem:[%s14866_s13 + $0x12c] sm:$0xf] }
  0xfc   : > { %13492 = vmatmul.mubr.bf16.gmra.mxu1 %v12042_v17  ;;  %v1648_v27 = vor.u32 %v1647_v18, %v1643_v15  ;;  %v1667_v35 = vrot.slane %v1665_v11, 5  ;;  %v1675_v62 = vshll.u32 %v1375_v47, 16  ;;  %v2366_v28 = vshrl.u32 %v11999_v3, 16  ;;  %v1379_v3 = vld [vmem:[%s14866_s13 + $0x140] sm:$0xf] }
  0xfd   : > { %v1644_v29 = vsel %vm15206_vm5, %v1639_v19, %v1643_v15  ;;  %v1662_v30 = vor.u32 %v1661_v25, %v1658_v12  ;;  %v1671_v54 = vrot.slane %v1669_v40, 4  ;;  %v2371_v63 = vshrl.u32 %v12000_v10, 16 }
  0xfe   : > { %v1649_v32 = vrot.slane %v1648_v27, 4  ;;  %v1677_v44 = vrot.slane %v1675_v62, 5  ;;  %v12027_v0 = vrot.slane %v2366_v28, 11  ;;  %v2374_v34 = vshll.u32 %v12000_v10, 16  ;;  %v1381_v27 = vld [vmem:[%s14866_s13 + $0x148] sm:$0x1] }
  0xff   : > { %v1663_v41 = vrot.slane %v1662_v30, 4  ;;  %v1672_v43 = vor.u32 %v1671_v54, %v1667_v35  ;;  %v2373_v37 = vrot.slane %v2371_v63, 7  ;;  %v2380_v55 = vshrl.u32 %v12001_v61, 16 }
 0x100   : > { %v1654_v38 = vsel %vm15206_vm5, %v1649_v32, %v1653_v22  ;;  %v2383_v23 = vshll.u32 %v12001_v61, 16  ;;  %v2388_v60 = vshrl.u32 %v12002_v16, 16  ;;  %v2393_v45 = vshrl.u32 %v12003_v31, 16  ;;  %v15399_v32 = vld [vmem:[%s14866_s13 + $0x144] sm:$0xf] }
 0x101   : > { %v11955_v39 = vcombine.low %v1644_v29, %v1654_v38  ;;  %v1668_v48 = vsel %vm15206_vm5, %v1663_v41, %v1667_v35  ;;  %v1673_v49 = vrot.slane %v1672_v43, 4  ;;  %v2376_v50 = vor.u32 %v2374_v34, %v2373_v37  ;;  %v12005_v29 = vld [vmem:[%s14866_s13 + $0x13c] sm:$0x8]  ;;  %v12008_v43 = vld [vmem:[%s14866_s13 + $0x154] sm:$0x8] }
 0x102   : > { %v2378_v51 = vrot.slane %v2373_v37, 4  ;;  %v2382_v53 = vrot.slane %v2380_v55, 7  ;;  %v12028_v21 = vrot.slane %v2388_v60, 11  ;;  %v2395_v56 = vrot.slane %v2393_v45, 7 }
 0x103   : > { %13447 = vmatprep.mubr.bf16.mxu0 %v11955_v39  ;;  %v1678_v59 = vsel %vm15206_vm5, %v1673_v49, %v1677_v44  ;;  %v2377_v42 = vsel %vm14892_vm2, %v12027_v0, %v2376_v50  ;;  %v2396_v52 = vshll.u32 %v12003_v31, 16  ;;  %v2402_v4 = vshrl.u32 %v15370_v57, 16  ;;  %v15396_v31 = vld [vmem:[%s14866_s13 + $0x140] sm:$0xf]  ;;  %v15405_v49 = vld [vmem:[%s14866_s13 + $0x158] sm:$0xf] }
 0x104   : > { %v11956_v20 = vcombine.low %v1668_v48, %v1678_v59  ;;  %v2385_v24 = vor.u32 %v2383_v23, %v2382_v53  ;;  %v2400_v36 = vrot.slane %v2395_v56, 4  ;;  %v2405_v47 = vshll.u32 %v15370_v57, 16 }
 0x105   : > { %v2398_v15 = vor.u32 %v2396_v52, %v2395_v56  ;;  %v2404_v5 = vrot.slane %v2402_v4, 7  ;;  %v1680_v8 = vshrl.u32 %v1376_v58, 16  ;;  %v1683_v10 = vshll.u32 %v1376_v58, 16  ;;  %v15413_v52 = vld [vmem:[%s14866_s13 + $0x15c] sm:$0xf] }
 0x106   : > { %13448 = vmatmul.mubr.bf16.gmra.mxu0 %v11956_v20  ;;  %v2386_v13 = vsel %vm14892_vm2, %v2378_v51, %v2385_v24  ;;  %v1689_v7 = vshll.u32 %v1377_v26, 16  ;;  %v1693_v1 = vshrl.u32 %v1377_v26, 16  ;;  %v1699_v14 = vshll.u32 %v1378_v6, 16  ;;  %v1382_v24 = vld [vmem:[%s14866_s13 + $0x158] sm:$0xf] }
 0x107   : > { %v12043_v17 = vcombine.low %v2377_v42, %v2386_v13  ;;  %v2399_v18 = vsel %vm14892_vm2, %v12028_v21, %v2398_v15  ;;  %v2407_v22 = vor.u32 %v2405_v47, %v2404_v5  ;;  %v1682_v11 = vrot.slane %v1680_v8, 4  ;;  %v1383_v15 = vld [vmem:[%s14866_s13 + $0x15c] sm:$0xf] }
 0x108   : > { %v1685_v19 = vrot.slane %v1683_v10, 5  ;;  %v1691_v12 = vrot.slane %v1689_v7, 5  ;;  %v1695_v25 = vrot.slane %v1693_v1, 4  ;;  %v1701_v40 = vrot.slane %v1699_v14, 5 }
 0x109   : > { %13495 = vmatprep.mubr.bf16.mxu1 %v12043_v17  ;;  %v2408_v35 = vsel %vm14892_vm2, %v2400_v36, %v2407_v22  ;;  %v1704_v62 = vshrl.u32 %v1379_v3, 16  ;;  %v1707_v61 = vshll.u32 %v1379_v3, 16  ;;  %v1713_v28 = vshll.u32 %v1380_v9, 16 }
 0x10a   : > { %v12044_v30 = vcombine.low %v2399_v18, %v2408_v35  ;;  %v1686_v54 = vor.u32 %v1685_v19, %v1682_v11  ;;  %v1696_v63 = vor.u32 %v1695_v25, %v1691_v12  ;;  %v1717_v16 = vshrl.u32 %v1380_v9, 16  ;;  %v1384_v18 = vld [vmem:[%s14866_s13 + $0x160] sm:$0x1]  ;;  %v1385_v25 = vld [vmem:[%s14866_s13 + $0x170] sm:$0xf] }
 0x10b   : > { %v1706_v44 = vrot.slane %v1704_v62, 4  ;;  %v1709_v0 = vrot.slane %v1707_v61, 5  ;;  %v1715_v34 = vrot.slane %v1713_v28, 5  ;;  %v1723_v41 = vshll.u32 %v1381_v27, 16  ;;  %v1386_v61 = vld [vmem:[%s14866_s13 + $0x174] sm:$0xf] }
 0x10c   : > { %13496 = vmatmul.mubr.bf16.gmra.mxu1 %v12044_v30  ;;  %v1687_v37 = vrot.slane %v1686_v54, 4  ;;  %v1697_v55 = vrot.slane %v1696_v63, 4  ;;  %v1719_v38 = vrot.slane %v1717_v16, 4  ;;  %v2410_v23 = vshrl.u32 %v12005_v29, 16  ;;  %v1387_v63 = vld [vmem:[%s14866_s13 + $0x178] sm:$0x1] }
 0x10d   : > { %v1710_v60 = vor.u32 %v1709_v0, %v1706_v44  ;;  %v1725_v45 = vrot.slane %v1723_v41, 5  ;;  %v2415_v39 = vshrl.u32 %v15396_v31, 16  ;;  %v2418_v48 = vshll.u32 %v15396_v31, 16  ;;  %v12011_v41 = vld [vmem:[%s14866_s13 + $0x16c] sm:$0x8] }
 0x10e   : > { %v1692_v50 = vsel %vm15206_vm5, %v1687_v37, %v1691_v12  ;;  %v1702_v51 = vsel %vm15206_vm5, %v1697_v55, %v1701_v40  ;;  %v1720_v53 = vor.u32 %v1719_v38, %v1715_v34  ;;  %v12029_v21 = vrot.slane %v2410_v23, 11 }
 0x10f   : > { %v11957_v56 = vcombine.low %v1692_v50, %v1702_v51  ;;  %v1711_v58 = vrot.slane %v1710_v60, 4  ;;  %v2417_v59 = vrot.slane %v2415_v39, 7  ;;  %v2424_v42 = vshrl.u32 %v15399_v32, 16 }
 0x110   : > { %v1721_v4 = vrot.slane %v1720_v53, 4  ;;  %v2427_v26 = vshll.u32 %v15399_v32, 16  ;;  %v2432_v6 = vshrl.u32 %v12008_v43, 16  ;;  %v2437_v20 = vshrl.u32 %v15405_v49, 16  ;;  %v15438_v43 = vld [vmem:[%s14866_s13 + $0x170] sm:$0xf] }
 0x111   : > { %13451 = vmatprep.mubr.bf16.mxu0 %v11957_v56  ;;  %v1716_v36 = vsel %vm15206_vm5, %v1711_v58, %v1715_v34  ;;  %v2420_v47 = vor.u32 %v2418_v48, %v2417_v59  ;;  %v2422_v3 = vrot.slane %v2417_v59, 4  ;;  %v2426_v9 = vrot.slane %v2424_v42, 7 }
 0x112   : > { %v1726_v5 = vsel %vm15206_vm5, %v1721_v4, %v1725_v45  ;;  %v12030_v8 = vrot.slane %v2432_v6, 11  ;;  %v2439_v10 = vrot.slane %v2437_v20, 7  ;;  %v2440_v13 = vshll.u32 %v15405_v49, 16  ;;  %v15443_v6 = vld [vmem:[%s14866_s13 + $0x174] sm:$0xf] }
 0x113   : > { %v11958_v7 = vcombine.low %v1716_v36, %v1726_v5  ;;  %v2421_v1 = vsel %vm14892_vm2, %v12029_v21, %v2420_v47  ;;  %v2429_v14 = vor.u32 %v2427_v26, %v2426_v9  ;;  %v2446_v17 = vshrl.u32 %v15413_v52, 16  ;;  %v15451_v5 = vld [vmem:[%s14866_s13 + $0x188] sm:$0xf] }
 0x114   : > { %v2442_v22 = vor.u32 %v2440_v13, %v2439_v10  ;;  %v2444_v11 = vrot.slane %v2439_v10, 4  ;;  %v2449_v19 = vshll.u32 %v15413_v52, 16  ;;  %v1728_v12 = vshrl.u32 %v1382_v24, 16 }
 0x115   : > { %13452 = vmatmul.mubr.bf16.gmra.mxu0 %v11958_v7  ;;  %v2430_v40 = vsel %vm14892_vm2, %v2422_v3, %v2429_v14  ;;  %v2448_v27 = vrot.slane %v2446_v17, 7  ;;  %v1731_v35 = vshll.u32 %v1382_v24, 16  ;;  %v1737_v62 = vshll.u32 %v1383_v15, 16 }
 0x116   : > { %v12045_v28 = vcombine.low %v2421_v1, %v2430_v40  ;;  %v2443_v29 = vsel %vm14892_vm2, %v12030_v8, %v2442_v22  ;;  %v1730_v30 = vrot.slane %v1728_v12, 4  ;;  %v1741_v54 = vshrl.u32 %v1383_v15, 16  ;;  %v12014_v15 = vld [vmem:[%s14866_s13 + $0x184] sm:$0x8]  ;;  %v15456_v1 = vld [vmem:[%s14866_s13 + $0x18c] sm:$0xf] }
 0x117   : > { %v2451_v16 = vor.u32 %v2449_v19, %v2448_v27  ;;  %v1733_v44 = vrot.slane %v1731_v35, 5  ;;  %v1739_v0 = vrot.slane %v1737_v62, 5  ;;  %v1747_v34 = vshll.u32 %v1384_v18, 16  ;;  %v12082_v27 = vld [vmem:[%s14866_s13 + $0x24] sm:$0xf] }
 0x118   : > { %13499 = vmatprep.mubr.bf16.mxu1 %v12045_v28  ;;  %v1743_v37 = vrot.slane %v1741_v54, 4  ;;  %v1752_v55 = vshrl.u32 %v1385_v25, 16  ;;  %v1755_v38 = vshll.u32 %v1385_v25, 16  ;;  %v1761_v23 = vshll.u32 %v1386_v61, 16 }
 0x119   : > { %v2452_v60 = vsel %vm14892_vm2, %v2444_v11, %v2451_v16  ;;  %v1734_v45 = vor.u32 %v1733_v44, %v1730_v30  ;;  %v1749_v39 = vrot.slane %v1747_v34, 5  ;;  %v1765_v48 = vshrl.u32 %v1386_v61, 16  ;;  %v12081_v11 = vld [vmem:[%s14866_s13 + $0x20] sm:$0xf] }
 0x11a   : > { %v12046_v50 = vcombine.low %v2443_v29, %v2452_v60  ;;  %v1744_v51 = vor.u32 %v1743_v37, %v1739_v0  ;;  %v1754_v53 = vrot.slane %v1752_v55, 4  ;;  %v1757_v21 = vrot.slane %v1755_v38, 5  ;;  %v14494_v34 = vld [vmem:[%s14866_s13 + $0x20] sm:$0xf]  ;;  %v14496_v38 = vld [vmem:[%s14866_s13 + $0x38] sm:$0xf] }
 0x11b   : > { %v1735_v56 = vrot.slane %v1734_v45, 4  ;;  %v1763_v58 = vrot.slane %v1761_v23, 5  ;;  %v1767_v59 = vrot.slane %v1765_v48, 4  ;;  %v1771_v42 = vshll.u32 %v1387_v63, 16  ;;  %v14497_v23 = vld [vmem:[%s14866_s13 + $0x3c] sm:$0xf] }
 0x11c   : > { %13500 = vmatmul.mubr.bf16.gmra.mxu1 %v12046_v50  ;;  %v1745_v4 = vrot.slane %v1744_v51, 4  ;;  %v1758_v26 = vor.u32 %v1757_v21, %v1754_v53  ;;  %v2454_v20 = vshrl.u32 %v12011_v41, 16  ;;  %v2459_v24 = vshrl.u32 %v15438_v43, 16  ;;  %v14495_v41 = vld [vmem:[%s14866_s13 + $0x24] sm:$0xf] }
 0x11d   : > { %v1740_v36 = vsel %vm15206_vm5, %v1735_v56, %v1739_v0  ;;  %v1768_v47 = vor.u32 %v1767_v59, %v1763_v58  ;;  %v1773_v3 = vrot.slane %v1771_v42, 5  ;;  %v2462_v9 = vshll.u32 %v15438_v43, 16  ;;  %v12083_v45 = vld [vmem:[%s14866_s13 + $0x28] sm:$0x1]  ;;  %v12084_v56 = vld [vmem:[%s14866_s13 + $0x38] sm:$0xf] }
 0x11e   : > { %v1750_v8 = vsel %vm15206_vm5, %v1745_v4, %v1749_v39  ;;  %v1759_v10 = vrot.slane %v1758_v26, 4  ;;  %v12031_v13 = vrot.slane %v2454_v20, 11  ;;  %v2461_v7 = vrot.slane %v2459_v24, 7  ;;  %v12085_v26 = vld [vmem:[%s14866_s13 + $0x3c] sm:$0xf] }
 0x11f   : > { %v11959_v14 = vcombine.low %v1740_v36, %v1750_v8  ;;  %v1769_v17 = vrot.slane %v1768_v47, 4  ;;  %v2468_v18 = vshrl.u32 %v15443_v6, 16  ;;  %v2471_v22 = vshll.u32 %v15443_v6, 16  ;;  %v12086_v20 = vld [vmem:[%s14866_s13 + $0x40] sm:$0x1] }
 0x120   : > { %v1764_v19 = vsel %vm15206_vm5, %v1759_v10, %v1763_v58  ;;  %v2464_v12 = vor.u32 %v2462_v9, %v2461_v7  ;;  %v2466_v25 = vrot.slane %v2461_v7, 4  ;;  %v2476_v40 = vshrl.u32 %v12014_v15, 16 }
 0x121   : > { %13455 = vmatprep.mubr.bf16.mxu0 %v11959_v14  ;;  %v1774_v35 = vsel %vm15206_vm5, %v1769_v17, %v1773_v3  ;;  %v2470_v62 = vrot.slane %v2468_v18, 7  ;;  %v2481_v61 = vshrl.u32 %v15451_v5, 16  ;;  %v2484_v28 = vshll.u32 %v15451_v5, 16 }
 0x122   : > { %v11960_v29 = vcombine.low %v1764_v19, %v1774_v35  ;;  %v2465_v30 = vsel %vm14892_vm2, %v12031_v13, %v2464_v12  ;;  %v12032_v54 = vrot.slane %v2476_v40, 11  ;;  %v2490_v63 = vshrl.u32 %v15456_v1, 16  ;;  %v12087_v13 = vld [vmem:[%s14866_s13 + $0x50] sm:$0xf] }
 0x123   : > { %v2473_v16 = vor.u32 %v2471_v22, %v2470_v62  ;;  %v2483_v44 = vrot.slane %v2481_v61, 7  ;;  %v2493_v0 = vshll.u32 %v15456_v1, 16  ;;  %v12057_v37 = vcombine.low %v14494_v34, %v14495_v41  ;;  %v14323_v22 = vld [vmem:[#allocation6 + $0x1b0] sm:$0xff]   ;;  %v12089_v34 = vld [vmem:[%s14866_s13 + $0x58] sm:$0x1] }
 0x124   : > { %13456 = vmatmul.mubr.bf16.gmra.mxu0 %v11960_v29  ;;  %v2492_v55 = vrot.slane %v2490_v63, 7  ;;  %v12058_v60 = vcombine.low %v14496_v38, %v14497_v23  ;;  %v3220_v39 = vshrl.u32 %v12081_v11, 16  ;;  %v3223_v48 = vshll.u32 %v12081_v11, 16  ;;  %v14498_v62 = vld [vmem:[%s14866_s13 + $0x50] sm:$0xf] }
 0x125   : > { %v2474_v50 = vsel %vm14892_vm2, %v2466_v25, %v2473_v16  ;;  %v2486_v51 = vor.u32 %v2484_v28, %v2483_v44  ;;  %v2488_v53 = vrot.slane %v2483_v44, 4  ;;  %13523 = vmatprep.mubr.bf16.mxu0 %v12057_v37  ;;  %v3229_v21 = vshll.u32 %v12082_v27, 16  ;;  %v14499_v61 = vld [vmem:[%s14866_s13 + $0x54] sm:$0xf]  ;;  %v14500_v16 = vld [vmem:[%s14866_s13 + $0x68] sm:$0xf] }
 0x126   : > { %v12047_v58 = vcombine.low %v2465_v30, %v2474_v50  ;;  %v2495_v59 = vor.u32 %v2493_v0, %v2492_v55  ;;  %v3222_v42 = vrot.slane %v3220_v39, 4  ;;  %v3225_v4 = vrot.slane %v3223_v48, 5  ;;  %v12088_v29 = vld [vmem:[%s14866_s13 + $0x54] sm:$0xf]  ;;  %v14501_v44 = vld [vmem:[%s14866_s13 + $0x6c] sm:$0xf] }
 0x127   : > { %v2487_v24 = vsel %vm14892_vm2, %v12032_v54, %v2486_v51  ;;  %v3231_v36 = vrot.slane %v3229_v21, 5  ;;  %v3233_v47 = vshrl.u32 %v12082_v27, 16  ;;  %v3239_v3 = vshll.u32 %v12083_v45, 16  ;;  %v12090_v23 = vld [vmem:[%s14866_s13 + $0x68] sm:$0xf] }
 0x128   : > { %13503 = vmatprep.mubr.bf16.mxu1 %v12047_v58  ;;  %v2496_v9 = vsel %vm14892_vm2, %v2488_v53, %v2495_v59  ;;  %v3226_v15 = vor.u32 %v3225_v4, %v3222_v42  ;;  %v3244_v8 = vshrl.u32 %v12084_v56, 16  ;;  %v3247_v10 = vshll.u32 %v12084_v56, 16  ;;  %v12091_v50 = vld [vmem:[%s14866_s13 + $0x6c] sm:$0xf] }
 0x129   : > { %v12048_v7 = vcombine.low %v2487_v24, %v2496_v9  ;;  %v3235_v14 = vrot.slane %v3233_v47, 4  ;;  %v3241_v17 = vrot.slane %v3239_v3, 5  ;;  %v3253_v18 = vshll.u32 %v12085_v26, 16  ;;  %v14326_v51 = vld [vmem:[#allocation6 + $0x1a8] sm:$0xff]  }
 0x12a   : > { %v3227_v11 = vrot.slane %v3226_v15, 4  ;;  %v3246_v19 = vrot.slane %v3244_v8, 4  ;;  %v3249_v12 = vrot.slane %v3247_v10, 5  ;;  %v3257_v25 = vshrl.u32 %v12085_v26, 16  ;;  %v14329_v10 = vld [vmem:[#allocation6 + $0x1a0] sm:$0xff]  }
 0x12b   : > { %13504 = vmatmul.mubr.bf16.gmra.mxu1 %v12048_v7  ;;  %v3236_v40 = vor.u32 %v3235_v14, %v3231_v36  ;;  %v3255_v27 = vrot.slane %v3253_v18, 5  ;;  %v3263_v35 = vshll.u32 %v12086_v20, 16  ;;  %v12059_v28 = vcombine.low %v14498_v62, %v14499_v61  ;;  %v12093_v18 = vld [vmem:[%s14866_s13 + $0x80] sm:$0xf]  ;;  %v14503_v61 = vld [vmem:[%s14866_s13 + $0x84] sm:$0xf] }
 0x12c   : > { %13524 = vmatmul.mubr.bf16.vlgmr.msra.gmra.mxu0 %v12058_v60  ;;  %v3232_v30 = vsel %vm15206_vm5, %v3227_v11, %v3231_v36  ;;  %v3250_v54 = vor.u32 %v3249_v12, %v3246_v19  ;;  %v3259_v63 = vrot.slane %v3257_v25, 4  ;;  %v12060_v0 = vcombine.low %v14500_v16, %v14501_v44  ;;  %v14502_v62 = vld [vmem:[%s14866_s13 + $0x80] sm:$0xf]  ;;  %v14332_v16 = vld [vmem:[#allocation6 + $0x198] sm:$0xff]  }
 0x12d   : > { %v3237_v41 = vrot.slane %v3236_v40, 4  ;;  %13604 = vmatpush3.bf16.msra.mxu0 %v15300_v46  ;;  %v3265_v37 = vrot.slane %v3263_v35, 5  ;;  %13527 = vmatprep.mubr.bf16.mxu0 %v12059_v28  ;;  %v3268_v55 = vshrl.u32 %v12087_v13, 16  ;;  %v3271_v38 = vshll.u32 %v12087_v13, 16  ;;  %v12092_v46 = vld [vmem:[%s14866_s13 + $0x70] sm:$0x1] }
 0x12e   : > { %v3251_v60 = vrot.slane %v3250_v54, 4  ;;  %v3260_v45 = vor.u32 %v3259_v63, %v3255_v27  ;;  %13605 = vmatprep.subr.bf16.mxu0 %v14323_v22  ;;  %v3277_v39 = vshll.u32 %v12088_v29, 16  ;;  %v3281_v48 = vshrl.u32 %v12088_v29, 16  ;;  %v12094_v40 = vld [vmem:[%s14866_s13 + $0x84] sm:$0xf] }
 0x12f   : > { %v3242_v53 = vsel %vm15206_vm5, %v3237_v41, %v3241_v17  ;;  %v3270_v21 = vrot.slane %v3268_v55, 4  ;;  %v3273_v56 = vrot.slane %v3271_v38, 5  ;;  %v3287_v58 = vshll.u32 %v12089_v34, 16  ;;  %v14504_v29 = vld [vmem:[%s14866_s13 + $0x98] sm:$0xf] }
 0x130   : > { %v12129_v59 = vcombine.low %v3232_v30, %v3242_v53  ;;  %v3256_v42 = vsel %vm15206_vm5, %v3251_v60, %v3255_v27  ;;  %v3261_v4 = vrot.slane %v3260_v45, 4  ;;  %v3279_v26 = vrot.slane %v3277_v39, 5  ;;  %v14505_v30 = vld [vmem:[%s14866_s13 + $0x9c] sm:$0xf]  ;;  %v12095_v63 = vld [vmem:[%s14866_s13 + $0x88] sm:$0x1] }
 0x131   : > { %v3274_v20 = vor.u32 %v3273_v56, %v3270_v21  ;;  %v3283_v24 = vrot.slane %v3281_v48, 4  ;;  %v3289_v36 = vrot.slane %v3287_v58, 5  ;;  %13606 = vmatpush3.bf16.msra.mxu0 %v14323_v22  ;;  %v3292_v47 = vshrl.u32 %v12090_v23, 16  ;;  %v14334_v22 = vld [vmem:[#allocation6 + $0x1f0] sm:$0xff]   ;;  %v14506_v55 = vld [vmem:[#allocation6 + $0x1f8] sm:$0xff]   ;;  %v14338_v53 = vld [vmem:[#allocation6 + $0x1e8] sm:$0xff]  }
 0x132   : > { %13571 = vmatprep.mubr.bf16.mxu1 %v12129_v59  ;;  %v3266_v3 = vsel %vm15206_vm5, %v3261_v4, %v3265_v37  ;;  %v3295_v9 = vshll.u32 %v12090_v23, 16  ;;  %v3301_v15 = vshll.u32 %v12091_v50, 16  ;;  %v3305_v8 = vshrl.u32 %v12091_v50, 16  ;;  %13607 = vmatprep.subr.bf16.mxu0 %v14326_v51  ;;  %v12096_v37 = vld [vmem:[%s14866_s13 + $0x98] sm:$0xf] }
 0x133   : > { %v12130_v13 = vcombine.low %v3256_v42, %v3266_v3  ;;  %v3275_v7 = vrot.slane %v3274_v20, 4  ;;  %v3284_v14 = vor.u32 %v3283_v24, %v3279_v26  ;;  %v3294_v17 = vrot.slane %v3292_v47, 4  ;;  %v12097_v59 = vld [vmem:[%s14866_s13 + $0x9c] sm:$0xf] }
 0x134   : > { %13528 = vmatmul.mubr.bf16.gmra.mxu0 %v12060_v0  ;;  %v3297_v11 = vrot.slane %v3295_v9, 5  ;;  %v3303_v19 = vrot.slane %v3301_v15, 5  ;;  %v3307_v12 = vrot.slane %v3305_v8, 4  ;;  %v3311_v25 = vshll.u32 %v12092_v46, 16  ;;  %v12099_v8 = vld [vmem:[%s14866_s13 + $0xb0] sm:$0xf] }
 0x135   : > { %13572 = vmatmul.mubr.bf16.vlgmr.msra.gmra.mxu1 %v12130_v13  ;;  %v3280_v27 = vsel %vm15206_vm5, %v3275_v7, %v3279_v26  ;;  %v3285_v35 = vrot.slane %v3284_v14, 4  ;;  %v12061_v28 = vcombine.low %v14502_v62, %v14503_v61  ;;  %v12062_v54 = vcombine.low %v14504_v29, %v14505_v30  ;;  %13608 = vmatpush3.bf16.msra.mxu0 %v14326_v51  ;;  %v12098_v26 = vld [vmem:[%s14866_s13 + $0xa0] sm:$0x1]  ;;  %v14509_v61 = vld [vmem:[%s14866_s13 + $0xc8] sm:$0xf] }
 0x136   : > { %v3298_v44 = vor.u32 %v3297_v11, %v3294_v17  ;;  %v3308_v0 = vor.u32 %v3307_v12, %v3303_v19  ;;  %v3313_v34 = vrot.slane %v3311_v25, 5  ;;  %v3316_v41 = vshrl.u32 %v12093_v18, 16  ;;  %13609 = vmatprep.subr.bf16.mxu0 %v14329_v10  ;;  %13652 = vmatpush3.bf16.msra.mxu1 %v14506_v55  ;;  %v14507_v12 = vld [vmem:[%s14866_s13 + $0xb0] sm:$0xf]  ;;  %v14508_v25 = vld [vmem:[%s14866_s13 + $0xb4] sm:$0xf] }
 0x137   : > { %v3290_v38 = vsel %vm15206_vm5, %v3285_v35, %v3289_v36  ;;  %13531 = vmatprep.mubr.bf16.mxu0 %v12061_v28  ;;  %v3319_v23 = vshll.u32 %v12093_v18, 16  ;;  %v3325_v60 = vshll.u32 %v12094_v40, 16  ;;  %v3329_v45 = vshrl.u32 %v12094_v40, 16  ;;  %13653 = vmatprep.subr.bf16.mxu1 %v14334_v22  ;;  %v14337_v36 = vld [vmem:[#allocation6 + $0x190] sm:$0xff]   ;;  %v14510_v28 = vld [vmem:[%s14866_s13 + $0xcc] sm:$0xf] }
 0x138   : > { %v12131_v39 = vcombine.low %v3280_v27, %v3290_v38  ;;  %v3299_v48 = vrot.slane %v3298_v44, 4  ;;  %v3309_v50 = vrot.slane %v3308_v0, 4  ;;  %v3318_v51 = vrot.slane %v3316_v41, 4  ;;  %v12100_v30 = vld [vmem:[%s14866_s13 + $0xb4] sm:$0xf] }
 0x139   : > { %v3321_v21 = vrot.slane %v3319_v23, 5  ;;  %v3327_v56 = vrot.slane %v3325_v60, 5  ;;  %v3331_v58 = vrot.slane %v3329_v45, 4  ;;  %v3335_v46 = vshll.u32 %v12095_v63, 16  ;;  %13610 = vmatpush3.bf16.msra.mxu0 %v14329_v10  ;;  %v14339_v10 = vld [vmem:[#allocation6 + $0x1e0] sm:$0xff]   ;;  %v14343_v45 = vld [vmem:[#allocation6 + $0x1d8] sm:$0xff]  }
 0x13a   : > { %13575 = vmatprep.mubr.bf16.mxu1 %v12131_v39  ;;  %v3304_v42 = vsel %vm15206_vm5, %v3299_v48, %v3303_v19  ;;  %v3314_v4 = vsel %vm15206_vm5, %v3309_v50, %v3313_v34  ;;  %v3340_v20 = vshrl.u32 %v12096_v37, 16  ;;  %v3343_v24 = vshll.u32 %v12096_v37, 16  ;;  %13611 = vmatprep.subr.bf16.mxu0 %v14332_v16  ;;  %v12102_v34 = vld [vmem:[%s14866_s13 + $0xc8] sm:$0xf]  ;;  %v12103_v60 = vld [vmem:[%s14866_s13 + $0xcc] sm:$0xf] }
 0x13b   : > { %v12132_v47 = vcombine.low %v3304_v42, %v3314_v4  ;;  %v3322_v3 = vor.u32 %v3321_v21, %v3318_v51  ;;  %v3332_v9 = vor.u32 %v3331_v58, %v3327_v56  ;;  %v3337_v15 = vrot.slane %v3335_v46, 5  ;;  %13654 = vmatpush3.bf16.msra.mxu1 %v14334_v22  ;;  %v14342_v22 = vld [vmem:[#allocation6 + $0x188] sm:$0xff]   ;;  %v14347_v42 = vld [vmem:[#allocation6 + $0x180] sm:$0xff]  }
 0x13c   : > { %13532 = vmatmul.mubr.bf16.gmra.mxu0 %v12062_v54  ;;  %v3342_v13 = vrot.slane %v3340_v20, 4  ;;  %v3345_v7 = vrot.slane %v3343_v24, 5  ;;  %v3349_v14 = vshll.u32 %v12097_v59, 16  ;;  %v3353_v17 = vshrl.u32 %v12097_v59, 16  ;;  %13655 = vmatprep.subr.bf16.mxu1 %v14338_v53  ;;  %v12101_v54 = vld [vmem:[%s14866_s13 + $0xb8] sm:$0x1]  ;;  %v15535_v41 = vpop.f32.mrf.mxu0 }
 0x13d   : > { %13576 = vmatmul.mubr.bf16.gmra.mxu1 %v12132_v47  ;;  %v3323_v18 = vrot.slane %v3322_v3, 4  ;;  %v3333_v11 = vrot.slane %v3332_v9, 4  ;;  %v3359_v19 = vshll.u32 %v12098_v26, 16  ;;  %v12063_v40 = vcombine.low %v14507_v12, %v14508_v25  ;;  %13612 = vmatpush3.bf16.msra.mxu0 %v14332_v16  ;;  %v15538_v39 = vpop.f32.mrf.mxu1  ;;  %v12104_v47 = vld [vmem:[%s14866_s13 + $0xd0] sm:$0x1] }
 0x13e   : > { %v3346_v27 = vor.u32 %v3345_v7, %v3342_v13  ;;  %v3351_v35 = vrot.slane %v3349_v14, 5  ;;  %v3355_v62 = vrot.slane %v3353_v17, 4  ;;  %v12064_v29 = vcombine.low %v14509_v61, %v14510_v28  ;;  %13613 = vmatprep.subr.bf16.mxu0 %v14337_v36  ;;  %v12106_v28 = vld [vmem:[%s14866_s13 + $0xe4] sm:$0xf] }
 0x13f   : > { %v3328_v63 = vsel %vm15206_vm5, %v3323_v18, %v3327_v56  ;;  %v3338_v44 = vsel %vm15206_vm5, %v3333_v11, %v3337_v15  ;;  %v3361_v0 = vrot.slane %v3359_v19, 5  ;;  %13535 = vmatprep.mubr.bf16.mxu0 %v12063_v40  ;;  %v3364_v16 = vshrl.u32 %v12099_v8, 16  ;;  %13656 = vmatpush3.bf16.msra.mxu1 %v14338_v53  ;;  %v15540_v56 = vpop.f32.mrf.mxu0  ;;  %v15544_v4 = vpop.f32.mrf.mxu1  ;;  %v14344_v19 = vld [vmem:[#allocation6 + $0x1d0] sm:$0xff]  }
 0x140   : > { %v12133_v37 = vcombine.low %v3328_v63, %v3338_v44  ;;  %v3347_v55 = vrot.slane %v3346_v27, 4  ;;  %v3356_v38 = vor.u32 %v3355_v62, %v3351_v35  ;;  %v3367_v23 = vshll.u32 %v12099_v8, 16  ;;  %13657 = vmatprep.subr.bf16.mxu1 %v14339_v10  ;;  %v14512_v62 = vld [vmem:[%s14866_s13 + $0xe4] sm:$0xf]  ;;  %v14513_v44 = vld [vmem:[%s14866_s13 + $0xf8] sm:$0xf] }
 0x141   : > { %v3366_v48 = vrot.slane %v3364_v16, 4  ;;  %v3373_v50 = vshll.u32 %v12100_v30, 16  ;;  %v3377_v51 = vshrl.u32 %v12100_v30, 16  ;;  %v3383_v21 = vshll.u32 %v12101_v54, 16  ;;  %13614 = vmatpush3.bf16.msra.mxu0 %v14337_v36  ;;  %v15547_v36 = vpop.f32.mrf.mxu0  ;;  %v15551_v7 = vpop.f32.mrf.mxu1 }
 0x142   : > { %13579 = vmatprep.mubr.bf16.mxu1 %v12133_v37  ;;  %v3352_v53 = vsel %vm15206_vm5, %v3347_v55, %v3351_v35  ;;  %v3357_v58 = vrot.slane %v3356_v38, 4  ;;  %v3369_v46 = vrot.slane %v3367_v23, 5  ;;  %v3388_v59 = vshrl.u32 %v12102_v34, 16  ;;  %13615 = vmatprep.subr.bf16.mxu0 %v14342_v22  ;;  %v14511_v35 = vld [vmem:[%s14866_s13 + $0xe0] sm:$0xf] }
 0x143   : > { %v3375_v26 = vrot.slane %v3373_v50, 5  ;;  %v3379_v20 = vrot.slane %v3377_v51, 4  ;;  %v3385_v24 = vrot.slane %v3383_v21, 5  ;;  %v3391_v3 = vshll.u32 %v12102_v34, 16  ;;  %13658 = vmatpush3.bf16.msra.mxu1 %v14339_v10  ;;  %v12105_v10 = vld [vmem:[%s14866_s13 + $0xe0] sm:$0xf]  ;;  %v15554_v12 = vpop.f32.mrf.mxu0  ;;  %v15561_v30 = vpop.f32.mrf.mxu1 }
 0x144   : > { %v3362_v9 = vsel %vm15206_vm5, %v3357_v58, %v3361_v0  ;;  %13536 = vmatmul.mubr.bf16.gmra.mxu0 %v12064_v29  ;;  %v3370_v15 = vor.u32 %v3369_v46, %v3366_v48  ;;  %v3390_v8 = vrot.slane %v3388_v59, 4  ;;  %v3397_v13 = vshll.u32 %v12103_v60, 16  ;;  %13659 = vmatprep.subr.bf16.mxu1 %v14343_v45  ;;  %18972 = vst [vmem:[#allocation15_spill] sm:$0xff] %v15554_v12  ;;  %v15559_v29 = vld [vmem:[#allocation6 + $0x238] sm:$0xff]  }
 0x145   : > { %v12134_v14 = vcombine.low %v3352_v53, %v3362_v9  ;;  %v3380_v17 = vor.u32 %v3379_v20, %v3375_v26  ;;  %v3393_v18 = vrot.slane %v3391_v3, 5  ;;  %v3401_v11 = vshrl.u32 %v12103_v60, 16  ;;  %13616 = vmatpush3.bf16.msra.mxu0 %v14342_v22  ;;  %18973 = vst [vmem:[#allocation16_spill] sm:$0xff] %v15561_v30  ;;  %v14514_v0 = vld [vmem:[%s14866_s13 + $0xfc] sm:$0xf]  ;;  %v15565_v34 = vpop.f32.mrf.mxu0  ;;  %v15570_v48 = vpop.f32.mrf.mxu1 }
 0x146   : > { %v3371_v25 = vrot.slane %v3370_v15, 4  ;;  %v3399_v40 = vrot.slane %v3397_v13, 5  ;;  %v3407_v27 = vshll.u32 %v12104_v47, 16  ;;  %v12065_v61 = vcombine.low %v14511_v35, %v14512_v62  ;;  %13617 = vmatprep.subr.bf16.mxu0 %v14347_v42  ;;  %v12107_v38 = vld [vmem:[%s14866_s13 + $0xe8] sm:$0x1] }
 0x147   : > { %13580 = vmatmul.mubr.bf16.gmra.mxu1 %v12134_v14  ;;  %v3381_v22 = vrot.slane %v3380_v17, 4  ;;  %v3394_v54 = vor.u32 %v3393_v18, %v3390_v8  ;;  %v3403_v63 = vrot.slane %v3401_v11, 4  ;;  %v12066_v16 = vcombine.low %v14513_v44, %v14514_v0  ;;  %v12108_v58 = vld [vmem:[%s14866_s13 + $0xf8] sm:$0xf]  ;;  %v15575_v46 = vpop.f32.mrf.mxu0  ;;  %v12109_v3 = vld [vmem:[%s14866_s13 + $0xfc] sm:$0xf]  ;;  %v15579_v9 = vpop.f32.mrf.mxu1 }
 0x148   : > { %v3376_v37 = vsel %vm15206_vm5, %v3371_v25, %v3375_v26  ;;  %v3409_v55 = vrot.slane %v3407_v27, 5  ;;  %13539 = vmatprep.mubr.bf16.mxu0 %v12065_v61  ;;  %v3412_v23 = vshrl.u32 %v12105_v10, 16  ;;  %v3415_v60 = vshll.u32 %v12105_v10, 16  ;;  %13660 = vmatpush3.bf16.msra.mxu1 %v14343_v45  ;;  %v14348_v45 = vld [vmem:[#allocation6 + $0x1c8] sm:$0xff]   ;;  %v12110_v18 = vld [vmem:[%s14866_s13 + $0x100] sm:$0x1] }
 0x149   : > { %v3386_v50 = vsel %vm15206_vm5, %v3381_v22, %v3385_v24  ;;  %v3395_v51 = vrot.slane %v3394_v54, 4  ;;  %v3404_v21 = vor.u32 %v3403_v63, %v3399_v40  ;;  %v3421_v53 = vshll.u32 %v12106_v28, 16  ;;  %13661 = vmatprep.subr.bf16.mxu1 %v14344_v19  ;;  %13618 = vmatpush3.bf16.msra.mxu0 %v14347_v42  ;;  %v15583_v42 = vpop.f32.mrf.mxu0  ;;  %v15586_v25 = vpop.f32.mrf.mxu1  ;;  %v14349_v61 = vld [vmem:[#allocation6 + $0x1c0] sm:$0xff]  }
 0x14a   : > { %v12135_v59 = vcombine.low %v3376_v37, %v3386_v50  ;;  %v3414_v26 = vrot.slane %v3412_v23, 4  ;;  %v3417_v20 = vrot.slane %v3415_v60, 5  ;;  %v3425_v47 = vshrl.u32 %v12106_v28, 16  ;;  %13699 = vmatprep.subr.bf16.mxu0 %v15559_v29  ;;  %v12111_v0 = vld [vmem:[%s14866_s13 + $0x110] sm:$0xf] }
 0x14b   : > { %v3400_v24 = vsel %vm15206_vm5, %v3395_v51, %v3399_v40  ;;  %v3405_v15 = vrot.slane %v3404_v21, 4  ;;  %v3423_v8 = vrot.slane %v3421_v53, 5  ;;  %v3431_v13 = vshll.u32 %v12107_v38, 16  ;;  %v15590_v28 = vpop.f32.mrf.mxu0  ;;  %v14515_v21 = vld [vmem:[%s14866_s13 + $0x110] sm:$0xf] }
 0x14c   : > { %13583 = vmatprep.mubr.bf16.mxu1 %v12135_v59  ;;  %13540 = vmatmul.mubr.bf16.gmra.mxu0 %v12066_v16  ;;  %v3418_v14 = vor.u32 %v3417_v20, %v3414_v26  ;;  %v3427_v17 = vrot.slane %v3425_v47, 4  ;;  %v3436_v11 = vshrl.u32 %v12108_v58, 16  ;;  %v3439_v10 = vshll.u32 %v12108_v58, 16  ;;  %18974 = vst [vmem:[#allocation17_spill] sm:$0xff] %v15590_v28  ;;  %v15593_v16 = vpop.f32.mrf.mxu1  ;;  %v14516_v53 = vld [vmem:[%s14866_s13 + $0x114] sm:$0xf] }
 0x14d   : > { %v3410_v27 = vsel %vm15206_vm5, %v3405_v15, %v3409_v55  ;;  %v3433_v35 = vrot.slane %v3431_v13, 5  ;;  %v3445_v40 = vshll.u32 %v12109_v3, 16  ;;  %v3449_v62 = vshrl.u32 %v12109_v3, 16  ;;  %13662 = vmatpush3.bf16.msra.mxu1 %v14344_v19  ;;  %18975 = vst [vmem:[#allocation18_spill] sm:$0xff] %v15593_v16  ;;  %v12112_v19 = vld [vmem:[%s14866_s13 + $0x114] sm:$0xf]  ;;  %v15596_v60 = vpop.f32.mrf.mxu0 }
 0x14e   : > { %v12136_v22 = vcombine.low %v3400_v24, %v3410_v27  ;;  %v3419_v54 = vrot.slane %v3418_v14, 4  ;;  %v3428_v63 = vor.u32 %v3427_v17, %v3423_v8  ;;  %v3438_v44 = vrot.slane %v3436_v11, 4  ;;  %13663 = vmatprep.subr.bf16.mxu1 %v14348_v45  ;;  %v14517_v59 = vld [vmem:[%s14866_s13 + $0x128] sm:$0xf]  ;;  %v15604_v20 = vpop.f32.mrf.mxu1  ;;  %v12113_v15 = vld [vmem:[%s14866_s13 + $0x118] sm:$0x1] }
 0x14f   : > { %v3441_v37 = vrot.slane %v3439_v10, 5  ;;  %v3447_v55 = vrot.slane %v3445_v40, 5  ;;  %v3451_v38 = vrot.slane %v3449_v62, 4  ;;  %v3455_v23 = vshll.u32 %v12110_v18, 16  ;;  %v12114_v14 = vld [vmem:[%s14866_s13 + $0x128] sm:$0xf]  ;;  %v15608_v17 = vpop.f32.mrf.mxu0 }
 0x150   : > { %13584 = vmatmul.mubr.bf16.gmra.mxu1 %v12136_v22  ;;  %v3424_v50 = vsel %vm15206_vm5, %v3419_v54, %v3423_v8  ;;  %v3429_v51 = vrot.slane %v3428_v63, 4  ;;  %v12067_v58 = vcombine.low %v14515_v21, %v14516_v53  ;;  %v12068_v26 = vcombine.low %v14517_v59, %v15370_v57  ;;  %v15612_v57 = vpop.f32.mrf.mxu1  ;;  %v12155_v28 = vld [vmem:[%s14866_s13 + $0x3c] sm:$0xf] }
 0x151   : > { %v3442_v47 = vor.u32 %v3441_v37, %v3438_v44  ;;  %v3452_v3 = vor.u32 %v3451_v38, %v3447_v55  ;;  %v3457_v24 = vrot.slane %v3455_v23, 5  ;;  %v3460_v13 = vshrl.u32 %v12111_v0, 16  ;;  %13664 = vmatpush3.bf16.msra.mxu1 %v14348_v45  ;;  %v15614_v54 = vpop.f32.mrf.mxu0  ;;  %v12115_v37 = vld [vmem:[%s14866_s13 + $0x12c] sm:$0xf] }
 0x152   : > { %v3434_v8 = vsel %vm15206_vm5, %v3429_v51, %v3433_v35  ;;  %13543 = vmatprep.mubr.bf16.mxu0 %v12067_v58  ;;  %v3463_v18 = vshll.u32 %v12111_v0, 16  ;;  %v3469_v11 = vshll.u32 %v12112_v19, 16  ;;  %v3473_v10 = vshrl.u32 %v12112_v19, 16  ;;  %13665 = vmatprep.subr.bf16.mxu1 %v14349_v61  ;;  %v15617_v0 = vpop.f32.mrf.mxu1  ;;  %v12116_v19 = vld [vmem:[%s14866_s13 + $0x130] sm:$0x1] }
 0x153   : > { %v12137_v27 = vcombine.low %v3424_v50, %v3434_v8  ;;  %v3443_v40 = vrot.slane %v3442_v47, 4  ;;  %v3453_v62 = vrot.slane %v3452_v3, 4  ;;  %v3462_v22 = vrot.slane %v3460_v13, 4  ;;  %v15624_v21 = vpop.f32.mrf.mxu0  ;;  %v12117_v47 = vld [vmem:[%s14866_s13 + $0x140] sm:$0xf] }
 0x154   : > { %13544 = vmatmul.mubr.bf16.gmra.mxu0 %v12068_v26  ;;  %v3465_v45 = vrot.slane %v3463_v18, 5  ;;  %v3471_v63 = vrot.slane %v3469_v11, 5  ;;  %v3475_v44 = vrot.slane %v3473_v10, 4  ;;  %v3479_v35 = vshll.u32 %v12113_v15, 16  ;;  %18976 = vst [vmem:[#allocation19_spill] sm:$0xff] %v15624_v21  ;;  %v15627_v3 = vpop.f32.mrf.mxu1 }
 0x155   : > { %13587 = vmatprep.mubr.bf16.mxu1 %v12137_v27  ;;  %v3448_v38 = vsel %vm15206_vm5, %v3443_v40, %v3447_v55  ;;  %v3458_v23 = vsel %vm15206_vm5, %v3453_v62, %v3457_v24  ;;  %v3484_v50 = vshrl.u32 %v12114_v14, 16  ;;  %v3487_v51 = vshll.u32 %v12114_v14, 16  ;;  %13666 = vmatpush3.bf16.msra.mxu1 %v14349_v61  ;;  %18977 = vst [vmem:[#allocation20_spill] sm:$0xff] %v15627_v3  ;;  %v12118_v24 = vld [vmem:[%s14866_s13 + $0x144] sm:$0xf]  ;;  %v15630_v18 = vpop.f32.mrf.mxu0 }
 0x156   : > { %v12138_v53 = vcombine.low %v3448_v38, %v3458_v23  ;;  %v3466_v58 = vor.u32 %v3465_v45, %v3462_v22  ;;  %v3476_v59 = vor.u32 %v3475_v44, %v3471_v63  ;;  %v3481_v26 = vrot.slane %v3479_v35, 5  ;;  %v15634_v27 = vpop.f32.mrf.mxu1  ;;  %v12119_v44 = vld [vmem:[%s14866_s13 + $0x148] sm:$0x1] }
 0x157   : > { %v3486_v15 = vrot.slane %v3484_v50, 4  ;;  %v3489_v55 = vrot.slane %v3487_v51, 5  ;;  %v3493_v13 = vshll.u32 %v12115_v37, 16  ;;  %v3497_v8 = vshrl.u32 %v12115_v37, 16  ;;  %v15639_v35 = vpop.f32.mrf.mxu0 }
 0x158   : > { %13588 = vmatmul.mubr.bf16.gmra.mxu1 %v12138_v53  ;;  %v3467_v14 = vrot.slane %v3466_v58, 4  ;;  %v3477_v61 = vrot.slane %v3476_v59, 4  ;;  %v3503_v11 = vshll.u32 %v12116_v19, 16  ;;  %v12069_v10 = vcombine.low %v15396_v31, %v15399_v32  ;;  %v12120_v32 = vld [vmem:[%s14866_s13 + $0x158] sm:$0xf]  ;;  %v15646_v19 = vpop.f32.mrf.mxu1 }
 0x159   : > { %v3490_v40 = vor.u32 %v3489_v55, %v3486_v15  ;;  %v3495_v62 = vrot.slane %v3493_v13, 5  ;;  %v3499_v22 = vrot.slane %v3497_v8, 4  ;;  %v12070_v45 = vcombine.low %v15405_v49, %v15413_v52  ;;  %v12121_v52 = vld [vmem:[%s14866_s13 + $0x15c] sm:$0xf]  ;;  %v15649_v58 = vpop.f32.mrf.mxu0 }
 0x15a   : > { %v3472_v37 = vsel %vm15206_vm5, %v3467_v14, %v3471_v63  ;;  %v3482_v38 = vsel %vm15206_vm5, %v3477_v61, %v3481_v26  ;;  %v3505_v23 = vrot.slane %v3503_v11, 5  ;;  %13547 = vmatprep.mubr.bf16.mxu0 %v12069_v10  ;;  %v3508_v31 = vshrl.u32 %v12117_v47, 16  ;;  %v12122_v26 = vld [vmem:[%s14866_s13 + $0x160] sm:$0x1]  ;;  %v15652_v13 = vpop.f32.mrf.mxu1 }
 0x15b   : > { %v12139_v50 = vcombine.low %v3472_v37, %v3482_v38  ;;  %v3491_v51 = vrot.slane %v3490_v40, 4  ;;  %v3500_v53 = vor.u32 %v3499_v22, %v3495_v62  ;;  %v3511_v49 = vshll.u32 %v12117_v47, 16  ;;  %v15656_v47 = vpop.f32.mrf.mxu0 }
 0x15c   : > { %13548 = vmatmul.mubr.bf16.gmra.mxu0 %v12070_v45  ;;  %v3510_v59 = vrot.slane %v3508_v31, 4  ;;  %v3517_v63 = vshll.u32 %v12118_v24, 16  ;;  %v3521_v15 = vshrl.u32 %v12118_v24, 16  ;;  %v3527_v55 = vshll.u32 %v12119_v44, 16  ;;  %18978 = vst [vmem:[#allocation21_spill] sm:$0xff] %v15656_v47  ;;  %v15658_v37 = vpop.f32.mrf.mxu1 }
 0x15d   : > { %13591 = vmatprep.mubr.bf16.mxu1 %v12139_v50  ;;  %v3496_v8 = vsel %vm15206_vm5, %v3491_v51, %v3495_v62  ;;  %v3501_v14 = vrot.slane %v3500_v53, 4  ;;  %v3513_v61 = vrot.slane %v3511_v49, 5  ;;  %v3532_v11 = vshrl.u32 %v12120_v32, 16  ;;  %18979 = vst [vmem:[#allocation22_spill] sm:$0xff] %v15658_v37  ;;  %v15662_v62 = vpop.f32.mrf.mxu0  ;;  %v12123_v47 = vld [vmem:[%s14866_s13 + $0x170] sm:$0xf] }
 0x15e   : > { %v3519_v10 = vrot.slane %v3517_v63, 5  ;;  %v3523_v40 = vrot.slane %v3521_v15, 4  ;;  %v3529_v22 = vrot.slane %v3527_v55, 5  ;;  %v3535_v45 = vshll.u32 %v12120_v32, 16  ;;  %v15665_v63 = vpop.f32.mrf.mxu1 }
 0x15f   : > { %v3506_v24 = vsel %vm15206_vm5, %v3501_v14, %v3505_v23  ;;  %v3514_v44 = vor.u32 %v3513_v61, %v3510_v59  ;;  %v3534_v38 = vrot.slane %v3532_v11, 4  ;;  %v3541_v31 = vshll.u32 %v12121_v52, 16  ;;  %v12124_v23 = vld [vmem:[%s14866_s13 + $0x174] sm:$0xf]  ;;  %v15670_v59 = vpop.f32.mrf.mxu0 }
 0x160   : > { %v12140_v50 = vcombine.low %v3496_v8, %v3506_v24  ;;  %v3524_v51 = vor.u32 %v3523_v40, %v3519_v10  ;;  %v3537_v53 = vrot.slane %v3535_v45, 5  ;;  %v3545_v49 = vshrl.u32 %v12121_v52, 16  ;;  %v15674_v11 = vpop.f32.mrf.mxu1 }
 0x161   : > { %v3515_v32 = vrot.slane %v3514_v44, 4  ;;  %v3543_v15 = vrot.slane %v3541_v31, 5  ;;  %v3551_v55 = vshll.u32 %v12122_v26, 16  ;;  %v12071_v37 = vcombine.low %v15438_v43, %v15443_v6  ;;  %v12125_v43 = vld [vmem:[%s14866_s13 + $0x178] sm:$0x1]  ;;  %v15679_v24 = vpop.f32.mrf.mxu0 }
 0x162   : > { %13592 = vmatmul.mubr.bf16.gmra.mxu1 %v12140_v50  ;;  %v3525_v14 = vrot.slane %v3524_v51, 4  ;;  %v3538_v61 = vor.u32 %v3537_v53, %v3534_v38  ;;  %v3547_v8 = vrot.slane %v3545_v49, 4  ;;  %v12072_v52 = vcombine.low %v15451_v5, %v15456_v1  ;;  %v12126_v1 = vld [vmem:[%s14866_s13 + $0x188] sm:$0xf]  ;;  %v15684_v50 = vpop.f32.mrf.mxu1  ;;  %v12127_v49 = vld [vmem:[%s14866_s13 + $0x18c] sm:$0xf] }
 0x163   : > { %v3520_v40 = vsel %vm15206_vm5, %v3515_v32, %v3519_v10  ;;  %v3553_v26 = vrot.slane %v3551_v55, 5  ;;  %13551 = vmatprep.mubr.bf16.mxu0 %v12071_v37  ;;  %v3556_v6 = vshrl.u32 %v12123_v47, 16  ;;  %v3559_v45 = vshll.u32 %v12123_v47, 16  ;;  %v15687_v47 = vpop.f32.mrf.mxu0 }
 0x164   : > { %v3530_v44 = vsel %vm15206_vm5, %v3525_v14, %v3529_v22  ;;  %v3539_v38 = vrot.slane %v3538_v61, 4  ;;  %v3548_v31 = vor.u32 %v3547_v8, %v3543_v15  ;;  %13552 = vmatmul.mubr.bf16.gmra.mxu0 %v12072_v52  ;;  %v3565_v5 = vshll.u32 %v12124_v23, 16  ;;  %18980 = vst [vmem:[#allocation23_spill] sm:$0xff] %v15687_v47  ;;  %v12128_v61 = vld [vmem:[%s14866_s13 + $0x190] sm:$0x1]  ;;  %v15692_v8 = vpop.f32.mrf.mxu1 }
 0x165   : > { %v12141_v10 = vcombine.low %v3520_v40, %v3530_v44  ;;  %v3558_v51 = vrot.slane %v3556_v6, 4  ;;  %v3561_v37 = vrot.slane %v3559_v45, 5  ;;  %v3569_v53 = vshrl.u32 %v12124_v23, 16  ;;  %18981 = vst [vmem:[#allocation24_spill] sm:$0xff] %v15692_v8  ;;  %v12153_v45 = vld [vmem:[%s14866_s13 + $0x34] sm:$0x8]  ;;  %v15695_v23 = vpop.f32.mrf.mxu0 }
 0x166   : > { %v3544_v32 = vsel %vm15206_vm5, %v3539_v38, %v3543_v15  ;;  %v3549_v22 = vrot.slane %v3548_v31, 4  ;;  %v3567_v55 = vrot.slane %v3565_v5, 5  ;;  %v3575_v14 = vshll.u32 %v12125_v43, 16  ;;  %v15700_v5 = vld [vmem:[%s14866_s13 + $0x38] sm:$0xf]  ;;  %v15702_v43 = vpop.f32.mrf.mxu1 }
 0x167   : > { %13595 = vmatprep.mubr.bf16.mxu1 %v12141_v10  ;;  %v3562_v52 = vor.u32 %v3561_v37, %v3558_v51  ;;  %v3571_v40 = vrot.slane %v3569_v53, 4  ;;  %v3580_v6 = vshrl.u32 %v12126_v1, 16  ;;  %v3583_v44 = vshll.u32 %v12126_v1, 16  ;;  %v15704_v53 = vpop.f32.mrf.mxu0 }
 0x168   : > { %v3554_v47 = vsel %vm15206_vm5, %v3549_v22, %v3553_v26  ;;  %v3577_v15 = vrot.slane %v3575_v14, 5  ;;  %v3589_v38 = vshll.u32 %v12127_v49, 16  ;;  %v3593_v31 = vshrl.u32 %v12127_v49, 16  ;;  %v15707_v26 = vpop.f32.mrf.mxu1 }
 0x169   : > { %v12142_v8 = vcombine.low %v3544_v32, %v3554_v47  ;;  %v3563_v10 = vrot.slane %v3562_v52, 4  ;;  %v3572_v51 = vor.u32 %v3571_v40, %v3567_v55  ;;  %v3582_v37 = vrot.slane %v3580_v6, 4  ;;  %v15712_v14 = vpop.f32.mrf.mxu0 }
 0x16a   : > { %v3585_v1 = vrot.slane %v3583_v44, 5  ;;  %v3591_v3 = vrot.slane %v3589_v38, 5  ;;  %v3595_v21 = vrot.slane %v3593_v31, 4  ;;  %v3599_v16 = vshll.u32 %v12128_v61, 16  ;;  %18982 = vst [vmem:[#allocation25_spill] sm:$0xff] %v15712_v14  ;;  %v15716_v38 = vpop.f32.mrf.mxu1 }
 0x16b   : > { %13596 = vmatmul.mubr.bf16.gmra.mxu1 %v12142_v8  ;;  %v3568_v49 = vsel %vm15206_vm5, %v3563_v10, %v3567_v55  ;;  %v3573_v22 = vrot.slane %v3572_v51, 4  ;;  %v3974_v47 = vshrl.u32 %v12153_v45, 16  ;;  %v3979_v32 = vshrl.u32 %v15700_v5, 16  ;;  %v12156_v61 = vld [vmem:[%s14866_s13 + $0x4c] sm:$0x8]  ;;  %18983 = vst [vmem:[#allocation26_spill] sm:$0xff] %v15716_v38  ;;  %v15723_v51 = vpop.f32.mrf.mxu0 }
 0x16c   : > { %v3586_v52 = vor.u32 %v3585_v1, %v3582_v37  ;;  %v3596_v40 = vor.u32 %v3595_v21, %v3591_v3  ;;  %v3601_v6 = vrot.slane %v3599_v16, 5  ;;  %v3982_v44 = vshll.u32 %v15700_v5, 16  ;;  %v15721_v45 = vld [vmem:[%s14866_s13 + $0x50] sm:$0xf]  ;;  %18984 = vst [vmem:[#allocation27_spill] sm:$0xff] %v15723_v51  ;;  %v15725_v1 = vpop.f32.mrf.mxu1 }
 0x16d   : > { %v3578_v8 = vsel %vm15206_vm5, %v3573_v22, %v3577_v15  ;;  %v12201_v31 = vrot.slane %v3974_v47, 11  ;;  %v3981_v55 = vrot.slane %v3979_v32, 7  ;;  %v3988_v10 = vshrl.u32 %v12155_v28, 16  ;;  %18985 = vst [vmem:[#allocation28_spill] sm:$0xff] %v15725_v1  ;;  %v15732_v22 = vld [vmem:[%s14866_s13 + $0x54] sm:$0xf]  ;;  %v15734_v47 = vpop.f32.mrf.mxu0 }
 0x16e   : > { %v12143_v30 = vcombine.low %v3568_v49, %v3578_v8  ;;  %v3587_v37 = vrot.slane %v3586_v52, 4  ;;  %v3597_v21 = vrot.slane %v3596_v40, 4  ;;  %v3991_v16 = vshll.u32 %v12155_v28, 16 }
 0x16f   : > { %v3984_v12 = vor.u32 %v3982_v44, %v3981_v55  ;;  %v3986_v38 = vrot.slane %v3981_v55, 4  ;;  %v3990_v14 = vrot.slane %v3988_v10, 7  ;;  %v15729_v15 = vadd.f32 %v15538_v39, %v15535_v41  ;;  %v15741_v44 = vpop.f32.mrf.mxu1  ;;  %v12159_v55 = vld [vmem:[%s14866_s13 + $0x64] sm:$0x8]  ;;  %v15747_v10 = vpop.f32.mrf.mxu0 }
 0x170   : > { %13599 = vmatprep.mubr.bf16.mxu1 %v12143_v30  ;;  %v3592_v49 = vsel %vm15206_vm5, %v3587_v37, %v3591_v3  ;;  %v3602_v32 = vsel %vm15206_vm5, %v3597_v21, %v3601_v6  ;;  %v3996_v52 = vshrl.u32 %v12156_v61, 16  ;;  %v4001_v40 = vshrl.u32 %v15721_v45, 16  ;;  %v15752_v21 = vld [vmem:[%s14866_s13 + $0x68] sm:$0xf] }
 0x171   : > { %v12144_v8 = vcombine.low %v3592_v49, %v3602_v32  ;;  %v3985_v41 = vsel %vm14892_vm2, %v12201_v31, %v3984_v12  ;;  %v3993_v39 = vor.u32 %v3991_v16, %v3990_v14  ;;  %v4004_v30 = vshll.u32 %v15721_v45, 16  ;;  %v15754_v1 = vpop.f32.mrf.mxu1  ;;  %v15764_v16 = vld [vmem:[%s14866_s13 + $0x6c] sm:$0xf]  ;;  %v15766_v49 = vpop.f32.mrf.mxu0 }
 0x172   : > { %v12202_v3 = vrot.slane %v3996_v52, 11  ;;  %v4003_v37 = vrot.slane %v4001_v40, 7  ;;  %v4010_v6 = vshrl.u32 %v15732_v22, 16  ;;  %v4013_v61 = vshll.u32 %v15732_v22, 16 }
 0x173   : > { %13600 = vmatmul.mubr.bf16.gmra.mxu1 %v12144_v8  ;;  %v3994_v12 = vsel %vm14892_vm2, %v3986_v38, %v3993_v39  ;;  %v12241_v14 = vcombine.low %v15700_v5, %v12155_v28  ;;  %v15761_v31 = vadd.f32 %v15544_v4, %v15540_v56  ;;  %v15768_v8 = vpop.f32.mrf.mxu1  ;;  %v12242_v38 = vcombine.low %v15721_v45, %v15732_v22  ;;  %v12162_v5 = vld [vmem:[%s14866_s13 + $0x7c] sm:$0x8]  ;;  %v15779_v39 = vld [vmem:[%s14866_s13 + $0x80] sm:$0xf] }
 0x174   : > { %v12217_v32 = vcombine.low %v3985_v41, %v3994_v12  ;;  %v4006_v52 = vor.u32 %v4004_v30, %v4003_v37  ;;  %v4008_v40 = vrot.slane %v4003_v37, 4  ;;  %v4012_v51 = vrot.slane %v4010_v6, 7  ;;  %v15781_v41 = vpop.f32.mrf.mxu0 }
 0x175   : > { %18986 = vst [vmem:[#allocation29_spill] sm:$0xff] %v15761_v31  ;;  %13667 = vmatprep.mubr.bf16.mxu1 %v12241_v14  ;;  %v15774_v28 = vadd.f32 %v15551_v7, %v15547_v36  ;;  %v4018_v56 = vshrl.u32 %v12159_v55, 16  ;;  %v4023_v4 = vshrl.u32 %v15752_v21, 16  ;;  %18988 = vst [vmem:[#allocation31_spill] sm:$0xff] %v15781_v41  ;;  %v4026_v45 = vshll.u32 %v15752_v21, 16  ;;  %v15787_v36 = vpop.f32.mrf.mxu1 }
 0x176   : > { %13619 = vmatprep.mubr.bf16.mxu0 %v12217_v32  ;;  %v4007_v30 = vsel %vm14892_vm2, %v12202_v3, %v4006_v52  ;;  %v4015_v37 = vor.u32 %v4013_v61, %v4012_v51  ;;  %v4032_v22 = vshrl.u32 %v15764_v16, 16  ;;  %18989 = vst [vmem:[#allocation32_spill] sm:$0xff] %v15787_v36  ;;  %v4035_v6 = vshll.u32 %v15764_v16, 16  ;;  %v15795_v14 = vld [vmem:[%s14866_s13 + $0x84] sm:$0xf]  ;;  %v15797_v32 = vpop.f32.mrf.mxu0 }
 0x177   : > { %18987 = vst [vmem:[#allocation30_spill] sm:$0xff] %v15774_v28  ;;  %v12203_v7 = vrot.slane %v4018_v56, 11  ;;  %v4025_v55 = vrot.slane %v4023_v4, 7  ;;  %v15792_v12 = vadd.f32 %v15570_v48, %v15565_v34  ;;  %v4040_v61 = vshrl.u32 %v12162_v5, 16  ;;  %v15802_v56 = vpop.f32.mrf.mxu1  ;;  %v14353_v48 = vld [vmem:[#allocation6 + $0x230] sm:$0xff]  }
 0x178   : > { %v4016_v51 = vsel %vm14892_vm2, %v4008_v40, %v4015_v37  ;;  %v4034_v3 = vrot.slane %v4032_v22, 7  ;;  %v4045_v52 = vshrl.u32 %v15779_v39, 16  ;;  %v4048_v34 = vshll.u32 %v15779_v39, 16  ;;  %v15806_v2 = vpop.f32.mrf.mxu0 }
 0x179   : > { %18990 = vst [vmem:[#allocation33_spill] sm:$0xff] %v15792_v12  ;;  %v12218_v4 = vcombine.low %v4007_v30, %v4016_v51  ;;  %v4028_v36 = vor.u32 %v4026_v45, %v4025_v55  ;;  %v4030_v41 = vrot.slane %v4025_v55, 4  ;;  %v12165_v12 = vld [vmem:[%s14866_s13 + $0x94] sm:$0x8]  ;;  %v12204_v31 = vrot.slane %v4040_v61, 11  ;;  %v15809_v37 = vpop.f32.mrf.mxu1 }
 0x17a   : > { %v4037_v28 = vor.u32 %v4035_v6, %v4034_v3  ;;  %v4047_v40 = vrot.slane %v4045_v52, 7  ;;  %v4054_v5 = vshrl.u32 %v15795_v14, 16  ;;  %v4057_v45 = vshll.u32 %v15795_v14, 16  ;;  %v15821_v6 = vld [vmem:[%s14866_s13 + $0x98] sm:$0xf]  ;;  %v15826_v3 = vpop.f32.mrf.mxu0 }
 0x17b   : > { %13620 = vmatmul.mubr.bf16.vlgmr.msra.gmra.mxu0 %v12218_v4  ;;  %13668 = vmatmul.mubr.bf16.vlgmr.msra.gmra.mxu1 %v12242_v38  ;;  %v4029_v30 = vsel %vm14892_vm2, %v12203_v7, %v4028_v36  ;;  %v12243_v22 = vcombine.low %v15752_v21, %v15764_v16  ;;  %v15818_v55 = vadd.f32 %v15579_v9, %v15575_v46  ;;  %v15824_v51 = vld [vmem:[%s14866_s13 + $0x9c] sm:$0xf]  ;;  %v12168_v52 = vld [vmem:[%s14866_s13 + $0xac] sm:$0x8]  ;;  %v15833_v21 = vld [vmem:[%s14866_s13 + $0xb0] sm:$0xf]  ;;  %v15835_v16 = vpop.f32.mrf.mxu1 }
 0x17c   : > { %13700 = vmatpush3.bf16.msra.mxu0 %v15559_v29  ;;  %v4038_v38 = vsel %vm14892_vm2, %v4030_v41, %v4037_v28  ;;  %v4050_v36 = vor.u32 %v4048_v34, %v4047_v40  ;;  %v4052_v7 = vrot.slane %v4047_v40, 4  ;;  %v4056_v61 = vrot.slane %v4054_v5, 7  ;;  %v14356_v4 = vld [vmem:[#allocation6 + $0x228] sm:$0xff]  }
 0x17d   : > { %18991 = vst [vmem:[#allocation34_spill] sm:$0xff] %v15818_v55  ;;  %v12219_v46 = vcombine.low %v4029_v30, %v4038_v38  ;;  %13701 = vmatprep.subr.bf16.mxu0 %v14353_v48  ;;  %13671 = vmatprep.mubr.bf16.mxu1 %v12243_v22  ;;  %v15839_v9 = vadd.f32 %v15586_v25, %v15583_v42  ;;  %v4062_v29 = vshrl.u32 %v12165_v12, 16  ;;  %v15841_v55 = vpop.f32.mrf.mxu0  ;;  %v4067_v40 = vshrl.u32 %v15821_v6, 16  ;;  %v15848_v5 = vpop.f32.mrf.mxu1  ;;  %v15854_v22 = vld [vmem:[%s14866_s13 + $0xb4] sm:$0xf] }
 0x17e   : > { %18993 = vst [vmem:[#allocation36_spill] sm:$0xff] %v15841_v55  ;;  %v4051_v28 = vsel %vm14892_vm2, %v12204_v31, %v4050_v36  ;;  %v4059_v41 = vor.u32 %v4057_v45, %v4056_v61  ;;  %v12244_v34 = vcombine.low %v15779_v39, %v15795_v14  ;;  %18994 = vst [vmem:[#allocation37_spill] sm:$0xff] %v15848_v5  ;;  %v4070_v42 = vshll.u32 %v15821_v6, 16  ;;  %v12171_v55 = vld [vmem:[%s14866_s13 + $0xc4] sm:$0x8] }
 0x17f   : > { %18992 = vst [vmem:[#allocation35_spill] sm:$0xff] %v15839_v9  ;;  %13623 = vmatprep.mubr.bf16.mxu0 %v12219_v46  ;;  %v12205_v30 = vrot.slane %v4062_v29, 11  ;;  %v4076_v25 = vshrl.u32 %v15824_v51, 16  ;;  %v4079_v12 = vshll.u32 %v15824_v51, 16  ;;  %v15856_v31 = vpop.f32.mrf.mxu0  ;;  %v4069_v14 = vrot.slane %v4067_v40, 7  ;;  %v15864_v36 = vpop.f32.mrf.mxu1 }
 0x180   : > { %v4060_v39 = vsel %vm14892_vm2, %v4052_v7, %v4059_v41  ;;  %13702 = vmatpush3.bf16.msra.mxu0 %v14353_v48  ;;  %v15862_v45 = vadd.f32 %v15604_v20, %v15596_v60  ;;  %v4084_v38 = vshrl.u32 %v12168_v52, 16  ;;  %18996 = vst [vmem:[#allocation39_spill] sm:$0xff] %v15864_v36  ;;  %v4089_v29 = vshrl.u32 %v15833_v21, 16  ;;  %v14359_v7 = vld [vmem:[#allocation6 + $0x220] sm:$0xff]   ;;  %v15873_v20 = vld [vmem:[%s14866_s13 + $0xc8] sm:$0xf] }
 0x181   : > { %v12220_v61 = vcombine.low %v4051_v28, %v4060_v39  ;;  %v4078_v46 = vrot.slane %v4076_v25, 7  ;;  %v4092_v5 = vshll.u32 %v15833_v21, 16  ;;  %13703 = vmatprep.subr.bf16.mxu0 %v14356_v4  ;;  %v15869_v48 = vpop.f32.mrf.mxu0  ;;  %v4072_v41 = vor.u32 %v4070_v42, %v4069_v14  ;;  %v15876_v52 = vld [vmem:[%s14866_s13 + $0xcc] sm:$0xf]  ;;  %v15878_v28 = vpop.f32.mrf.mxu1 }
 0x182   : > { %18995 = vst [vmem:[#allocation38_spill] sm:$0xff] %v15862_v45  ;;  %v4074_v40 = vrot.slane %v4069_v14, 4  ;;  %v12206_v9 = vrot.slane %v4084_v38, 11  ;;  %v4098_v60 = vshrl.u32 %v15854_v22, 16  ;;  %v4091_v39 = vrot.slane %v4089_v29, 7 }
 0x183   : > { %13624 = vmatmul.mubr.bf16.gmra.mxu0 %v12220_v61  ;;  %13672 = vmatmul.mubr.bf16.gmra.mxu1 %v12244_v34  ;;  %v4081_v25 = vor.u32 %v4079_v12, %v4078_v46  ;;  %v4101_v45 = vshll.u32 %v15854_v22, 16  ;;  %v12245_v42 = vcombine.low %v15821_v6, %v15824_v51  ;;  %v15883_v14 = vpop.f32.mrf.mxu0  ;;  %v4073_v38 = vsel %vm14892_vm2, %v12205_v30, %v4072_v41  ;;  %v12174_v34 = vld [vmem:[%s14866_s13 + $0xdc] sm:$0x8]  ;;  %v15899_v51 = vld [vmem:[%s14866_s13 + $0xe0] sm:$0xf] }
 0x184   : > { %v4100_v36 = vrot.slane %v4098_v60, 7  ;;  %13704 = vmatpush3.bf16.msra.mxu0 %v14356_v4  ;;  %v15889_v61 = vadd.f32 %v15612_v57, %v15608_v17  ;;  %v4094_v46 = vor.u32 %v4092_v5, %v4091_v39  ;;  %v4096_v29 = vrot.slane %v4091_v39, 4  ;;  %v15902_v30 = vld [vmem:[%s14866_s13 + $0xe4] sm:$0xf]  ;;  %v14362_v4 = vld [vmem:[#allocation6 + $0x218] sm:$0xff]   ;;  %v15908_v60 = vpop.f32.mrf.mxu1 }
 0x185   : > { %v4082_v12 = vsel %vm14892_vm2, %v4074_v40, %v4081_v25  ;;  %13675 = vmatprep.mubr.bf16.mxu1 %v12245_v42  ;;  %v15896_v6 = vadd.f32 %v15617_v0, %v15614_v54  ;;  %13705 = vmatprep.subr.bf16.mxu0 %v14359_v7  ;;  %v15904_v41 = vpop.f32.mrf.mxu0  ;;  %v12246_v40 = vcombine.low %v15833_v21, %v15854_v22  ;;  %v4106_v5 = vshrl.u32 %v12171_v55, 16 }
 0x186   : > { %18997 = vst [vmem:[#allocation40_spill] sm:$0xff] %v15889_v61  ;;  %18999 = vst [vmem:[#allocation42_spill] sm:$0xff] %v15904_v41  ;;  %v12221_v17 = vcombine.low %v4073_v38, %v4082_v12  ;;  %v4103_v57 = vor.u32 %v4101_v45, %v4100_v36  ;;  %v4095_v54 = vsel %vm14892_vm2, %v12206_v9, %v4094_v46  ;;  %v4111_v0 = vshrl.u32 %v15873_v20, 16  ;;  %v14365_v46 = vld [vmem:[#allocation6 + $0x210] sm:$0xff]   ;;  %v14368_v41 = vld [vmem:[#allocation6 + $0x208] sm:$0xff]  }
 0x187   : > { %18998 = vst [vmem:[#allocation41_spill] sm:$0xff] %v15896_v6  ;;  %v4114_v25 = vshll.u32 %v15873_v20, 16  ;;  %v4120_v39 = vshrl.u32 %v15876_v52, 16  ;;  %v12207_v45 = vrot.slane %v4106_v5, 11  ;;  %v4123_v55 = vshll.u32 %v15876_v52, 16 }
 0x188   : > { %13627 = vmatprep.mubr.bf16.mxu0 %v12221_v17  ;;  %v4104_v42 = vsel %vm14892_vm2, %v4096_v29, %v4103_v57  ;;  %v15920_v21 = vadd.f32 %v15634_v27, %v15630_v18  ;;  %13706 = vmatpush3.bf16.msra.mxu0 %v14359_v7  ;;  %v15922_v9 = vpop.f32.mrf.mxu0  ;;  %v4113_v36 = vrot.slane %v4111_v0, 7  ;;  %v4128_v12 = vshrl.u32 %v12174_v34, 16  ;;  %v12177_v18 = vld [vmem:[%s14866_s13 + $0xf4] sm:$0x8]  ;;  %v15930_v27 = vld [vmem:[%s14866_s13 + $0xf8] sm:$0xf]  ;;  %v15932_v7 = vpop.f32.mrf.mxu1 }
 0x189   : > { %19001 = vst [vmem:[#allocation44_spill] sm:$0xff] %v15922_v9  ;;  %v12222_v22 = vcombine.low %v4095_v54, %v4104_v42  ;;  %v4122_v38 = vrot.slane %v4120_v39, 7  ;;  %13707 = vmatprep.subr.bf16.mxu0 %v14362_v4  ;;  %v4133_v29 = vshrl.u32 %v15899_v51, 16  ;;  %v4136_v17 = vshll.u32 %v15899_v51, 16  ;;  %19002 = vst [vmem:[#allocation45_spill] sm:$0xff] %v15932_v7 }
 0x18a   : > { %19000 = vst [vmem:[#allocation43_spill] sm:$0xff] %v15920_v21  ;;  %v4142_v57 = vshrl.u32 %v15902_v30, 16  ;;  %v4145_v5 = vshll.u32 %v15902_v30, 16  ;;  %v4116_v34 = vor.u32 %v4114_v25, %v4113_v36  ;;  %v4118_v54 = vrot.slane %v4113_v36, 4  ;;  %v15935_v42 = vld [vmem:[%s14866_s13 + $0xfc] sm:$0xf]  ;;  %v15937_v21 = vpop.f32.mrf.mxu0 }
 0x18b   : > { %13628 = vmatmul.mubr.bf16.gmra.mxu0 %v12222_v22  ;;  %13676 = vmatmul.mubr.bf16.gmra.mxu1 %v12246_v40  ;;  %v4125_v0 = vor.u32 %v4123_v55, %v4122_v38  ;;  %v12208_v39 = vrot.slane %v4128_v12, 11  ;;  %v4135_v6 = vrot.slane %v4133_v29, 7  ;;  %v12247_v9 = vcombine.low %v15873_v20, %v15876_v52  ;;  %v12180_v36 = vld [vmem:[%s14866_s13 + $0x10c] sm:$0x8]  ;;  %v15955_v38 = vld [vmem:[%s14866_s13 + $0x110] sm:$0xf] }
 0x18c   : > { %v4144_v61 = vrot.slane %v4142_v57, 7  ;;  %v15943_v40 = vadd.f32 %v15646_v19, %v15639_v35  ;;  %13708 = vmatpush3.bf16.msra.mxu0 %v14362_v4  ;;  %v4117_v25 = vsel %vm14892_vm2, %v12207_v45, %v4116_v34  ;;  %v15951_v22 = vadd.f32 %v15652_v13, %v15649_v58  ;;  %v15958_v19 = vld [vmem:[%s14866_s13 + $0x114] sm:$0xf]  ;;  %v15966_v34 = vpop.f32.mrf.mxu0 }
 0x18d   : > { %v4126_v55 = vsel %vm14892_vm2, %v4118_v54, %v4125_v0  ;;  %13709 = vmatprep.subr.bf16.mxu0 %v14365_v46  ;;  %v4138_v52 = vor.u32 %v4136_v17, %v4135_v6  ;;  %v4140_v12 = vrot.slane %v4135_v6, 4  ;;  %13679 = vmatprep.mubr.bf16.mxu1 %v12247_v9  ;;  %v12248_v45 = vcombine.low %v15899_v51, %v15902_v30  ;;  %v14371_v57 = vld [vmem:[#allocation6 + $0x200] sm:$0xff]  }
 0x18e   : > { %v12223_v20 = vcombine.low %v4117_v25, %v4126_v55  ;;  %v4147_v35 = vor.u32 %v4145_v5, %v4144_v61  ;;  %v15960_v4 = vpop.f32.mrf.mxu1  ;;  %v4150_v29 = vshrl.u32 %v12177_v18, 16  ;;  %v4155_v58 = vshrl.u32 %v15930_v27, 16  ;;  %v12183_v55 = vld [vmem:[%s14866_s13 + $0x124] sm:$0x8] }
 0x18f   : > { %v4158_v13 = vshll.u32 %v15930_v27, 16  ;;  %v4139_v61 = vsel %vm14892_vm2, %v12208_v39, %v4138_v52  ;;  %v4164_v9 = vshrl.u32 %v15935_v42, 16  ;;  %v4167_v51 = vshll.u32 %v15935_v42, 16 }
 0x190   : > { %13631 = vmatprep.mubr.bf16.mxu0 %v12223_v20  ;;  %v4148_v6 = vsel %vm14892_vm2, %v4140_v12, %v4147_v35  ;;  %13710 = vmatpush3.bf16.msra.mxu0 %v14365_v46  ;;  %v12209_v17 = vrot.slane %v4150_v29, 11  ;;  %v4157_v5 = vrot.slane %v4155_v58, 7  ;;  %v15976_v18 = vadd.f32 %v15665_v63, %v15662_v62  ;;  %v15981_v20 = vpop.f32.mrf.mxu1  ;;  %v15986_v63 = vld [vmem:[%s14866_s13 + $0x128] sm:$0xf]  ;;  %v15989_v35 = vld [vmem:[%s14866_s13 + $0x12c] sm:$0xf] }
 0x191   : > { %v12224_v30 = vcombine.low %v4139_v61, %v4148_v6  ;;  %13711 = vmatprep.subr.bf16.mxu0 %v14368_v41  ;;  %v4166_v54 = vrot.slane %v4164_v9, 7  ;;  %v4172_v0 = vshrl.u32 %v12180_v36, 16  ;;  %v4177_v39 = vshrl.u32 %v15955_v38, 16  ;;  %v15991_v36 = vpop.f32.mrf.mxu0 }
 0x192   : > { %v4180_v25 = vshll.u32 %v15955_v38, 16  ;;  %v4160_v46 = vor.u32 %v4158_v13, %v4157_v5  ;;  %v4162_v52 = vrot.slane %v4157_v5, 4  ;;  %v4186_v12 = vshrl.u32 %v15958_v19, 16  ;;  %19003 = vst [vmem:[#allocation46_spill] sm:$0xff] %v15991_v36 }
 0x193   : > { %13632 = vmatmul.mubr.bf16.gmra.mxu0 %v12224_v30  ;;  %13680 = vmatmul.mubr.bf16.gmra.mxu1 %v12248_v45  ;;  %v4189_v62 = vshll.u32 %v15958_v19, 16  ;;  %v4169_v29 = vor.u32 %v4167_v51, %v4166_v54  ;;  %v12210_v58 = vrot.slane %v4172_v0, 11  ;;  %v4179_v61 = vrot.slane %v4177_v39, 7  ;;  %v12186_v30 = vld [vmem:[%s14866_s13 + $0x13c] sm:$0x8] }
 0x194   : > { %v12249_v45 = vcombine.low %v15930_v27, %v15935_v42  ;;  %13712 = vmatpush3.bf16.msra.mxu0 %v14368_v41  ;;  %v4161_v13 = vsel %vm14892_vm2, %v12209_v17, %v4160_v46  ;;  %v4188_v6 = vrot.slane %v4186_v12, 7  ;;  %v15999_v9 = vadd.f32 %v15674_v11, %v15670_v59  ;;  %v16009_v41 = vld [vmem:[%s14866_s13 + $0x140] sm:$0xf]  ;;  %v16012_v42 = vld [vmem:[%s14866_s13 + $0x144] sm:$0xf]  ;;  %v16014_v17 = vpop.f32.mrf.mxu1 }
 0x195   : > { %13713 = vmatprep.subr.bf16.mxu0 %v14371_v57  ;;  %v4170_v51 = vsel %vm14892_vm2, %v4162_v52, %v4169_v29  ;;  %v4182_v5 = vor.u32 %v4180_v25, %v4179_v61  ;;  %v4184_v54 = vrot.slane %v4179_v61, 4  ;;  %v16006_v27 = vadd.f32 %v15684_v50, %v15679_v24 }
 0x196   : > { %13683 = vmatprep.mubr.bf16.mxu1 %v12249_v45  ;;  %v12225_v59 = vcombine.low %v4161_v13, %v4170_v51  ;;  %v4191_v11 = vor.u32 %v4189_v62, %v4188_v6  ;;  %v12250_v0 = vcombine.low %v15955_v38, %v15958_v19  ;;  %v4194_v39 = vshrl.u32 %v12183_v55, 16  ;;  %v16032_v45 = vpop.f32.mrf.mxu1 }
 0x197   : > { %v16018_v46 = vpop.f32.mrf.mxu0  ;;  %v4183_v25 = vsel %vm14892_vm2, %v12210_v58, %v4182_v5  ;;  %v4199_v24 = vshrl.u32 %v15986_v63, 16  ;;  %v4202_v50 = vshll.u32 %v15986_v63, 16  ;;  %v4208_v52 = vshrl.u32 %v15989_v35, 16  ;;  %19004 = vst [vmem:[#allocation47_spill] sm:$0xff] %v16032_v45  ;;  %v12189_v5 = vld [vmem:[%s14866_s13 + $0x154] sm:$0x8] }
 0x198   : > { %13714 = vmatpush3.bf16.msra.mxu0 %v14371_v57  ;;  %13635 = vmatprep.mubr.bf16.mxu0 %v12225_v59  ;;  %v4192_v12 = vsel %vm14892_vm2, %v4184_v54, %v4191_v11  ;;  %v12211_v38 = vrot.slane %v4194_v39, 11  ;;  %v4211_v19 = vshll.u32 %v15989_v35, 16  ;;  %v16030_v55 = vadd.f32 %v15702_v43, %v15695_v23  ;;  %v16040_v54 = vld [vmem:[%s14866_s13 + $0x158] sm:$0xf] }
 0x199   : > { %v12226_v62 = vcombine.low %v4183_v25, %v4192_v12  ;;  %v4201_v29 = vrot.slane %v4199_v24, 7  ;;  %v4210_v58 = vrot.slane %v4208_v52, 7  ;;  %v4216_v61 = vshrl.u32 %v12186_v30, 16  ;;  %v16042_v23 = vpop.f32.mrf.mxu0 }
 0x19a   : > { %v4221_v57 = vshrl.u32 %v16009_v41, 16  ;;  %v4224_v13 = vshll.u32 %v16009_v41, 16  ;;  %v4230_v6 = vshrl.u32 %v16012_v42, 16  ;;  %v4233_v51 = vshll.u32 %v16012_v42, 16 }
 0x19b   : > { %13684 = vmatmul.mubr.bf16.gmra.mxu1 %v12250_v0  ;;  %13636 = vmatmul.mubr.bf16.gmra.mxu0 %v12226_v62  ;;  %v4204_v43 = vor.u32 %v4202_v50, %v4201_v29  ;;  %v4206_v30 = vrot.slane %v4201_v29, 4  ;;  %v4213_v59 = vor.u32 %v4211_v19, %v4210_v58  ;;  %v12212_v11 = vrot.slane %v4216_v61, 11  ;;  %v12191_v0 = vld [vmem:[%s14866_s13 + $0x15c] sm:$0xf]  ;;  %v19005_v62 = vld [vmem:[#allocation25_spill] sm:$0xff] }
 0x19c   : > { %v4223_v39 = vrot.slane %v4221_v57, 7  ;;  %v4232_v25 = vrot.slane %v4230_v6, 7  ;;  %v12251_v24 = vcombine.low %v15986_v63, %v15989_v35  ;;  %v16049_v52 = vadd.f32 %v15707_v26, %v15704_v53  ;;  %v19006_v29 = vld [vmem:[#allocation26_spill] sm:$0xff]  ;;  %v16063_v57 = vld [vmem:[%s14866_s13 + $0x170] sm:$0xf] }
 0x19d   : > { %v4205_v12 = vsel %vm14892_vm2, %v12211_v38, %v4204_v43  ;;  %v4214_v50 = vsel %vm14892_vm2, %v4206_v30, %v4213_v59  ;;  %v12252_v19 = vcombine.low %v16009_v41, %v16012_v42  ;;  %v16059_v58 = vadd.f32 %v19006_v29, %v19005_v62  ;;  %v12192_v61 = vld [vmem:[%s14866_s13 + $0x16c] sm:$0x8]  ;;  %v12194_v38 = vld [vmem:[%s14866_s13 + $0x174] sm:$0xf]  ;;  %v16068_v43 = vpop.f32.mrf.mxu0 }
 0x19e   : > { %v16065_v63 = vpop.f32.mrf.mxu1  ;;  %v12227_v53 = vcombine.low %v4205_v12, %v4214_v50  ;;  %v4226_v26 = vor.u32 %v4224_v13, %v4223_v39  ;;  %v4228_v35 = vrot.slane %v4223_v39, 4  ;;  %v4235_v6 = vor.u32 %v4233_v51, %v4232_v25  ;;  %13687 = vmatprep.mubr.bf16.mxu1 %v12251_v24 }
 0x19f   : > { %v4238_v30 = vshrl.u32 %v12189_v5, 16  ;;  %v4243_v41 = vshrl.u32 %v16040_v54, 16  ;;  %v4246_v42 = vshll.u32 %v16040_v54, 16  ;;  %v4252_v13 = vshrl.u32 %v12191_v0, 16 }
 0x1a0   : > { %13639 = vmatprep.mubr.bf16.mxu0 %v12227_v53  ;;  %v4227_v59 = vsel %vm14892_vm2, %v12212_v11, %v4226_v26  ;;  %v4236_v12 = vsel %vm14892_vm2, %v4228_v35, %v4235_v6  ;;  %v4255_v39 = vshll.u32 %v12191_v0, 16  ;;  %v16076_v51 = vpop.f32.mrf.mxu1  ;;  %v16080_v50 = vadd.f32 %v15741_v44, %v15734_v47  ;;  %v12195_v26 = vld [vmem:[%s14866_s13 + $0x184] sm:$0x8]  ;;  %v16085_v35 = vpop.f32.mrf.mxu0  ;;  %v16091_v47 = vld [vmem:[%s14866_s13 + $0x18c] sm:$0xf] }
 0x1a1   : > { %v12228_v25 = vcombine.low %v4227_v59, %v4236_v12  ;;  %v12213_v24 = vrot.slane %v4238_v30, 11  ;;  %v4245_v5 = vrot.slane %v4243_v41, 7  ;;  %v4254_v62 = vrot.slane %v4252_v13, 7  ;;  %19007 = vst [vmem:[#allocation25_spill] sm:$0xff] %v16085_v35  ;;  %v16088_v12 = vld [vmem:[%s14866_s13 + $0x188] sm:$0xf] }
 0x1a2   : > { %v4260_v29 = vshrl.u32 %v12192_v61, 16  ;;  %v4265_v11 = vshrl.u32 %v16063_v57, 16  ;;  %v4268_v53 = vshll.u32 %v16063_v57, 16  ;;  %v4274_v59 = vshrl.u32 %v12194_v38, 16  ;;  %v16094_v45 = vpop.f32.mrf.mxu1  ;;  %v12198_v35 = vld [vmem:[%s14866_s13 + $0x19c] sm:$0x8] }
 0x1a3   : > { %13688 = vmatmul.mubr.bf16.gmra.mxu1 %v12252_v19  ;;  %13640 = vmatmul.mubr.bf16.gmra.mxu0 %v12228_v25  ;;  %v4248_v6 = vor.u32 %v4246_v42, %v4245_v5  ;;  %v4250_v30 = vrot.slane %v4245_v5, 4  ;;  %v4277_v41 = vshll.u32 %v12194_v38, 16  ;;  %v4257_v44 = vor.u32 %v4255_v39, %v4254_v62 }
 0x1a4   : > { %v12214_v19 = vrot.slane %v4260_v29, 11  ;;  %v4267_v61 = vrot.slane %v4265_v11, 7  ;;  %v12253_v13 = vcombine.low %v16040_v54, %v12191_v0  ;;  %v4276_v42 = vrot.slane %v4274_v59, 7  ;;  %v12199_v0 = vld [vmem:[%s14866_s13 + $0x1a0] sm:$0xf]  ;;  %v16119_v59 = vpop.f32.mrf.mxu1 }
 0x1a5   : > { %v4249_v25 = vsel %vm14892_vm2, %v12213_v24, %v4248_v6  ;;  %v16100_v5 = vadd.f32 %v15754_v1, %v15747_v10  ;;  %v12254_v7 = vcombine.low %v16063_v57, %v12194_v38  ;;  %v4258_v39 = vsel %vm14892_vm2, %v4250_v30, %v4257_v44  ;;  %v12200_v24 = vld [vmem:[%s14866_s13 + $0x1a4] sm:$0xf]  ;;  %19008 = vst [vmem:[#allocation26_spill] sm:$0xff] %v16119_v59 }
 0x1a6   : > { %v4270_v62 = vor.u32 %v4268_v53, %v4267_v61  ;;  %v4272_v29 = vrot.slane %v4267_v61, 4  ;;  %13691 = vmatprep.mubr.bf16.mxu1 %v12253_v13  ;;  %v16108_v54 = vadd.f32 %v15768_v8, %v15766_v49  ;;  %v16112_v11 = vpop.f32.mrf.mxu0  ;;  %v12229_v6 = vcombine.low %v4249_v25, %v4258_v39 }
 0x1a7   : > { %v4279_v1 = vor.u32 %v4277_v41, %v4276_v42  ;;  %v4282_v10 = vshrl.u32 %v12195_v26, 16  ;;  %v4287_v38 = vshrl.u32 %v16088_v12, 16  ;;  %v4290_v53 = vshll.u32 %v16088_v12, 16 }
 0x1a8   : > { %v4271_v57 = vsel %vm14892_vm2, %v12214_v19, %v4270_v62  ;;  %v4296_v30 = vshrl.u32 %v16091_v47, 16  ;;  %13643 = vmatprep.mubr.bf16.mxu0 %v12229_v6  ;;  %v4299_v26 = vshll.u32 %v16091_v47, 16  ;;  %v16126_v41 = vadd.f32 %v15802_v56, %v15797_v32  ;;  %v16128_v25 = vpop.f32.mrf.mxu0 }
 0x1a9   : > { %v4280_v49 = vsel %vm14892_vm2, %v4272_v29, %v4279_v1  ;;  %v12215_v8 = vrot.slane %v4282_v10, 11  ;;  %v4289_v19 = vrot.slane %v4287_v38, 7  ;;  %v4304_v13 = vshrl.u32 %v12198_v35, 16  ;;  %v12265_v29 = vld [vmem:[%s14866_s13 + $0x38] sm:$0xf] }
 0x1aa   : > { %v12230_v44 = vcombine.low %v4271_v57, %v4280_v49  ;;  %v4298_v61 = vrot.slane %v4296_v30, 7  ;;  %v4309_v42 = vshrl.u32 %v12199_v0, 16  ;;  %v4312_v39 = vshll.u32 %v12199_v0, 16  ;;  %v12266_v1 = vld [vmem:[%s14866_s13 + $0x3c] sm:$0xf] }
 0x1ab   : > { %13692 = vmatmul.mubr.bf16.gmra.mxu1 %v12254_v7  ;;  %v4318_v62 = vshrl.u32 %v12200_v24, 16  ;;  %v4321_v6 = vshll.u32 %v12200_v24, 16  ;;  %v4292_v10 = vor.u32 %v4290_v53, %v4289_v19  ;;  %v4294_v59 = vrot.slane %v4289_v19, 4  ;;  %v12267_v57 = vld [vmem:[%s14866_s13 + $0x40] sm:$0x1] }
 0x1ac   : > { %13644 = vmatmul.mubr.bf16.gmra.mxu0 %v12230_v44  ;;  %v4301_v32 = vor.u32 %v4299_v26, %v4298_v61  ;;  %v12216_v56 = vrot.slane %v4304_v13, 11  ;;  %v4311_v38 = vrot.slane %v4309_v42, 7  ;;  %v12255_v30 = vcombine.low %v16088_v12, %v16091_v47  ;;  %v12268_v61 = vld [vmem:[%s14866_s13 + $0x50] sm:$0xf]  ;;  %v16150_v13 = vpop.f32.mrf.mxu0 }
 0x1ad   : > { %v16133_v7 = vpop.f32.mrf.mxu1  ;;  %v4320_v35 = vrot.slane %v4318_v62, 7  ;;  %v16139_v49 = vadd.f32 %v15809_v37, %v15806_v2  ;;  %v4293_v44 = vsel %vm14892_vm2, %v12215_v8, %v4292_v10  ;;  %v12256_v26 = vcombine.low %v12199_v0, %v12200_v24  ;;  %v12269_v37 = vld [vmem:[%s14866_s13 + $0x54] sm:$0xf] }
 0x1ae   : > { %v4302_v53 = vsel %vm14892_vm2, %v4294_v59, %v4301_v32  ;;  %v16147_v19 = vadd.f32 %v15835_v16, %v15826_v3  ;;  %v4314_v47 = vor.u32 %v4312_v39, %v4311_v38  ;;  %v4316_v42 = vrot.slane %v4311_v38, 4  ;;  %13695 = vmatprep.mubr.bf16.mxu1 %v12255_v30  ;;  %v12270_v59 = vld [vmem:[%s14866_s13 + $0x58] sm:$0x1] }
 0x1af   : > { %v12231_v12 = vcombine.low %v4293_v44, %v4302_v53  ;;  %v4323_v2 = vor.u32 %v4321_v6, %v4320_v35  ;;  %v16153_v62 = vpop.f32.mrf.mxu1  ;;  %v5048_v8 = vshrl.u32 %v12265_v29, 16  ;;  %v5051_v10 = vshll.u32 %v12265_v29, 16  ;;  %v16160_v35 = vpop.f32.mrf.mxu0 }
 0x1b0   : > { %v5057_v36 = vshll.u32 %v12266_v1, 16  ;;  %v4315_v3 = vsel %vm14892_vm2, %v12216_v56, %v4314_v47  ;;  %v5061_v0 = vshrl.u32 %v12266_v1, 16  ;;  %v5067_v24 = vshll.u32 %v12267_v57, 16  ;;  %19009 = vst [vmem:[#allocation48_spill] sm:$0xff] %v16160_v35  ;;  %v12271_v47 = vld [vmem:[%s14866_s13 + $0x68] sm:$0xf] }
 0x1b1   : > { %13647 = vmatprep.mubr.bf16.mxu0 %v12231_v12  ;;  %v4324_v16 = vsel %vm14892_vm2, %v4316_v42, %v4323_v2  ;;  %v5050_v6 = vrot.slane %v5048_v8, 4  ;;  %v5053_v32 = vrot.slane %v5051_v10, 5  ;;  %v2066_v44 = vadd.f32 %v15856_v31, %v15729_v15  ;;  %v16164_v56 = vpop.f32.mrf.mxu1  ;;  %v19010_v8 = vld [vmem:[#allocation29_spill] sm:$0xff] }
 0x1b2   : > { %v12232_v39 = vcombine.low %v4315_v3, %v4324_v16  ;;  %v5059_v38 = vrot.slane %v5057_v36, 5  ;;  %v5063_v29 = vrot.slane %v5061_v0, 4  ;;  %v5069_v30 = vrot.slane %v5067_v24, 5  ;;  %v12272_v0 = vld [vmem:[%s14866_s13 + $0x6c] sm:$0xf] }
 0x1b3   : > { %13696 = vmatmul.mubr.bf16.gmra.mxu1 %v12256_v26  ;;  %v5072_v53 = vshrl.u32 %v12268_v61, 16  ;;  %v5054_v1 = vor.u32 %v5053_v32, %v5050_v6  ;;  %v5075_v57 = vshll.u32 %v12268_v61, 16  ;;  %v5081_v12 = vshll.u32 %v12269_v37, 16  ;;  %v12273_v24 = vld [vmem:[%s14866_s13 + $0x70] sm:$0x1]  ;;  %v19012_v32 = vld [vmem:[#allocation30_spill] sm:$0xff] }
 0x1b4   : > { %13648 = vmatmul.mubr.bf16.gmra.mxu0 %v12232_v39  ;;  %v5085_v26 = vshrl.u32 %v12269_v37, 16  ;;  %v5064_v42 = vor.u32 %v5063_v29, %v5059_v38  ;;  %v5091_v2 = vshll.u32 %v12270_v59, 16  ;;  %v2064_v10 = vadd.f32 %v15869_v48, %v19010_v8  ;;  %v19011_v6 = vld [vmem:[#allocation39_spill] sm:$0xff]  ;;  %v16178_v48 = vpop.f32.mrf.mxu1 }
 0x1b5   : > { %v5074_v36 = vrot.slane %v5072_v53, 4  ;;  %v5055_v3 = vrot.slane %v5054_v1, 4  ;;  %v5077_v16 = vrot.slane %v5075_v57, 5  ;;  %v5083_v15 = vrot.slane %v5081_v12, 5  ;;  %19013 = vst [vmem:[#allocation29_spill] sm:$0xff] %v16178_v48 }
 0x1b6   : > { %v5087_v31 = vrot.slane %v5085_v26, 4  ;;  %v5065_v39 = vrot.slane %v5064_v42, 4  ;;  %v5093_v61 = vrot.slane %v5091_v2, 5  ;;  %v16174_v37 = vadd.f32 %v19011_v6, %v2066_v44  ;;  %v12274_v2 = vld [vmem:[%s14866_s13 + $0x80] sm:$0xf] }
 0x1b7   : > { %v16171_v35 = vpop.f32.mrf.mxu0  ;;  %v2067_v59 = vadd.f32 %v15883_v14, %v19012_v32  ;;  %v5060_v53 = vsel %vm15206_vm5, %v5055_v3, %v5059_v38  ;;  %v5078_v1 = vor.u32 %v5077_v16, %v5074_v36  ;;  %v16183_v12 = vadd.f32 %v15878_v28, %v2064_v10  ;;  %v12275_v38 = vld [vmem:[%s14866_s13 + $0x84] sm:$0xf]  ;;  %v12276_v36 = vld [vmem:[%s14866_s13 + $0x88] sm:$0x1] }
 0x1b8   : > { %v5088_v57 = vor.u32 %v5087_v31, %v5083_v15  ;;  %v5070_v26 = vsel %vm15206_vm5, %v5065_v39, %v5069_v30  ;;  %v5096_v42 = vshrl.u32 %v12271_v47, 16  ;;  %v5099_v48 = vshll.u32 %v12271_v47, 16 }
 0x1b9   : > { %v16188_v44 = vadd.f32 %v15908_v60, %v2067_v59  ;;  %v16191_v14 = vpop.f32.mrf.mxu0  ;;  %v12313_v8 = vcombine.low %v5060_v53, %v5070_v26  ;;  %v5079_v6 = vrot.slane %v5078_v1, 4  ;;  %v5105_v16 = vshll.u32 %v12272_v0, 16  ;;  %v19016_v59 = vld [vmem:[#allocation33_spill] sm:$0xff]  ;;  %v19017_v53 = vld [vmem:[#allocation44_spill] sm:$0xff] }
 0x1ba   : > { %v5089_v32 = vrot.slane %v5088_v57, 4  ;;  %v5098_v3 = vrot.slane %v5096_v42, 4  ;;  %v5109_v28 = vshrl.u32 %v12272_v0, 16  ;;  %v5115_v10 = vshll.u32 %v12273_v24, 16 }
 0x1bb   : > { %19015 = vst [vmem:[#allocation39_spill] sm:$0xff] %v16188_v44  ;;  %13715 = vmatprep.mubr.bf16.mxu0 %v12313_v8  ;;  %v5084_v60 = vsel %vm15206_vm5, %v5079_v6, %v5083_v15  ;;  %v5101_v39 = vrot.slane %v5099_v48, 5  ;;  %v2070_v47 = vadd.f32 %v19017_v53, %v19016_v59  ;;  %v5107_v57 = vrot.slane %v5105_v16, 5  ;;  %v16203_v0 = vpop.f32.mrf.mxu0  ;;  %v12277_v48 = vld [vmem:[%s14866_s13 + $0x98] sm:$0xf] }
 0x1bc   : > { %v16195_v31 = vpop.f32.mrf.mxu1  ;;  %v5094_v30 = vsel %vm15206_vm5, %v5089_v32, %v5093_v61  ;;  %v5111_v26 = vrot.slane %v5109_v28, 4  ;;  %v5117_v42 = vrot.slane %v5115_v10, 5  ;;  %v5120_v8 = vshrl.u32 %v12274_v2, 16  ;;  %v19018_v28 = vld [vmem:[#allocation34_spill] sm:$0xff] }
 0x1bd   : > { %v12314_v1 = vcombine.low %v5084_v60, %v5094_v30  ;;  %v5102_v24 = vor.u32 %v5101_v39, %v5098_v3  ;;  %v5123_v33 = vshll.u32 %v12274_v2, 16  ;;  %v5129_v6 = vshll.u32 %v12275_v38, 16  ;;  %v12278_v30 = vld [vmem:[%s14866_s13 + $0x9c] sm:$0xf] }
 0x1be   : > { %v5112_v15 = vor.u32 %v5111_v26, %v5107_v57  ;;  %v5133_v61 = vshrl.u32 %v12275_v38, 16  ;;  %v5139_v32 = vshll.u32 %v12276_v36, 16  ;;  %v16206_v44 = vpop.f32.mrf.mxu1  ;;  %v5122_v60 = vrot.slane %v5120_v8, 4  ;;  %v16212_v26 = vpop.f32.mrf.mxu0 }
 0x1bf   : > { %13716 = vmatmul.mubr.bf16.vlgmr.msra.gmra.mxu0 %v12314_v1  ;;  %v5103_v59 = vrot.slane %v5102_v24, 4  ;;  %v5125_v16 = vrot.slane %v5123_v33, 5  ;;  %v2068_v10 = vadd.f32 %v15937_v21, %v19018_v28  ;;  %v5131_v39 = vrot.slane %v5129_v6, 5  ;;  %v12279_v1 = vld [vmem:[%s14866_s13 + $0xa0] sm:$0x1]  ;;  %19019 = vst [vmem:[#allocation30_spill] sm:$0xff] %v16212_v26 }
 0x1c0   : > { %v5113_v3 = vrot.slane %v5112_v15, 4  ;;  %v5135_v2 = vrot.slane %v5133_v61, 4  ;;  %v5141_v53 = vrot.slane %v5139_v32, 5  ;;  %v16217_v24 = vadd.f32 %v15960_v4, %v2070_v47  ;;  %v19021_v33 = vld [vmem:[#allocation35_spill] sm:$0xff]  ;;  %v16227_v32 = vpop.f32.mrf.mxu1  ;;  %v12282_v26 = vld [vmem:[%s14866_s13 + $0xb8] sm:$0x1] }
 0x1c1   : > { %v5108_v38 = vsel %vm15206_vm5, %v5103_v59, %v5107_v57  ;;  %v5126_v36 = vor.u32 %v5125_v16, %v5122_v60  ;;  %v2071_v21 = vadd.f32 %v15966_v34, %v19021_v33  ;;  %v16224_v6 = vadd.f32 %v15981_v20, %v2068_v10  ;;  %v12280_v61 = vld [vmem:[%s14866_s13 + $0xb0] sm:$0xf]  ;;  %v12281_v47 = vld [vmem:[%s14866_s13 + $0xb4] sm:$0xf] }
 0x1c2   : > { %19020 = vst [vmem:[#allocation33_spill] sm:$0xff] %v16217_v24  ;;  %v5118_v8 = vsel %vm15206_vm5, %v5113_v3, %v5117_v42  ;;  %v5136_v15 = vor.u32 %v5135_v2, %v5131_v39  ;;  %v5144_v4 = vshrl.u32 %v12277_v48, 16  ;;  %v5147_v16 = vshll.u32 %v12277_v48, 16  ;;  %v19024_v2 = vld [vmem:[#allocation38_spill] sm:$0xff] }
 0x1c3   : > { %19022 = vst [vmem:[#allocation44_spill] sm:$0xff] %v16224_v6  ;;  %v12315_v28 = vcombine.low %v5108_v38, %v5118_v8  ;;  %v5127_v57 = vrot.slane %v5126_v36, 4  ;;  %v16230_v59 = vadd.f32 %v16014_v17, %v2071_v21  ;;  %v5153_v34 = vshll.u32 %v12278_v30, 16  ;;  %v12285_v6 = vld [vmem:[%s14866_s13 + $0xd0] sm:$0x1] }
 0x1c4   : > { %v5137_v60 = vrot.slane %v5136_v15, 4  ;;  %v5157_v33 = vshrl.u32 %v12278_v30, 16  ;;  %v5146_v10 = vrot.slane %v5144_v4, 4  ;;  %v5163_v3 = vshll.u32 %v12279_v1, 16  ;;  %v16242_v30 = vpop.f32.mrf.mxu1 }
 0x1c5   : > { %19023 = vst [vmem:[#allocation34_spill] sm:$0xff] %v16230_v59  ;;  %13719 = vmatprep.mubr.bf16.mxu0 %v12315_v28  ;;  %v5132_v20 = vsel %vm15206_vm5, %v5127_v57, %v5131_v39  ;;  %v2074_v38 = vadd.f32 %v16018_v46, %v19024_v2  ;;  %v5149_v36 = vrot.slane %v5147_v16, 5  ;;  %v5155_v21 = vrot.slane %v5153_v34, 5  ;;  %19025 = vst [vmem:[#allocation35_spill] sm:$0xff] %v16242_v30  ;;  %v19026_v16 = vld [vmem:[#allocation40_spill] sm:$0xff] }
 0x1c6   : > { %v16234_v42 = vpop.f32.mrf.mxu0  ;;  %v5142_v17 = vsel %vm15206_vm5, %v5137_v60, %v5141_v53  ;;  %v5159_v48 = vrot.slane %v5157_v33, 4  ;;  %v5165_v15 = vrot.slane %v5163_v3, 5  ;;  %v5168_v28 = vshrl.u32 %v12280_v61, 16  ;;  %v12283_v33 = vld [vmem:[%s14866_s13 + $0xc8] sm:$0xf] }
 0x1c7   : > { %v12316_v8 = vcombine.low %v5132_v20, %v5142_v17  ;;  %v5150_v39 = vor.u32 %v5149_v36, %v5146_v10  ;;  %v5171_v57 = vshll.u32 %v12280_v61, 16  ;;  %v5177_v46 = vshll.u32 %v12281_v47, 16  ;;  %v12284_v2 = vld [vmem:[%s14866_s13 + $0xcc] sm:$0xf] }
 0x1c8   : > { %v16244_v59 = vpop.f32.mrf.mxu0  ;;  %v5160_v1 = vor.u32 %v5159_v48, %v5155_v21  ;;  %v5170_v4 = vrot.slane %v5168_v28, 4  ;;  %v5181_v53 = vshrl.u32 %v12281_v47, 16  ;;  %v5187_v60 = vshll.u32 %v12282_v26, 16  ;;  %v19027_v26 = vld [vmem:[#allocation41_spill] sm:$0xff] }
 0x1c9   : > { %13720 = vmatmul.mubr.bf16.gmra.mxu0 %v12316_v8  ;;  %v2072_v34 = vadd.f32 %v16042_v23, %v19026_v16  ;;  %v5151_v30 = vrot.slane %v5150_v39, 4  ;;  %v5173_v3 = vrot.slane %v5171_v57, 5  ;;  %v5179_v17 = vrot.slane %v5177_v46, 5  ;;  %v12287_v16 = vld [vmem:[%s14866_s13 + $0xe4] sm:$0xf] }
 0x1ca   : > { %v5161_v20 = vrot.slane %v5160_v1, 4  ;;  %v5183_v10 = vrot.slane %v5181_v53, 4  ;;  %v5189_v61 = vrot.slane %v5187_v60, 5  ;;  %v16254_v36 = vadd.f32 %v16065_v63, %v2074_v38  ;;  %v16258_v47 = vpop.f32.mrf.mxu0  ;;  %v12286_v38 = vld [vmem:[%s14866_s13 + $0xe0] sm:$0xf] }
 0x1cb   : > { %v2075_v23 = vadd.f32 %v16068_v43, %v19027_v26  ;;  %v5156_v48 = vsel %vm15206_vm5, %v5151_v30, %v5155_v21  ;;  %v5174_v28 = vor.u32 %v5173_v3, %v5170_v4  ;;  %v16265_v39 = vadd.f32 %v16076_v51, %v2072_v34  ;;  %v12288_v26 = vld [vmem:[%s14866_s13 + $0xe8] sm:$0x1]  ;;  %v19029_v51 = vld [vmem:[#allocation43_spill] sm:$0xff] }
 0x1cc   : > { %v16251_v24 = vpop.f32.mrf.mxu1  ;;  %v5166_v8 = vsel %vm15206_vm5, %v5161_v20, %v5165_v15  ;;  %v5184_v57 = vor.u32 %v5183_v10, %v5179_v17  ;;  %v5192_v43 = vshrl.u32 %v12283_v33, 16  ;;  %v5195_v53 = vshll.u32 %v12283_v33, 16  ;;  %v16277_v20 = vpop.f32.mrf.mxu0 }
 0x1cd   : > { %v12317_v1 = vcombine.low %v5156_v48, %v5166_v8  ;;  %v16268_v63 = vadd.f32 %v16094_v45, %v2075_v23  ;;  %v5175_v46 = vrot.slane %v5174_v28, 4  ;;  %v5201_v60 = vshll.u32 %v12284_v2, 16  ;;  %19030 = vst [vmem:[#allocation40_spill] sm:$0xff] %v16277_v20 }
 0x1ce   : > { %v16273_v21 = vpop.f32.mrf.mxu1  ;;  %v5185_v30 = vrot.slane %v5184_v57, 4  ;;  %v5205_v15 = vshrl.u32 %v12284_v2, 16  ;;  %v5211_v4 = vshll.u32 %v12285_v6, 16  ;;  %v2078_v34 = vadd.f32 %v16112_v11, %v19029_v51 }
 0x1cf   : > { %19028 = vst [vmem:[#allocation38_spill] sm:$0xff] %v16268_v63  ;;  %13723 = vmatprep.mubr.bf16.mxu0 %v12317_v1  ;;  %v5180_v45 = vsel %vm15206_vm5, %v5175_v46, %v5179_v17  ;;  %v5194_v3 = vrot.slane %v5192_v43, 4  ;;  %v5197_v10 = vrot.slane %v5195_v53, 5  ;;  %v5203_v33 = vrot.slane %v5201_v60, 5  ;;  %v14374_v60 = vld [vmem:[#allocation8 + $0x78] sm:$0xff]  }
 0x1d0   : > { %v5190_v23 = vsel %vm15206_vm5, %v5185_v30, %v5189_v61  ;;  %v5207_v48 = vrot.slane %v5205_v15, 4  ;;  %v5213_v8 = vrot.slane %v5211_v4, 5  ;;  %v5216_v2 = vshrl.u32 %v12286_v38, 16  ;;  %v16283_v57 = vpop.f32.mrf.mxu1  ;;  %v12289_v4 = vld [vmem:[%s14866_s13 + $0xf8] sm:$0xf]  ;;  %13747 = vmatprep.subr.bf16.mxu1 %v14374_v60 }
 0x1d1   : > { %v12318_v28 = vcombine.low %v5180_v45, %v5190_v23  ;;  %v5198_v1 = vor.u32 %v5197_v10, %v5194_v3  ;;  %v5219_v6 = vshll.u32 %v12286_v38, 16  ;;  %v5225_v51 = vshll.u32 %v12287_v16, 16  ;;  %v12290_v10 = vld [vmem:[%s14866_s13 + $0xfc] sm:$0xf]  ;;  %13748 = vmatpush3.bf16.msra.mxu1 %v14374_v60 }
 0x1d2   : > { %v5208_v11 = vor.u32 %v5207_v48, %v5203_v33  ;;  %v5229_v20 = vshrl.u32 %v12287_v16, 16  ;;  %v5235_v63 = vshll.u32 %v12288_v26, 16  ;;  %v5218_v43 = vrot.slane %v5216_v2, 4  ;;  %v16298_v23 = vpop.f32.mrf.mxu1 }
 0x1d3   : > { %13724 = vmatmul.mubr.bf16.gmra.mxu0 %v12318_v28  ;;  %v5199_v46 = vrot.slane %v5198_v1, 4  ;;  %v5221_v61 = vrot.slane %v5219_v6, 5  ;;  %v2076_v53 = vadd.f32 %v16128_v25, %v15943_v40  ;;  %v5227_v38 = vrot.slane %v5225_v51, 5  ;;  %19031 = vst [vmem:[#allocation41_spill] sm:$0xff] %v16298_v23 }
 0x1d4   : > { %v5209_v30 = vrot.slane %v5208_v11, 4  ;;  %v5231_v15 = vrot.slane %v5229_v20, 4  ;;  %v16293_v45 = vadd.f32 %v16133_v7, %v2078_v34  ;;  %v2079_v3 = vadd.f32 %v16150_v13, %v15951_v22  ;;  %v12291_v7 = vld [vmem:[%s14866_s13 + $0x100] sm:$0x1] }
 0x1d5   : > { %v16285_v17 = vpop.f32.mrf.mxu0  ;;  %v5204_v16 = vsel %vm15206_vm5, %v5199_v46, %v5203_v33  ;;  %v5222_v26 = vor.u32 %v5221_v61, %v5218_v43  ;;  %v5237_v48 = vrot.slane %v5235_v63, 5  ;;  %v16305_v33 = vadd.f32 %v16153_v62, %v2076_v53  ;;  %v12293_v43 = vld [vmem:[%s14866_s13 + $0x114] sm:$0xf] }
 0x1d6   : > { %v5214_v25 = vsel %vm15206_vm5, %v5209_v30, %v5213_v8  ;;  %v5232_v20 = vor.u32 %v5231_v15, %v5227_v38  ;;  %v16309_v13 = vadd.f32 %v16164_v56, %v2079_v3  ;;  %v5240_v28 = vshrl.u32 %v12289_v4, 16  ;;  %v12292_v8 = vld [vmem:[%s14866_s13 + $0x110] sm:$0xf] }
 0x1d7   : > { %v16300_v40 = vpop.f32.mrf.mxu0  ;;  %v12319_v34 = vcombine.low %v5204_v16, %v5214_v25  ;;  %v5223_v22 = vrot.slane %v5222_v26, 4  ;;  %v5243_v2 = vshll.u32 %v12289_v4, 16  ;;  %v5249_v6 = vshll.u32 %v12290_v10, 16  ;;  %v12294_v4 = vld [vmem:[%s14866_s13 + $0x118] sm:$0x1] }
 0x1d8   : > { %v5233_v1 = vrot.slane %v5232_v20, 4  ;;  %v5253_v11 = vshrl.u32 %v12290_v10, 16  ;;  %v5242_v63 = vrot.slane %v5240_v28, 4  ;;  %v5259_v51 = vshll.u32 %v12291_v7, 16 }
 0x1d9   : > { %13727 = vmatprep.mubr.bf16.mxu0 %v12319_v34  ;;  %v5228_v62 = vsel %vm15206_vm5, %v5223_v22, %v5227_v38  ;;  %v2082_v46 = vadd.f32 %v16171_v35, %v15976_v18  ;;  %v16319_v56 = vpop.f32.mrf.mxu0  ;;  %v5245_v60 = vrot.slane %v5243_v2, 5  ;;  %v5251_v30 = vrot.slane %v5249_v6, 5  ;;  %v14375_v35 = vld [vmem:[#allocation8 + $0x70] sm:$0xff]  }
 0x1da   : > { %v5238_v53 = vsel %vm15206_vm5, %v5233_v1, %v5237_v48  ;;  %v5255_v15 = vrot.slane %v5253_v11, 4  ;;  %v5261_v26 = vrot.slane %v5259_v51, 5  ;;  %v5264_v38 = vshrl.u32 %v12292_v8, 16  ;;  %13749 = vmatprep.subr.bf16.mxu1 %v14375_v35  ;;  %v12295_v51 = vld [vmem:[%s14866_s13 + $0x128] sm:$0xf] }
 0x1db   : > { %v12320_v16 = vcombine.low %v5228_v62, %v5238_v53  ;;  %v5246_v3 = vor.u32 %v5245_v60, %v5242_v63  ;;  %v5267_v25 = vshll.u32 %v12292_v8, 16  ;;  %v5273_v20 = vshll.u32 %v12293_v43, 16  ;;  %v16328_v28 = vpop.f32.mrf.mxu0  ;;  %13750 = vmatpush3.bf16.msra.mxu1 %v14375_v35 }
 0x1dc   : > { %v16317_v61 = vpop.f32.mrf.mxu1  ;;  %v5256_v10 = vor.u32 %v5255_v15, %v5251_v30  ;;  %v5266_v7 = vrot.slane %v5264_v38, 4  ;;  %v5277_v34 = vshrl.u32 %v12293_v43, 16  ;;  %v5283_v48 = vshll.u32 %v12294_v4, 16  ;;  %v12296_v43 = vld [vmem:[%s14866_s13 + $0x12c] sm:$0xf] }
 0x1dd   : > { %13728 = vmatmul.mubr.bf16.gmra.mxu0 %v12320_v16  ;;  %v2080_v22 = vadd.f32 %v16191_v14, %v15999_v9  ;;  %v5247_v1 = vrot.slane %v5246_v3, 4  ;;  %v5269_v6 = vrot.slane %v5267_v25, 5  ;;  %v5275_v11 = vrot.slane %v5273_v20, 5  ;;  %v12297_v15 = vld [vmem:[%s14866_s13 + $0x130] sm:$0x1] }
 0x1de   : > { %v16324_v18 = vpop.f32.mrf.mxu1  ;;  %v5257_v2 = vrot.slane %v5256_v10, 4  ;;  %v5279_v8 = vrot.slane %v5277_v34, 4  ;;  %v16331_v62 = vadd.f32 %v16195_v31, %v2082_v46  ;;  %v2083_v63 = vadd.f32 %v16203_v0, %v16006_v27  ;;  %v12298_v10 = vld [vmem:[%s14866_s13 + $0x140] sm:$0xf] }
 0x1df   : > { %v5252_v9 = vsel %vm15206_vm5, %v5247_v1, %v5251_v30  ;;  %v5270_v53 = vor.u32 %v5269_v6, %v5266_v7  ;;  %v16342_v60 = vadd.f32 %v16206_v44, %v2080_v22  ;;  %v5285_v0 = vrot.slane %v5283_v48, 5  ;;  %v12299_v7 = vld [vmem:[%s14866_s13 + $0x144] sm:$0xf] }
 0x1e0   : > { %v5262_v14 = vsel %vm15206_vm5, %v5257_v2, %v5261_v26  ;;  %v16345_v31 = vpop.f32.mrf.mxu1  ;;  %v5280_v27 = vor.u32 %v5279_v8, %v5275_v11  ;;  %v16348_v4 = vadd.f32 %v16227_v32, %v2083_v63  ;;  %v5288_v38 = vshrl.u32 %v12295_v51, 16  ;;  %v12300_v2 = vld [vmem:[%s14866_s13 + $0x148] sm:$0x1] }
 0x1e1   : > { %v12321_v46 = vcombine.low %v5252_v9, %v5262_v14  ;;  %v5271_v30 = vrot.slane %v5270_v53, 4  ;;  %v5291_v26 = vshll.u32 %v12295_v51, 16  ;;  %v5297_v3 = vshll.u32 %v12296_v43, 16  ;;  %v14376_v8 = vld [vmem:[#allocation8 + $0x68] sm:$0xff]  }
 0x1e2   : > { %v5281_v44 = vrot.slane %v5280_v27, 4  ;;  %v5301_v25 = vshrl.u32 %v12296_v43, 16  ;;  %v5307_v20 = vshll.u32 %v12297_v15, 16  ;;  %v2086_v35 = vadd.f32 %v16234_v42, %v16030_v55  ;;  %v16361_v6 = vpop.f32.mrf.mxu1  ;;  %13751 = vmatprep.subr.bf16.mxu1 %v14376_v8 }
 0x1e3   : > { %13731 = vmatprep.mubr.bf16.mxu0 %v12321_v46  ;;  %v5276_v32 = vsel %vm15206_vm5, %v5271_v30, %v5275_v11  ;;  %v5290_v48 = vrot.slane %v5288_v38, 4  ;;  %v5293_v22 = vrot.slane %v5291_v26, 5  ;;  %v5299_v1 = vrot.slane %v5297_v3, 5  ;;  %19032 = vst [vmem:[#allocation43_spill] sm:$0xff] %v16361_v6  ;;  %13752 = vmatpush3.bf16.msra.mxu1 %v14376_v8 }
 0x1e4   : > { %v16350_v16 = vpop.f32.mrf.mxu0  ;;  %v5286_v63 = vsel %vm15206_vm5, %v5281_v44, %v5285_v0  ;;  %v5303_v51 = vrot.slane %v5301_v25, 4  ;;  %v5309_v43 = vrot.slane %v5307_v20, 5  ;;  %v5312_v14 = vshrl.u32 %v12298_v10, 16 }
 0x1e5   : > { %v12322_v55 = vcombine.low %v5276_v32, %v5286_v63  ;;  %v5294_v42 = vor.u32 %v5293_v22, %v5290_v48  ;;  %v5315_v53 = vshll.u32 %v12298_v10, 16  ;;  %v5321_v15 = vshll.u32 %v12299_v7, 16  ;;  %v12301_v32 = vld [vmem:[%s14866_s13 + $0x158] sm:$0xf] }
 0x1e6   : > { %v16356_v34 = vpop.f32.mrf.mxu0  ;;  %v5304_v11 = vor.u32 %v5303_v51, %v5299_v1  ;;  %v5325_v46 = vshrl.u32 %v12299_v7, 16  ;;  %v5331_v27 = vshll.u32 %v12300_v2, 16  ;;  %v5314_v38 = vrot.slane %v5312_v14, 4 }
 0x1e7   : > { %13732 = vmatmul.mubr.bf16.gmra.mxu0 %v12322_v55  ;;  %v5295_v0 = vrot.slane %v5294_v42, 4  ;;  %v5317_v26 = vrot.slane %v5315_v53, 5  ;;  %v2084_v3 = vadd.f32 %v16244_v59, %v16049_v52  ;;  %v5323_v25 = vrot.slane %v5321_v15, 5  ;;  %v12302_v59 = vld [vmem:[%s14866_s13 + $0x15c] sm:$0xf] }
 0x1e8   : > { %v16365_v9 = vpop.f32.mrf.mxu0  ;;  %v5305_v10 = vrot.slane %v5304_v11, 4  ;;  %v5327_v20 = vrot.slane %v5325_v46, 4  ;;  %v16379_v2 = vadd.f32 %v16251_v24, %v2086_v35  ;;  %v2087_v52 = vadd.f32 %v16258_v47, %v16059_v58  ;;  %v12304_v47 = vld [vmem:[%s14866_s13 + $0x170] sm:$0xf] }
 0x1e9   : > { %v5300_v48 = vsel %vm15206_vm5, %v5295_v0, %v5299_v1  ;;  %v5318_v22 = vor.u32 %v5317_v26, %v5314_v38  ;;  %v5333_v55 = vrot.slane %v5331_v27, 5  ;;  %v16389_v42 = vadd.f32 %v16273_v21, %v2084_v3  ;;  %v12303_v1 = vld [vmem:[%s14866_s13 + $0x160] sm:$0x1] }
 0x1ea   : > { %v16367_v30 = vpop.f32.mrf.mxu0  ;;  %v5310_v63 = vsel %vm15206_vm5, %v5305_v10, %v5309_v43  ;;  %v5328_v51 = vor.u32 %v5327_v20, %v5323_v25  ;;  %v16395_v35 = vadd.f32 %v16283_v57, %v2087_v52  ;;  %v5336_v58 = vshrl.u32 %v12301_v32, 16  ;;  %v14377_v0 = vld [vmem:[#allocation8 + $0x60] sm:$0xff]  }
 0x1eb   : > { %v16371_v44 = vpop.f32.mrf.mxu1  ;;  %v12323_v53 = vcombine.low %v5300_v48, %v5310_v63  ;;  %v5319_v24 = vrot.slane %v5318_v22, 4  ;;  %v5339_v43 = vshll.u32 %v12301_v32, 16  ;;  %v5345_v46 = vshll.u32 %v12302_v59, 16  ;;  %v12305_v10 = vld [vmem:[%s14866_s13 + $0x174] sm:$0xf]  ;;  %13753 = vmatprep.subr.bf16.mxu1 %v14377_v0 }
 0x1ec   : > { %v16374_v7 = vpop.f32.mrf.mxu0  ;;  %v5329_v15 = vrot.slane %v5328_v51, 4  ;;  %v5349_v27 = vshrl.u32 %v12302_v59, 16  ;;  %v5338_v26 = vrot.slane %v5336_v58, 4  ;;  %v5355_v3 = vshll.u32 %v12303_v1, 16  ;;  %v12306_v59 = vld [vmem:[%s14866_s13 + $0x178] sm:$0x1]  ;;  %13754 = vmatpush3.bf16.msra.mxu1 %v14377_v0 }
 0x1ed   : > { %v16384_v8 = vpop.f32.mrf.mxu1  ;;  %13735 = vmatprep.mubr.bf16.mxu0 %v12323_v53  ;;  %v5324_v38 = vsel %vm15206_vm5, %v5319_v24, %v5323_v25  ;;  %v2090_v57 = vadd.f32 %v16285_v17, %v16080_v50  ;;  %v5341_v48 = vrot.slane %v5339_v43, 5  ;;  %v5347_v22 = vrot.slane %v5345_v46, 5 }
 0x1ee   : > { %v16392_v14 = vpop.f32.mrf.mxu0  ;;  %v5334_v32 = vsel %vm15206_vm5, %v5329_v15, %v5333_v55  ;;  %v5351_v52 = vrot.slane %v5349_v27, 4  ;;  %v5357_v25 = vrot.slane %v5355_v3, 5  ;;  %v5360_v53 = vshrl.u32 %v12304_v47, 16 }
 0x1ef   : > { %v16398_v11 = vpop.f32.mrf.mxu1  ;;  %v12324_v51 = vcombine.low %v5324_v38, %v5334_v32  ;;  %v5342_v1 = vor.u32 %v5341_v48, %v5338_v26  ;;  %v5363_v50 = vshll.u32 %v12304_v47, 16  ;;  %v5369_v17 = vshll.u32 %v12305_v10, 16 }
 0x1f0   : > { %v16400_v21 = vpop.f32.mrf.mxu0  ;;  %v5352_v24 = vor.u32 %v5351_v52, %v5347_v22  ;;  %v5362_v55 = vrot.slane %v5360_v53, 4  ;;  %v5373_v15 = vshrl.u32 %v12305_v10, 16  ;;  %v5379_v43 = vshll.u32 %v12306_v59, 16  ;;  %v12307_v52 = vld [vmem:[%s14866_s13 + $0x188] sm:$0xf] }
 0x1f1   : > { %v16407_v20 = vpop.f32.mrf.mxu1  ;;  %13736 = vmatmul.mubr.bf16.gmra.mxu0 %v12324_v51  ;;  %v2088_v46 = vadd.f32 %v16300_v40, %v16100_v5  ;;  %v5343_v38 = vrot.slane %v5342_v1, 4  ;;  %v5365_v26 = vrot.slane %v5363_v50, 5  ;;  %v5371_v3 = vrot.slane %v5369_v17, 5  ;;  %v12308_v59 = vld [vmem:[%s14866_s13 + $0x18c] sm:$0xf] }
 0x1f2   : > { %19033 = vst [vmem:[#allocation49_spill] sm:$0xff] %v16407_v20  ;;  %v16412_v63 = vpop.f32.mrf.mxu0  ;;  %v5353_v0 = vrot.slane %v5352_v24, 4  ;;  %v5375_v32 = vrot.slane %v5373_v15, 4  ;;  %v16423_v48 = vadd.f32 %v16317_v61, %v2090_v57  ;;  %v2091_v10 = vadd.f32 %v16319_v56, %v16108_v54  ;;  %v12309_v61 = vld [vmem:[%s14866_s13 + $0x190] sm:$0x1]  ;;  %v14378_v24 = vld [vmem:[#allocation8 + $0x58] sm:$0xff]  }
 0x1f3   : > { %19034 = vst [vmem:[#allocation50_spill] sm:$0xff] %v16412_v63  ;;  %v5348_v5 = vsel %vm15206_vm5, %v5343_v38, %v5347_v22  ;;  %v5366_v53 = vor.u32 %v5365_v26, %v5362_v55  ;;  %v16436_v1 = vadd.f32 %v16324_v18, %v2088_v46  ;;  %v5381_v50 = vrot.slane %v5379_v43, 5  ;;  %v12310_v18 = vld [vmem:[%s14866_s13 + $0x1a0] sm:$0xf]  ;;  %13755 = vmatprep.subr.bf16.mxu1 %v14378_v24 }
 0x1f4   : > { %v16414_v58 = vpop.f32.mrf.mxu0  ;;  %v5358_v40 = vsel %vm15206_vm5, %v5353_v0, %v5357_v25  ;;  %v5376_v56 = vor.u32 %v5375_v32, %v5371_v3  ;;  %v16442_v17 = vadd.f32 %v16345_v31, %v2091_v10  ;;  %v5384_v38 = vshrl.u32 %v12307_v52, 16  ;;  %v12311_v31 = vld [vmem:[%s14866_s13 + $0x1a4] sm:$0xf]  ;;  %13756 = vmatpush3.bf16.msra.mxu1 %v14378_v24 }
 0x1f5   : > { %v16418_v27 = vpop.f32.mrf.mxu1  ;;  %v12325_v54 = vcombine.low %v5348_v5, %v5358_v40  ;;  %v5367_v15 = vrot.slane %v5366_v53, 4  ;;  %v5387_v25 = vshll.u32 %v12307_v52, 16  ;;  %v5393_v55 = vshll.u32 %v12308_v59, 16 }
 0x1f6   : > { %v16420_v47 = vpop.f32.mrf.mxu0  ;;  %v5377_v0 = vrot.slane %v5376_v56, 4  ;;  %v5397_v26 = vshrl.u32 %v12308_v59, 16  ;;  %v5403_v32 = vshll.u32 %v12309_v61, 16  ;;  %v2094_v43 = vadd.f32 %v16350_v16, %v16126_v41 }
 0x1f7   : > { %v16429_v51 = vpop.f32.mrf.mxu1  ;;  %13739 = vmatprep.mubr.bf16.mxu0 %v12325_v54  ;;  %v5372_v52 = vsel %vm15206_vm5, %v5367_v15, %v5371_v3  ;;  %v5386_v5 = vrot.slane %v5384_v38, 4  ;;  %v5389_v40 = vrot.slane %v5387_v25, 5  ;;  %v5395_v53 = vrot.slane %v5393_v55, 5 }
 0x1f8   : > { %v16439_v57 = vpop.f32.mrf.mxu0  ;;  %v5382_v54 = vsel %vm15206_vm5, %v5377_v0, %v5381_v50  ;;  %v5399_v59 = vrot.slane %v5397_v26, 4  ;;  %v5405_v61 = vrot.slane %v5403_v32, 5  ;;  %v5408_v16 = vshrl.u32 %v12310_v18, 16 }
 0x1f9   : > { %v16444_v22 = vpop.f32.mrf.mxu1  ;;  %v12326_v20 = vcombine.low %v5372_v52, %v5382_v54  ;;  %v5390_v41 = vor.u32 %v5389_v40, %v5386_v5  ;;  %v5411_v6 = vshll.u32 %v12310_v18, 16  ;;  %v5417_v23 = vshll.u32 %v12311_v31, 16 }
 0x1fa   : > { %19035 = vst [vmem:[#allocation51_spill] sm:$0xff] %v16444_v22  ;;  %v16447_v46 = vpop.f32.mrf.mxu0  ;;  %v12312_v22 = vld [vmem:[%s14866_s13 + $0x1a8] sm:$0x1]  ;;  %v5400_v24 = vor.u32 %v5399_v59, %v5395_v53  ;;  %v5421_v63 = vshrl.u32 %v12311_v31, 16  ;;  %v5410_v25 = vrot.slane %v5408_v16, 4  ;;  %v2092_v50 = vadd.f32 %v16356_v34, %v16139_v49 }
 0x1fb   : > { %19036 = vst [vmem:[#allocation52_spill] sm:$0xff] %v16447_v46  ;;  %v16452_v10 = vpop.f32.mrf.mxu1  ;;  %v5427_v3 = vshll.u32 %v12312_v22, 16  ;;  %13740 = vmatmul.mubr.bf16.gmra.mxu0 %v12326_v20  ;;  %v5391_v38 = vrot.slane %v5390_v41, 4  ;;  %v5413_v55 = vrot.slane %v5411_v6, 5  ;;  %v5419_v32 = vrot.slane %v5417_v23, 5 }
 0x1fc   : > { %19037 = vst [vmem:[#allocation53_spill] sm:$0xff] %v16452_v10  ;;  %v13533_v46 = vpop.f32.mrf.mxu0  ;;  %v5401_v26 = vrot.slane %v5400_v24, 4  ;;  %v5423_v52 = vrot.slane %v5421_v63, 4  ;;  %v16466_v22 = vadd.f32 %v16371_v44, %v2094_v43  ;;  %v2095_v20 = vadd.f32 %v16365_v9, %v16147_v19 }
 0x1fd   : > { %v13577_v56 = vpop.f32.mrf.mxu1  ;;  %v5396_v18 = vsel %vm15206_vm5, %v5391_v38, %v5395_v53  ;;  %v5414_v40 = vor.u32 %v5413_v55, %v5410_v25  ;;  %v5429_v23 = vrot.slane %v5427_v3, 5  ;;  %v16475_v63 = vadd.f32 %v16384_v8, %v2092_v50  ;;  %v19041_v55 = vld [vmem:[#allocation34_spill] sm:$0xff] }
 0x1fe   : > { %v3044_v10 = vpop.f32.mrf.mxu0  ;;  %v5406_v49 = vsel %vm15206_vm5, %v5401_v26, %v5405_v61  ;;  %v5424_v34 = vor.u32 %v5423_v52, %v5419_v32  ;;  %v16480_v44 = vadd.f32 %v16398_v11, %v2095_v20  ;;  %v3141_v19 = vadd.f32 %v16374_v7, %v16174_v37  ;;  %v19038_v61 = vld [vmem:[#allocation39_spill] sm:$0xff]  ;;  %v19039_v11 = vld [vmem:[#allocation33_spill] sm:$0xff]  ;;  %v14379_v52 = vld [vmem:[#allocation8 + $0x38] sm:$0xff]  }
 0x1ff   : > { %v3781_v15 = vpop.f32.mrf.mxu1  ;;  %v12327_v53 = vcombine.low %v5396_v18, %v5406_v49  ;;  %v5415_v54 = vrot.slane %v5414_v40, 4  ;;  %v3139_v59 = vadd.f32 %v16392_v14, %v16183_v12  ;;  %v16488_v41 = vadd.f32 %v16400_v21, %v19038_v61  ;;  %v19040_v14 = vld [vmem:[#allocation44_spill] sm:$0xff]  ;;  %v14380_v18 = vld [vmem:[#allocation8 + $0x50] sm:$0xff]   ;;  %13795 = vmatprep.subr.bf16.mxu0 %v14379_v52 }
 0x200   : > { %v13534_v0 = vpop.f32.mrf.mxu0  ;;  %v5425_v43 = vrot.slane %v5424_v34, 4  ;;  %v16493_v16 = vadd.f32 %v16418_v27, %v3141_v19  ;;  %v3145_v24 = vadd.f32 %v16414_v58, %v19039_v11  ;;  %v3143_v21 = vadd.f32 %v16420_v47, %v19040_v14  ;;  %v19042_v47 = vld [vmem:[#allocation38_spill] sm:$0xff]  ;;  %13757 = vmatprep.subr.bf16.mxu1 %v14380_v18  ;;  %13796 = vmatpush3.bf16.msra.mxu0 %v14379_v52 }
 0x201   : > { %v16461_v5 = vpop.f32.mrf.mxu1  ;;  %13743 = vmatprep.mubr.bf16.mxu0 %v12327_v53  ;;  %v5420_v8 = vsel %vm15206_vm5, %v5415_v54, %v5419_v32  ;;  %v16500_v12 = vadd.f32 %v16429_v51, %v3139_v59  ;;  %v16508_v27 = vadd.f32 %v16439_v57, %v19041_v55  ;;  %v3149_v26 = vadd.f32 %v13533_v46, %v16254_v36  ;;  %v14383_v11 = vld [vmem:[#allocation8 + $0x48] sm:$0xff]  }
 0x202   : > { %v16470_v6 = vpop.f32.mrf.mxu0  ;;  %v5430_v7 = vsel %vm15206_vm5, %v5425_v43, %v5429_v23  ;;  %v16504_v25 = vadd.f32 %v13577_v56, %v3145_v24  ;;  %v16510_v58 = vadd.f32 %v3781_v15, %v3143_v21  ;;  %v3147_v32 = vadd.f32 %v3044_v10, %v16265_v39  ;;  %13758 = vmatpush3.bf16.msra.mxu1 %v14380_v18 }
 0x203   : > { %v16477_v31 = vpop.f32.mrf.mxu1  ;;  %v12328_v38 = vcombine.low %v5420_v8, %v5430_v7  ;;  %v3150_v40 = vadd.f32 %v13534_v0, %v19042_v47  ;;  %13759 = vmatprep.subr.bf16.mxu1 %v14383_v11  ;;  %vm11732_vm6 = vcmask 523264  }
 0x204   : > { %v13537_v9 = vpop.f32.mrf.mxu0 }
 0x205   : > { %13744 = vmatmul.mubr.bf16.gmra.mxu0 %v12328_v38  ;;  %v3153_v56 = vadd.f32 %v13537_v9, %v16293_v45  ;;  %v14381_v9 = vld [vmem:[#allocation8 + $0x30] sm:$0xff]  }
 0x206   : > { %v3060_v37 = vpop.f32.mrf.mxu0  ;;  %13797 = vmatprep.subr.bf16.mxu0 %v14381_v9  ;;  %13760 = vmatpush3.bf16.msra.mxu1 %v14383_v11  ;;  %v6110_v11 = vld [vmem:[#allocation2 + $0xc] sm:$0xf] }
 0x207   : > { %v13581_v3 = vpop.f32.mrf.mxu1  ;;  %v3151_v34 = vadd.f32 %v3060_v37, %v16305_v33  ;;  %13798 = vmatpush3.bf16.msra.mxu0 %v14381_v9 }
 0x208   : > { %v13538_v50 = vpop.f32.mrf.mxu0  ;;  %v16518_v49 = vadd.f32 %v13581_v3, %v3149_v26 }
 0x209   : > { %v3797_v51 = vpop.f32.mrf.mxu1  ;;  %v3154_v39 = vadd.f32 %v13538_v50, %v16309_v13 }
 0x20a   : > { %v16516_v20 = vpop.f32.mrf.mxu0  ;;  %v16520_v57 = vadd.f32 %v3797_v51, %v3147_v32  ;;  %v14384_v51 = vld [vmem:[#allocation8 + $0x20] sm:$0xff]  }
 0x20b   : > { %v13582_v15 = vpop.f32.mrf.mxu1 }
 0x20c   : > { %v16523_v36 = vadd.f32 %v13582_v15, %v3150_v40  ;;  %v13541_v46 = vpop.f32.mrf.mxu0 }
 0x20d   : > { %v16526_v10 = vpop.f32.mrf.mxu1  ;;  %v3157_v45 = vadd.f32 %v13541_v46, %v16331_v62  ;;  %v14382_v62 = vld [vmem:[#allocation8 + $0x28] sm:$0xff]  }
 0x20e   : > { %v3076_v0 = vpop.f32.mrf.mxu0  ;;  %13799 = vmatprep.subr.bf16.mxu0 %v14382_v62 }
 0x20f   : > { %v3155_v23 = vadd.f32 %v3076_v0, %v16342_v60  ;;  %13800 = vmatpush3.bf16.msra.mxu0 %v14382_v62  ;;  %v6109_v62 = vld [vmem:[#allocation2 + $0x8] sm:$0xf] }
 0x210   : > { %v13585_v53 = vpop.f32.mrf.mxu1  ;;  %v13542_v54 = vpop.f32.mrf.mxu0  ;;  %13801 = vmatprep.subr.bf16.mxu0 %v14384_v51 }
 0x211   : > { %v16530_v19 = vadd.f32 %v13585_v53, %v3153_v56  ;;  %v3158_v33 = vadd.f32 %v13542_v54, %v16348_v4  ;;  %v14386_v56 = vld [vmem:[#allocation8 + $0x40] sm:$0xff]  }
 0x212   : > { %v3813_v43 = vpop.f32.mrf.mxu1  ;;  %v16533_v13 = vpop.f32.mrf.mxu0  ;;  %13761 = vmatprep.subr.bf16.mxu1 %v14386_v56 }
 0x213   : > { %v16535_v59 = vadd.f32 %v3813_v43, %v3151_v34  ;;  %13802 = vmatpush3.bf16.msra.mxu0 %v14384_v51  ;;  %13762 = vmatpush3.bf16.msra.mxu1 %v14386_v56  ;;  %v14393_v56 = vld [vmem:[#allocation8] sm:$0xff]  }
 0x214   : > { %v13586_v61 = vpop.f32.mrf.mxu1  ;;  %v13545_v8 = vpop.f32.mrf.mxu0 }
 0x215   : > { %v16537_v24 = vadd.f32 %v13586_v61, %v3154_v39  ;;  %v3161_v60 = vadd.f32 %v13545_v8, %v16379_v2 }
 0x216   : > { %v16540_v37 = vpop.f32.mrf.mxu1  ;;  %v3092_v7 = vpop.f32.mrf.mxu0 }
 0x217   : > { %v3159_v4 = vadd.f32 %v3092_v7, %v16389_v42  ;;  %v6162_v7 = vshrl.u32 %v6109_v62, 16 }
 0x218   : > { %v13589_v14 = vpop.f32.mrf.mxu1  ;;  %v13546_v21 = vpop.f32.mrf.mxu0 }
 0x219   : > { %v16543_v3 = vadd.f32 %v13589_v14, %v3157_v45  ;;  %v3162_v38 = vadd.f32 %v13546_v21, %v16395_v35  ;;  %v14385_v35 = vld [vmem:[#allocation8 + $0x18] sm:$0xff]  }
 0x21a   : > { %v3829_v55 = vpop.f32.mrf.mxu1  ;;  %v16546_v50 = vpop.f32.mrf.mxu0  ;;  %13803 = vmatprep.subr.bf16.mxu0 %v14385_v35  ;;  %v16570_v14 = vld [vmem:[#allocation8 + $0xb8] sm:$0xff]  }
 0x21b   : > { %v16548_v26 = vadd.f32 %v3829_v55, %v3155_v23  ;;  %13804 = vmatpush3.bf16.msra.mxu0 %v14385_v35  ;;  %19043 = vst [vmem:[#allocation39_spill] sm:$0xff] %v16570_v14  ;;  %v12387_v55 = vcombine.low %v6109_v62, %v6110_v11  ;;  %13843 = vmatprep.subr.bf16.mxu1 %v16570_v14 }
 0x21c   : > { %v13590_v2 = vpop.f32.mrf.mxu1  ;;  %v13549_v32 = vpop.f32.mrf.mxu0 }
 0x21d   : > { %v16550_v52 = vadd.f32 %v13590_v2, %v3158_v33  ;;  %v3165_v42 = vadd.f32 %v13549_v32, %v16423_v48  ;;  %v14387_v33 = vld [vmem:[#allocation8 + $0x10] sm:$0xff]   ;;  %v6164_v32 = vrot.slane %v6162_v7, 7  ;;  %13763 = vmatprep.mubr.bf16.mxu1 %v12387_v55 }
 0x21e   : > { %v16553_v18 = vpop.f32.mrf.mxu1  ;;  %v3108_v47 = vpop.f32.mrf.mxu0  ;;  %13805 = vmatprep.subr.bf16.mxu0 %v14387_v33 }
 0x21f   : > { %v3163_v40 = vadd.f32 %v3108_v47, %v16436_v1  ;;  %13806 = vmatpush3.bf16.msra.mxu0 %v14387_v33 }
 0x220   : > { %v13550_v15 = vpop.f32.mrf.mxu0 }
 0x221   : > { %v3166_v34 = vadd.f32 %v13550_v15, %v16442_v17 }
 0x222   : > { %v13593_v39 = vpop.f32.mrf.mxu1  ;;  %v16557_v46 = vpop.f32.mrf.mxu0 }
 0x223   : > { %v16559_v45 = vadd.f32 %v13593_v39, %v3161_v60  ;;  %v14389_v60 = vld [vmem:[#allocation8 + $0x8] sm:$0xff]  }
 0x224   : > { %v3845_v48 = vpop.f32.mrf.mxu1  ;;  %v13553_v0 = vpop.f32.mrf.mxu0  ;;  %13807 = vmatprep.subr.bf16.mxu0 %v14389_v60 }
 0x225   : > { %v16561_v23 = vadd.f32 %v3845_v48, %v3159_v4  ;;  %v3169_v1 = vadd.f32 %v13553_v0, %v16466_v22  ;;  %v6165_v4 = vshll.u32 %v6109_v62, 16  ;;  %v6171_v22 = vshrl.u32 %v6110_v11, 16  ;;  %13808 = vmatpush3.bf16.msra.mxu0 %v14389_v60 }
 0x226   : > { %v13594_v53 = vpop.f32.mrf.mxu1  ;;  %v3124_v54 = vpop.f32.mrf.mxu0  ;;  %v6169_v48 = vrot.slane %v6164_v32, 4  ;;  %13809 = vmatprep.subr.bf16.mxu0 %v14393_v56 }
 0x227   : > { %v16564_v9 = vadd.f32 %v13594_v53, %v3162_v38  ;;  %v3167_v17 = vadd.f32 %v3124_v54, %v16475_v63  ;;  %v6174_v38 = vshll.u32 %v6110_v11, 16  ;;  %v6108_v63 = vld [vmem:[#allocation2 + $0x4] sm:$0x8]  ;;  %v6173_v51 = vrot.slane %v6171_v22, 7 }
 0x228   : > { %v16567_v43 = vpop.f32.mrf.mxu1  ;;  %v13554_v61 = vpop.f32.mrf.mxu0  ;;  %v6167_v39 = vor.u32 %v6165_v4, %v6164_v32 }
 0x229   : > { %v3170_v8 = vadd.f32 %v13554_v61, %v16480_v44  ;;  %v6157_v44 = vshrl.u32 %v6108_v63, 16  ;;  %v6176_v53 = vor.u32 %v6174_v38, %v6173_v51  ;;  %13810 = vmatpush3.bf16.msra.mxu0 %v14393_v56 }
 0x22b   : > { %v13597_v21 = vpop.f32.mrf.mxu1  ;;  %v12371_v15 = vrot.slane %v6157_v44, 11  ;;  %v6177_v62 = vsel %vm14892_vm2, %v6169_v48, %v6176_v53 }
 0x22c   : > { %v16572_v2 = vadd.f32 %v13597_v21, %v3165_v42 }
 0x22d   : > { %v3861_v47 = vpop.f32.mrf.mxu1  ;;  %v6168_v33 = vsel %vm14892_vm2, %v12371_v15, %v6167_v39 }
 0x22e   : > { %v16575_v35 = vadd.f32 %v3861_v47, %v3163_v40  ;;  %v12411_v40 = vcombine.low %v6168_v33, %v6177_v62 }
 0x22f   : > { %v13598_v0 = vpop.f32.mrf.mxu1 }
 0x230   : > { %v16577_v54 = vadd.f32 %v13598_v0, %v3166_v34  ;;  %13811 = vmatprep.mubr.bf16.mxu0 %v12411_v40  ;;  %v16589_v34 = vpop.f32.mrf.mxu0 }
 0x231   : > { %v16581_v61 = vpop.f32.mrf.mxu1 }
 0x233   : > { %v13601_v11 = vpop.f32.mrf.mxu1 }
 0x234   : > { %v16585_v60 = vadd.f32 %v13601_v11, %v3169_v1 }
 0x235   : > { %v3877_v7 = vpop.f32.mrf.mxu1 }
 0x236   : > { %v16587_v4 = vadd.f32 %v3877_v7, %v3167_v17 }
 0x237   : > { %v13602_v22 = vpop.f32.mrf.mxu1 }
 0x238   : > { %19045 = vst [vmem:[#allocation33_spill] sm:$0xff] %v16587_v4  ;;  %v16591_v21 = vadd.f32 %v13602_v22, %v3170_v8  ;;  %v19096_v4 = vld [vmem:[#allocation30_spill] sm:$0xff] }
 0x239   : > { %v16593_v38 = vpop.f32.mrf.mxu1 }
 0x23a   : > { %19046 = vst [vmem:[#allocation44_spill] sm:$0xff] %v16591_v21 }
 0x23b   : > { %v13621_v55 = vpop.f32.mrf.mxu0  ;;  %v16595_v63 = vpop.f32.mrf.mxu1 }
 0x23c   : > { %v16598_v32 = vadd.f32 %v13621_v55, %v16493_v16 }
 0x23d   : > { %v4487_v51 = vpop.f32.mrf.mxu0  ;;  %v16600_v1 = vpop.f32.mrf.mxu1 }
 0x23e   : > { %v16603_v44 = vadd.f32 %v4487_v51, %v16500_v12 }
 0x23f   : > { %v16605_v17 = vpop.f32.mrf.mxu0  ;;  %v16607_v47 = vpop.f32.mrf.mxu1 }
 0x241   : > { %v16609_v8 = vpop.f32.mrf.mxu0  ;;  %v16611_v56 = vpop.f32.mrf.mxu1 }
 0x243   : > { %v13625_v15 = vpop.f32.mrf.mxu0  ;;  %v16613_v39 = vpop.f32.mrf.mxu1 }
 0x244   : > { %v16616_v16 = vadd.f32 %v13625_v15, %v16504_v25 }
 0x245   : > { %v4503_v48 = vpop.f32.mrf.mxu0  ;;  %v16618_v0 = vpop.f32.mrf.mxu1 }
 0x246   : > { %19047 = vst [vmem:[#allocation34_spill] sm:$0xff] %v16618_v0  ;;  %v16621_v12 = vadd.f32 %v4503_v48, %v16510_v58 }
 0x247   : > { %v16623_v53 = vpop.f32.mrf.mxu0  ;;  %v16625_v33 = vpop.f32.mrf.mxu1 }
 0x248   : > { %19048 = vst [vmem:[#allocation38_spill] sm:$0xff] %v16625_v33  ;;  %v19093_v33 = vld [vmem:[#allocation25_spill] sm:$0xff] }
 0x249   : > { %v16627_v62 = vpop.f32.mrf.mxu0  ;;  %v16629_v40 = vpop.f32.mrf.mxu1 }
 0x24a   : > { %19049 = vst [vmem:[#allocation54_spill] sm:$0xff] %v16629_v40 }
 0x24b   : > { %v13629_v11 = vpop.f32.mrf.mxu0  ;;  %v16631_v7 = vpop.f32.mrf.mxu1 }
 0x24c   : > { %19050 = vst [vmem:[#allocation55_spill] sm:$0xff] %v16631_v7  ;;  %v16634_v25 = vadd.f32 %v13629_v11, %v16518_v49  ;;  %v16652_v49 = vld [vmem:[#allocation8 + $0xf8] sm:$0xff]  }
 0x24d   : > { %v4519_v22 = vpop.f32.mrf.mxu0  ;;  %v16636_v55 = vpop.f32.mrf.mxu1  ;;  %19059 = vst [vmem:[#allocation64_spill] sm:$0xff] %v16652_v49  ;;  %13891 = vmatprep.subr.bf16.mxu0 %v16652_v49 }
 0x24e   : > { %19051 = vst [vmem:[#allocation56_spill] sm:$0xff] %v16634_v25  ;;  %19052 = vst [vmem:[#allocation57_spill] sm:$0xff] %v16636_v55  ;;  %v16639_v58 = vadd.f32 %v4519_v22, %v16520_v57 }
 0x24f   : > { %v13630_v51 = vpop.f32.mrf.mxu0  ;;  %v16641_v15 = vpop.f32.mrf.mxu1 }
 0x250   : > { %19053 = vst [vmem:[#allocation58_spill] sm:$0xff] %v16639_v58  ;;  %19054 = vst [vmem:[#allocation59_spill] sm:$0xff] %v16641_v15  ;;  %v16644_v48 = vadd.f32 %v13630_v51, %v16523_v36  ;;  %v19083_v58 = vld [vmem:[#allocation22_spill] sm:$0xff] }
 0x251   : > { %v16646_v42 = vpop.f32.mrf.mxu0  ;;  %v16648_v14 = vpop.f32.mrf.mxu1 }
 0x252   : > { %19055 = vst [vmem:[#allocation60_spill] sm:$0xff] %v16644_v48  ;;  %19056 = vst [vmem:[#allocation61_spill] sm:$0xff] %v16646_v42  ;;  %v19091_v42 = vld [vmem:[#allocation37_spill] sm:$0xff] }
 0x253   : > { %19057 = vst [vmem:[#allocation62_spill] sm:$0xff] %v16648_v14  ;;  %v13633_v29 = vpop.f32.mrf.mxu0  ;;  %v16650_v7 = vpop.f32.mrf.mxu1 }
 0x254   : > { %19058 = vst [vmem:[#allocation63_spill] sm:$0xff] %v16650_v7  ;;  %v16655_v11 = vadd.f32 %v13633_v29, %v16530_v19 }
 0x255   : > { %v4535_v57 = vpop.f32.mrf.mxu0  ;;  %v16657_v22 = vpop.f32.mrf.mxu1 }
 0x256   : > { %19060 = vst [vmem:[#allocation65_spill] sm:$0xff] %v16655_v11  ;;  %19061 = vst [vmem:[#allocation66_spill] sm:$0xff] %v16657_v22  ;;  %v16661_v36 = vadd.f32 %v4535_v57, %v16535_v59 }
 0x257   : > { %v13634_v51 = vpop.f32.mrf.mxu0  ;;  %v16663_v15 = vpop.f32.mrf.mxu1 }
 0x258   : > { %19062 = vst [vmem:[#allocation67_spill] sm:$0xff] %v16661_v36  ;;  %19063 = vst [vmem:[#allocation68_spill] sm:$0xff] %v16663_v15  ;;  %v16666_v14 = vadd.f32 %v13634_v51, %v16537_v24  ;;  %v19072_v24 = vld [vmem:[#allocation15_spill] sm:$0xff]  ;;  %v19073_v51 = vld [vmem:[#allocation16_spill] sm:$0xff] }
 0x259   : > { %v16668_v7 = vpop.f32.mrf.mxu0  ;;  %v16670_v48 = vpop.f32.mrf.mxu1 }
 0x25a   : > { %19064 = vst [vmem:[#allocation69_spill] sm:$0xff] %v16666_v14  ;;  %19065 = vst [vmem:[#allocation70_spill] sm:$0xff] %v16668_v7  ;;  %v1217_v14 = vadd.f32 %v19073_v51, %v19072_v24  ;;  %v19084_v24 = vld [vmem:[#allocation23_spill] sm:$0xff]  ;;  %v19085_v51 = vld [vmem:[#allocation24_spill] sm:$0xff] }
 0x25b   : > { %19066 = vst [vmem:[#allocation71_spill] sm:$0xff] %v16670_v48  ;;  %v16672_v29 = vpop.f32.mrf.mxu1  ;;  %v13637_v19 = vpop.f32.mrf.mxu0  ;;  %v1281_v25 = vadd.f32 %v19085_v51, %v19084_v24  ;;  %v19095_v24 = vld [vmem:[#allocation48_spill] sm:$0xff] }
 0x25c   : > { %19067 = vst [vmem:[#allocation72_spill] sm:$0xff] %v16672_v29  ;;  %v16675_v22 = vadd.f32 %v13637_v19, %v16543_v3  ;;  %v19075_v29 = vld [vmem:[#allocation42_spill] sm:$0xff]  ;;  %v19078_v19 = vld [vmem:[#allocation17_spill] sm:$0xff] }
 0x25d   : > { %v16677_v49 = vpop.f32.mrf.mxu1  ;;  %v4551_v59 = vpop.f32.mrf.mxu0  ;;  %v2065_v11 = vadd.f32 %v19075_v29, %v1217_v14  ;;  %v19088_v14 = vld [vmem:[#allocation31_spill] sm:$0xff]  ;;  %v19089_v29 = vld [vmem:[#allocation32_spill] sm:$0xff] }
 0x25e   : > { %19068 = vst [vmem:[#allocation73_spill] sm:$0xff] %v16675_v22  ;;  %19069 = vst [vmem:[#allocation74_spill] sm:$0xff] %v16677_v49  ;;  %v16680_v57 = vadd.f32 %v4551_v59, %v16548_v26  ;;  %v19079_v49 = vld [vmem:[#allocation18_spill] sm:$0xff]  ;;  %v19080_v26 = vld [vmem:[#allocation19_spill] sm:$0xff] }
 0x25f   : > { %v16682_v15 = vpop.f32.mrf.mxu1  ;;  %v13638_v36 = vpop.f32.mrf.mxu0  ;;  %v1233_v22 = vadd.f32 %v19079_v49, %v19078_v19  ;;  %v19081_v59 = vld [vmem:[#allocation20_spill] sm:$0xff]  ;;  %v19092_v49 = vld [vmem:[#allocation46_spill] sm:$0xff] }
 0x260   : > { %19070 = vst [vmem:[#allocation75_spill] sm:$0xff] %v16680_v57  ;;  %19071 = vst [vmem:[#allocation76_spill] sm:$0xff] %v16682_v15  ;;  %v16687_v48 = vadd.f32 %v13638_v36, %v16550_v52  ;;  %v1249_v57 = vadd.f32 %v19081_v59, %v19080_v26  ;;  %v19082_v15 = vld [vmem:[#allocation21_spill] sm:$0xff]  ;;  %v19086_v52 = vld [vmem:[#allocation27_spill] sm:$0xff] }
 0x261   : > { %v16690_v55 = vpop.f32.mrf.mxu0  ;;  %v16692_v3 = vpop.f32.mrf.mxu1  ;;  %v1265_v7 = vadd.f32 %v19083_v58, %v19082_v15  ;;  %v19087_v36 = vld [vmem:[#allocation28_spill] sm:$0xff]  ;;  %v2069_v19 = vadd.f32 %v19092_v49, %v1233_v22  ;;  %v19094_v58 = vld [vmem:[#allocation45_spill] sm:$0xff] }
 0x262   : > { %19074 = vst [vmem:[#allocation15_spill] sm:$0xff] %v16687_v48  ;;  %19076 = vst [vmem:[#allocation16_spill] sm:$0xff] %v16690_v55  ;;  %v1297_v48 = vadd.f32 %v19087_v36, %v19086_v52  ;;  %v1313_v55 = vadd.f32 %v19089_v29, %v19088_v14  ;;  %v2073_v26 = vadd.f32 %v19093_v33, %v1249_v57  ;;  %v19097_v36 = vld [vmem:[#allocation40_spill] sm:$0xff] }
 0x263   : > { %19077 = vst [vmem:[#allocation42_spill] sm:$0xff] %v16692_v3  ;;  %v13641_v21 = vpop.f32.mrf.mxu0  ;;  %v19090_v3 = vld [vmem:[#allocation36_spill] sm:$0xff]  ;;  %v2787_v15 = vadd.f32 %v19094_v58, %v2065_v11  ;;  %v2077_v51 = vadd.f32 %v19095_v24, %v1265_v7  ;;  %v2081_v52 = vadd.f32 %v19096_v4, %v1281_v25  ;;  %v16717_v29 = vpop.f32.mrf.mxu1  ;;  %v19099_v11 = vld [vmem:[#allocation47_spill] sm:$0xff]  ;;  %v19100_v7 = vld [vmem:[#allocation26_spill] sm:$0xff] }
 0x264   : > { %v1329_v40 = vadd.f32 %v19091_v42, %v19090_v3  ;;  %v16711_v59 = vadd.f32 %v13641_v21, %v16559_v45  ;;  %v2085_v0 = vadd.f32 %v19097_v36, %v1297_v48  ;;  %v2089_v42 = vadd.f32 %v16328_v28, %v1313_v55  ;;  %v19098_v45 = vld [vmem:[#allocation50_spill] sm:$0xff]  ;;  %v19102_v25 = vld [vmem:[#allocation29_spill] sm:$0xff]  ;;  %v19103_v58 = vld [vmem:[#allocation35_spill] sm:$0xff] }
 0x265   : > { %v4567_v14 = vpop.f32.mrf.mxu0  ;;  %v3140_v21 = vadd.f32 %v19098_v45, %v2787_v15  ;;  %v2791_v3 = vadd.f32 %v19099_v11, %v2069_v19  ;;  %v2795_v49 = vadd.f32 %v19100_v7, %v2073_v26  ;;  %v2799_v48 = vadd.f32 %v19102_v25, %v2077_v51  ;;  %v19104_v28 = vld [vmem:[#allocation41_spill] sm:$0xff]  ;;  %v19105_v36 = vld [vmem:[#allocation43_spill] sm:$0xff]  ;;  %v19107_v26 = vld [vmem:[#allocation52_spill] sm:$0xff] }
 0x266   : > { %v2093_v22 = vadd.f32 %v16367_v30, %v1329_v40  ;;  %v16722_v33 = vadd.f32 %v4567_v14, %v16561_v23  ;;  %v2803_v24 = vadd.f32 %v19103_v58, %v2081_v52  ;;  %v2807_v55 = vadd.f32 %v19104_v28, %v2085_v0  ;;  %v16733_v30 = vpop.f32.mrf.mxu1  ;;  %v6111_v40 = vld [vmem:[#allocation2 + $0x1c] sm:$0x8]  ;;  %v6114_v15 = vld [vmem:[#allocation2 + $0x34] sm:$0x8]  ;;  %v6120_v51 = vld [vmem:[#allocation2 + $0x64] sm:$0x8] }
 0x267   : > { %v13642_v57 = vpop.f32.mrf.mxu0  ;;  %v2811_v14 = vadd.f32 %v19105_v36, %v2089_v42  ;;  %v19106_v19 = vld [vmem:[#allocation49_spill] sm:$0xff]  ;;  %v3144_v11 = vadd.f32 %v19107_v26, %v2791_v3  ;;  %v19108_v52 = vld [vmem:[#allocation51_spill] sm:$0xff]  ;;  %v3152_v58 = vadd.f32 %v16516_v20, %v2799_v48  ;;  %v3899_v42 = vadd.f32 %v16461_v5, %v16508_v27 }
 0x268   : > { %v16728_v4 = vadd.f32 %v13642_v57, %v16564_v9  ;;  %v2815_v45 = vadd.f32 %v19106_v19, %v2093_v22  ;;  %v3148_v9 = vadd.f32 %v16470_v6, %v2795_v49  ;;  %v6117_v57 = vld [vmem:[#allocation2 + $0x4c] sm:$0x8]  ;;  %v3895_v7 = vadd.f32 %v19108_v52, %v16488_v41  ;;  %v19109_v0 = vld [vmem:[#allocation53_spill] sm:$0xff]  ;;  %v6123_v49 = vld [vmem:[#allocation2 + $0x7c] sm:$0x8]  ;;  %v16750_v26 = vpop.f32.mrf.mxu1 }
 0x269   : > { %v16735_v23 = vpop.f32.mrf.mxu0  ;;  %v3893_v25 = vadd.f32 %v19109_v0, %v3140_v21  ;;  %v3156_v28 = vadd.f32 %v16533_v13, %v2803_v24  ;;  %v3160_v22 = vadd.f32 %v16546_v50, %v2807_v55  ;;  %v6179_v36 = vshrl.u32 %v6111_v40, 16  ;;  %v6132_v40 = vld [vmem:[#allocation2 + $0xc4] sm:$0x8]  ;;  %v7119_v52 = vld [vmem:[#allocation2 + $0xc] sm:$0xf] }
 0x26a   : > { %19101 = vst [vmem:[#allocation17_spill] sm:$0xff] %v16728_v4  ;;  %v6126_v4 = vld [vmem:[#allocation2 + $0x94] sm:$0x8]  ;;  %v6201_v6 = vshrl.u32 %v6114_v15, 16  ;;  %v3164_v19 = vadd.f32 %v16557_v46, %v2811_v14  ;;  %v6223_v20 = vshrl.u32 %v6117_v57, 16  ;;  %v6245_v21 = vshrl.u32 %v6120_v51, 16 }
 0x26b   : > { %v3897_v13 = vadd.f32 %v16477_v31, %v3144_v11  ;;  %v3901_v48 = vadd.f32 %v16526_v10, %v3148_v9  ;;  %v3168_v5 = vadd.f32 %v16589_v34, %v2815_v45  ;;  %v6289_v50 = vshrl.u32 %v6126_v4, 16  ;;  %v7118_v11 = vld [vmem:[#allocation2 + $0x8] sm:$0xf] }
 0x26c   : > { %v13645_v3 = vpop.f32.mrf.mxu0  ;;  %v16759_v24 = vadd.f32 %v16540_v37, %v3152_v58  ;;  %v16762_v46 = vadd.f32 %v16553_v18, %v3156_v28  ;;  %v16768_v15 = vadd.f32 %v16567_v43, %v3160_v22  ;;  %v4617_v31 = vadd.f32 %v16605_v17, %v3895_v7  ;;  %v6129_v37 = vld [vmem:[#allocation2 + $0xac] sm:$0x8]  ;;  %v16778_v18 = vpop.f32.mrf.mxu1  ;;  %v6138_v58 = vld [vmem:[#allocation2 + $0xf4] sm:$0x8] }
 0x26d   : > { %v16753_v41 = vadd.f32 %v13645_v3, %v16572_v2  ;;  %v6267_v2 = vshrl.u32 %v6123_v49, 16  ;;  %v16771_v34 = vrot.slane %v6179_v36, 11  ;;  %v16773_v4 = vrot.slane %v6201_v6, 11  ;;  %v6135_v3 = vld [vmem:[#allocation2 + $0xdc] sm:$0x8] }
 0x26e   : > { %v4583_v27 = vpop.f32.mrf.mxu0  ;;  %v16776_v14 = vadd.f32 %v16581_v61, %v3164_v19  ;;  %v16783_v45 = vrot.slane %v6223_v20, 11  ;;  %v16785_v43 = vrot.slane %v6245_v21, 11  ;;  %v16788_v17 = vadd.f32 %v16593_v38, %v3168_v5  ;;  %v19115_v19 = vld [vmem:[#allocation34_spill] sm:$0xff] }
 0x26f   : > { %v16765_v55 = vadd.f32 %v4583_v27, %v16575_v35  ;;  %v4615_v9 = vadd.f32 %v16609_v8, %v3893_v25  ;;  %v16793_v51 = vrot.slane %v6289_v50, 11  ;;  %v6333_v61 = vshrl.u32 %v6132_v40, 16  ;;  %v19118_v27 = vld [vmem:[#allocation38_spill] sm:$0xff] }
 0x270   : > { %v13646_v10 = vpop.f32.mrf.mxu0  ;;  %19110 = vst [vmem:[#allocation18_spill] sm:$0xff] %v16783_v45  ;;  %19111 = vst [vmem:[#allocation19_spill] sm:$0xff] %v16785_v43  ;;  %v16801_v7 = vadd.f32 %v16600_v1, %v16603_v44  ;;  %v16803_v0 = vrot.slane %v6267_v2, 11  ;;  %v6311_v38 = vshrl.u32 %v6129_v37, 16  ;;  %v16806_v8 = vadd.f32 %v16607_v47, %v4617_v31  ;;  %v19120_v2 = vld [vmem:[#allocation61_spill] sm:$0xff]  ;;  %v19140_v43 = vld [vmem:[#allocation71_spill] sm:$0xff] }
 0x271   : > { %v16781_v35 = vadd.f32 %v13646_v10, %v16577_v54  ;;  %19112 = vst [vmem:[#allocation20_spill] sm:$0xff] %v16793_v51  ;;  %v16797_v54 = vadd.f32 %v16595_v63, %v16598_v32  ;;  %v4621_v25 = vadd.f32 %v16623_v53, %v3899_v42  ;;  %v4619_v28 = vadd.f32 %v16627_v62, %v3897_v13  ;;  %v16810_v63 = vpop.f32.mrf.mxu1  ;;  %v6141_v10 = vld [vmem:[#allocation2 + $0x10c] sm:$0x8]  ;;  %v6147_v37 = vld [vmem:[#allocation2 + $0x13c] sm:$0x8] }
 0x272   : > { %v16791_v57 = vpop.f32.mrf.mxu0  ;;  %19113 = vst [vmem:[#allocation21_spill] sm:$0xff] %v16803_v0  ;;  %v7167_v36 = vshrl.u32 %v7118_v11, 16  ;;  %v7170_v1 = vshll.u32 %v7118_v11, 16  ;;  %v7176_v44 = vshll.u32 %v7119_v52, 16  ;;  %v7180_v6 = vshrl.u32 %v7119_v52, 16  ;;  %v19137_v0 = vld [vmem:[#allocation69_spill] sm:$0xff] }
 0x273   : > { %v16816_v49 = vadd.f32 %v16611_v56, %v4615_v9  ;;  %v16820_v47 = vadd.f32 %v16613_v39, %v16616_v16  ;;  %v16822_v62 = vrot.slane %v6333_v61, 11  ;;  %v6377_v42 = vshrl.u32 %v6138_v58, 16  ;;  %v6144_v56 = vld [vmem:[#allocation2 + $0x124] sm:$0x8]  ;;  %v19119_v39 = vld [vmem:[#allocation54_spill] sm:$0xff]  ;;  %v16840_v11 = vpop.f32.mrf.mxu1  ;;  %v19121_v9 = vld [vmem:[#allocation44_spill] sm:$0xff] }
 0x274   : > { %v13649_v22 = vpop.f32.mrf.mxu0  ;;  %v16826_v20 = vadd.f32 %v19115_v19, %v16621_v12  ;;  %v16831_v13 = vrot.slane %v6311_v38, 11  ;;  %v6355_v5 = vshrl.u32 %v6135_v3, 16  ;;  %v16834_v50 = vadd.f32 %v19118_v27, %v4621_v25  ;;  %v6150_v52 = vld [vmem:[#allocation2 + $0x154] sm:$0x8]  ;;  %v19123_v3 = vld [vmem:[#allocation55_spill] sm:$0xff]  ;;  %v19126_v27 = vld [vmem:[#allocation58_spill] sm:$0xff] }
 0x275   : > { %v16813_v32 = vadd.f32 %v13649_v22, %v16585_v60  ;;  %19114 = vst [vmem:[#allocation22_spill] sm:$0xff] %v16822_v62  ;;  %v19116_v60 = vld [vmem:[#allocation33_spill] sm:$0xff]  ;;  %v16837_v16 = vadd.f32 %v19119_v39, %v4619_v28  ;;  %v4623_v40 = vadd.f32 %v19120_v2, %v3901_v48  ;;  %v7169_v12 = vrot.slane %v7167_v36, 4  ;;  %v19122_v22 = vld [vmem:[#allocation56_spill] sm:$0xff]  ;;  %v19124_v48 = vld [vmem:[#allocation70_spill] sm:$0xff] }
 0x276   : > { %v4599_v53 = vpop.f32.mrf.mxu0  ;;  %19117 = vst [vmem:[#allocation23_spill] sm:$0xff] %v16831_v13  ;;  %v7172_v38 = vrot.slane %v7170_v1, 5  ;;  %v16845_v58 = vrot.slane %v7176_v44, 5  ;;  %v7182_v25 = vrot.slane %v7180_v6, 4  ;;  %v16849_v28 = vadd.f32 %v19123_v3, %v19122_v22  ;;  %v19127_v39 = vld [vmem:[#allocation57_spill] sm:$0xff]  ;;  %v19129_v1 = vld [vmem:[#allocation59_spill] sm:$0xff] }
 0x277   : > { %v16829_v21 = vadd.f32 %v4599_v53, %v19116_v60  ;;  %v4627_v53 = vadd.f32 %v19124_v48, %v16759_v24  ;;  %v16853_v19 = vrot.slane %v6377_v42, 11  ;;  %v6421_v36 = vshrl.u32 %v6144_v56, 16  ;;  %v7120_v60 = vld [vmem:[#allocation2 + $0x10] sm:$0x1]  ;;  %v7871_v3 = vld [vmem:[#allocation2 + $0x1c] sm:$0x8] }
 0x278   : > { %v13650_v31 = vpop.f32.mrf.mxu0  ;;  %v16857_v2 = vadd.f32 %v19127_v39, %v19126_v27  ;;  %v6399_v22 = vshrl.u32 %v6141_v10, 16  ;;  %v19131_v62 = vld [vmem:[#allocation62_spill] sm:$0xff]  ;;  %v19132_v42 = vld [vmem:[#allocation65_spill] sm:$0xff]  ;;  %v19133_v56 = vld [vmem:[#allocation63_spill] sm:$0xff]  ;;  %v6465_v27 = vshrl.u32 %v6150_v52, 16  ;;  %v7186_v10 = vshll.u32 %v7120_v60, 16 }
 0x279   : > { %v16843_v61 = vadd.f32 %v13650_v31, %v19121_v9  ;;  %19125 = vst [vmem:[#allocation24_spill] sm:$0xff] %v16853_v19  ;;  %v19128_v31 = vld [vmem:[#allocation60_spill] sm:$0xff]  ;;  %v16865_v9 = vrot.slane %v6355_v5, 11  ;;  %v16868_v24 = vadd.f32 %v19131_v62, %v4623_v40  ;;  %v16872_v48 = vadd.f32 %v19133_v56, %v19132_v42  ;;  %v19134_v39 = vld [vmem:[#allocation67_spill] sm:$0xff]  ;;  %v19135_v13 = vld [vmem:[#allocation66_spill] sm:$0xff] }
 0x27a   : > { %v16861_v44 = vadd.f32 %v19129_v1, %v19128_v31  ;;  %v16863_v6 = vpop.f32.mrf.mxu0  ;;  %v6443_v19 = vshrl.u32 %v6147_v37, 16  ;;  %v16876_v51 = vadd.f32 %v19135_v13, %v19134_v39  ;;  %v16878_v31 = vpop.f32.mrf.mxu1  ;;  %v7173_v1 = vor.u32 %v7172_v38, %v7169_v12  ;;  %v19138_v62 = vld [vmem:[#allocation68_spill] sm:$0xff]  ;;  %v19143_v13 = vld [vmem:[#allocation73_spill] sm:$0xff]  ;;  %v19146_v12 = vld [vmem:[#allocation75_spill] sm:$0xff] }
 0x27b   : > { %19130 = vst [vmem:[#allocation27_spill] sm:$0xff] %v16865_v9  ;;  %v7183_v5 = vor.u32 %v7182_v25, %v16845_v58  ;;  %v7123_v9 = vld [vmem:[#allocation2 + $0x28] sm:$0x1]  ;;  %v16883_v40 = vadd.f32 %v19138_v62, %v19137_v0  ;;  %v16886_v42 = vadd.f32 %v19140_v43, %v4627_v53  ;;  %v16888_v37 = vrot.slane %v6421_v36, 11  ;;  %v6153_v52 = vld [vmem:[#allocation2 + $0x16c] sm:$0x8] }
 0x27c   : > { %19136 = vst [vmem:[#allocation28_spill] sm:$0xff] %v16876_v51  ;;  %v7920_v56 = vshrl.u32 %v7871_v3, 16  ;;  %v19144_v39 = vld [vmem:[#allocation72_spill] sm:$0xff]  ;;  %v19147_v38 = vld [vmem:[#allocation74_spill] sm:$0xff]  ;;  %v16903_v43 = vld [vmem:[%s18930_s2] ss:$0 sm:$0xff] }
 0x27d   : > { %19139 = vst [vmem:[#allocation31_spill] sm:$0xff] %v16883_v40  ;;  %19141 = vst [vmem:[#allocation32_spill] sm:$0xff] %v16886_v42  ;;  %v16892_v45 = vadd.f32 %v19144_v39, %v19143_v13  ;;  %v16896_v25 = vadd.f32 %v19147_v38, %v19146_v12  ;;  %v19149_v60 = vld [vmem:[#allocation16_spill] sm:$0xff]  ;;  %v16905_v53 = vrot.slane %v6399_v22, 11  ;;  %v16908_v3 = vrot.slane %v6443_v19, 11  ;;  %v4939_v12 = vpop.f32.mrf.mxu1 }
 0x27e   : > { %19142 = vst [vmem:[#allocation36_spill] sm:$0xff] %v16888_v37  ;;  %v4631_v51 = vadd.f32 %v19149_v60, %v16762_v46  ;;  %v16910_v62 = vrot.slane %v6465_v27, 11  ;;  %v7210_v13 = vshll.u32 %v7123_v9, 16  ;;  %v7874_v39 = vld [vmem:[#allocation2 + $0x34] sm:$0x8]  ;;  %v6487_v37 = vshrl.u32 %v6153_v52, 16 }
 0x27f   : > { %19145 = vst [vmem:[#allocation37_spill] sm:$0xff] %v16892_v45  ;;  %19148 = vst [vmem:[#allocation46_spill] sm:$0xff] %v16896_v25  ;;  %v13717_v0 = vpop.f32.mrf.mxu0  ;;  %v7174_v46 = vrot.slane %v7173_v1, 4  ;;  %v7184_v60 = vrot.slane %v7183_v5, 4  ;;  %v7188_v25 = vrot.slane %v7186_v10, 5  ;;  %v19150_v45 = vld [vmem:[#allocation15_spill] sm:$0xff]  ;;  %v16925_v52 = vadd.f32 %v16717_v29, %v16711_v59 }
 0x280   : > { %v5722_v36 = vadd.f32 %v13717_v0, %v16797_v54  ;;  %v19151_v42 = vld [vmem:[#allocation76_spill] sm:$0xff]  ;;  %v16918_v19 = vrot.slane %v7920_v56, 11  ;;  %v7126_v27 = vld [vmem:[#allocation2 + $0x40] sm:$0x1]  ;;  %v19152_v0 = vld [vmem:[#allocation42_spill] sm:$0xff]  ;;  %v4635_v1 = vadd.f32 %v16735_v23, %v16768_v15  ;;  %v16940_v29 = vrot.slane %v7210_v13, 5  ;;  %v13697_v56 = vpop.f32.mrf.mxu1 }
 0x281   : > { %v5593_v38 = vpop.f32.mrf.mxu0  ;;  %v16914_v40 = vadd.f32 %v19151_v42, %v19150_v45  ;;  %v16921_v9 = vadd.f32 %v19152_v0, %v4631_v51  ;;  %v16932_v45 = vld [vmem:[%s18931_s3] ss:$0 sm:$0xff]  ;;  %v7129_v10 = vld [vmem:[#allocation2 + $0x58] sm:$0x1]  ;;  %v16936_v42 = vadd.f32 %v16733_v30, %v16722_v33  ;;  %v16942_v15 = vrot.slane %v6487_v37, 11 }
 0x282   : > { %v5761_v22 = vmul.f32 %v16903_v43, %v5722_v36  ;;  %v5720_v54 = vadd.f32 %v5593_v38, %v16801_v7  ;;  %v7942_v7 = vshrl.u32 %v7874_v39, 16  ;;  %v7179_v38 = vsel %vm15206_vm5, %v7174_v46, %v16845_v58 }
 0x283   : > { %v13718_v5 = vpop.f32.mrf.mxu0  ;;  %19153 = vst [vmem:[#allocation25_spill] sm:$0xff] %v16942_v15  ;;  %v7189_v39 = vsel %vm15206_vm5, %v7184_v60, %v7188_v25  ;;  %v7234_v0 = vshll.u32 %v7126_v27, 16  ;;  %v7258_v13 = vshll.u32 %v7129_v10, 16  ;;  %v16957_v15 = vadd.f32 %v16778_v18, %v4635_v1  ;;  %v4952_v18 = vpop.f32.mrf.mxu1  ;;  %v7880_v1 = vld [vmem:[#allocation2 + $0x64] sm:$0x8] }
 0x284   : > { %v5759_v51 = vmul.f32 %v16903_v43, %v5720_v54  ;;  %v5723_v59 = vadd.f32 %v13718_v5, %v16806_v8  ;;  %v5800_v33 = vadd.f32 %v16932_v45, %v5761_v22  ;;  %v7877_v54 = vld [vmem:[#allocation2 + $0x4c] sm:$0x8]  ;;  %v19155_v5 = vld [vmem:[#allocation17_spill] sm:$0xff]  ;;  %v4639_v58 = vadd.f32 %v16791_v57, %v16776_v14 }
 0x285   : > { %v5596_v23 = vpop.f32.mrf.mxu0  ;;  %v16954_v37 = vadd.f32 %v16750_v26, %v19155_v5  ;;  %v16961_v25 = vrot.slane %v7942_v7, 11  ;;  %v16965_v46 = vadd.f32 %v16810_v63, %v16753_v41  ;;  %v16972_v26 = vadd.f32 %v16840_v11, %v16765_v55 }
 0x286   : > { %v5762_v30 = vmul.f32 %v16903_v43, %v5723_v59  ;;  %v5721_v8 = vadd.f32 %v5596_v23, %v16816_v49  ;;  %v5798_v49 = vadd.f32 %v16932_v45, %v5759_v51  ;;  %v16974_v27 = vcombine.low %v7179_v38, %v7189_v39  ;;  %v7132_v59 = vld [vmem:[#allocation2 + $0x70] sm:$0x1]  ;;  %v7135_v39 = vld [vmem:[#allocation2 + $0x88] sm:$0x1] }
 0x287   : > { %v16976_v14 = vrot.slane %v7234_v0, 5  ;;  %v7964_v57 = vshrl.u32 %v7877_v54, 16  ;;  %v5832_v7 = vmax.f32 %v5800_v33, 0.0  ;;  %v16979_v51 = vrot.slane %v7258_v13, 5  ;;  %v7883_v0 = vld [vmem:[#allocation2 + $0x7c] sm:$0x8] }
 0x288   : > { %v5801_v60 = vadd.f32 %v16932_v45, %v5762_v30  ;;  %v5760_v22 = vmul.f32 %v16903_v43, %v5721_v8  ;;  %v16983_v23 = vadd.f32 %v16878_v31, %v16781_v35  ;;  %v16985_v55 = vadd.f32 %v4939_v12, %v4639_v58  ;;  %v7886_v33 = vld [vmem:[#allocation2 + $0x94] sm:$0x8]  ;;  %v13698_v35 = vpop.f32.mrf.mxu1 }
 0x289   : > { %v13721_v10 = vpop.f32.mrf.mxu0  ;;  %v16988_v11 = vadd.f32 %v13697_v56, %v16813_v32  ;;  %v5830_v30 = vmax.f32 %v5798_v49, 0.0  ;;  %v7986_v5 = vshrl.u32 %v7880_v1, 16  ;;  %v7282_v12 = vshll.u32 %v7132_v59, 16 }
 0x28a   : > { %v5833_v41 = vmax.f32 %v5801_v60, 0.0  ;;  %v5799_v63 = vadd.f32 %v16932_v45, %v5760_v22  ;;  %v5726_v38 = vadd.f32 %v13721_v10, %v16820_v47  ;;  %v7138_v60 = vld [vmem:[#allocation2 + $0xa0] sm:$0x1]  ;;  %v16992_v22 = vadd.f32 %v4952_v18, %v16829_v21 }
 0x28b   : > { %v5609_v13 = vpop.f32.mrf.mxu0  ;;  %v7306_v58 = vshll.u32 %v7135_v39, 16  ;;  %v8008_v10 = vshrl.u32 %v7883_v0, 16  ;;  %v8030_v49 = vshrl.u32 %v7886_v33, 16  ;;  %v7330_v21 = vshll.u32 %v7138_v60, 16  ;;  %v7141_v39 = vld [vmem:[#allocation2 + $0xb8] sm:$0x1] }
 0x28c   : > { %v12715_v8 = vpack.c.bf16 %v5833_v41, %v5832_v7  ;;  %v5831_v54 = vmax.f32 %v5799_v63, 0.0  ;;  %v5765_v31 = vmul.f32 %v16903_v43, %v5726_v38  ;;  %v5724_v32 = vadd.f32 %v5609_v13, %v16826_v20 }
 0x28d   : > { %v13722_v56 = vpop.f32.mrf.mxu0  ;;  %v16998_v41 = vrot.slane %v7964_v57, 11  ;;  %v4643_v18 = vadd.f32 %v16863_v6, %v16788_v17  ;;  %v17003_v63 = vadd.f32 %v13698_v35, %v16843_v61  ;;  %v17006_v38 = vrot.slane %v7986_v5, 11 }
 0x28e   : > { %12852 = vst [vmem:[#allocation2 + $0x38] sm:$0xff] %v12715_v8   ;;  %v12710_v47 = vpack.c.bf16 %v5831_v54, %v5830_v30  ;;  %v5763_v7 = vmul.f32 %v16903_v43, %v5724_v32  ;;  %v5727_v1 = vadd.f32 %v13722_v56, %v16834_v50  ;;  %v5804_v20 = vadd.f32 %v16932_v45, %v5765_v31  ;;  %v4955_v30 = vpop.f32.mrf.mxu1  ;;  %v7889_v54 = vld [vmem:[#allocation2 + $0xac] sm:$0x8]  ;;  %v17023_v31 = vld [vmem:[#allocation2 + $0xc4] sm:$0x8] }
 0x28f   : > { %v5612_v59 = vpop.f32.mrf.mxu0  ;;  %19156 = vst [vmem:[#allocation45_spill] sm:$0xff] %v17006_v38  ;;  %v17011_v33 = vrot.slane %v7282_v12, 5  ;;  %v17013_v17 = vrot.slane %v7306_v58, 5  ;;  %v17015_v61 = vrot.slane %v8008_v10, 11  ;;  %v17017_v6 = vrot.slane %v8030_v49, 11  ;;  %19162 = vst [vmem:[#allocation26_spill] sm:$0xff] %v17023_v31 }
 0x290   : > { %12851 = vst [vmem:[#allocation2 + $0x20] sm:$0xff] %v12710_v47   ;;  %v5802_v0 = vadd.f32 %v16932_v45, %v5763_v7  ;;  %v5766_v50 = vmul.f32 %v16903_v43, %v5727_v1  ;;  %v5725_v57 = vadd.f32 %v5612_v59, %v16837_v16  ;;  %v7354_v8 = vshll.u32 %v7141_v39, 16 }
 0x291   : > { %19157 = vst [vmem:[#allocation48_spill] sm:$0xff] %v17011_v33  ;;  %19158 = vst [vmem:[#allocation30_spill] sm:$0xff] %v17013_v17  ;;  %v17021_v60 = vrot.slane %v7330_v21, 5  ;;  %v8052_v35 = vshrl.u32 %v7889_v54, 16  ;;  %v5836_v16 = vmax.f32 %v5804_v20, 0.0  ;;  %v17028_v56 = vadd.f32 %v4955_v30, %v4643_v18  ;;  %v14404_v33 = vld [vmem:[#allocation8 + $0x98] sm:$0xff]  }
 0x292   : > { %19159 = vst [vmem:[#allocation40_spill] sm:$0xff] %v17015_v61  ;;  %19160 = vst [vmem:[#allocation50_spill] sm:$0xff] %v17017_v6  ;;  %v5805_v13 = vadd.f32 %v16932_v45, %v5766_v50  ;;  %v5764_v5 = vmul.f32 %v16903_v43, %v5725_v57  ;;  %v5834_v32 = vmax.f32 %v5802_v0, 0.0  ;;  %v17025_v12 = vrot.slane %v7354_v8, 5 }
 0x293   : > { %19161 = vst [vmem:[#allocation47_spill] sm:$0xff] %v17021_v60  ;;  %v13725_v49 = vpop.f32.mrf.mxu0  ;;  %v17031_v59 = vrot.slane %v8052_v35, 11 }
 0x294   : > { %19163 = vst [vmem:[#allocation29_spill] sm:$0xff] %v17025_v12  ;;  %v5837_v58 = vmax.f32 %v5805_v13, 0.0  ;;  %v5803_v10 = vadd.f32 %v16932_v45, %v5764_v5  ;;  %v5730_v21 = vadd.f32 %v13725_v49, %v16849_v28 }
 0x295   : > { %v6115_v7 = vld [vmem:[#allocation2 + $0x38] sm:$0xf]  ;;  %v6116_v1 = vld [vmem:[#allocation2 + $0x3c] sm:$0xf]  ;;  %19164 = vst [vmem:[#allocation35_spill] sm:$0xff] %v17031_v59  ;;  %v5625_v8 = vpop.f32.mrf.mxu0 }
 0x296   : > { %v6206_v39 = vshrl.u32 %v6115_v7, 16  ;;  %v6209_v50 = vshll.u32 %v6115_v7, 16  ;;  %v6215_v20 = vshrl.u32 %v6116_v1, 16  ;;  %v12725_v0 = vpack.c.bf16 %v5837_v58, %v5836_v16  ;;  %v14395_v58 = vld [vmem:[#allocation8 + $0xb0] sm:$0xff]  }
 0x297   : > { %v5835_v57 = vmax.f32 %v5803_v10, 0.0  ;;  %v6112_v54 = vld [vmem:[#allocation2 + $0x20] sm:$0xf]  ;;  %v6113_v47 = vld [vmem:[#allocation2 + $0x24] sm:$0xf]  ;;  %v6218_v18 = vshll.u32 %v6116_v1, 16  ;;  %v12389_v30 = vcombine.low %v6115_v7, %v6116_v1  ;;  %v5769_v13 = vmul.f32 %v16903_v43, %v5730_v21  ;;  %v13726_v49 = vpop.f32.mrf.mxu0 }
 0x298   : > { %v5728_v5 = vadd.f32 %v5625_v8, %v16857_v2  ;;  %v6184_v31 = vshrl.u32 %v6112_v54, 16  ;;  %v6187_v12 = vshll.u32 %v6112_v54, 16  ;;  %v17036_v35 = vld [vmem:[#allocation2 + $0x20] sm:$0xf]  ;;  %12854 = vst [vmem:[#allocation2 + $0x68] sm:$0xff] %v12725_v0   ;;  %v6193_v59 = vshrl.u32 %v6113_v47, 16 }
 0x299   : > { %v12720_v28 = vpack.c.bf16 %v5835_v57, %v5834_v32  ;;  %v6196_v60 = vshll.u32 %v6113_v47, 16  ;;  %v12388_v16 = vcombine.low %v6112_v54, %v6113_v47  ;;  %v5808_v10 = vadd.f32 %v16932_v45, %v5769_v13  ;;  %v5628_v2 = vpop.f32.mrf.mxu0  ;;  %v19165_v13 = vld [vmem:[#allocation39_spill] sm:$0xff] }
 0x29a   : > { %v5767_v6 = vmul.f32 %v16903_v43, %v5728_v5  ;;  %v5731_v7 = vadd.f32 %v13726_v49, %v16861_v44  ;;  %v6186_v1 = vrot.slane %v6184_v31, 7  ;;  %v6195_v21 = vrot.slane %v6193_v59, 7  ;;  %v14398_v59 = vld [vmem:[#allocation8 + $0xa8] sm:$0xff]  }
 0x29b   : > { %12853 = vst [vmem:[#allocation2 + $0x50] sm:$0xff] %v12720_v28   ;;  %13764 = vmatmul.mubr.bf16.vlgmr.msra.gmra.mxu1 %v12388_v16  ;;  %v6208_v8 = vrot.slane %v6206_v39, 7  ;;  %v6217_v17 = vrot.slane %v6215_v20, 7  ;;  %v5840_v0 = vmax.f32 %v5808_v10, 0.0  ;;  %v5729_v54 = vadd.f32 %v5628_v2, %v16868_v24 }
 0x29c   : > { %v5806_v57 = vadd.f32 %v16932_v45, %v5767_v6  ;;  %v5770_v47 = vmul.f32 %v16903_v43, %v5731_v7  ;;  %13767 = vmatprep.mubr.bf16.mxu1 %v12389_v30  ;;  %13844 = vmatpush3.bf16.msra.mxu1 %v19165_v13  ;;  %v6189_v44 = vor.u32 %v6187_v12, %v6186_v1  ;;  %v6191_v31 = vrot.slane %v6186_v1, 4 }
 0x29d   : > { %v6198_v5 = vor.u32 %v6196_v60, %v6195_v21  ;;  %v6211_v28 = vor.u32 %v6209_v50, %v6208_v8  ;;  %13845 = vmatprep.subr.bf16.mxu1 %v14395_v58  ;;  %v5768_v49 = vmul.f32 %v16903_v43, %v5729_v54  ;;  %v6213_v16 = vrot.slane %v6208_v8, 4  ;;  %v13729_v6 = vpop.f32.mrf.mxu0 }
 0x29e   : > { %v5838_v39 = vmax.f32 %v5806_v57, 0.0  ;;  %v5809_v20 = vadd.f32 %v16932_v45, %v5770_v47  ;;  %v6190_v24 = vsel %vm14892_vm2, %v16771_v34, %v6189_v44  ;;  %v6220_v12 = vor.u32 %v6218_v18, %v6217_v17  ;;  %v14410_v17 = vld [vmem:[#allocation8 + $0xf0] sm:$0xff]  }
 0x29f   : > { %v6199_v30 = vsel %vm14892_vm2, %v6191_v31, %v6198_v5  ;;  %v6212_v60 = vsel %vm14892_vm2, %v16773_v4, %v6211_v28  ;;  %v5807_v7 = vadd.f32 %v16932_v45, %v5768_v49  ;;  %v5734_v1 = vadd.f32 %v13729_v6, %v16872_v48  ;;  %v6121_v21 = vld [vmem:[#allocation2 + $0x68] sm:$0xf]  ;;  %v17058_v8 = vld [vmem:[#allocation2 + $0x6c] sm:$0xf]  ;;  %v5641_v57 = vpop.f32.mrf.mxu0  ;;  %v14401_v4 = vld [vmem:[#allocation8 + $0xa0] sm:$0xff]  }
 0x2a0   : > { %v5841_v50 = vmax.f32 %v5809_v20, 0.0  ;;  %v12412_v2 = vcombine.low %v6190_v24, %v6199_v30  ;;  %13846 = vmatpush3.bf16.msra.mxu1 %v14395_v58  ;;  %v6221_v34 = vsel %vm14892_vm2, %v6213_v16, %v6220_v12  ;;  %v6250_v47 = vshrl.u32 %v6121_v21, 16  ;;  %v19167_v31 = vld [vmem:[#allocation28_spill] sm:$0xff] }
 0x2a1   : > { %v6253_v54 = vshll.u32 %v6121_v21, 16  ;;  %v6259_v13 = vshrl.u32 %v17058_v8, 16  ;;  %13847 = vmatprep.subr.bf16.mxu1 %v14398_v59  ;;  %v5839_v44 = vmax.f32 %v5807_v7, 0.0  ;;  %v5773_v48 = vmul.f32 %v16903_v43, %v5734_v1  ;;  %v13730_v20 = vpop.f32.mrf.mxu0  ;;  %v19168_v30 = vld [vmem:[#allocation64_spill] sm:$0xff] }
 0x2a2   : > { %v12735_v18 = vpack.c.bf16 %v5841_v50, %v5840_v0  ;;  %v5732_v5 = vadd.f32 %v5641_v57, %v19167_v31  ;;  %13812 = vmatmul.mubr.bf16.vlgmr.msra.gmra.mxu0 %v12412_v2  ;;  %v6118_v28 = vld [vmem:[#allocation2 + $0x50] sm:$0xf]  ;;  %v6119_v58 = vld [vmem:[#allocation2 + $0x54] sm:$0xf]  ;;  %v19169_v50 = vld [vmem:[#allocation31_spill] sm:$0xff]  ;;  %v12413_v61 = vcombine.low %v6212_v60, %v6221_v34  ;;  %v12391_v60 = vcombine.low %v6121_v21, %v17058_v8 }
 0x2a3   : > { %v6228_v49 = vshrl.u32 %v6118_v28, 16  ;;  %v6231_v6 = vshll.u32 %v6118_v28, 16  ;;  %v6237_v16 = vshrl.u32 %v6119_v58, 16  ;;  %v6240_v24 = vshll.u32 %v6119_v58, 16  ;;  %13892 = vmatpush3.bf16.msra.mxu0 %v19168_v30  ;;  %v5644_v1 = vpop.f32.mrf.mxu0 }
 0x2a4   : > { %12856 = vst [vmem:[#allocation2 + $0x98] sm:$0xff] %v12735_v18   ;;  %v12730_v12 = vpack.c.bf16 %v5839_v44, %v5838_v39  ;;  %v5812_v32 = vadd.f32 %v16932_v45, %v5773_v48  ;;  %v5771_v0 = vmul.f32 %v16903_v43, %v5732_v5  ;;  %v5735_v7 = vadd.f32 %v13730_v20, %v19169_v50  ;;  %v19170_v44 = vld [vmem:[#allocation32_spill] sm:$0xff]  ;;  %v14411_v5 = vld [vmem:[#allocation8 + $0xe8] sm:$0xff]  }
 0x2a5   : > { %13848 = vmatpush3.bf16.msra.mxu1 %v14398_v59  ;;  %v6230_v2 = vrot.slane %v6228_v49, 7  ;;  %v6239_v57 = vrot.slane %v6237_v16, 7  ;;  %v12390_v31 = vcombine.low %v6118_v28, %v6119_v58  ;;  %13893 = vmatprep.subr.bf16.mxu0 %v14410_v17  ;;  %v5733_v48 = vadd.f32 %v5644_v1, %v19170_v44 }
 0x2a6   : > { %13849 = vmatprep.subr.bf16.mxu1 %v14401_v4  ;;  %12855 = vst [vmem:[#allocation2 + $0x80] sm:$0xff] %v12730_v12   ;;  %v5844_v38 = vmax.f32 %v5812_v32, 0.0  ;;  %v5810_v18 = vadd.f32 %v16932_v45, %v5771_v0  ;;  %v5774_v39 = vmul.f32 %v16903_v43, %v5735_v7  ;;  %13815 = vmatprep.mubr.bf16.mxu0 %v12413_v61  ;;  %v6252_v59 = vrot.slane %v6250_v47, 7  ;;  %v14408_v61 = vld [vmem:[#allocation8 + $0x90] sm:$0xff]   ;;  %v14415_v47 = vld [vmem:[#allocation8 + $0xe0] sm:$0xff]  }
 0x2a7   : > { %13768 = vmatmul.mubr.bf16.gmra.mxu1 %v12390_v31  ;;  %v6261_v20 = vrot.slane %v6259_v13, 7  ;;  %v6262_v49 = vshll.u32 %v17058_v8, 16  ;;  %v5772_v32 = vmul.f32 %v16903_v43, %v5733_v48  ;;  %v6233_v58 = vor.u32 %v6231_v6, %v6230_v2  ;;  %13894 = vmatpush3.bf16.msra.mxu0 %v14410_v17  ;;  %v13733_v21 = vpop.f32.mrf.mxu0  ;;  %v19171_v8 = vld [vmem:[#allocation18_spill] sm:$0xff] }
 0x2a8   : > { %v5842_v34 = vmax.f32 %v5810_v18, 0.0  ;;  %v5813_v28 = vadd.f32 %v16932_v45, %v5774_v39  ;;  %13771 = vmatprep.mubr.bf16.mxu1 %v12391_v60  ;;  %v6235_v16 = vrot.slane %v6230_v2, 4  ;;  %v6242_v30 = vor.u32 %v6240_v24, %v6239_v57  ;;  %13895 = vmatprep.subr.bf16.mxu0 %v14411_v5  ;;  %v19175_v60 = vld [vmem:[#allocation46_spill] sm:$0xff] }
 0x2a9   : > { %13850 = vmatpush3.bf16.msra.mxu1 %v14401_v4  ;;  %v6255_v12 = vor.u32 %v6253_v54, %v6252_v59  ;;  %v6257_v0 = vrot.slane %v6252_v59, 4  ;;  %v5811_v50 = vadd.f32 %v16932_v45, %v5772_v32  ;;  %v6234_v7 = vsel %vm14892_vm2, %v19171_v8, %v6233_v58  ;;  %v19172_v4 = vld [vmem:[#allocation37_spill] sm:$0xff]  ;;  %v19173_v54 = vld [vmem:[#allocation19_spill] sm:$0xff]  ;;  %v5657_v44 = vpop.f32.mrf.mxu0 }
 0x2aa   : > { %13851 = vmatprep.subr.bf16.mxu1 %v14404_v33  ;;  %v5845_v13 = vmax.f32 %v5813_v28, 0.0  ;;  %v6264_v1 = vor.u32 %v6262_v49, %v6261_v20  ;;  %v5738_v17 = vadd.f32 %v13733_v21, %v19172_v4  ;;  %v6243_v6 = vsel %vm14892_vm2, %v6235_v16, %v6242_v30  ;;  %v14413_v20 = vld [vmem:[#allocation8 + $0x88] sm:$0xff]  }
 0x2ab   : > { %v6256_v24 = vsel %vm14892_vm2, %v19173_v54, %v6255_v12  ;;  %v17086_v2 = vld [vmem:[#allocation2 + $0x98] sm:$0xf]  ;;  %v19174_v57 = vshrl.u32 %v17036_v35, 16  ;;  %v5843_v39 = vmax.f32 %v5811_v50, 0.0  ;;  %v12414_v48 = vcombine.low %v6234_v7, %v6243_v6  ;;  %13896 = vmatpush3.bf16.msra.mxu0 %v14411_v5 }
 0x2ac   : > { %v12745_v18 = vpack.c.bf16 %v5845_v13, %v5844_v38  ;;  %v6265_v59 = vsel %vm14892_vm2, %v6257_v0, %v6264_v1  ;;  %v5777_v49 = vmul.f32 %v16903_v43, %v5738_v17  ;;  %v5736_v28 = vadd.f32 %v5657_v44, %v19175_v60  ;;  %13897 = vmatprep.subr.bf16.mxu0 %v14415_v47  ;;  %v14416_v38 = vld [vmem:[#allocation8 + $0xd8] sm:$0xff]   ;;  %v13734_v13 = vpop.f32.mrf.mxu0  ;;  %v6128_v1 = vld [vmem:[#allocation2 + $0x9c] sm:$0xf]  ;;  %v14419_v60 = vld [vmem:[#allocation8 + $0xd0] sm:$0xff]  }
 0x2ad   : > { %v17090_v31 = vrot.slane %v19174_v57, 4  ;;  %13852 = vmatpush3.bf16.msra.mxu1 %v14404_v33  ;;  %v6124_v32 = vld [vmem:[#allocation2 + $0x80] sm:$0xf]  ;;  %v6125_v58 = vld [vmem:[#allocation2 + $0x84] sm:$0xf]  ;;  %v12415_v16 = vcombine.low %v6256_v24, %v6265_v59  ;;  %v6294_v30 = vshrl.u32 %v17086_v2, 16  ;;  %v12740_v12 = vpack.c.bf16 %v5843_v39, %v5842_v34  ;;  %13816 = vmatmul.mubr.bf16.gmra.mxu0 %v12414_v48 }
 0x2ae   : > { %13853 = vmatprep.subr.bf16.mxu1 %v14408_v61  ;;  %12858 = vst [vmem:[#allocation2 + $0xc8] sm:$0xff] %v12745_v18   ;;  %v6272_v0 = vshrl.u32 %v6124_v32, 16  ;;  %v6275_v33 = vshll.u32 %v6124_v32, 16  ;;  %v6281_v50 = vshrl.u32 %v6125_v58, 16  ;;  %v5816_v5 = vadd.f32 %v16932_v45, %v5777_v49  ;;  %v5660_v4 = vpop.f32.mrf.mxu0 }
 0x2af   : > { %v5775_v21 = vmul.f32 %v16903_v43, %v5736_v28  ;;  %v5739_v8 = vadd.f32 %v13734_v13, %v16914_v40  ;;  %v6284_v7 = vshll.u32 %v6125_v58, 16  ;;  %13819 = vmatprep.mubr.bf16.mxu0 %v12415_v16  ;;  %12857 = vst [vmem:[#allocation2 + $0xb0] sm:$0xff] %v12740_v12   ;;  %v12392_v54 = vcombine.low %v6124_v32, %v6125_v58  ;;  %v14418_v40 = vld [vmem:[#allocation8 + $0x80] sm:$0xff]  }
 0x2b0   : > { %v6274_v17 = vrot.slane %v6272_v0, 7  ;;  %v6283_v6 = vrot.slane %v6281_v50, 7  ;;  %v17100_v34 = vrot.slane %v6294_v30, 7  ;;  %13898 = vmatpush3.bf16.msra.mxu0 %v14415_v47  ;;  %v5848_v24 = vmax.f32 %v5816_v5, 0.0  ;;  %v19176_v50 = vld [vmem:[#allocation21_spill] sm:$0xff] }
 0x2b1   : > { %13854 = vmatpush3.bf16.msra.mxu1 %v14408_v61  ;;  %v5814_v57 = vadd.f32 %v16932_v45, %v5775_v21  ;;  %v5778_v18 = vmul.f32 %v16903_v43, %v5739_v8  ;;  %v5737_v39 = vadd.f32 %v5660_v4, %v16921_v9  ;;  %13899 = vmatprep.subr.bf16.mxu0 %v14416_v38  ;;  %v6297_v44 = vshll.u32 %v17086_v2, 16  ;;  %v13737_v58 = vpop.f32.mrf.mxu0  ;;  %v19177_v8 = vld [vmem:[#allocation20_spill] sm:$0xff]  ;;  %v14420_v4 = vld [vmem:[#allocation8 + $0xc8] sm:$0xff]  }
 0x2b2   : > { %13855 = vmatprep.subr.bf16.mxu1 %v14413_v20  ;;  %13772 = vmatmul.mubr.bf16.gmra.mxu1 %v12392_v54  ;;  %v6303_v48 = vshrl.u32 %v6128_v1, 16  ;;  %v6306_v59 = vshll.u32 %v6128_v1, 16  ;;  %v12393_v49 = vcombine.low %v17086_v2, %v6128_v1  ;;  %v6277_v32 = vor.u32 %v6275_v33, %v6274_v17 }
 0x2b3   : > { %v5846_v61 = vmax.f32 %v5814_v57, 0.0  ;;  %v5817_v47 = vadd.f32 %v16932_v45, %v5778_v18  ;;  %v5776_v28 = vmul.f32 %v16903_v43, %v5737_v39  ;;  %v6279_v9 = vrot.slane %v6274_v17, 4  ;;  %v5673_v33 = vpop.f32.mrf.mxu0  ;;  %v17123_v18 = vld [vmem:[#allocation8 + $0x138] sm:$0xff]  }
 0x2b4   : > { %v6305_v16 = vrot.slane %v6303_v48, 7  ;;  %13775 = vmatprep.mubr.bf16.mxu1 %v12393_v49  ;;  %v6286_v30 = vor.u32 %v6284_v7, %v6283_v6  ;;  %v6299_v12 = vor.u32 %v6297_v44, %v17100_v34  ;;  %v5742_v2 = vadd.f32 %v13737_v58, %v16925_v52  ;;  %13900 = vmatpush3.bf16.msra.mxu0 %v14416_v38 }
 0x2b5   : > { %13856 = vmatpush3.bf16.msra.mxu1 %v14413_v20  ;;  %v5849_v13 = vmax.f32 %v5817_v47, 0.0  ;;  %v5815_v0 = vadd.f32 %v16932_v45, %v5776_v28  ;;  %v6278_v5 = vsel %vm14892_vm2, %v19176_v50, %v6277_v32  ;;  %v6301_v20 = vrot.slane %v17100_v34, 4  ;;  %13901 = vmatprep.subr.bf16.mxu0 %v14419_v60  ;;  %v13738_v39 = vpop.f32.mrf.mxu0  ;;  %v6133_v32 = vld [vmem:[#allocation2 + $0xc8] sm:$0xf] }
 0x2b6   : > { %13857 = vmatprep.subr.bf16.mxu1 %v14418_v40  ;;  %v6287_v21 = vsel %vm14892_vm2, %v6279_v9, %v6286_v30  ;;  %v6300_v7 = vsel %vm14892_vm2, %v19177_v8, %v6299_v12  ;;  %v6308_v1 = vor.u32 %v6306_v59, %v6305_v16  ;;  %v5781_v6 = vmul.f32 %v16903_v43, %v5742_v2  ;;  %v6130_v38 = vld [vmem:[#allocation2 + $0xb0] sm:$0xf]  ;;  %v6131_v57 = vld [vmem:[#allocation2 + $0xb4] sm:$0xf] }
 0x2b7   : > { %v12755_v52 = vpack.c.bf16 %v5849_v13, %v5848_v24  ;;  %v5847_v17 = vmax.f32 %v5815_v0, 0.0  ;;  %v5740_v54 = vadd.f32 %v5673_v33, %v16936_v42  ;;  %v12416_v44 = vcombine.low %v6278_v5, %v6287_v21  ;;  %v6134_v42 = vld [vmem:[#allocation2 + $0xcc] sm:$0xf]  ;;  %v5676_v58 = vpop.f32.mrf.mxu0  ;;  %v14422_v13 = vld [vmem:[#allocation8 + $0xc0] sm:$0xff]  }
 0x2b8   : > { %v6316_v48 = vshrl.u32 %v6130_v38, 16  ;;  %v6319_v49 = vshll.u32 %v6130_v38, 16  ;;  %v6325_v47 = vshrl.u32 %v6131_v57, 16  ;;  %v5820_v59 = vadd.f32 %v16932_v45, %v5781_v6  ;;  %13902 = vmatpush3.bf16.msra.mxu0 %v14419_v60 }
 0x2b9   : > { %13858 = vmatpush3.bf16.msra.mxu1 %v14418_v40  ;;  %12860 = vst [vmem:[#allocation2 + $0xf8] sm:$0xff] %v12755_v52   ;;  %v12750_v34 = vpack.c.bf16 %v5847_v17, %v5846_v61  ;;  %v5779_v24 = vmul.f32 %v16903_v43, %v5740_v54  ;;  %v5743_v28 = vadd.f32 %v13738_v39, %v16954_v37  ;;  %v6328_v30 = vshll.u32 %v6131_v57, 16 }
 0x2ba   : > { %13820 = vmatmul.mubr.bf16.gmra.mxu0 %v12416_v44  ;;  %v6318_v16 = vrot.slane %v6316_v48, 7  ;;  %v6327_v9 = vrot.slane %v6325_v47, 7  ;;  %v12394_v12 = vcombine.low %v6130_v38, %v6131_v57  ;;  %13903 = vmatprep.subr.bf16.mxu0 %v14420_v4  ;;  %v5852_v40 = vmax.f32 %v5820_v59, 0.0  ;;  %v17136_v38 = vld [vmem:[#allocation8 + $0x178] sm:$0xff]  }
 0x2bb   : > { %12859 = vst [vmem:[#allocation2 + $0xe0] sm:$0xff] %v12750_v34   ;;  %v5818_v61 = vadd.f32 %v16932_v45, %v5779_v24  ;;  %v5782_v0 = vmul.f32 %v16903_v43, %v5743_v28  ;;  %v5741_v2 = vadd.f32 %v5676_v58, %v16957_v15  ;;  %13939 = vmatprep.subr.bf16.mxu1 %v17123_v18  ;;  %v6338_v60 = vshrl.u32 %v6133_v32, 16  ;;  %v19178_v28 = vld [vmem:[#allocation23_spill] sm:$0xff] }
 0x2bc   : > { %13776 = vmatmul.mubr.bf16.gmra.mxu1 %v12394_v12  ;;  %v6309_v37 = vsel %vm14892_vm2, %v6301_v20, %v6308_v1  ;;  %v6341_v50 = vshll.u32 %v6133_v32, 16  ;;  %v6347_v5 = vshrl.u32 %v6134_v42, 16  ;;  %13904 = vmatpush3.bf16.msra.mxu0 %v14420_v4  ;;  %v6350_v54 = vshll.u32 %v6134_v42, 16  ;;  %v13741_v1 = vpop.f32.mrf.mxu0 }
 0x2bd   : > { %v5850_v33 = vmax.f32 %v5818_v61, 0.0  ;;  %v5821_v21 = vadd.f32 %v16932_v45, %v5782_v0  ;;  %v5780_v8 = vmul.f32 %v16903_v43, %v5741_v2  ;;  %v12417_v52 = vcombine.low %v6300_v7, %v6309_v37  ;;  %13905 = vmatprep.subr.bf16.mxu0 %v14422_v13 }
 0x2be   : > { %v6340_v17 = vrot.slane %v6338_v60, 7  ;;  %v6349_v6 = vrot.slane %v6347_v5, 7  ;;  %v12395_v15 = vcombine.low %v6133_v32, %v6134_v42  ;;  %v6321_v39 = vor.u32 %v6319_v49, %v6318_v16  ;;  %v5689_v24 = vpop.f32.mrf.mxu0 }
 0x2bf   : > { %v5853_v57 = vmax.f32 %v5821_v21, 0.0  ;;  %v5819_v20 = vadd.f32 %v16932_v45, %v5780_v8  ;;  %13823 = vmatprep.mubr.bf16.mxu0 %v12417_v52  ;;  %v6323_v44 = vrot.slane %v6318_v16, 4  ;;  %v5746_v48 = vadd.f32 %v13741_v1, %v16965_v46 }
 0x2c0   : > { %13779 = vmatprep.mubr.bf16.mxu1 %v12395_v15  ;;  %v6330_v47 = vor.u32 %v6328_v30, %v6327_v9  ;;  %v6343_v7 = vor.u32 %v6341_v50, %v6340_v17  ;;  %v6345_v4 = vrot.slane %v6340_v17, 4  ;;  %v6322_v32 = vsel %vm14892_vm2, %v19178_v28, %v6321_v39  ;;  %13906 = vmatpush3.bf16.msra.mxu0 %v14422_v13  ;;  %v19179_v30 = vld [vmem:[#allocation22_spill] sm:$0xff]  ;;  %v13742_v61 = vpop.f32.mrf.mxu0 }
 0x2c1   : > { %v12765_v34 = vpack.c.bf16 %v5853_v57, %v5852_v40  ;;  %v5851_v59 = vmax.f32 %v5819_v20, 0.0  ;;  %v6352_v42 = vor.u32 %v6350_v54, %v6349_v6  ;;  %v5785_v58 = vmul.f32 %v16903_v43, %v5746_v48  ;;  %13987 = vmatprep.subr.bf16.mxu0 %v17136_v38  ;;  %v6139_v5 = vld [vmem:[#allocation2 + $0xf8] sm:$0xf]  ;;  %v17156_v6 = vld [vmem:[#allocation2 + $0xfc] sm:$0xf] }
 0x2c2   : > { %v5744_v49 = vadd.f32 %v5689_v24, %v16972_v26  ;;  %v6331_v46 = vsel %vm14892_vm2, %v6323_v44, %v6330_v47  ;;  %v6136_v16 = vld [vmem:[#allocation2 + $0xe0] sm:$0xf]  ;;  %v6137_v9 = vld [vmem:[#allocation2 + $0xe4] sm:$0xf]  ;;  %v6344_v12 = vsel %vm14892_vm2, %v19179_v30, %v6343_v7  ;;  %v5747_v60 = vadd.f32 %v13742_v61, %v16983_v23  ;;  %v5692_v21 = vpop.f32.mrf.mxu0 }
 0x2c3   : > { %12862 = vst [vmem:[#allocation2 + $0x128] sm:$0xff] %v12765_v34   ;;  %v12760_v40 = vpack.c.bf16 %v5851_v59, %v5850_v33  ;;  %v12418_v0 = vcombine.low %v6322_v32, %v6331_v46  ;;  %v6360_v13 = vshrl.u32 %v6136_v16, 16  ;;  %v6363_v2 = vshll.u32 %v6136_v16, 16 }
 0x2c4   : > { %v5824_v37 = vadd.f32 %v16932_v45, %v5785_v58  ;;  %v5783_v26 = vmul.f32 %v16903_v43, %v5744_v49  ;;  %v6369_v50 = vshrl.u32 %v6137_v9, 16  ;;  %v6372_v52 = vshll.u32 %v6137_v9, 16 }
 0x2c5   : > { %12861 = vst [vmem:[#allocation2 + $0x110] sm:$0xff] %v12760_v40   ;;  %13824 = vmatmul.mubr.bf16.gmra.mxu0 %v12418_v0  ;;  %v6362_v8 = vrot.slane %v6360_v13, 7  ;;  %v12396_v17 = vcombine.low %v6136_v16, %v6137_v9  ;;  %v6353_v33 = vsel %vm14892_vm2, %v6345_v4, %v6352_v42  ;;  %v5786_v57 = vmul.f32 %v16903_v43, %v5747_v60  ;;  %v13745_v34 = vpop.f32.mrf.mxu0  ;;  %v19180_v16 = vld [vmem:[#allocation27_spill] sm:$0xff] }
 0x2c6   : > { %v5856_v54 = vmax.f32 %v5824_v37, 0.0  ;;  %v5822_v15 = vadd.f32 %v16932_v45, %v5783_v26  ;;  %v5745_v23 = vadd.f32 %v5692_v21, %v16985_v55  ;;  %v6371_v20 = vrot.slane %v6369_v50, 7 }
 0x2c7   : > { %13780 = vmatmul.mubr.bf16.gmra.mxu1 %v12396_v17  ;;  %v12419_v1 = vcombine.low %v6344_v12, %v6353_v33  ;;  %v6382_v39 = vshrl.u32 %v6139_v5, 16  ;;  %v6385_v44 = vshll.u32 %v6139_v5, 16  ;;  %v5825_v47 = vadd.f32 %v16932_v45, %v5786_v57  ;;  %v5705_v46 = vpop.f32.mrf.mxu0 }
 0x2c8   : > { %v5854_v48 = vmax.f32 %v5822_v15, 0.0  ;;  %v5784_v7 = vmul.f32 %v16903_v43, %v5745_v23  ;;  %v6391_v4 = vshrl.u32 %v17156_v6, 16  ;;  %v6394_v24 = vshll.u32 %v17156_v6, 16 }
 0x2c9   : > { %13827 = vmatprep.mubr.bf16.mxu0 %v12419_v1  ;;  %v6384_v59 = vrot.slane %v6382_v39, 7  ;;  %v12397_v28 = vcombine.low %v6139_v5, %v17156_v6  ;;  %v6365_v55 = vor.u32 %v6363_v2, %v6362_v8  ;;  %v5857_v32 = vmax.f32 %v5825_v47, 0.0  ;;  %v13746_v60 = vpop.f32.mrf.mxu0 }
 0x2ca   : > { %v5823_v42 = vadd.f32 %v16932_v45, %v5784_v7  ;;  %v5750_v58 = vadd.f32 %v13745_v34, %v16988_v11  ;;  %v6393_v49 = vrot.slane %v6391_v4, 7  ;;  %v6367_v30 = vrot.slane %v6362_v8, 4  ;;  %v6145_v23 = vld [vmem:[#allocation2 + $0x128] sm:$0xf] }
 0x2cb   : > { %13783 = vmatprep.mubr.bf16.mxu1 %v12397_v28  ;;  %v6366_v9 = vsel %vm14892_vm2, %v19180_v16, %v6365_v55  ;;  %v6374_v12 = vor.u32 %v6372_v52, %v6371_v20  ;;  %v6387_v40 = vor.u32 %v6385_v44, %v6384_v59  ;;  %v12775_v61 = vpack.c.bf16 %v5857_v32, %v5856_v54  ;;  %v5708_v6 = vpop.f32.mrf.mxu0  ;;  %v19181_v7 = vld [vmem:[#allocation24_spill] sm:$0xff] }
 0x2cc   : > { %v5855_v0 = vmax.f32 %v5823_v42, 0.0  ;;  %v5789_v13 = vmul.f32 %v16903_v43, %v5750_v58  ;;  %v5748_v2 = vadd.f32 %v5705_v46, %v16992_v22  ;;  %v6142_v37 = vld [vmem:[#allocation2 + $0x110] sm:$0xf]  ;;  %v6143_v26 = vld [vmem:[#allocation2 + $0x114] sm:$0xf]  ;;  %v5751_v33 = vadd.f32 %v13746_v60, %v17003_v63 }
 0x2cd   : > { %v6375_v11 = vsel %vm14892_vm2, %v6367_v30, %v6374_v12  ;;  %v6404_v50 = vshrl.u32 %v6142_v37, 16  ;;  %v6407_v5 = vshll.u32 %v6142_v37, 16  ;;  %v6413_v21 = vshrl.u32 %v6143_v26, 16  ;;  %12864 = vst [vmem:[#allocation2 + $0x158] sm:$0xff] %v12775_v61  }
 0x2ce   : > { %v12770_v17 = vpack.c.bf16 %v5855_v0, %v5854_v48  ;;  %v5828_v8 = vadd.f32 %v16932_v45, %v5789_v13  ;;  %v5787_v52 = vmul.f32 %v16903_v43, %v5748_v2  ;;  %v12420_v54 = vcombine.low %v6366_v9, %v6375_v11  ;;  %v6146_v48 = vld [vmem:[#allocation2 + $0x12c] sm:$0xf] }
 0x2cf   : > { %v6406_v22 = vrot.slane %v6404_v50, 7  ;;  %v6415_v15 = vrot.slane %v6413_v21, 7  ;;  %v6416_v57 = vshll.u32 %v6143_v26, 16  ;;  %v5790_v39 = vmul.f32 %v16903_v43, %v5751_v33 }
 0x2d0   : > { %12863 = vst [vmem:[#allocation2 + $0x140] sm:$0xff] %v12770_v17   ;;  %v5860_v20 = vmax.f32 %v5828_v8, 0.0  ;;  %v5826_v1 = vadd.f32 %v16932_v45, %v5787_v52  ;;  %v5749_v44 = vadd.f32 %v5708_v6, %v17028_v56  ;;  %13828 = vmatmul.mubr.bf16.gmra.mxu0 %v12420_v54  ;;  %v12398_v47 = vcombine.low %v6142_v37, %v6143_v26 }
 0x2d1   : > { %v6388_v63 = vsel %vm14892_vm2, %v19181_v7, %v6387_v40  ;;  %v6389_v4 = vrot.slane %v6384_v59, 4  ;;  %v6396_v34 = vor.u32 %v6394_v24, %v6393_v49  ;;  %v5829_v55 = vadd.f32 %v16932_v45, %v5790_v39  ;;  %v7122_v7 = vld [vmem:[#allocation2 + $0x24] sm:$0xf] }
 0x2d2   : > { %v5858_v28 = vmax.f32 %v5826_v1, 0.0  ;;  %v5788_v32 = vmul.f32 %v16903_v43, %v5749_v44  ;;  %v6426_v42 = vshrl.u32 %v6145_v23, 16  ;;  %13784 = vmatmul.mubr.bf16.gmra.mxu1 %v12398_v47  ;;  %v6429_v56 = vshll.u32 %v6145_v23, 16 }
 0x2d3   : > { %v6397_v58 = vsel %vm14892_vm2, %v6389_v4, %v6396_v34  ;;  %v6435_v46 = vshrl.u32 %v6146_v48, 16  ;;  %v6438_v16 = vshll.u32 %v6146_v48, 16  ;;  %v5861_v9 = vmax.f32 %v5829_v55, 0.0  ;;  %v17199_v55 = vld [vmem:[#allocation2 + $0x20] sm:$0xf] }
 0x2d4   : > { %v5827_v30 = vadd.f32 %v16932_v45, %v5788_v32  ;;  %v12421_v12 = vcombine.low %v6388_v63, %v6397_v58  ;;  %v6428_v40 = vrot.slane %v6426_v42, 7  ;;  %v12399_v24 = vcombine.low %v6145_v23, %v6146_v48  ;;  %v6151_v0 = vld [vmem:[#allocation2 + $0x158] sm:$0xf]  ;;  %v6152_v33 = vld [vmem:[#allocation2 + $0x15c] sm:$0xf] }
 0x2d5   : > { %v6437_v59 = vrot.slane %v6435_v46, 7  ;;  %v6409_v49 = vor.u32 %v6407_v5, %v6406_v22  ;;  %v6411_v61 = vrot.slane %v6406_v22, 4  ;;  %v12785_v13 = vpack.c.bf16 %v5861_v9, %v5860_v20 }
 0x2d6   : > { %v5859_v43 = vmax.f32 %v5827_v30, 0.0  ;;  %13831 = vmatprep.mubr.bf16.mxu0 %v12421_v12  ;;  %v6418_v2 = vor.u32 %v6416_v57, %v6415_v15  ;;  %v6431_v37 = vor.u32 %v6429_v56, %v6428_v40  ;;  %13787 = vmatprep.mubr.bf16.mxu1 %v12399_v24  ;;  %v6433_v45 = vrot.slane %v6428_v40, 4  ;;  %v17205_v12 = vld [vmem:[#allocation2 + $0x24] sm:$0xf] }
 0x2d7   : > { %v6410_v26 = vsel %vm14892_vm2, %v16905_v53, %v6409_v49  ;;  %v6148_v60 = vld [vmem:[#allocation2 + $0x140] sm:$0xf]  ;;  %v6149_v11 = vld [vmem:[#allocation2 + $0x144] sm:$0xf]  ;;  %v6440_v50 = vor.u32 %v6438_v16, %v6437_v59  ;;  %v6470_v21 = vshrl.u32 %v6151_v0, 16  ;;  %12866 = vst [vmem:[#allocation2 + $0x188] sm:$0xff] %v12785_v13   ;;  %v12401_v4 = vcombine.low %v6151_v0, %v6152_v33 }
 0x2d8   : > { %v12780_v17 = vpack.c.bf16 %v5859_v43, %v5858_v28  ;;  %v6419_v5 = vsel %vm14892_vm2, %v6411_v61, %v6418_v2  ;;  %v6448_v8 = vshrl.u32 %v6148_v60, 16  ;;  %v6451_v52 = vshll.u32 %v6148_v60, 16  ;;  %v19182_v53 = vld [vmem:[#allocation36_spill] sm:$0xff] }
 0x2d9   : > { %v12422_v6 = vcombine.low %v6410_v26, %v6419_v5  ;;  %v6457_v54 = vshrl.u32 %v6149_v11, 16  ;;  %v6460_v22 = vshll.u32 %v6149_v11, 16  ;;  %v12400_v15 = vcombine.low %v6148_v60, %v6149_v11 }
 0x2da   : > { %12865 = vst [vmem:[#allocation2 + $0x170] sm:$0xff] %v12780_v17   ;;  %v6450_v57 = vrot.slane %v6448_v8, 7  ;;  %v6432_v23 = vsel %vm14892_vm2, %v19182_v53, %v6431_v37  ;;  %v6441_v20 = vsel %vm14892_vm2, %v6433_v45, %v6440_v50  ;;  %v6472_v1 = vrot.slane %v6470_v21, 7 }
 0x2db   : > { %13832 = vmatmul.mubr.bf16.gmra.mxu0 %v12422_v6  ;;  %v6459_v39 = vrot.slane %v6457_v54, 7  ;;  %13788 = vmatmul.mubr.bf16.gmra.mxu1 %v12400_v15  ;;  %v12423_v44 = vcombine.low %v6432_v23, %v6441_v20  ;;  %v6473_v48 = vshll.u32 %v6151_v0, 16  ;;  %v6479_v47 = vshrl.u32 %v6152_v33, 16 }
 0x2dc   : > { %v6482_v63 = vshll.u32 %v6152_v33, 16  ;;  %v6453_v34 = vor.u32 %v6451_v52, %v6450_v57  ;;  %v6455_v28 = vrot.slane %v6450_v57, 4  ;;  %v6477_v56 = vrot.slane %v6472_v1, 4  ;;  %13791 = vmatprep.mubr.bf16.mxu1 %v12401_v4  ;;  %v7875_v4 = vld [vmem:[#allocation2 + $0x38] sm:$0xf] }
 0x2dd   : > { %13835 = vmatprep.mubr.bf16.mxu0 %v12423_v44  ;;  %v6481_v32 = vrot.slane %v6479_v47, 7  ;;  %v6462_v42 = vor.u32 %v6460_v22, %v6459_v39  ;;  %v6475_v58 = vor.u32 %v6473_v48, %v6472_v1  ;;  %v7194_v16 = vshll.u32 %v17036_v35, 16  ;;  %v7124_v22 = vld [vmem:[#allocation2 + $0x38] sm:$0xf]  ;;  %v7125_v44 = vld [vmem:[#allocation2 + $0x3c] sm:$0xf] }
 0x2de   : > { %v6454_v46 = vsel %vm14892_vm2, %v16908_v3, %v6453_v34  ;;  %v7200_v9 = vshll.u32 %v7122_v7, 16  ;;  %v7204_v30 = vshrl.u32 %v7122_v7, 16  ;;  %v7925_v49 = vshrl.u32 %v17199_v55, 16  ;;  %v19183_v34 = vld [vmem:[#allocation25_spill] sm:$0xff] }
 0x2df   : > { %v6463_v40 = vsel %vm14892_vm2, %v6455_v28, %v6462_v42  ;;  %v6476_v59 = vsel %vm14892_vm2, %v16910_v62, %v6475_v58  ;;  %v6484_v24 = vor.u32 %v6482_v63, %v6481_v32  ;;  %v7196_v0 = vrot.slane %v7194_v16, 5  ;;  %v7876_v42 = vld [vmem:[#allocation2 + $0x3c] sm:$0xf] }
 0x2e0   : > { %v12424_v61 = vcombine.low %v6454_v46, %v6463_v40  ;;  %v7202_v13 = vrot.slane %v7200_v9, 5  ;;  %v7206_v3 = vrot.slane %v7204_v30, 4  ;;  %v7927_v37 = vrot.slane %v7925_v49, 7  ;;  %v7127_v9 = vld [vmem:[#allocation2 + $0x50] sm:$0xf] }
 0x2e1   : > { %v6154_v43 = vld [vmem:[#allocation2 + $0x170] sm:$0xf]  ;;  %v6155_v35 = vld [vmem:[#allocation2 + $0x174] sm:$0xf]  ;;  %v6485_v2 = vsel %vm14892_vm2, %v6477_v56, %v6484_v24  ;;  %v7928_v26 = vshll.u32 %v17199_v55, 16  ;;  %v12499_v60 = vcombine.low %v17199_v55, %v17205_v12  ;;  %v7197_v5 = vor.u32 %v7196_v0, %v17090_v31 }
 0x2e2   : > { %v6492_v11 = vshrl.u32 %v6154_v43, 16  ;;  %v6495_v62 = vshll.u32 %v6154_v43, 16  ;;  %v6501_v45 = vshrl.u32 %v6155_v35, 16  ;;  %v6504_v50 = vshll.u32 %v6155_v35, 16  ;;  %v7128_v24 = vld [vmem:[#allocation2 + $0x54] sm:$0xf] }
 0x2e3   : > { %13836 = vmatmul.mubr.bf16.gmra.mxu0 %v12424_v61  ;;  %v12402_v21 = vcombine.low %v6154_v43, %v6155_v35  ;;  %v12425_v17 = vcombine.low %v6476_v59, %v6485_v2  ;;  %v7207_v8 = vor.u32 %v7206_v3, %v7202_v13  ;;  %v7930_v6 = vor.u32 %v7928_v26, %v7927_v37  ;;  %v14423_v3 = vld [vmem:[#allocation8 + $0x130] sm:$0xff]  }
 0x2e4   : > { %v6494_v52 = vrot.slane %v6492_v11, 7  ;;  %v6503_v33 = vrot.slane %v6501_v45, 7  ;;  %v7932_v54 = vrot.slane %v7927_v37, 4  ;;  %v7198_v15 = vrot.slane %v7197_v5, 4  ;;  %v8950_v55 = vld [vmem:[#allocation2 + $0x40] sm:$0x1] }
 0x2e5   : > { %13792 = vmatmul.mubr.bf16.gmra.mxu1 %v12402_v21  ;;  %13839 = vmatprep.mubr.bf16.mxu0 %v12425_v17  ;;  %v7208_v57 = vrot.slane %v7207_v8, 4  ;;  %v7934_v53 = vshrl.u32 %v17205_v12, 16  ;;  %v7937_v23 = vshll.u32 %v17205_v12, 16  ;;  %v7931_v31 = vsel %vm14892_vm2, %v16918_v19, %v7930_v6  ;;  %v7878_v8 = vld [vmem:[#allocation2 + $0x50] sm:$0xf] }
 0x2e6   : > { %v6497_v20 = vor.u32 %v6495_v62, %v6494_v52  ;;  %v6499_v1 = vrot.slane %v6494_v52, 4  ;;  %v6506_v39 = vor.u32 %v6504_v50, %v6503_v33  ;;  %13859 = vmatprep.mubr.bf16.mxu1 %v16974_v27  ;;  %v7203_v48 = vsel %vm15206_vm5, %v7198_v15, %v7202_v13  ;;  %v14424_v15 = vld [vmem:[#allocation8 + $0x128] sm:$0xff]  }
 0x2e7   : > { %v7213_v47 = vsel %vm15206_vm5, %v7208_v57, %v16940_v29  ;;  %v7936_v7 = vrot.slane %v7934_v53, 7  ;;  %v7215_v63 = vshrl.u32 %v7124_v22, 16  ;;  %v7218_v19 = vshll.u32 %v7124_v22, 16  ;;  %v7879_v22 = vld [vmem:[#allocation2 + $0x54] sm:$0xf] }
 0x2e8   : > { %v6498_v28 = vsel %vm14892_vm2, %v19183_v34, %v6497_v20  ;;  %v6507_v27 = vsel %vm14892_vm2, %v6499_v1, %v6506_v39  ;;  %v12436_v32 = vcombine.low %v7203_v48, %v7213_v47  ;;  %v7224_v16 = vshll.u32 %v7125_v44, 16  ;;  %v14429_v34 = vld [vmem:[#allocation8 + $0x170] sm:$0xff]  }
 0x2e9   : > { %v12426_v58 = vcombine.low %v6498_v28, %v6507_v27  ;;  %v7939_v56 = vor.u32 %v7937_v23, %v7936_v7  ;;  %v7217_v46 = vrot.slane %v7215_v63, 4  ;;  %v7220_v30 = vrot.slane %v7218_v19, 5  ;;  %v14425_v19 = vld [vmem:[#allocation8 + $0x120] sm:$0xff]  }
 0x2ea   : > { %v7228_v29 = vshrl.u32 %v7125_v44, 16  ;;  %v7947_v40 = vshrl.u32 %v7875_v4, 16  ;;  %v7950_v59 = vshll.u32 %v7875_v4, 16  ;;  %v7226_v61 = vrot.slane %v7224_v16, 5  ;;  %v7130_v44 = vld [vmem:[#allocation2 + $0x68] sm:$0xf] }
 0x2eb   : > { %13840 = vmatmul.mubr.bf16.gmra.mxu0 %v12426_v58  ;;  %v7940_v49 = vsel %vm14892_vm2, %v7932_v54, %v7939_v56  ;;  %v7956_v0 = vshrl.u32 %v7876_v42, 16  ;;  %v7959_v13 = vshll.u32 %v7876_v42, 16  ;;  %v7221_v35 = vor.u32 %v7220_v30, %v7217_v46  ;;  %v7131_v4 = vld [vmem:[#allocation2 + $0x6c] sm:$0xf]  ;;  %v7881_v16 = vld [vmem:[#allocation2 + $0x68] sm:$0xf] }
 0x2ec   : > { %v12475_v43 = vcombine.low %v7931_v31, %v7940_v49  ;;  %v7230_v2 = vrot.slane %v7228_v29, 4  ;;  %v7949_v37 = vrot.slane %v7947_v40, 7  ;;  %v7239_v11 = vshrl.u32 %v7127_v9, 16 }
 0x2ed   : > { %13860 = vmatmul.mubr.bf16.vlgmr.msra.gmra.mxu1 %v12436_v32  ;;  %v7958_v26 = vrot.slane %v7956_v0, 7  ;;  %v7242_v62 = vshll.u32 %v7127_v9, 16  ;;  %v7248_v45 = vshll.u32 %v7128_v24, 16  ;;  %v7222_v50 = vrot.slane %v7221_v35, 4  ;;  %v14430_v0 = vld [vmem:[#allocation8 + $0x168] sm:$0xff]  }
 0x2ee   : > { %13907 = vmatprep.mubr.bf16.mxu0 %v12475_v43  ;;  %v7231_v21 = vor.u32 %v7230_v2, %v7226_v61  ;;  %13940 = vmatpush3.bf16.msra.mxu1 %v17123_v18  ;;  %v7952_v17 = vor.u32 %v7950_v59, %v7949_v37  ;;  %v7954_v5 = vrot.slane %v7949_v37, 4  ;;  %v7241_v33 = vrot.slane %v7239_v11, 4  ;;  %v7133_v2 = vld [vmem:[#allocation2 + $0x80] sm:$0xf] }
 0x2ef   : > { %v7961_v52 = vor.u32 %v7959_v13, %v7958_v26  ;;  %v7244_v6 = vrot.slane %v7242_v62, 5  ;;  %v7250_v54 = vrot.slane %v7248_v45, 5  ;;  %13941 = vmatprep.subr.bf16.mxu1 %v14423_v3  ;;  %v7227_v57 = vsel %vm15206_vm5, %v7222_v50, %v7226_v61  ;;  %v7882_v61 = vld [vmem:[#allocation2 + $0x6c] sm:$0xf] }
 0x2f0   : > { %v7232_v53 = vrot.slane %v7231_v21, 4  ;;  %v7953_v23 = vsel %vm14892_vm2, %v16961_v25, %v7952_v17  ;;  %v7252_v20 = vshrl.u32 %v7128_v24, 16  ;;  %v7969_v39 = vshrl.u32 %v7878_v8, 16  ;;  %v14426_v62 = vld [vmem:[#allocation8 + $0x118] sm:$0xff]  }
 0x2f1   : > { %v7962_v18 = vsel %vm14892_vm2, %v7954_v5, %v7961_v52  ;;  %v7245_v1 = vor.u32 %v7244_v6, %v7241_v33  ;;  %v7972_v31 = vshll.u32 %v7878_v8, 16  ;;  %v7978_v63 = vshrl.u32 %v7879_v22, 16  ;;  %v14432_v6 = vld [vmem:[#allocation8 + $0x160] sm:$0xff]  }
 0x2f2   : > { %v7237_v48 = vsel %vm15206_vm5, %v7232_v53, %v16976_v14  ;;  %v12476_v47 = vcombine.low %v7953_v23, %v7962_v18  ;;  %v7254_v7 = vrot.slane %v7252_v20, 4  ;;  %13942 = vmatpush3.bf16.msra.mxu1 %v14423_v3  ;;  %v7971_v27 = vrot.slane %v7969_v39, 7  ;;  %v14428_v53 = vld [vmem:[#allocation8 + $0x110] sm:$0xff]  }
 0x2f3   : > { %v12437_v28 = vcombine.low %v7227_v57, %v7237_v48  ;;  %v7246_v25 = vrot.slane %v7245_v1, 4  ;;  %v7981_v32 = vshll.u32 %v7879_v22, 16  ;;  %13943 = vmatprep.subr.bf16.mxu1 %v14424_v15  ;;  %v7980_v58 = vrot.slane %v7978_v63, 7  ;;  %v7884_v57 = vld [vmem:[#allocation2 + $0x80] sm:$0xf] }
 0x2f4   : > { %13908 = vmatmul.mubr.bf16.vlgmr.msra.gmra.mxu0 %v12476_v47  ;;  %v7255_v42 = vor.u32 %v7254_v7, %v7250_v54  ;;  %v7263_v56 = vshrl.u32 %v7130_v44, 16  ;;  %v7266_v46 = vshll.u32 %v7130_v44, 16  ;;  %v7974_v9 = vor.u32 %v7972_v31, %v7971_v27  ;;  %v7885_v39 = vld [vmem:[#allocation2 + $0x84] sm:$0xf]  ;;  %v19184_v44 = vld [vmem:[#allocation45_spill] sm:$0xff] }
 0x2f5   : > { %13863 = vmatprep.mubr.bf16.mxu1 %v12437_v28  ;;  %v7251_v14 = vsel %vm15206_vm5, %v7246_v25, %v7250_v54  ;;  %v7976_v30 = vrot.slane %v7971_v27, 4  ;;  %v7272_v29 = vshll.u32 %v7131_v4, 16  ;;  %13988 = vmatpush3.bf16.msra.mxu0 %v17136_v38  ;;  %v7983_v59 = vor.u32 %v7981_v32, %v7980_v58  ;;  %v19185_v25 = vld [vmem:[#allocation48_spill] sm:$0xff]  ;;  %v7136_v58 = vld [vmem:[#allocation2 + $0x98] sm:$0xf] }
 0x2f6   : > { %v7256_v40 = vrot.slane %v7255_v42, 4  ;;  %v7265_v24 = vrot.slane %v7263_v56, 4  ;;  %v7268_v49 = vrot.slane %v7266_v46, 5  ;;  %13944 = vmatpush3.bf16.msra.mxu1 %v14424_v15  ;;  %13989 = vmatprep.subr.bf16.mxu0 %v14429_v34  ;;  %v7975_v13 = vsel %vm14892_vm2, %v16998_v41, %v7974_v9  ;;  %v7134_v41 = vld [vmem:[#allocation2 + $0x84] sm:$0xf]  ;;  %v14431_v56 = vld [vmem:[#allocation8 + $0x108] sm:$0xff]  }
 0x2f7   : > { %v7274_v3 = vrot.slane %v7272_v29, 5  ;;  %v7276_v43 = vshrl.u32 %v7131_v4, 16  ;;  %v7991_v35 = vshrl.u32 %v7881_v16, 16  ;;  %13945 = vmatprep.subr.bf16.mxu1 %v14425_v19  ;;  %v7984_v37 = vsel %vm14892_vm2, %v7976_v30, %v7983_v59  ;;  %v7137_v30 = vld [vmem:[#allocation2 + $0x9c] sm:$0xf]  ;;  %v14433_v29 = vld [vmem:[#allocation8 + $0x158] sm:$0xff]  }
 0x2f8   : > { %v7261_v38 = vsel %vm15206_vm5, %v7256_v40, %v16979_v51  ;;  %v7269_v26 = vor.u32 %v7268_v49, %v7265_v24  ;;  %v7994_v11 = vshll.u32 %v7881_v16, 16  ;;  %v12477_v50 = vcombine.low %v7975_v13, %v7984_v37 }
 0x2f9   : > { %v12438_v45 = vcombine.low %v7251_v14, %v7261_v38  ;;  %v7278_v21 = vrot.slane %v7276_v43, 4  ;;  %v7993_v17 = vrot.slane %v7991_v35, 7  ;;  %13990 = vmatpush3.bf16.msra.mxu0 %v14429_v34  ;;  %v8000_v8 = vshrl.u32 %v7882_v61, 16  ;;  %v7887_v43 = vld [vmem:[#allocation2 + $0x98] sm:$0xf]  ;;  %v14436_v35 = vld [vmem:[#allocation8 + $0x150] sm:$0xff]  }
 0x2fa   : > { %v7270_v5 = vrot.slane %v7269_v26, 4  ;;  %v8003_v52 = vshll.u32 %v7882_v61, 16  ;;  %v7287_v33 = vshrl.u32 %v7133_v2, 16  ;;  %13946 = vmatpush3.bf16.msra.mxu1 %v14425_v19  ;;  %13991 = vmatprep.subr.bf16.mxu0 %v14430_v0  ;;  %v7290_v15 = vshll.u32 %v7133_v2, 16 }
 0x2fb   : > { %13864 = vmatmul.mubr.bf16.gmra.mxu1 %v12438_v45  ;;  %13911 = vmatprep.mubr.bf16.mxu0 %v12477_v50  ;;  %v7279_v51 = vor.u32 %v7278_v21, %v7274_v3  ;;  %v7996_v54 = vor.u32 %v7994_v11, %v7993_v17  ;;  %v7998_v22 = vrot.slane %v7993_v17, 4  ;;  %v8002_v20 = vrot.slane %v8000_v8, 7  ;;  %v14434_v11 = vld [vmem:[#allocation8 + $0x100] sm:$0xff]  }
 0x2fc   : > { %v7275_v23 = vsel %vm15206_vm5, %v7270_v5, %v7274_v3  ;;  %v7289_v18 = vrot.slane %v7287_v33, 4  ;;  %v7296_v1 = vshll.u32 %v7134_v41, 16  ;;  %13947 = vmatprep.subr.bf16.mxu1 %v14426_v62  ;;  %v7292_v47 = vrot.slane %v7290_v15, 5  ;;  %v19187_v5 = vld [vmem:[#allocation30_spill] sm:$0xff] }
 0x2fd   : > { %v7280_v31 = vrot.slane %v7279_v51, 4  ;;  %v7997_v48 = vsel %vm14892_vm2, %v19184_v44, %v7996_v54  ;;  %v7300_v7 = vshrl.u32 %v7134_v41, 16  ;;  %13992 = vmatpush3.bf16.msra.mxu0 %v14430_v0  ;;  %v8005_v63 = vor.u32 %v8003_v52, %v8002_v20  ;;  %v17274_v41 = vld [vmem:[#allocation2 + $0x9c] sm:$0xf]  ;;  %v7139_v51 = vld [vmem:[#allocation2 + $0xb0] sm:$0xf] }
 0x2fe   : > { %v7298_v4 = vrot.slane %v7296_v1, 5  ;;  %v8013_v34 = vshrl.u32 %v7884_v57, 16  ;;  %v8016_v28 = vshll.u32 %v7884_v57, 16  ;;  %13948 = vmatpush3.bf16.msra.mxu1 %v14426_v62  ;;  %13993 = vmatprep.subr.bf16.mxu0 %v14432_v6  ;;  %v7293_v32 = vor.u32 %v7292_v47, %v7289_v18  ;;  %v19186_v62 = vld [vmem:[#allocation40_spill] sm:$0xff] }
 0x2ff   : > { %v7285_v27 = vsel %vm15206_vm5, %v7280_v31, %v19185_v25  ;;  %v7302_v19 = vrot.slane %v7300_v7, 4  ;;  %v8022_v42 = vshrl.u32 %v7885_v39, 16  ;;  %13949 = vmatprep.subr.bf16.mxu1 %v14428_v53  ;;  %v8006_v16 = vsel %vm14892_vm2, %v7998_v22, %v8005_v63  ;;  %v17283_v31 = vld [vmem:[#allocation8 + $0x1b8] sm:$0xff]   ;;  %v17285_v25 = vld [vmem:[#allocation2 + $0xb0] sm:$0xf] }
 0x300   : > { %v12439_v46 = vcombine.low %v7275_v23, %v7285_v27  ;;  %v8015_v14 = vrot.slane %v8013_v34, 7  ;;  %v8025_v9 = vshll.u32 %v7885_v39, 16  ;;  %v12478_v40 = vcombine.low %v7997_v48, %v8006_v16  ;;  %v14437_v23 = vld [vmem:[#allocation8 + $0x148] sm:$0xff]  }
 0x301   : > { %v7294_v59 = vrot.slane %v7293_v32, 4  ;;  %v7303_v24 = vor.u32 %v7302_v19, %v7298_v4  ;;  %v8024_v49 = vrot.slane %v8022_v42, 7  ;;  %13994 = vmatpush3.bf16.msra.mxu0 %v14432_v6  ;;  %v7311_v13 = vshrl.u32 %v7136_v58, 16 }
 0x302   : > { %13867 = vmatprep.mubr.bf16.mxu1 %v12439_v46  ;;  %v8018_v61 = vor.u32 %v8016_v28, %v8015_v14  ;;  %v8020_v0 = vrot.slane %v8015_v14, 4  ;;  %v7314_v3 = vshll.u32 %v7136_v58, 16  ;;  %13950 = vmatpush3.bf16.msra.mxu1 %v14428_v53  ;;  %v7320_v26 = vshll.u32 %v7137_v30, 16  ;;  %v7140_v53 = vld [vmem:[#allocation2 + $0xb4] sm:$0xf]  ;;  %v19188_v46 = vld [vmem:[#allocation50_spill] sm:$0xff] }
 0x303   : > { %13912 = vmatmul.mubr.bf16.gmra.mxu0 %v12478_v40  ;;  %v7299_v2 = vsel %vm15206_vm5, %v7294_v59, %v7298_v4  ;;  %v7304_v38 = vrot.slane %v7303_v24, 4  ;;  %v8027_v37 = vor.u32 %v8025_v9, %v8024_v49  ;;  %13951 = vmatprep.subr.bf16.mxu1 %v14431_v56  ;;  %v7313_v50 = vrot.slane %v7311_v13, 4  ;;  %v17289_v58 = vld [vmem:[#allocation2 + $0xb4] sm:$0xf] }
 0x304   : > { %v8019_v45 = vsel %vm14892_vm2, %v19186_v62, %v8018_v61  ;;  %v7316_v21 = vrot.slane %v7314_v3, 5  ;;  %v7324_v17 = vshrl.u32 %v7137_v30, 16  ;;  %13995 = vmatprep.subr.bf16.mxu0 %v14433_v29  ;;  %v7322_v33 = vrot.slane %v7320_v26, 5  ;;  %v7142_v61 = vld [vmem:[#allocation2 + $0xc8] sm:$0xf] }
 0x305   : > { %v7309_v8 = vsel %vm15206_vm5, %v7304_v38, %v19187_v5  ;;  %v8028_v52 = vsel %vm14892_vm2, %v8020_v0, %v8027_v37  ;;  %v8035_v6 = vshrl.u32 %v7887_v43, 16  ;;  %13996 = vmatpush3.bf16.msra.mxu0 %v14433_v29  ;;  %v8038_v18 = vshll.u32 %v7887_v43, 16  ;;  %v19189_v29 = vld [vmem:[#allocation47_spill] sm:$0xff] }
 0x306   : > { %v12440_v54 = vcombine.low %v7299_v2, %v7309_v8  ;;  %v12479_v22 = vcombine.low %v8019_v45, %v8028_v52  ;;  %v7317_v15 = vor.u32 %v7316_v21, %v7313_v50  ;;  %v7326_v57 = vrot.slane %v7324_v17, 4  ;;  %13952 = vmatpush3.bf16.msra.mxu1 %v14431_v56  ;;  %13997 = vmatprep.subr.bf16.mxu0 %v14436_v35  ;;  %v14441_v56 = vld [vmem:[#allocation8 + $0x140] sm:$0xff]  }
 0x307   : > { %v8037_v20 = vrot.slane %v8035_v6, 7  ;;  %v8044_v1 = vshrl.u32 %v17274_v41, 16  ;;  %v8047_v39 = vshll.u32 %v17274_v41, 16  ;;  %13953 = vmatprep.subr.bf16.mxu1 %v14434_v11  ;;  %v7335_v47 = vshrl.u32 %v7139_v51, 16  ;;  %v7144_v50 = vld [vmem:[#allocation2 + $0xd0] sm:$0x1] }
 0x308   : > { %13868 = vmatmul.mubr.bf16.gmra.mxu1 %v12440_v54  ;;  %13915 = vmatprep.mubr.bf16.mxu0 %v12479_v22  ;;  %v7318_v44 = vrot.slane %v7317_v15, 4  ;;  %v7327_v48 = vor.u32 %v7326_v57, %v7322_v33  ;;  %v7338_v7 = vshll.u32 %v7139_v51, 16  ;;  %v7344_v28 = vshll.u32 %v7140_v53, 16  ;;  %v17308_v15 = vld [vmem:[#allocation2 + $0xc8] sm:$0xf]  ;;  %v19190_v57 = vld [vmem:[#allocation35_spill] sm:$0xff] }
 0x309   : > { %v8040_v63 = vor.u32 %v8038_v18, %v8037_v20  ;;  %v8042_v4 = vrot.slane %v8037_v20, 4  ;;  %v8046_v34 = vrot.slane %v8044_v1, 7  ;;  %13998 = vmatpush3.bf16.msra.mxu0 %v14436_v35  ;;  %v7337_v19 = vrot.slane %v7335_v47, 4  ;;  %v7143_v35 = vld [vmem:[#allocation2 + $0xcc] sm:$0xf] }
 0x30a   : > { %v7323_v27 = vsel %vm15206_vm5, %v7318_v44, %v7322_v33  ;;  %v7328_v32 = vrot.slane %v7327_v48, 4  ;;  %v7340_v42 = vrot.slane %v7338_v7, 5  ;;  %13954 = vmatpush3.bf16.msra.mxu1 %v14434_v11  ;;  %13999 = vmatprep.subr.bf16.mxu0 %v14437_v23  ;;  %v7346_v9 = vrot.slane %v7344_v28, 5  ;;  %v17304_v11 = vld [vmem:[#allocation8 + $0x1f8] sm:$0xff]   ;;  %v19192_v7 = vld [vmem:[#allocation26_spill] sm:$0xff] }
 0x30b   : > { %v8041_v16 = vsel %vm14892_vm2, %v19188_v46, %v8040_v63  ;;  %v8049_v14 = vor.u32 %v8047_v39, %v8046_v34  ;;  %v7348_v30 = vshrl.u32 %v7140_v53, 16  ;;  %14035 = vmatprep.subr.bf16.mxu1 %v17283_v31  ;;  %v8057_v24 = vshrl.u32 %v17285_v25, 16  ;;  %v17313_v1 = vld [vmem:[#allocation2 + $0xcc] sm:$0xf]  ;;  %v19191_v39 = vld [vmem:[#allocation29_spill] sm:$0xff] }
 0x30c   : > { %v7333_v40 = vsel %vm15206_vm5, %v7328_v32, %v19189_v29  ;;  %v7341_v59 = vor.u32 %v7340_v42, %v7337_v19  ;;  %v8060_v49 = vshll.u32 %v17285_v25, 16  ;;  %v8066_v43 = vshrl.u32 %v17289_v58, 16  ;;  %v7145_v34 = vld [vmem:[#allocation2 + $0xe0] sm:$0xf]  ;;  %v7146_v42 = vld [vmem:[#allocation2 + $0xe4] sm:$0xf] }
 0x30d   : > { %v12441_v0 = vcombine.low %v7323_v27, %v7333_v40  ;;  %v8050_v13 = vsel %vm14892_vm2, %v8042_v4, %v8049_v14  ;;  %v7350_v3 = vrot.slane %v7348_v30, 4  ;;  %14000 = vmatpush3.bf16.msra.mxu0 %v14437_v23  ;;  %v8059_v37 = vrot.slane %v8057_v24, 7 }
 0x30e   : > { %v12480_v2 = vcombine.low %v8041_v16, %v8050_v13  ;;  %v7342_v38 = vrot.slane %v7341_v59, 4  ;;  %v8069_v26 = vshll.u32 %v17289_v58, 16  ;;  %14001 = vmatprep.subr.bf16.mxu0 %v14441_v56  ;;  %v8068_v45 = vrot.slane %v8066_v43, 7 }
 0x30f   : > { %13871 = vmatprep.mubr.bf16.mxu1 %v12441_v0  ;;  %v7351_v62 = vor.u32 %v7350_v3, %v7346_v9  ;;  %v7359_v21 = vshrl.u32 %v7142_v61, 16  ;;  %v7362_v17 = vshll.u32 %v7142_v61, 16  ;;  %v8062_v8 = vor.u32 %v8060_v49, %v8059_v37  ;;  %v7147_v61 = vld [vmem:[#allocation2 + $0xe8] sm:$0x1] }
 0x310   : > { %13916 = vmatmul.mubr.bf16.gmra.mxu0 %v12480_v2  ;;  %v7347_v5 = vsel %vm15206_vm5, %v7342_v38, %v7346_v9  ;;  %v8064_v52 = vrot.slane %v8059_v37, 4  ;;  %v7368_v33 = vshll.u32 %v7143_v35, 16  ;;  %v8071_v51 = vor.u32 %v8069_v26, %v8068_v45  ;;  %v7895_v2 = vld [vmem:[#allocation2 + $0xdc] sm:$0x8] }
 0x311   : > { %v7352_v6 = vrot.slane %v7351_v62, 4  ;;  %v7361_v54 = vrot.slane %v7359_v21, 4  ;;  %v7364_v22 = vrot.slane %v7362_v17, 5  ;;  %14002 = vmatpush3.bf16.msra.mxu0 %v14441_v56  ;;  %v8063_v53 = vsel %vm14892_vm2, %v19190_v57, %v8062_v8  ;;  %v17333_v8 = vld [vmem:[#allocation2 + $0xe4] sm:$0xf] }
 0x312   : > { %v7370_v23 = vrot.slane %v7368_v33, 5  ;;  %v7372_v20 = vshrl.u32 %v7143_v35, 16  ;;  %v7378_v18 = vshll.u32 %v7144_v50, 16  ;;  %14083 = vmatprep.subr.bf16.mxu0 %v17304_v11  ;;  %v8072_v48 = vsel %vm14892_vm2, %v8064_v52, %v8071_v51 }
 0x313   : > { %v7357_v44 = vsel %vm15206_vm5, %v7352_v6, %v19191_v39  ;;  %v7365_v47 = vor.u32 %v7364_v22, %v7361_v54  ;;  %v19193_v63 = vshrl.u32 %v19192_v7, 16  ;;  %v12481_v27 = vcombine.low %v8063_v53, %v8072_v48  ;;  %v7148_v54 = vld [vmem:[#allocation2 + $0xf8] sm:$0xf] }
 0x314   : > { %v12442_v28 = vcombine.low %v7347_v5, %v7357_v44  ;;  %v7374_v32 = vrot.slane %v7372_v20, 4  ;;  %v7380_v19 = vrot.slane %v7378_v18, 5  ;;  %v8079_v46 = vshrl.u32 %v17308_v15, 16  ;;  %v17331_v5 = vld [vmem:[#allocation2 + $0xe0] sm:$0xf] }
 0x315   : > { %v12466_v4 = vrot.slane %v19193_v63, 11  ;;  %v7366_v56 = vrot.slane %v7365_v47, 4  ;;  %v8082_v16 = vshll.u32 %v17308_v15, 16  ;;  %v8088_v14 = vshrl.u32 %v17313_v1, 16  ;;  %13919 = vmatprep.mubr.bf16.mxu0 %v12481_v27  ;;  %v7149_v20 = vld [vmem:[#allocation2 + $0xfc] sm:$0xf] }
 0x316   : > { %13872 = vmatmul.mubr.bf16.gmra.mxu1 %v12442_v28  ;;  %v7375_v9 = vor.u32 %v7374_v32, %v7370_v23  ;;  %v8091_v30 = vshll.u32 %v17313_v1, 16  ;;  %v7383_v29 = vshrl.u32 %v7145_v34, 16  ;;  %v7386_v40 = vshll.u32 %v7145_v34, 16  ;;  %v7150_v47 = vld [vmem:[#allocation2 + $0x100] sm:$0x1] }
 0x317   : > { %v7371_v59 = vsel %vm15206_vm5, %v7366_v56, %v7370_v23  ;;  %v8081_v24 = vrot.slane %v8079_v46, 7  ;;  %v8090_v49 = vrot.slane %v8088_v14, 7  ;;  %v7392_v0 = vshll.u32 %v7146_v42, 16 }
 0x318   : > { %v7376_v13 = vrot.slane %v7375_v9, 4  ;;  %v7385_v3 = vrot.slane %v7383_v29, 4  ;;  %v7388_v43 = vrot.slane %v7386_v40, 5  ;;  %v7396_v35 = vshrl.u32 %v7146_v42, 16  ;;  %v7898_v42 = vld [vmem:[#allocation2 + $0xf4] sm:$0x8] }
 0x319   : > { %v8084_v38 = vor.u32 %v8082_v16, %v8081_v24  ;;  %v8086_v37 = vrot.slane %v8081_v24, 4  ;;  %v8093_v26 = vor.u32 %v8091_v30, %v8090_v49  ;;  %v7394_v62 = vrot.slane %v7392_v0, 5  ;;  %v17347_v9 = vld [vmem:[#allocation2 + $0xf8] sm:$0xf] }
 0x31a   : > { %v7381_v45 = vsel %vm15206_vm5, %v7376_v13, %v7380_v19  ;;  %v7389_v50 = vor.u32 %v7388_v43, %v7385_v3  ;;  %v7398_v21 = vrot.slane %v7396_v35, 4  ;;  %v7402_v17 = vshll.u32 %v7147_v61, 16  ;;  %v17349_v13 = vld [vmem:[#allocation2 + $0xfc] sm:$0xf] }
 0x31b   : > { %v12443_v52 = vcombine.low %v7371_v59, %v7381_v45  ;;  %v8085_v33 = vsel %vm14892_vm2, %v12466_v4, %v8084_v38  ;;  %v8094_v6 = vsel %vm14892_vm2, %v8086_v37, %v8093_v26  ;;  %v8096_v51 = vshrl.u32 %v7895_v2, 16  ;;  %v7151_v38 = vld [vmem:[#allocation2 + $0x110] sm:$0xf] }
 0x31c   : > { %v12482_v22 = vcombine.low %v8085_v33, %v8094_v6  ;;  %v7390_v57 = vrot.slane %v7389_v50, 4  ;;  %v7399_v53 = vor.u32 %v7398_v21, %v7394_v62  ;;  %v7404_v23 = vrot.slane %v7402_v17, 5  ;;  %v7152_v50 = vld [vmem:[#allocation2 + $0x114] sm:$0xf] }
 0x31d   : > { %13875 = vmatprep.mubr.bf16.mxu1 %v12443_v52  ;;  %v12467_v18 = vrot.slane %v8096_v51, 11  ;;  %v8101_v39 = vshrl.u32 %v17331_v5, 16  ;;  %v8104_v44 = vshll.u32 %v17331_v5, 16  ;;  %v8110_v48 = vshrl.u32 %v17333_v8, 16 }
 0x31e   : > { %13920 = vmatmul.mubr.bf16.gmra.mxu0 %v12482_v22  ;;  %v7395_v7 = vsel %vm15206_vm5, %v7390_v57, %v7394_v62  ;;  %v7400_v63 = vrot.slane %v7399_v53, 4  ;;  %v8113_v4 = vshll.u32 %v17333_v8, 16  ;;  %v7407_v34 = vshrl.u32 %v7148_v54, 16 }
 0x31f   : > { %v8103_v28 = vrot.slane %v8101_v39, 7  ;;  %v8112_v27 = vrot.slane %v8110_v48, 7  ;;  %v7410_v32 = vshll.u32 %v7148_v54, 16  ;;  %v7416_v19 = vshll.u32 %v7149_v20, 16  ;;  %v7153_v54 = vld [vmem:[#allocation2 + $0x118] sm:$0x1] }
 0x320   : > { %v7405_v56 = vsel %vm15206_vm5, %v7400_v63, %v7404_v23  ;;  %v7409_v46 = vrot.slane %v7407_v34, 4  ;;  %v7420_v16 = vshrl.u32 %v7149_v20, 16  ;;  %v7426_v14 = vshll.u32 %v7150_v47, 16  ;;  %v7901_v39 = vld [vmem:[#allocation2 + $0x10c] sm:$0x8] }
 0x321   : > { %v12444_v30 = vcombine.low %v7395_v7, %v7405_v56  ;;  %v8106_v29 = vor.u32 %v8104_v44, %v8103_v28  ;;  %v8108_v40 = vrot.slane %v8103_v28, 4  ;;  %v8115_v59 = vor.u32 %v8113_v4, %v8112_v27  ;;  %v17363_v63 = vld [vmem:[#allocation2 + $0x110] sm:$0xf]  ;;  %v17365_v4 = vld [vmem:[#allocation2 + $0x114] sm:$0xf] }
 0x322   : > { %v7412_v24 = vrot.slane %v7410_v32, 5  ;;  %v7418_v49 = vrot.slane %v7416_v19, 5  ;;  %v7422_v61 = vrot.slane %v7420_v16, 4  ;;  %v7428_v0 = vrot.slane %v7426_v14, 5 }
 0x323   : > { %13876 = vmatmul.mubr.bf16.gmra.mxu1 %v12444_v30  ;;  %v8107_v3 = vsel %vm14892_vm2, %v12467_v18, %v8106_v29  ;;  %v8116_v43 = vsel %vm14892_vm2, %v8108_v40, %v8115_v59  ;;  %v8118_v35 = vshrl.u32 %v7898_v42, 16  ;;  %v8123_v2 = vshrl.u32 %v17347_v9, 16  ;;  %v7154_v40 = vld [vmem:[#allocation2 + $0x128] sm:$0xf] }
 0x324   : > { %v12483_v37 = vcombine.low %v8107_v3, %v8116_v43  ;;  %v7413_v26 = vor.u32 %v7412_v24, %v7409_v46  ;;  %v7423_v62 = vor.u32 %v7422_v61, %v7418_v49  ;;  %v8126_v45 = vshll.u32 %v17347_v9, 16 }
 0x325   : > { %v12468_v21 = vrot.slane %v8118_v35, 11  ;;  %v8125_v17 = vrot.slane %v8123_v2, 7  ;;  %v8132_v52 = vshrl.u32 %v17349_v13, 16  ;;  %v8135_v33 = vshll.u32 %v17349_v13, 16 }
 0x326   : > { %13923 = vmatprep.mubr.bf16.mxu0 %v12483_v37  ;;  %v7414_v6 = vrot.slane %v7413_v26, 4  ;;  %v7424_v51 = vrot.slane %v7423_v62, 4  ;;  %v7431_v22 = vshrl.u32 %v7151_v38, 16  ;;  %v7434_v57 = vshll.u32 %v7151_v38, 16  ;;  %v7156_v26 = vld [vmem:[#allocation2 + $0x130] sm:$0x1] }
 0x327   : > { %v8128_v53 = vor.u32 %v8126_v45, %v8125_v17  ;;  %v8130_v23 = vrot.slane %v8125_v17, 4  ;;  %v8134_v20 = vrot.slane %v8132_v52, 7  ;;  %v7440_v18 = vshll.u32 %v7152_v50, 16 }
 0x328   : > { %v7419_v44 = vsel %vm15206_vm5, %v7414_v6, %v7418_v49  ;;  %v7429_v48 = vsel %vm15206_vm5, %v7424_v51, %v7428_v0  ;;  %v7433_v47 = vrot.slane %v7431_v22, 4  ;;  %v7436_v7 = vrot.slane %v7434_v57, 5  ;;  %v7155_v0 = vld [vmem:[#allocation2 + $0x12c] sm:$0xf]  ;;  %v17377_v57 = vld [vmem:[#allocation2 + $0x128] sm:$0xf] }
 0x329   : > { %v12445_v34 = vcombine.low %v7419_v44, %v7429_v48  ;;  %v8129_v28 = vsel %vm14892_vm2, %v12468_v21, %v8128_v53  ;;  %v8137_v27 = vor.u32 %v8135_v33, %v8134_v20  ;;  %v7442_v32 = vrot.slane %v7440_v18, 5  ;;  %v7904_v33 = vld [vmem:[#allocation2 + $0x124] sm:$0x8] }
 0x32a   : > { %v7437_v19 = vor.u32 %v7436_v7, %v7433_v47  ;;  %v7444_v42 = vshrl.u32 %v7152_v50, 16  ;;  %v7450_v56 = vshll.u32 %v7153_v54, 16  ;;  %v8140_v46 = vshrl.u32 %v7901_v39, 16  ;;  %v17383_v39 = vld [vmem:[#allocation2 + $0x12c] sm:$0xf] }
 0x32b   : > { %13879 = vmatprep.mubr.bf16.mxu1 %v12445_v34  ;;  %v8138_v16 = vsel %vm14892_vm2, %v8130_v23, %v8137_v27  ;;  %v8145_v14 = vshrl.u32 %v17363_v63, 16  ;;  %v8148_v30 = vshll.u32 %v17363_v63, 16  ;;  %v8154_v29 = vshrl.u32 %v17365_v4, 16  ;;  %v7157_v34 = vld [vmem:[#allocation2 + $0x140] sm:$0xf] }
 0x32c   : > { %v12484_v59 = vcombine.low %v8129_v28, %v8138_v16  ;;  %v7438_v24 = vrot.slane %v7437_v19, 4  ;;  %v7446_v49 = vrot.slane %v7444_v42, 4  ;;  %v7452_v61 = vrot.slane %v7450_v56, 5 }
 0x32d   : > { %v12469_v3 = vrot.slane %v8140_v46, 11  ;;  %v8147_v43 = vrot.slane %v8145_v14, 7  ;;  %v8156_v35 = vrot.slane %v8154_v29, 7  ;;  %v8157_v2 = vshll.u32 %v17365_v4, 16  ;;  %v7158_v14 = vld [vmem:[#allocation2 + $0x144] sm:$0xf] }
 0x32e   : > { %13924 = vmatmul.mubr.bf16.gmra.mxu0 %v12484_v59  ;;  %v7443_v38 = vsel %vm15206_vm5, %v7438_v24, %v7442_v32  ;;  %v7447_v37 = vor.u32 %v7446_v49, %v7442_v32  ;;  %v7455_v62 = vshrl.u32 %v7154_v40, 16  ;;  %v7458_v45 = vshll.u32 %v7154_v40, 16 }
 0x32f   : > { %v8150_v50 = vor.u32 %v8148_v30, %v8147_v43  ;;  %v8152_v21 = vrot.slane %v8147_v43, 4  ;;  %v8159_v17 = vor.u32 %v8157_v2, %v8156_v35  ;;  %v7464_v52 = vshll.u32 %v7155_v0, 16 }
 0x330   : > { %v7448_v6 = vrot.slane %v7447_v37, 4  ;;  %v7457_v51 = vrot.slane %v7455_v62, 4  ;;  %v7460_v54 = vrot.slane %v7458_v45, 5  ;;  %v7468_v22 = vshrl.u32 %v7155_v0, 16  ;;  %v7159_v0 = vld [vmem:[#allocation2 + $0x148] sm:$0x1] }
 0x331   : > { %v8151_v53 = vsel %vm14892_vm2, %v12469_v3, %v8150_v50  ;;  %v8160_v23 = vsel %vm14892_vm2, %v8152_v21, %v8159_v17  ;;  %v7466_v20 = vrot.slane %v7464_v52, 5  ;;  %v7474_v18 = vshll.u32 %v7156_v26, 16  ;;  %v7907_v37 = vld [vmem:[#allocation2 + $0x13c] sm:$0x8]  ;;  %v17395_v21 = vld [vmem:[#allocation2 + $0x140] sm:$0xf] }
 0x332   : > { %v7453_v44 = vsel %vm15206_vm5, %v7448_v6, %v7452_v61  ;;  %v12485_v48 = vcombine.low %v8151_v53, %v8160_v23  ;;  %v7461_v47 = vor.u32 %v7460_v54, %v7457_v51  ;;  %v7470_v7 = vrot.slane %v7468_v22, 4  ;;  %v17399_v51 = vld [vmem:[#allocation2 + $0x144] sm:$0xf] }
 0x333   : > { %v12446_v28 = vcombine.low %v7443_v38, %v7453_v44  ;;  %v7476_v27 = vrot.slane %v7474_v18, 5  ;;  %v8162_v32 = vshrl.u32 %v7904_v33, 16  ;;  %v8167_v19 = vshrl.u32 %v17377_v57, 16 }
 0x334   : > { %13927 = vmatprep.mubr.bf16.mxu0 %v12485_v48  ;;  %v7462_v42 = vrot.slane %v7461_v47, 4  ;;  %v7471_v56 = vor.u32 %v7470_v7, %v7466_v20  ;;  %v8170_v46 = vshll.u32 %v17377_v57, 16  ;;  %v8176_v16 = vshrl.u32 %v17383_v39, 16  ;;  %v7161_v7 = vld [vmem:[#allocation2 + $0x15c] sm:$0xf] }
 0x335   : > { %13880 = vmatmul.mubr.bf16.gmra.mxu1 %v12446_v28  ;;  %v12470_v30 = vrot.slane %v8162_v32, 11  ;;  %v8169_v29 = vrot.slane %v8167_v19, 7  ;;  %v8179_v40 = vshll.u32 %v17383_v39, 16  ;;  %v7479_v59 = vshrl.u32 %v7157_v34, 16 }
 0x336   : > { %v7467_v24 = vsel %vm15206_vm5, %v7462_v42, %v7466_v20  ;;  %v7472_v49 = vrot.slane %v7471_v56, 4  ;;  %v8178_v61 = vrot.slane %v8176_v16, 7  ;;  %v7482_v3 = vshll.u32 %v7157_v34, 16  ;;  %v7160_v20 = vld [vmem:[#allocation2 + $0x158] sm:$0xf] }
 0x337   : > { %v8172_v43 = vor.u32 %v8170_v46, %v8169_v29  ;;  %v8174_v35 = vrot.slane %v8169_v29, 4  ;;  %v7481_v2 = vrot.slane %v7479_v59, 4  ;;  %v7488_v38 = vshll.u32 %v7158_v14, 16  ;;  %v7162_v56 = vld [vmem:[#allocation2 + $0x160] sm:$0x1] }
 0x338   : > { %v7477_v26 = vsel %vm15206_vm5, %v7472_v49, %v7476_v27  ;;  %v8181_v62 = vor.u32 %v8179_v40, %v8178_v61  ;;  %v7484_v45 = vrot.slane %v7482_v3, 5  ;;  %v7492_v50 = vshrl.u32 %v7158_v14, 16  ;;  %v7910_v59 = vld [vmem:[#allocation2 + $0x154] sm:$0x8]  ;;  %v17409_v3 = vld [vmem:[#allocation2 + $0x158] sm:$0xf] }
 0x339   : > { %v12447_v17 = vcombine.low %v7467_v24, %v7477_v26  ;;  %v8173_v52 = vsel %vm14892_vm2, %v12470_v30, %v8172_v43  ;;  %v7490_v33 = vrot.slane %v7488_v38, 5  ;;  %v7498_v6 = vshll.u32 %v7159_v0, 16 }
 0x33a   : > { %v8182_v54 = vsel %vm14892_vm2, %v8174_v35, %v8181_v62  ;;  %v7485_v22 = vor.u32 %v7484_v45, %v7481_v2  ;;  %v7494_v53 = vrot.slane %v7492_v50, 4  ;;  %v8184_v23 = vshrl.u32 %v7907_v37, 16  ;;  %v17415_v50 = vld [vmem:[#allocation2 + $0x15c] sm:$0xf] }
 0x33b   : > { %13883 = vmatprep.mubr.bf16.mxu1 %v12447_v17  ;;  %v12486_v18 = vcombine.low %v8173_v52, %v8182_v54  ;;  %v7500_v44 = vrot.slane %v7498_v6, 5  ;;  %v8189_v48 = vshrl.u32 %v17395_v21, 16  ;;  %v8192_v47 = vshll.u32 %v17395_v21, 16  ;;  %v7163_v54 = vld [vmem:[#allocation2 + $0x170] sm:$0xf] }
 0x33c   : > { %v7486_v34 = vrot.slane %v7485_v22, 4  ;;  %v7495_v28 = vor.u32 %v7494_v53, %v7490_v33  ;;  %v12471_v27 = vrot.slane %v8184_v23, 11  ;;  %v8198_v32 = vshrl.u32 %v17399_v51, 16 }
 0x33d   : > { %13928 = vmatmul.mubr.bf16.gmra.mxu0 %v12486_v18  ;;  %v8191_v19 = vrot.slane %v8189_v48, 7  ;;  %v8201_v42 = vshll.u32 %v17399_v51, 16  ;;  %v7503_v46 = vshrl.u32 %v7160_v20, 16  ;;  %v7506_v16 = vshll.u32 %v7160_v20, 16 }
 0x33e   : > { %v7491_v14 = vsel %vm15206_vm5, %v7486_v34, %v7490_v33  ;;  %v7496_v30 = vrot.slane %v7495_v28, 4  ;;  %v8200_v29 = vrot.slane %v8198_v32, 7  ;;  %v7512_v40 = vshll.u32 %v7161_v7, 16 }
 0x33f   : > { %v8194_v24 = vor.u32 %v8192_v47, %v8191_v19  ;;  %v8196_v49 = vrot.slane %v8191_v19, 4  ;;  %v7505_v61 = vrot.slane %v7503_v46, 4  ;;  %v7508_v0 = vrot.slane %v7506_v16, 5 }
 0x340   : > { %v7501_v43 = vsel %vm15206_vm5, %v7496_v30, %v7500_v44  ;;  %v8203_v35 = vor.u32 %v8201_v42, %v8200_v29  ;;  %v7514_v2 = vrot.slane %v7512_v40, 5  ;;  %v7516_v38 = vshrl.u32 %v7161_v7, 16  ;;  %v7164_v7 = vld [vmem:[#allocation2 + $0x174] sm:$0xf] }
 0x341   : > { %v12448_v37 = vcombine.low %v7491_v14, %v7501_v43  ;;  %v8195_v26 = vsel %vm14892_vm2, %v12471_v27, %v8194_v24  ;;  %v7509_v62 = vor.u32 %v7508_v0, %v7505_v61  ;;  %v7522_v45 = vshll.u32 %v7162_v56, 16  ;;  %v7165_v27 = vld [vmem:[#allocation2 + $0x178] sm:$0x1]  ;;  %v7913_v14 = vld [vmem:[#allocation2 + $0x16c] sm:$0x8] }
 0x342   : > { %v8204_v17 = vsel %vm14892_vm2, %v8196_v49, %v8203_v35  ;;  %v7518_v52 = vrot.slane %v7516_v38, 4  ;;  %v8206_v33 = vshrl.u32 %v7910_v59, 16  ;;  %v8211_v6 = vshrl.u32 %v17409_v3, 16  ;;  %v17425_v24 = vld [vmem:[#allocation2 + $0x170] sm:$0xf] }
 0x343   : > { %13884 = vmatmul.mubr.bf16.gmra.mxu1 %v12448_v37  ;;  %v12487_v22 = vcombine.low %v8195_v26, %v8204_v17  ;;  %v7510_v53 = vrot.slane %v7509_v62, 4  ;;  %v7524_v23 = vrot.slane %v7522_v45, 5  ;;  %v8214_v20 = vshll.u32 %v17409_v3, 16  ;;  %v17431_v26 = vld [vmem:[#allocation2 + $0x174] sm:$0xf] }
 0x344   : > { %v7519_v18 = vor.u32 %v7518_v52, %v7514_v2  ;;  %v12472_v44 = vrot.slane %v8206_v33, 11  ;;  %v8213_v48 = vrot.slane %v8211_v6, 7  ;;  %v8220_v47 = vshrl.u32 %v17415_v50, 16  ;;  %v7916_v62 = vld [vmem:[#allocation2 + $0x184] sm:$0x8] }
 0x345   : > { %13931 = vmatprep.mubr.bf16.mxu0 %v12487_v22  ;;  %v7515_v34 = vsel %vm15206_vm5, %v7510_v53, %v7514_v2  ;;  %v8223_v28 = vshll.u32 %v17415_v50, 16  ;;  %v7527_v32 = vshrl.u32 %v7163_v54, 16  ;;  %v7530_v19 = vshll.u32 %v7163_v54, 16  ;;  %v17436_v6 = vld [vmem:[#allocation2 + $0x188] sm:$0xf] }
 0x346   : > { %v7520_v42 = vrot.slane %v7519_v18, 4  ;;  %v8216_v56 = vor.u32 %v8214_v20, %v8213_v48  ;;  %v8218_v46 = vrot.slane %v8213_v48, 4  ;;  %v8222_v16 = vrot.slane %v8220_v47, 7  ;;  %v17441_v47 = vld [vmem:[#allocation2 + $0x18c] sm:$0xf] }
 0x347   : > { %v7529_v30 = vrot.slane %v7527_v32, 4  ;;  %v7532_v29 = vrot.slane %v7530_v19, 5  ;;  %v7536_v40 = vshll.u32 %v7164_v7, 16  ;;  %v7540_v59 = vshrl.u32 %v7164_v7, 16 }
 0x348   : > { %v7525_v49 = vsel %vm15206_vm5, %v7520_v42, %v7524_v23  ;;  %v8217_v61 = vsel %vm14892_vm2, %v12472_v44, %v8216_v56  ;;  %v8225_v0 = vor.u32 %v8223_v28, %v8222_v16  ;;  %v7546_v43 = vshll.u32 %v7165_v27, 16 }
 0x349   : > { %v12449_v35 = vcombine.low %v7515_v34, %v7525_v49  ;;  %v7533_v2 = vor.u32 %v7532_v29, %v7529_v30  ;;  %v7538_v38 = vrot.slane %v7536_v40, 5  ;;  %v7542_v37 = vrot.slane %v7540_v59, 4  ;;  %v8946_v40 = vld [vmem:[#allocation2 + $0x24] sm:$0xf] }
 0x34a   : > { %v8226_v45 = vsel %vm14892_vm2, %v8218_v46, %v8225_v0  ;;  %v7548_v17 = vrot.slane %v7546_v43, 5  ;;  %v8228_v52 = vshrl.u32 %v7913_v14, 16  ;;  %v8233_v33 = vshrl.u32 %v17425_v24, 16  ;;  %v8945_v46 = vld [vmem:[#allocation2 + $0x20] sm:$0xf] }
 0x34b   : > { %13887 = vmatprep.mubr.bf16.mxu1 %v12449_v35  ;;  %v12488_v54 = vcombine.low %v8217_v61, %v8226_v45  ;;  %v7534_v22 = vrot.slane %v7533_v2, 4  ;;  %v7543_v53 = vor.u32 %v7542_v37, %v7538_v38  ;;  %v8236_v23 = vshll.u32 %v17425_v24, 16  ;;  %v14519_v37 = vld [vmem:[#allocation2 + $0x3c] sm:$0xf]  ;;  %v8947_v45 = vld [vmem:[#allocation2 + $0x28] sm:$0x1] }
 0x34c   : > { %v12473_v20 = vrot.slane %v8228_v52, 11  ;;  %v8235_v18 = vrot.slane %v8233_v33, 7  ;;  %v8242_v44 = vshrl.u32 %v17431_v26, 16  ;;  %v8245_v48 = vshll.u32 %v17431_v26, 16 }
 0x34d   : > { %13932 = vmatmul.mubr.bf16.gmra.mxu0 %v12488_v54  ;;  %v7539_v7 = vsel %vm15206_vm5, %v7534_v22, %v7538_v38  ;;  %v7544_v34 = vrot.slane %v7543_v53, 4  ;;  %v8250_v28 = vshrl.u32 %v7916_v62, 16  ;;  %v8255_v27 = vshrl.u32 %v17436_v6, 16  ;;  %v14518_v38 = vld [vmem:[#allocation2 + $0x38] sm:$0xf] }
 0x34e   : > { %v8238_v32 = vor.u32 %v8236_v23, %v8235_v18  ;;  %v8240_v19 = vrot.slane %v8235_v18, 4  ;;  %v8244_v42 = vrot.slane %v8242_v44, 7  ;;  %v8258_v56 = vshll.u32 %v17436_v6, 16  ;;  %v8948_v22 = vld [vmem:[#allocation2 + $0x38] sm:$0xf] }
 0x34f   : > { %v7549_v16 = vsel %vm15206_vm5, %v7544_v34, %v7548_v17  ;;  %v12474_v14 = vrot.slane %v8250_v28, 11  ;;  %v8257_v30 = vrot.slane %v8255_v27, 7  ;;  %v8264_v29 = vshrl.u32 %v17441_v47, 16  ;;  %v8949_v28 = vld [vmem:[#allocation2 + $0x3c] sm:$0xf] }
 0x350   : > { %v12450_v59 = vcombine.low %v7539_v7, %v7549_v16  ;;  %v8239_v49 = vsel %vm14892_vm2, %v12473_v20, %v8238_v32  ;;  %v8247_v61 = vor.u32 %v8245_v48, %v8244_v42  ;;  %v8267_v0 = vshll.u32 %v17441_v47, 16  ;;  %v14521_v42 = vld [vmem:[#allocation2 + $0x54] sm:$0xf] }
 0x351   : > { %v8260_v43 = vor.u32 %v8258_v56, %v8257_v30  ;;  %v8262_v35 = vrot.slane %v8257_v30, 4  ;;  %v8266_v2 = vrot.slane %v8264_v29, 7  ;;  %v12500_v62 = vcombine.low %v14518_v38, %v14519_v37  ;;  %v8951_v30 = vld [vmem:[#allocation2 + $0x50] sm:$0xf]  ;;  %v8952_v37 = vld [vmem:[#allocation2 + $0x54] sm:$0xf] }
 0x352   : > { %13888 = vmatmul.mubr.bf16.gmra.mxu1 %v12450_v59  ;;  %v8248_v17 = vsel %vm14892_vm2, %v8240_v19, %v8247_v61  ;;  %v8994_v52 = vshrl.u32 %v8945_v46, 16  ;;  %v8997_v33 = vshll.u32 %v8945_v46, 16  ;;  %v9003_v54 = vshll.u32 %v8946_v40, 16  ;;  %v14520_v19 = vld [vmem:[#allocation2 + $0x50] sm:$0xf] }
 0x353   : > { %v12489_v53 = vcombine.low %v8239_v49, %v8248_v17  ;;  %13955 = vmatprep.mubr.bf16.mxu1 %v12499_v60  ;;  %v8261_v23 = vsel %vm14892_vm2, %v12474_v14, %v8260_v43  ;;  %v8269_v20 = vor.u32 %v8267_v0, %v8266_v2  ;;  %v9007_v18 = vshrl.u32 %v8946_v40, 16  ;;  %v14523_v2 = vld [vmem:[#allocation2 + $0x6c] sm:$0xf] }
 0x354   : > { %v8996_v44 = vrot.slane %v8994_v52, 4  ;;  %v8999_v48 = vrot.slane %v8997_v33, 5  ;;  %v9005_v7 = vrot.slane %v9003_v54, 5  ;;  %v9013_v34 = vshll.u32 %v8947_v45, 16  ;;  %v14443_v45 = vld [vmem:[#allocation8 + $0x1b0] sm:$0xff]  }
 0x355   : > { %13935 = vmatprep.mubr.bf16.mxu0 %v12489_v53  ;;  %v8270_v27 = vsel %vm14892_vm2, %v8262_v35, %v8269_v20  ;;  %v9009_v32 = vrot.slane %v9007_v18, 4  ;;  %v12501_v56 = vcombine.low %v14520_v19, %v14521_v42  ;;  %v9018_v12 = vshrl.u32 %v8948_v22, 16  ;;  %v17462_v35 = vld [vmem:[#allocation2 + $0x68] sm:$0xf]  ;;  %v8953_v20 = vld [vmem:[#allocation2 + $0x58] sm:$0x1] }
 0x356   : > { %v12490_v60 = vcombine.low %v8261_v23, %v8270_v27  ;;  %v9000_v46 = vor.u32 %v8999_v48, %v8996_v44  ;;  %v9015_v16 = vrot.slane %v9013_v34, 5  ;;  %v9021_v14 = vshll.u32 %v8948_v22, 16  ;;  %v8954_v27 = vld [vmem:[#allocation2 + $0x68] sm:$0xf] }
 0x357   : > { %v9010_v29 = vor.u32 %v9009_v32, %v9005_v7  ;;  %v9020_v40 = vrot.slane %v9018_v12, 4  ;;  %v9027_v59 = vshll.u32 %v8949_v28, 16  ;;  %v9031_v49 = vshrl.u32 %v8949_v28, 16  ;;  %v14446_v12 = vld [vmem:[#allocation8 + $0x1a8] sm:$0xff]  }
 0x358   : > { %13936 = vmatmul.mubr.bf16.gmra.mxu0 %v12490_v60  ;;  %v9001_v61 = vrot.slane %v9000_v46, 4  ;;  %v9023_v0 = vrot.slane %v9021_v14, 5  ;;  %v9037_v43 = vshll.u32 %v8950_v55, 16  ;;  %v12502_v38 = vcombine.low %v17462_v35, %v14523_v2  ;;  %v8955_v55 = vld [vmem:[#allocation2 + $0x6c] sm:$0xf] }
 0x359   : > { %v9011_v17 = vrot.slane %v9010_v29, 4  ;;  %v9029_v52 = vrot.slane %v9027_v59, 5  ;;  %v9033_v33 = vrot.slane %v9031_v49, 4  ;;  %v9042_v54 = vshrl.u32 %v8951_v30, 16  ;;  %v8956_v49 = vld [vmem:[#allocation2 + $0x70] sm:$0x1] }
 0x35a   : > { %13956 = vmatmul.mubr.bf16.vlgmr.msra.gmra.mxu1 %v12500_v62  ;;  %v9006_v22 = vsel %vm15206_vm5, %v9001_v61, %v9005_v7  ;;  %v9024_v53 = vor.u32 %v9023_v0, %v9020_v40  ;;  %v9039_v23 = vrot.slane %v9037_v43, 5  ;;  %v9045_v18 = vshll.u32 %v8951_v30, 16 }
 0x35b   : > { %v9016_v44 = vsel %vm15206_vm5, %v9011_v17, %v9015_v16  ;;  %13959 = vmatprep.mubr.bf16.mxu1 %v12501_v56  ;;  %14036 = vmatpush3.bf16.msra.mxu1 %v17283_v31  ;;  %v9034_v48 = vor.u32 %v9033_v33, %v9029_v52  ;;  %v9044_v34 = vrot.slane %v9042_v54, 4  ;;  %v9051_v28 = vshll.u32 %v8952_v37, 16  ;;  %v17470_v32 = vpop.f32.mrf.mxu1  ;;  %v14524_v16 = vld [vmem:[#allocation2 + $0x80] sm:$0xf]  ;;  %v14525_v56 = vld [vmem:[#allocation2 + $0x84] sm:$0xf] }
 0x35c   : > { %v12523_v62 = vcombine.low %v9006_v22, %v9016_v44  ;;  %v9025_v19 = vrot.slane %v9024_v53, 4  ;;  %v9047_v42 = vrot.slane %v9045_v18, 5  ;;  %v9055_v7 = vshrl.u32 %v8952_v37, 16  ;;  %14037 = vmatprep.subr.bf16.mxu1 %v14443_v45  ;;  %v8957_v37 = vld [vmem:[#allocation2 + $0x80] sm:$0xf] }
 0x35d   : > { %v9035_v60 = vrot.slane %v9034_v48, 4  ;;  %v9053_v46 = vrot.slane %v9051_v28, 5  ;;  %v9061_v14 = vshll.u32 %v8953_v20, 16  ;;  %v12503_v30 = vcombine.low %v14524_v16, %v14525_v56  ;;  %v17472_v31 = vpop.f32.mrf.mxu1  ;;  %v8958_v20 = vld [vmem:[#allocation2 + $0x84] sm:$0xf] }
 0x35e   : > { %14003 = vmatprep.mubr.bf16.mxu0 %v12523_v62  ;;  %v9030_v29 = vsel %vm15206_vm5, %v9025_v19, %v9029_v52  ;;  %v9048_v40 = vor.u32 %v9047_v42, %v9044_v34  ;;  %v9057_v59 = vrot.slane %v9055_v7, 4  ;;  %v9066_v61 = vshrl.u32 %v8954_v27, 16  ;;  %v14449_v52 = vld [vmem:[#allocation8 + $0x1a0] sm:$0xff]   ;;  %v8959_v16 = vld [vmem:[#allocation2 + $0x88] sm:$0x1] }
 0x35f   : > { %v9040_v0 = vsel %vm15206_vm5, %v9035_v60, %v9039_v23  ;;  %v9063_v43 = vrot.slane %v9061_v14, 5  ;;  %14038 = vmatpush3.bf16.msra.mxu1 %v14443_v45  ;;  %v9069_v35 = vshll.u32 %v8954_v27, 16  ;;  %v9075_v2 = vshll.u32 %v8955_v55, 16  ;;  %v17478_v17 = vpop.f32.mrf.mxu1  ;;  %v14458_v23 = vld [vmem:[#allocation8 + $0x1f0] sm:$0xff]   ;;  %v14526_v27 = vld [vmem:[#allocation2 + $0x98] sm:$0xf] }
 0x360   : > { %v12524_v33 = vcombine.low %v9030_v29, %v9040_v0  ;;  %v9049_v54 = vrot.slane %v9048_v40, 4  ;;  %v9058_v22 = vor.u32 %v9057_v59, %v9053_v46  ;;  %v9068_v53 = vrot.slane %v9066_v61, 4  ;;  %14039 = vmatprep.subr.bf16.mxu1 %v14446_v12  ;;  %v8960_v59 = vld [vmem:[#allocation2 + $0x98] sm:$0xf] }
 0x361   : > { %v9071_v18 = vrot.slane %v9069_v35, 5  ;;  %v17480_v44 = vrot.slane %v9075_v2, 5  ;;  %v9079_v48 = vshrl.u32 %v8955_v55, 16  ;;  %v9085_v34 = vshll.u32 %v8956_v49, 16  ;;  %v17487_v56 = vpop.f32.mrf.mxu1  ;;  %v8961_v35 = vld [vmem:[#allocation2 + $0x9c] sm:$0xf] }
 0x362   : > { %14004 = vmatmul.mubr.bf16.vlgmr.msra.gmra.mxu0 %v12524_v33  ;;  %13960 = vmatmul.mubr.bf16.gmra.mxu1 %v12502_v38  ;;  %v9054_v45 = vsel %vm15206_vm5, %v9049_v54, %v9053_v46  ;;  %v9059_v28 = vrot.slane %v9058_v22, 4  ;;  %v12504_v62 = vcombine.low %v14526_v27, %v17274_v41  ;;  %v9090_v19 = vshrl.u32 %v8957_v37, 16  ;;  %v17485_v42 = vpop.f32.mrf.mxu0  ;;  %v14452_v41 = vld [vmem:[#allocation8 + $0x198] sm:$0xff]   ;;  %v14459_v2 = vld [vmem:[#allocation8 + $0x1e8] sm:$0xff]  }
 0x363   : > { %13963 = vmatprep.mubr.bf16.mxu1 %v12503_v30  ;;  %v9072_v7 = vor.u32 %v9071_v18, %v9068_v53  ;;  %v9081_v60 = vrot.slane %v9079_v48, 4  ;;  %v9087_v14 = vrot.slane %v9085_v34, 5  ;;  %v9093_v55 = vshll.u32 %v8957_v37, 16  ;;  %14040 = vmatpush3.bf16.msra.mxu1 %v14446_v12 }
 0x364   : > { %v9064_v38 = vsel %vm15206_vm5, %v9059_v28, %v9063_v43  ;;  %v9092_v46 = vrot.slane %v9090_v19, 4  ;;  %v9099_v29 = vshll.u32 %v8958_v20, 16  ;;  %v9103_v40 = vshrl.u32 %v8958_v20, 16  ;;  %14041 = vmatprep.subr.bf16.mxu1 %v14449_v52  ;;  %14084 = vmatpush3.bf16.msra.mxu0 %v17304_v11  ;;  %v17492_v30 = vpop.f32.mrf.mxu0  ;;  %v8962_v28 = vld [vmem:[#allocation2 + $0xa0] sm:$0x1] }
 0x365   : > { %v12525_v49 = vcombine.low %v9054_v45, %v9064_v38  ;;  %v9073_v61 = vrot.slane %v9072_v7, 4  ;;  %v9082_v0 = vor.u32 %v9081_v60, %v17480_v44  ;;  %v9095_v12 = vrot.slane %v9093_v55, 5  ;;  %14085 = vmatprep.subr.bf16.mxu0 %v14458_v23 }
 0x366   : > { %v9101_v37 = vrot.slane %v9099_v29, 5  ;;  %v9105_v43 = vrot.slane %v9103_v40, 4  ;;  %v9109_v33 = vshll.u32 %v8959_v16, 16  ;;  %v12505_v54 = vcombine.low %v17285_v25, %v17289_v58  ;;  %v17497_v22 = vpop.f32.mrf.mxu0  ;;  %v14456_v25 = vld [vmem:[#allocation8 + $0x190] sm:$0xff]   ;;  %v8963_v16 = vld [vmem:[#allocation2 + $0xb0] sm:$0xf] }
 0x367   : > { %14007 = vmatprep.mubr.bf16.mxu0 %v12525_v49  ;;  %v9078_v11 = vsel %vm15206_vm5, %v9073_v61, %v17480_v44  ;;  %v9083_v53 = vrot.slane %v9082_v0, 4  ;;  %v9096_v20 = vor.u32 %v9095_v12, %v9092_v46  ;;  %v9114_v18 = vshrl.u32 %v8960_v59, 16  ;;  %14042 = vmatpush3.bf16.msra.mxu1 %v14449_v52  ;;  %v17502_v48 = vpop.f32.mrf.mxu1  ;;  %v8964_v40 = vld [vmem:[#allocation2 + $0xb4] sm:$0xf] }
 0x368   : > { %v9106_v34 = vor.u32 %v9105_v43, %v9101_v37  ;;  %v9111_v45 = vrot.slane %v9109_v33, 5  ;;  %v9117_v27 = vshll.u32 %v8960_v59, 16  ;;  %v9123_v19 = vshll.u32 %v8961_v35, 16  ;;  %14043 = vmatprep.subr.bf16.mxu1 %v14452_v41  ;;  %14086 = vmatpush3.bf16.msra.mxu0 %v14458_v23  ;;  %v14463_v59 = vld [vmem:[#allocation8 + $0x1e0] sm:$0xff]   ;;  %v17508_v49 = vpop.f32.mrf.mxu0  ;;  %v8965_v43 = vld [vmem:[#allocation2 + $0xb8] sm:$0x1] }
 0x369   : > { %v9088_v58 = vsel %vm15206_vm5, %v9083_v53, %v9087_v14  ;;  %v9097_v7 = vrot.slane %v9096_v20, 4  ;;  %v9116_v60 = vrot.slane %v9114_v18, 4  ;;  %v9127_v44 = vshrl.u32 %v8961_v35, 16  ;;  %14087 = vmatprep.subr.bf16.mxu0 %v14459_v2  ;;  %v17506_v55 = vpop.f32.mrf.mxu1  ;;  %v14461_v53 = vld [vmem:[#allocation8 + $0x188] sm:$0xff]  }
 0x36a   : > { %v12526_v52 = vcombine.low %v9078_v11, %v9088_v58  ;;  %13964 = vmatmul.mubr.bf16.gmra.mxu1 %v12504_v62  ;;  %v9107_v38 = vrot.slane %v9106_v34, 4  ;;  %v9119_v46 = vrot.slane %v9117_v27, 5  ;;  %v9125_v29 = vrot.slane %v9123_v19, 5  ;;  %v8966_v34 = vld [vmem:[#allocation2 + $0xc8] sm:$0xf] }
 0x36b   : > { %v9102_v23 = vsel %vm15206_vm5, %v9097_v7, %v9101_v37  ;;  %13967 = vmatprep.mubr.bf16.mxu1 %v12505_v54  ;;  %v9129_v14 = vrot.slane %v9127_v44, 4  ;;  %v9133_v61 = vshll.u32 %v8962_v28, 16  ;;  %v12506_v0 = vcombine.low %v17308_v15, %v17313_v1  ;;  %14044 = vmatpush3.bf16.msra.mxu1 %v14452_v41  ;;  %v17514_v12 = vpop.f32.mrf.mxu1  ;;  %v8967_v28 = vld [vmem:[#allocation2 + $0xcc] sm:$0xf] }
 0x36c   : > { %14008 = vmatmul.mubr.bf16.gmra.mxu0 %v12526_v52  ;;  %v9112_v62 = vsel %vm15206_vm5, %v9107_v38, %v9111_v45  ;;  %v9120_v35 = vor.u32 %v9119_v46, %v9116_v60  ;;  %v9138_v33 = vshrl.u32 %v8963_v16, 16  ;;  %v9141_v11 = vshll.u32 %v8963_v16, 16  ;;  %14045 = vmatprep.subr.bf16.mxu1 %v14456_v25  ;;  %v14464_v19 = vld [vmem:[#allocation8 + $0x1d8] sm:$0xff]   ;;  %v8968_v46 = vld [vmem:[#allocation2 + $0xd0] sm:$0x1] }
 0x36d   : > { %v12527_v37 = vcombine.low %v9102_v23, %v9112_v62  ;;  %v9130_v54 = vor.u32 %v9129_v14, %v9125_v29  ;;  %v9135_v20 = vrot.slane %v9133_v61, 5  ;;  %v9147_v18 = vshll.u32 %v8964_v40, 16  ;;  %14088 = vmatpush3.bf16.msra.mxu0 %v14459_v2  ;;  %v17518_v45 = vpop.f32.mrf.mxu1  ;;  %v17520_v58 = vpop.f32.mrf.mxu0  ;;  %v14466_v23 = vld [vmem:[#allocation8 + $0x180] sm:$0xff]  }
 0x36e   : > { %v9121_v15 = vrot.slane %v9120_v35, 4  ;;  %v9140_v1 = vrot.slane %v9138_v33, 4  ;;  %v9143_v41 = vrot.slane %v9141_v11, 5  ;;  %v9151_v27 = vshrl.u32 %v8964_v40, 16  ;;  %14089 = vmatprep.subr.bf16.mxu0 %v14463_v59  ;;  %v8969_v33 = vld [vmem:[#allocation2 + $0xe0] sm:$0xf] }
 0x36f   : > { %14011 = vmatprep.mubr.bf16.mxu0 %v12527_v37  ;;  %v9131_v7 = vrot.slane %v9130_v54, 4  ;;  %v9149_v60 = vrot.slane %v9147_v18, 5  ;;  %v9157_v44 = vshll.u32 %v8965_v43, 16  ;;  %v12507_v16 = vcombine.low %v17331_v5, %v17333_v8  ;;  %14046 = vmatpush3.bf16.msra.mxu1 %v14456_v25  ;;  %v17526_v14 = vpop.f32.mrf.mxu0  ;;  %v14467_v11 = vld [vmem:[#allocation8 + $0x1d0] sm:$0xff]  }
 0x370   : > { %v9126_v2 = vsel %vm15206_vm5, %v9121_v15, %v9125_v29  ;;  %v9144_v52 = vor.u32 %v9143_v41, %v9140_v1  ;;  %v9153_v38 = vrot.slane %v9151_v27, 4  ;;  %v9162_v40 = vshrl.u32 %v8966_v34, 16  ;;  %14047 = vmatprep.subr.bf16.mxu1 %v14461_v53 }
 0x371   : > { %v9136_v61 = vsel %vm15206_vm5, %v9131_v7, %v9135_v20  ;;  %v9159_v62 = vrot.slane %v9157_v44, 5  ;;  %v9165_v35 = vshll.u32 %v8966_v34, 16  ;;  %v9171_v43 = vshll.u32 %v8967_v28, 16  ;;  %14090 = vmatpush3.bf16.msra.mxu0 %v14463_v59  ;;  %v17532_v54 = vpop.f32.mrf.mxu0  ;;  %v8970_v34 = vld [vmem:[#allocation2 + $0xe4] sm:$0xf]  ;;  %v17538_v7 = vld [vmem:[#allocation8 + $0x238] sm:$0xff]  }
 0x372   : > { %v12528_v5 = vcombine.low %v9126_v2, %v9136_v61  ;;  %13968 = vmatmul.mubr.bf16.gmra.mxu1 %v12506_v0  ;;  %v9145_v8 = vrot.slane %v9144_v52, 4  ;;  %v9154_v25 = vor.u32 %v9153_v38, %v9149_v60  ;;  %v9164_v29 = vrot.slane %v9162_v40, 4  ;;  %14091 = vmatprep.subr.bf16.mxu0 %v14464_v19  ;;  %v17530_v37 = vpop.f32.mrf.mxu1  ;;  %v8971_v52 = vld [vmem:[#allocation2 + $0xe8] sm:$0x1]  ;;  %v8972_v61 = vld [vmem:[#allocation2 + $0xf8] sm:$0xf] }
 0x373   : > { %13971 = vmatprep.mubr.bf16.mxu1 %v12507_v16  ;;  %v9167_v18 = vrot.slane %v9165_v35, 5  ;;  %v9173_v15 = vrot.slane %v9171_v43, 5  ;;  %v9175_v20 = vshrl.u32 %v8967_v28, 16  ;;  %v9181_v1 = vshll.u32 %v8968_v46, 16  ;;  %14048 = vmatpush3.bf16.msra.mxu1 %v14461_v53  ;;  %v17546_v35 = vpop.f32.mrf.mxu0 }
 0x374   : > { %14012 = vmatmul.mubr.bf16.gmra.mxu0 %v12528_v5  ;;  %v9150_v59 = vsel %vm15206_vm5, %v9145_v8, %v9149_v60  ;;  %v9155_v0 = vrot.slane %v9154_v25, 4  ;;  %v12508_v41 = vcombine.low %v17347_v9, %v17349_v13  ;;  %v9186_v27 = vshrl.u32 %v8969_v33, 16  ;;  %14049 = vmatprep.subr.bf16.mxu1 %v14466_v23  ;;  %v17540_v44 = vpop.f32.mrf.mxu1  ;;  %v14468_v9 = vld [vmem:[#allocation8 + $0x1c8] sm:$0xff]  }
 0x375   : > { %v9168_v16 = vor.u32 %v9167_v18, %v9164_v29  ;;  %v9177_v2 = vrot.slane %v9175_v20, 4  ;;  %v9183_v28 = vrot.slane %v9181_v1, 5  ;;  %v9189_v38 = vshll.u32 %v8969_v33, 16  ;;  %14092 = vmatpush3.bf16.msra.mxu0 %v14464_v19  ;;  %v8973_v29 = vld [vmem:[#allocation2 + $0xfc] sm:$0xf] }
 0x376   : > { %v9160_v53 = vsel %vm15206_vm5, %v9155_v0, %v9159_v62  ;;  %v9188_v60 = vrot.slane %v9186_v27, 4  ;;  %v9195_v46 = vshll.u32 %v8970_v34, 16  ;;  %v9199_v40 = vshrl.u32 %v8970_v34, 16  ;;  %14093 = vmatprep.subr.bf16.mxu0 %v14467_v11  ;;  %v17544_v13 = vpop.f32.mrf.mxu1 }
 0x377   : > { %v12529_v43 = vcombine.low %v9150_v59, %v9160_v53  ;;  %v9169_v5 = vrot.slane %v9168_v16, 4  ;;  %v9178_v8 = vor.u32 %v9177_v2, %v9173_v15  ;;  %v9191_v25 = vrot.slane %v9189_v38, 5  ;;  %14050 = vmatpush3.bf16.msra.mxu1 %v14466_v23  ;;  %v8974_v16 = vld [vmem:[#allocation2 + $0x100] sm:$0x1] }
 0x378   : > { %v9197_v19 = vrot.slane %v9195_v46, 5  ;;  %v9201_v33 = vrot.slane %v9199_v40, 4  ;;  %v9205_v18 = vshll.u32 %v8971_v52, 16  ;;  %v12509_v62 = vcombine.low %v17363_v63, %v17365_v4  ;;  %14131 = vmatprep.subr.bf16.mxu1 %v17538_v7  ;;  %v17551_v20 = vpop.f32.mrf.mxu1  ;;  %v14471_v63 = vld [vmem:[#allocation8 + $0x1c0] sm:$0xff]  }
 0x379   : > { %14015 = vmatprep.mubr.bf16.mxu0 %v12529_v43  ;;  %v9174_v1 = vsel %vm15206_vm5, %v9169_v5, %v9173_v15  ;;  %v9179_v34 = vrot.slane %v9178_v8, 4  ;;  %v9192_v59 = vor.u32 %v9191_v25, %v9188_v60  ;;  %v9210_v0 = vshrl.u32 %v8972_v61, 16  ;;  %14094 = vmatpush3.bf16.msra.mxu0 %v14467_v11  ;;  %v8975_v60 = vld [vmem:[#allocation2 + $0x110] sm:$0xf]  ;;  %v8976_v5 = vld [vmem:[#allocation2 + $0x114] sm:$0xf] }
 0x37a   : > { %13972 = vmatmul.mubr.bf16.gmra.mxu1 %v12508_v41  ;;  %v9202_v23 = vor.u32 %v9201_v33, %v9197_v19  ;;  %v9207_v27 = vrot.slane %v9205_v18, 5  ;;  %v9213_v2 = vshll.u32 %v8972_v61, 16  ;;  %v9219_v52 = vshll.u32 %v8973_v29, 16  ;;  %14095 = vmatprep.subr.bf16.mxu0 %v14468_v9  ;;  %v17555_v4 = vpop.f32.mrf.mxu0 }
 0x37b   : > { %v9184_v38 = vsel %vm15206_vm5, %v9179_v34, %v9183_v28  ;;  %v9193_v53 = vrot.slane %v9192_v59, 4  ;;  %13975 = vmatprep.mubr.bf16.mxu1 %v12509_v62  ;;  %v9212_v15 = vrot.slane %v9210_v0, 4  ;;  %v9223_v46 = vshrl.u32 %v8973_v29, 16 }
 0x37c   : > { %v12530_v40 = vcombine.low %v9174_v1, %v9184_v38  ;;  %v9203_v11 = vrot.slane %v9202_v23, 4  ;;  %v9215_v41 = vrot.slane %v9213_v2, 5  ;;  %v9221_v43 = vrot.slane %v9219_v52, 5  ;;  %v17559_v8 = vpop.f32.mrf.mxu1  ;;  %v17561_v61 = vpop.f32.mrf.mxu0  ;;  %v8977_v1 = vld [vmem:[#allocation2 + $0x118] sm:$0x1] }
 0x37d   : > { %v9198_v25 = vsel %vm15206_vm5, %v9193_v53, %v9197_v19  ;;  %v9225_v33 = vrot.slane %v9223_v46, 4  ;;  %v9229_v18 = vshll.u32 %v8974_v16, 16  ;;  %v12510_v28 = vcombine.low %v17377_v57, %v17383_v39  ;;  %14096 = vmatpush3.bf16.msra.mxu0 %v14468_v9  ;;  %v8978_v38 = vld [vmem:[#allocation2 + $0x128] sm:$0xf]  ;;  %v8979_v46 = vld [vmem:[#allocation2 + $0x12c] sm:$0xf] }
 0x37e   : > { %14016 = vmatmul.mubr.bf16.gmra.mxu0 %v12530_v40  ;;  %v9208_v29 = vsel %vm15206_vm5, %v9203_v11, %v9207_v27  ;;  %v9216_v62 = vor.u32 %v9215_v41, %v9212_v15  ;;  %v9234_v34 = vshrl.u32 %v8975_v60, 16  ;;  %v9237_v59 = vshll.u32 %v8975_v60, 16  ;;  %14097 = vmatprep.subr.bf16.mxu0 %v14471_v63  ;;  %v17569_v0 = vpop.f32.mrf.mxu1  ;;  %v17571_v23 = vpop.f32.mrf.mxu0 }
 0x37f   : > { %v12531_v19 = vcombine.low %v9198_v25, %v9208_v29  ;;  %v9226_v2 = vor.u32 %v9225_v33, %v9221_v43  ;;  %v9231_v16 = vrot.slane %v9229_v18, 5  ;;  %v9243_v52 = vshll.u32 %v8976_v5, 16 }
 0x380   : > { %v9217_v57 = vrot.slane %v9216_v62, 4  ;;  %v9236_v39 = vrot.slane %v9234_v34, 4  ;;  %v9239_v9 = vrot.slane %v9237_v59, 5  ;;  %v9247_v53 = vshrl.u32 %v8976_v5, 16  ;;  %v17573_v27 = vpop.f32.mrf.mxu1  ;;  %v17577_v41 = vpop.f32.mrf.mxu0  ;;  %v8980_v5 = vld [vmem:[#allocation2 + $0x130] sm:$0x1] }
 0x381   : > { %19194 = vst [vmem:[#allocation41_spill] sm:$0xff] %v17573_v27  ;;  %14019 = vmatprep.mubr.bf16.mxu0 %v12531_v19  ;;  %v9227_v15 = vrot.slane %v9226_v2, 4  ;;  %v9245_v60 = vrot.slane %v9243_v52, 5  ;;  %v9253_v40 = vshll.u32 %v8977_v1, 16  ;;  %v12511_v11 = vcombine.low %v17395_v21, %v17399_v51  ;;  %14098 = vmatpush3.bf16.msra.mxu0 %v14471_v63  ;;  %v8981_v19 = vld [vmem:[#allocation2 + $0x140] sm:$0xf] }
 0x382   : > { %v9222_v25 = vsel %vm15206_vm5, %v9217_v57, %v9221_v43  ;;  %13976 = vmatmul.mubr.bf16.gmra.mxu1 %v12510_v28  ;;  %v9240_v33 = vor.u32 %v9239_v9, %v9236_v39  ;;  %v9249_v18 = vrot.slane %v9247_v53, 4  ;;  %v9258_v29 = vshrl.u32 %v8978_v38, 16  ;;  %v17583_v21 = vpop.f32.mrf.mxu1  ;;  %v8982_v9 = vld [vmem:[#allocation2 + $0x144] sm:$0xf] }
 0x383   : > { %v9232_v62 = vsel %vm15206_vm5, %v9227_v15, %v9231_v16  ;;  %v9255_v34 = vrot.slane %v9253_v40, 5  ;;  %13979 = vmatprep.mubr.bf16.mxu1 %v12511_v11  ;;  %v9261_v1 = vshll.u32 %v8978_v38, 16  ;;  %v9267_v59 = vshll.u32 %v8979_v46, 16  ;;  %19195 = vst [vmem:[#allocation43_spill] sm:$0xff] %v17583_v21 }
 0x384   : > { %v12532_v51 = vcombine.low %v9222_v25, %v9232_v62  ;;  %v9241_v63 = vrot.slane %v9240_v33, 4  ;;  %v9250_v2 = vor.u32 %v9249_v18, %v9245_v60  ;;  %v9260_v52 = vrot.slane %v9258_v29, 4  ;;  %v8983_v18 = vld [vmem:[#allocation2 + $0x148] sm:$0x1] }
 0x385   : > { %v9263_v43 = vrot.slane %v9261_v1, 5  ;;  %v9269_v28 = vrot.slane %v9267_v59, 5  ;;  %v9271_v57 = vshrl.u32 %v8979_v46, 16  ;;  %v9277_v39 = vshll.u32 %v8980_v5, 16  ;;  %v17585_v53 = vpop.f32.mrf.mxu0 }
 0x386   : > { %14020 = vmatmul.mubr.bf16.gmra.mxu0 %v12532_v51  ;;  %v9246_v16 = vsel %vm15206_vm5, %v9241_v63, %v9245_v60  ;;  %v9251_v38 = vrot.slane %v9250_v2, 4  ;;  %v12512_v15 = vcombine.low %v17409_v3, %v17415_v50  ;;  %v9282_v40 = vshrl.u32 %v8981_v19, 16  ;;  %v8984_v51 = vld [vmem:[#allocation2 + $0x158] sm:$0xf] }
 0x387   : > { %v9264_v11 = vor.u32 %v9263_v43, %v9260_v52  ;;  %v9273_v25 = vrot.slane %v9271_v57, 4  ;;  %v9279_v33 = vrot.slane %v9277_v39, 5  ;;  %v9285_v29 = vshll.u32 %v8981_v19, 16  ;;  %v17591_v62 = vpop.f32.mrf.mxu1  ;;  %v17593_v46 = vpop.f32.mrf.mxu0  ;;  %v8985_v52 = vld [vmem:[#allocation2 + $0x15c] sm:$0xf] }
 0x388   : > { %v9256_v5 = vsel %vm15206_vm5, %v9251_v38, %v9255_v34  ;;  %v9284_v1 = vrot.slane %v9282_v40, 4  ;;  %v9291_v59 = vshll.u32 %v8982_v9, 16  ;;  %v9295_v60 = vshrl.u32 %v8982_v9, 16 }
 0x389   : > { %v12533_v63 = vcombine.low %v9246_v16, %v9256_v5  ;;  %v9265_v2 = vrot.slane %v9264_v11, 4  ;;  %v9274_v3 = vor.u32 %v9273_v25, %v9269_v28  ;;  %v9287_v50 = vrot.slane %v9285_v29, 5  ;;  %v17597_v43 = vpop.f32.mrf.mxu1  ;;  %v17599_v57 = vpop.f32.mrf.mxu0  ;;  %v8986_v5 = vld [vmem:[#allocation2 + $0x160] sm:$0x1] }
 0x38a   : > { %19196 = vst [vmem:[#allocation49_spill] sm:$0xff] %v17597_v43  ;;  %19197 = vst [vmem:[#allocation52_spill] sm:$0xff] %v17599_v57  ;;  %13980 = vmatmul.mubr.bf16.gmra.mxu1 %v12512_v15  ;;  %v9293_v19 = vrot.slane %v9291_v59, 5  ;;  %v9297_v39 = vrot.slane %v9295_v60, 4  ;;  %v9301_v21 = vshll.u32 %v8983_v18, 16  ;;  %v12513_v34 = vcombine.low %v17425_v24, %v17431_v26 }
 0x38b   : > { %14023 = vmatprep.mubr.bf16.mxu0 %v12533_v63  ;;  %v9270_v9 = vsel %vm15206_vm5, %v9265_v2, %v9269_v28  ;;  %v9275_v16 = vrot.slane %v9274_v3, 4  ;;  %v9288_v38 = vor.u32 %v9287_v50, %v9284_v1  ;;  %v9306_v40 = vshrl.u32 %v8984_v51, 16  ;;  %v17605_v11 = vpop.f32.mrf.mxu1  ;;  %v8987_v63 = vld [vmem:[#allocation2 + $0x170] sm:$0xf]  ;;  %v17609_v57 = vpop.f32.mrf.mxu0  ;;  %v8988_v50 = vld [vmem:[#allocation2 + $0x174] sm:$0xf] }
 0x38c   : > { %19198 = vst [vmem:[#allocation51_spill] sm:$0xff] %v17605_v11  ;;  %v9298_v25 = vor.u32 %v9297_v39, %v9293_v19  ;;  %v9303_v29 = vrot.slane %v9301_v21, 5  ;;  %13983 = vmatprep.mubr.bf16.mxu1 %v12513_v34  ;;  %v9309_v15 = vshll.u32 %v8984_v51, 16  ;;  %v9315_v59 = vshll.u32 %v8985_v52, 16  ;;  %19199 = vst [vmem:[#allocation53_spill] sm:$0xff] %v17609_v57 }
 0x38d   : > { %v9280_v18 = vsel %vm15206_vm5, %v9275_v16, %v9279_v33  ;;  %v9289_v60 = vrot.slane %v9288_v38, 4  ;;  %v9308_v24 = vrot.slane %v9306_v40, 4  ;;  %v9319_v26 = vshrl.u32 %v8985_v52, 16  ;;  %v17615_v33 = vpop.f32.mrf.mxu1  ;;  %v8992_v57 = vld [vmem:[#allocation2 + $0x190] sm:$0x1] }
 0x38e   : > { %v12534_v28 = vcombine.low %v9270_v9, %v9280_v18  ;;  %v9299_v1 = vrot.slane %v9298_v25, 4  ;;  %v9311_v2 = vrot.slane %v9309_v15, 5  ;;  %v9317_v3 = vrot.slane %v9315_v59, 5  ;;  %19200 = vst [vmem:[#allocation34_spill] sm:$0xff] %v17615_v33  ;;  %v8989_v9 = vld [vmem:[#allocation2 + $0x178] sm:$0x1] }
 0x38f   : > { %v9294_v21 = vsel %vm15206_vm5, %v9289_v60, %v9293_v19  ;;  %v9321_v39 = vrot.slane %v9319_v26, 4  ;;  %v9325_v51 = vshll.u32 %v8986_v5, 16  ;;  %v12514_v34 = vcombine.low %v17436_v6, %v17441_v47  ;;  %v9699_v25 = vld [vmem:[#allocation2 + $0x34] sm:$0x8]  ;;  %v17619_v60 = vld [vmem:[#allocation2 + $0x38] sm:$0xf] }
 0x390   : > { %14024 = vmatmul.mubr.bf16.gmra.mxu0 %v12534_v28  ;;  %v9304_v52 = vsel %vm15206_vm5, %v9299_v1, %v9303_v29  ;;  %v9312_v16 = vor.u32 %v9311_v2, %v9308_v24  ;;  %v9330_v38 = vshrl.u32 %v8987_v63, 16  ;;  %v9333_v40 = vshll.u32 %v8987_v63, 16  ;;  %v17621_v5 = vpop.f32.mrf.mxu0  ;;  %v17629_v33 = vld [vmem:[#allocation2 + $0x3c] sm:$0xf]  ;;  %v17647_v11 = vld [vmem:[#allocation2 + $0x50] sm:$0xf] }
 0x391   : > { %v12535_v15 = vcombine.low %v9294_v21, %v9304_v52  ;;  %v9322_v59 = vor.u32 %v9321_v39, %v9317_v3  ;;  %v9327_v18 = vrot.slane %v9325_v51, 5  ;;  %v9339_v19 = vshll.u32 %v8988_v50, 16 }
 0x392   : > { %v9313_v6 = vrot.slane %v9312_v16, 4  ;;  %13984 = vmatmul.mubr.bf16.gmra.mxu1 %v12514_v34  ;;  %v9332_v47 = vrot.slane %v9330_v38, 4  ;;  %v9335_v26 = vrot.slane %v9333_v40, 5  ;;  %v9343_v28 = vshrl.u32 %v8988_v50, 16  ;;  %v17623_v63 = vpop.f32.mrf.mxu1  ;;  %v17625_v21 = vpop.f32.mrf.mxu0  ;;  %v8990_v16 = vld [vmem:[#allocation2 + $0x188] sm:$0xf] }
 0x393   : > { %14027 = vmatprep.mubr.bf16.mxu0 %v12535_v15  ;;  %v9323_v29 = vrot.slane %v9322_v59, 4  ;;  %v9341_v24 = vrot.slane %v9339_v19, 5  ;;  %v9349_v1 = vshll.u32 %v8989_v9, 16  ;;  %v9748_v2 = vshrl.u32 %v9699_v25, 16  ;;  %19201 = vst [vmem:[#allocation33_spill] sm:$0xff] %v17623_v63  ;;  %19202 = vst [vmem:[#allocation38_spill] sm:$0xff] %v17625_v21 }
 0x394   : > { %v9318_v39 = vsel %vm15206_vm5, %v9313_v6, %v9317_v3  ;;  %v9336_v51 = vor.u32 %v9335_v26, %v9332_v47  ;;  %v9345_v52 = vrot.slane %v9343_v28, 4  ;;  %v9753_v34 = vshrl.u32 %v17619_v60, 16  ;;  %v17635_v25 = vpop.f32.mrf.mxu1  ;;  %v17637_v15 = vpop.f32.mrf.mxu0  ;;  %v8991_v47 = vld [vmem:[#allocation2 + $0x18c] sm:$0xf] }
 0x395   : > { %v9328_v50 = vsel %vm15206_vm5, %v9323_v29, %v9327_v18  ;;  %v9351_v38 = vrot.slane %v9349_v1, 5  ;;  %v12547_v9 = vrot.slane %v9748_v2, 11  ;;  %v9756_v40 = vshll.u32 %v17619_v60, 16  ;;  %19203 = vst [vmem:[#allocation54_spill] sm:$0xff] %v17635_v25  ;;  %19204 = vst [vmem:[#allocation61_spill] sm:$0xff] %v17637_v15 }
 0x396   : > { %v12536_v59 = vcombine.low %v9318_v39, %v9328_v50  ;;  %v9337_v3 = vrot.slane %v9336_v51, 4  ;;  %v9346_v19 = vor.u32 %v9345_v52, %v9341_v24  ;;  %v9755_v6 = vrot.slane %v9753_v34, 7  ;;  %v17641_v29 = vpop.f32.mrf.mxu1  ;;  %v17643_v1 = vpop.f32.mrf.mxu0  ;;  %v9702_v34 = vld [vmem:[#allocation2 + $0x4c] sm:$0x8] }
 0x397   : > { %v9762_v26 = vshrl.u32 %v17629_v33, 16  ;;  %v9765_v28 = vshll.u32 %v17629_v33, 16  ;;  %v9354_v27 = vshrl.u32 %v8990_v16, 16  ;;  %v9357_v18 = vshll.u32 %v8990_v16, 16  ;;  %19205 = vst [vmem:[#allocation44_spill] sm:$0xff] %v17641_v29  ;;  %19206 = vst [vmem:[#allocation56_spill] sm:$0xff] %v17643_v1 }
 0x398   : > { %14028 = vmatmul.mubr.bf16.gmra.mxu0 %v12536_v59  ;;  %v9342_v2 = vsel %vm15206_vm5, %v9337_v3, %v9341_v24  ;;  %v9347_v39 = vrot.slane %v9346_v19, 4  ;;  %v9758_v51 = vor.u32 %v9756_v40, %v9755_v6  ;;  %v9760_v52 = vrot.slane %v9755_v6, 4  ;;  %v17649_v21 = vpop.f32.mrf.mxu1  ;;  %v17655_v3 = vld [vmem:[#allocation2 + $0x54] sm:$0xf] }
 0x399   : > { %v9764_v50 = vrot.slane %v9762_v26, 7  ;;  %v9356_v25 = vrot.slane %v9354_v27, 4  ;;  %v9359_v63 = vrot.slane %v9357_v18, 5  ;;  %v9363_v15 = vshll.u32 %v8991_v47, 16  ;;  %19207 = vst [vmem:[#allocation55_spill] sm:$0xff] %v17649_v21 }
 0x39a   : > { %v9352_v16 = vsel %vm15206_vm5, %v9347_v39, %v9351_v38  ;;  %v9759_v59 = vsel %vm14892_vm2, %v12547_v9, %v9758_v51  ;;  %v9367_v1 = vshrl.u32 %v8991_v47, 16  ;;  %v9373_v24 = vshll.u32 %v8992_v57, 16 }
 0x39b   : > { %v12537_v40 = vcombine.low %v9342_v2, %v9352_v16  ;;  %v9767_v19 = vor.u32 %v9765_v28, %v9764_v50  ;;  %v9360_v6 = vor.u32 %v9359_v63, %v9356_v25  ;;  %v9365_v27 = vrot.slane %v9363_v15, 5  ;;  %v17657_v26 = vpop.f32.mrf.mxu0  ;;  %v17659_v18 = vpop.f32.mrf.mxu1  ;;  %v9705_v63 = vld [vmem:[#allocation2 + $0x64] sm:$0x8]  ;;  %v17672_v50 = vld [vmem:[#allocation2 + $0x6c] sm:$0xf] }
 0x39c   : > { %19208 = vst [vmem:[#allocation70_spill] sm:$0xff] %v17659_v18  ;;  %v9369_v29 = vrot.slane %v9367_v1, 4  ;;  %v9375_v21 = vrot.slane %v9373_v24, 5  ;;  %v9770_v43 = vshrl.u32 %v9702_v34, 16  ;;  %v9775_v38 = vshrl.u32 %v17647_v11, 16 }
 0x39d   : > { %14031 = vmatprep.mubr.bf16.mxu0 %v12537_v40  ;;  %v9768_v9 = vsel %vm14892_vm2, %v9760_v52, %v9767_v19  ;;  %v9361_v57 = vrot.slane %v9360_v6, 4  ;;  %v9778_v47 = vshll.u32 %v17647_v11, 16  ;;  %v9784_v28 = vshrl.u32 %v17655_v3, 16  ;;  %v17666_v25 = vpop.f32.mrf.mxu0  ;;  %v17668_v15 = vpop.f32.mrf.mxu1  ;;  %v17670_v34 = vld [vmem:[#allocation2 + $0x68] sm:$0xf] }
 0x39e   : > { %19209 = vst [vmem:[#allocation58_spill] sm:$0xff] %v17666_v25  ;;  %19210 = vst [vmem:[#allocation57_spill] sm:$0xff] %v17668_v15  ;;  %v12563_v2 = vcombine.low %v9759_v59, %v9768_v9  ;;  %v9370_v1 = vor.u32 %v9369_v29, %v9365_v27  ;;  %v12548_v39 = vrot.slane %v9770_v43, 11  ;;  %v9777_v51 = vrot.slane %v9775_v38, 7 }
 0x39f   : > { %v9366_v52 = vsel %vm15206_vm5, %v9361_v57, %v9365_v27  ;;  %v9786_v16 = vrot.slane %v9784_v28, 7  ;;  %v9787_v24 = vshll.u32 %v17655_v3, 16  ;;  %v17677_v40 = vpop.f32.mrf.mxu0  ;;  %v17679_v19 = vpop.f32.mrf.mxu1  ;;  %v9792_v43 = vshrl.u32 %v9705_v63, 16  ;;  %v9708_v27 = vld [vmem:[#allocation2 + $0x7c] sm:$0x8] }
 0x3a0   : > { %19211 = vst [vmem:[#allocation60_spill] sm:$0xff] %v17677_v40  ;;  %19212 = vst [vmem:[#allocation59_spill] sm:$0xff] %v17679_v19  ;;  %14051 = vmatprep.mubr.bf16.mxu1 %v12563_v2  ;;  %v9371_v6 = vrot.slane %v9370_v1, 4  ;;  %v9780_v59 = vor.u32 %v9778_v47, %v9777_v51  ;;  %v9782_v29 = vrot.slane %v9777_v51, 4  ;;  %v9797_v9 = vshrl.u32 %v17670_v34, 16 }
 0x3a1   : > { %v9789_v38 = vor.u32 %v9787_v24, %v9786_v16  ;;  %v9800_v15 = vshll.u32 %v17670_v34, 16  ;;  %v9806_v18 = vshrl.u32 %v17672_v50, 16  ;;  %v17684_v57 = vpop.f32.mrf.mxu0  ;;  %v17686_v28 = vpop.f32.mrf.mxu1  ;;  %v12549_v2 = vrot.slane %v9792_v43, 11  ;;  %v17693_v1 = vld [vmem:[#allocation2 + $0x80] sm:$0xf] }
 0x3a2   : > { %19213 = vst [vmem:[#allocation62_spill] sm:$0xff] %v17684_v57  ;;  %19214 = vst [vmem:[#allocation65_spill] sm:$0xff] %v17686_v28  ;;  %v9376_v19 = vsel %vm15206_vm5, %v9371_v6, %v9375_v21  ;;  %v9781_v47 = vsel %vm14892_vm2, %v12548_v39, %v9780_v59  ;;  %v9809_v63 = vshll.u32 %v17672_v50, 16  ;;  %v9799_v24 = vrot.slane %v9797_v9, 7  ;;  %v17697_v57 = vld [vmem:[#allocation2 + $0x84] sm:$0xf] }
 0x3a3   : > { %v12538_v51 = vcombine.low %v9366_v52, %v9376_v19  ;;  %v9790_v16 = vsel %vm14892_vm2, %v9782_v29, %v9789_v38  ;;  %v9808_v40 = vrot.slane %v9806_v18, 7  ;;  %v17699_v28 = vpop.f32.mrf.mxu0  ;;  %v12587_v21 = vcombine.low %v17619_v60, %v17629_v33  ;;  %v14474_v6 = vld [vmem:[#allocation8 + $0x230] sm:$0xff]   ;;  %v9711_v19 = vld [vmem:[#allocation2 + $0x94] sm:$0x8] }
 0x3a4   : > { %v12564_v36 = vcombine.low %v9781_v47, %v9790_v16  ;;  %v9814_v39 = vshrl.u32 %v9708_v27, 16  ;;  %v9802_v59 = vor.u32 %v9800_v15, %v9799_v24  ;;  %v9804_v43 = vrot.slane %v9799_v24, 4  ;;  %v17709_v47 = vld [vmem:[#allocation2 + $0x98] sm:$0xf]  ;;  %v17717_v27 = vld [vmem:[#allocation2 + $0x9c] sm:$0xf] }
 0x3a5   : > { %14032 = vmatmul.mubr.bf16.gmra.mxu0 %v12538_v51  ;;  %v9811_v25 = vor.u32 %v9809_v63, %v9808_v40  ;;  %v9819_v52 = vshrl.u32 %v17693_v1, 16  ;;  %v17704_v29 = vpop.f32.mrf.mxu1  ;;  %v17706_v18 = vpop.f32.mrf.mxu0  ;;  %v9828_v9 = vshrl.u32 %v17697_v57, 16  ;;  %v9822_v40 = vshll.u32 %v17693_v1, 16 }
 0x3a6   : > { %14052 = vmatmul.mubr.bf16.vlgmr.msra.gmra.mxu1 %v12564_v36  ;;  %14099 = vmatprep.mubr.bf16.mxu0 %v12587_v21  ;;  %v12550_v38 = vrot.slane %v9814_v39, 11  ;;  %v9803_v33 = vsel %vm14892_vm2, %v12549_v2, %v9802_v59  ;;  %v9831_v24 = vshll.u32 %v17697_v57, 16  ;;  %v9836_v2 = vshrl.u32 %v9711_v19, 16  ;;  %v14477_v21 = vld [vmem:[#allocation8 + $0x228] sm:$0xff]  }
 0x3a7   : > { %v9812_v60 = vsel %vm14892_vm2, %v9804_v43, %v9811_v25  ;;  %14132 = vmatpush3.bf16.msra.mxu1 %v17538_v7  ;;  %v9821_v15 = vrot.slane %v9819_v52, 7  ;;  %v17719_v36 = vpop.f32.mrf.mxu1  ;;  %v17721_v63 = vpop.f32.mrf.mxu0  ;;  %v9830_v16 = vrot.slane %v9828_v9, 7  ;;  %v17726_v25 = vadd.f32 %v17485_v42, %v17470_v32  ;;  %v9714_v32 = vld [vmem:[#allocation2 + $0xac] sm:$0x8]  ;;  %v17738_v42 = vld [vmem:[#allocation2 + $0xb0] sm:$0xf] }
 0x3a8   : > { %19215 = vst [vmem:[#allocation63_spill] sm:$0xff] %v17719_v36  ;;  %v12565_v51 = vcombine.low %v9803_v33, %v9812_v60  ;;  %14133 = vmatprep.subr.bf16.mxu1 %v14474_v6  ;;  %v9841_v59 = vshrl.u32 %v17709_v47, 16  ;;  %v12588_v9 = vcombine.low %v17647_v11, %v17655_v3  ;;  %v12589_v19 = vcombine.low %v17670_v34, %v17672_v50 }
 0x3a9   : > { %v9824_v7 = vor.u32 %v9822_v40, %v9821_v15  ;;  %v9826_v39 = vrot.slane %v9821_v15, 4  ;;  %v17729_v43 = vpop.f32.mrf.mxu1  ;;  %v17731_v52 = vpop.f32.mrf.mxu0  ;;  %v9833_v33 = vor.u32 %v9831_v24, %v9830_v16  ;;  %v9850_v60 = vshrl.u32 %v17717_v27, 16 }
 0x3aa   : > { %19216 = vst [vmem:[#allocation67_spill] sm:$0xff] %v17729_v43  ;;  %19217 = vst [vmem:[#allocation66_spill] sm:$0xff] %v17731_v52  ;;  %14055 = vmatprep.mubr.bf16.mxu1 %v12565_v51  ;;  %v12551_v40 = vrot.slane %v9836_v2, 11  ;;  %v9843_v43 = vrot.slane %v9841_v59, 7  ;;  %v9844_v52 = vshll.u32 %v17709_v47, 16  ;;  %v17753_v50 = vadd.f32 %v17492_v30, %v17472_v31  ;;  %v14480_v59 = vld [vmem:[#allocation8 + $0x220] sm:$0xff]  }
 0x3ab   : > { %v9825_v15 = vsel %vm14892_vm2, %v12550_v38, %v9824_v7  ;;  %14134 = vmatpush3.bf16.msra.mxu1 %v14474_v6  ;;  %v17743_v51 = vld [vmem:[#allocation2 + $0xb4] sm:$0xf]  ;;  %v17745_v11 = vpop.f32.mrf.mxu1  ;;  %v17747_v3 = vpop.f32.mrf.mxu0  ;;  %v9834_v34 = vsel %vm14892_vm2, %v9826_v39, %v9833_v33  ;;  %v9852_v16 = vrot.slane %v9850_v60, 7  ;;  %v9853_v38 = vshll.u32 %v17717_v27, 16  ;;  %v17766_v60 = vld [vmem:[#allocation2 + $0xc8] sm:$0xf] }
 0x3ac   : > { %19218 = vst [vmem:[#allocation69_spill] sm:$0xff] %v17745_v11  ;;  %19219 = vst [vmem:[#allocation68_spill] sm:$0xff] %v17753_v50  ;;  %14135 = vmatprep.subr.bf16.mxu1 %v14477_v21  ;;  %v12566_v24 = vcombine.low %v9825_v15, %v9834_v34  ;;  %v9846_v6 = vor.u32 %v9844_v52, %v9843_v43  ;;  %v9848_v2 = vrot.slane %v9843_v43, 4  ;;  %v9858_v7 = vshrl.u32 %v9714_v32, 16 }
 0x3ad   : > { %14100 = vmatmul.mubr.bf16.vlgmr.msra.gmra.mxu0 %v12588_v9  ;;  %v17756_v11 = vpop.f32.mrf.mxu1  ;;  %v17758_v36 = vpop.f32.mrf.mxu0  ;;  %v9855_v39 = vor.u32 %v9853_v38, %v9852_v16  ;;  %v17762_v31 = vadd.f32 %v17497_v22, %v17478_v17  ;;  %v9863_v30 = vshrl.u32 %v17738_v42, 16  ;;  %v9872_v33 = vshrl.u32 %v17743_v51, 16  ;;  %v9717_v9 = vld [vmem:[#allocation2 + $0xc4] sm:$0x8]  ;;  %v17775_v17 = vld [vmem:[#allocation2 + $0xcc] sm:$0xf] }
 0x3ae   : > { %14103 = vmatprep.mubr.bf16.mxu0 %v12589_v19  ;;  %14056 = vmatmul.mubr.bf16.gmra.mxu1 %v12566_v24  ;;  %v9847_v43 = vsel %vm14892_vm2, %v12551_v40, %v9846_v6  ;;  %v17772_v52 = vadd.f32 %v17508_v49, %v17487_v56  ;;  %v12552_v19 = vrot.slane %v9858_v7, 11  ;;  %v9866_v32 = vshll.u32 %v17738_v42, 16  ;;  %v14483_v7 = vld [vmem:[#allocation8 + $0x218] sm:$0xff]  }
 0x3af   : > { %19220 = vst [vmem:[#allocation71_spill] sm:$0xff] %v17762_v31  ;;  %v17777_v22 = vpop.f32.mrf.mxu1  ;;  %v17779_v15 = vpop.f32.mrf.mxu0  ;;  %v9856_v34 = vsel %vm14892_vm2, %v9848_v2, %v9855_v39  ;;  %v9865_v16 = vrot.slane %v9863_v30, 7  ;;  %v9874_v38 = vrot.slane %v9872_v33, 7  ;;  %v9875_v40 = vshll.u32 %v17743_v51, 16  ;;  %14136 = vmatpush3.bf16.msra.mxu1 %v14477_v21  ;;  %v9720_v39 = vld [vmem:[#allocation2 + $0xdc] sm:$0x8] }
 0x3b0   : > { %19221 = vst [vmem:[#allocation73_spill] sm:$0xff] %v17772_v52  ;;  %19222 = vst [vmem:[#allocation72_spill] sm:$0xff] %v17777_v22  ;;  %v12567_v24 = vcombine.low %v9847_v43, %v9856_v34  ;;  %v12590_v56 = vcombine.low %v17693_v1, %v17697_v57  ;;  %v9880_v49 = vshrl.u32 %v9717_v9, 16  ;;  %v9885_v6 = vshrl.u32 %v17766_v60, 16  ;;  %14137 = vmatprep.subr.bf16.mxu1 %v14480_v59  ;;  %v17793_v1 = vld [vmem:[#allocation2 + $0xe0] sm:$0xf] }
 0x3b1   : > { %v17787_v52 = vpop.f32.mrf.mxu0  ;;  %v9868_v31 = vor.u32 %v9866_v32, %v9865_v16  ;;  %v9870_v22 = vrot.slane %v9865_v16, 4  ;;  %v9877_v50 = vor.u32 %v9875_v40, %v9874_v38  ;;  %v9894_v2 = vshrl.u32 %v17775_v17, 16  ;;  %v17795_v9 = vpop.f32.mrf.mxu1  ;;  %v17802_v38 = vld [vmem:[#allocation2 + $0xe4] sm:$0xf] }
 0x3b2   : > { %14059 = vmatprep.mubr.bf16.mxu1 %v12567_v24  ;;  %v12591_v21 = vcombine.low %v17709_v47, %v17717_v27  ;;  %v12553_v30 = vrot.slane %v9880_v49, 11  ;;  %v9887_v33 = vrot.slane %v9885_v6, 7  ;;  %v9888_v57 = vshll.u32 %v17766_v60, 16  ;;  %v9723_v6 = vld [vmem:[#allocation2 + $0xf4] sm:$0x8] }
 0x3b3   : > { %v9869_v43 = vsel %vm14892_vm2, %v12552_v19, %v9868_v31  ;;  %v9878_v32 = vsel %vm14892_vm2, %v9870_v22, %v9877_v50  ;;  %v9896_v34 = vrot.slane %v9894_v2, 7  ;;  %v9897_v16 = vshll.u32 %v17775_v17, 16  ;;  %14138 = vmatpush3.bf16.msra.mxu1 %v14480_v59  ;;  %v14486_v31 = vld [vmem:[#allocation8 + $0x210] sm:$0xff]   ;;  %v17828_v2 = vpop.f32.mrf.mxu1 }
 0x3b4   : > { %v17804_v47 = vpop.f32.mrf.mxu0  ;;  %v17808_v27 = vadd.f32 %v17520_v58, %v17502_v48  ;;  %v12568_v40 = vcombine.low %v9869_v43, %v9878_v32  ;;  %v9890_v24 = vor.u32 %v9888_v57, %v9887_v33  ;;  %v9892_v49 = vrot.slane %v9887_v33, 4  ;;  %14139 = vmatprep.subr.bf16.mxu1 %v14483_v7  ;;  %v14489_v32 = vld [vmem:[#allocation8 + $0x208] sm:$0xff]  }
 0x3b5   : > { %14104 = vmatmul.mubr.bf16.gmra.mxu0 %v12590_v56  ;;  %v17812_v50 = vadd.f32 %v17526_v14, %v17506_v55  ;;  %v9899_v19 = vor.u32 %v9897_v16, %v9896_v34  ;;  %v9902_v22 = vshrl.u32 %v9720_v39, 16  ;;  %v9907_v59 = vshrl.u32 %v17793_v1, 16  ;;  %v17826_v14 = vld [vmem:[#allocation2 + $0xf8] sm:$0xf] }
 0x3b6   : > { %14107 = vmatprep.mubr.bf16.mxu0 %v12591_v21  ;;  %14060 = vmatmul.mubr.bf16.gmra.mxu1 %v12568_v40  ;;  %v9891_v48 = vsel %vm14892_vm2, %v12553_v30, %v9890_v24  ;;  %v17819_v58 = vadd.f32 %v17532_v54, %v17514_v12  ;;  %v17823_v56 = vadd.f32 %v17546_v35, %v17518_v45  ;;  %v9916_v55 = vshrl.u32 %v17802_v38, 16  ;;  %v17830_v39 = vpop.f32.mrf.mxu0  ;;  %v17835_v54 = vld [vmem:[#allocation2 + $0xfc] sm:$0xf] }
 0x3b7   : > { %v9900_v21 = vsel %vm14892_vm2, %v9892_v49, %v9899_v19  ;;  %v12554_v30 = vrot.slane %v9902_v22, 11  ;;  %v9909_v33 = vrot.slane %v9907_v59, 7  ;;  %v9910_v12 = vshll.u32 %v17793_v1, 16  ;;  %14140 = vmatpush3.bf16.msra.mxu1 %v14483_v7  ;;  %v9726_v59 = vld [vmem:[#allocation2 + $0x10c] sm:$0x8] }
 0x3b8   : > { %19223 = vst [vmem:[#allocation75_spill] sm:$0xff] %v17823_v56  ;;  %v12569_v45 = vcombine.low %v9891_v48, %v9900_v21  ;;  %v9918_v35 = vrot.slane %v9916_v55, 7  ;;  %v9919_v57 = vshll.u32 %v17802_v38, 16  ;;  %v9924_v43 = vshrl.u32 %v9723_v6, 16  ;;  %14141 = vmatprep.subr.bf16.mxu1 %v14486_v31  ;;  %v17848_v6 = vld [vmem:[#allocation2 + $0x110] sm:$0xf] }
 0x3b9   : > { %v17840_v34 = vadd.f32 %v17555_v4, %v17530_v37  ;;  %v9912_v16 = vor.u32 %v9910_v12, %v9909_v33  ;;  %v9914_v40 = vrot.slane %v9909_v33, 4  ;;  %v9929_v24 = vshrl.u32 %v17826_v14, 16  ;;  %v17852_v37 = vpop.f32.mrf.mxu0 }
 0x3ba   : > { %14063 = vmatprep.mubr.bf16.mxu1 %v12569_v45  ;;  %v12592_v49 = vcombine.low %v17738_v42, %v17743_v51  ;;  %v9921_v7 = vor.u32 %v9919_v57, %v9918_v35  ;;  %v12593_v19 = vcombine.low %v17766_v60, %v17775_v17  ;;  %v9938_v22 = vshrl.u32 %v17835_v54, 16  ;;  %v17857_v51 = vld [vmem:[#allocation2 + $0x114] sm:$0xf] }
 0x3bb   : > { %v17850_v48 = vpop.f32.mrf.mxu1  ;;  %v9913_v4 = vsel %vm14892_vm2, %v12554_v30, %v9912_v16  ;;  %v12555_v55 = vrot.slane %v9924_v43, 11  ;;  %v9931_v21 = vrot.slane %v9929_v24, 7  ;;  %v9932_v42 = vshll.u32 %v17826_v14, 16  ;;  %14142 = vmatpush3.bf16.msra.mxu1 %v14486_v31  ;;  %v14492_v31 = vld [vmem:[#allocation8 + $0x200] sm:$0xff]  }
 0x3bc   : > { %v9922_v60 = vsel %vm14892_vm2, %v9914_v40, %v9921_v7  ;;  %v9940_v17 = vrot.slane %v9938_v22, 7  ;;  %v9941_v33 = vshll.u32 %v17835_v54, 16  ;;  %v17864_v12 = vadd.f32 %v17585_v53, %v17559_v8  ;;  %14143 = vmatprep.subr.bf16.mxu1 %v14489_v32  ;;  %v9729_v8 = vld [vmem:[#allocation2 + $0x124] sm:$0x8]  ;;  %v17874_v53 = vld [vmem:[#allocation2 + $0x128] sm:$0xf]  ;;  %v17876_v7 = vpop.f32.mrf.mxu0 }
 0x3bd   : > { %14108 = vmatmul.mubr.bf16.gmra.mxu0 %v12592_v49  ;;  %v17866_v30 = vpop.f32.mrf.mxu1  ;;  %v12570_v45 = vcombine.low %v9913_v4, %v9922_v60  ;;  %v9934_v35 = vor.u32 %v9932_v42, %v9931_v21  ;;  %v9936_v57 = vrot.slane %v9931_v21, 4  ;;  %v9946_v43 = vshrl.u32 %v9726_v59, 16  ;;  %19224 = vst [vmem:[#allocation74_spill] sm:$0xff] %v17876_v7  ;;  %v17885_v59 = vld [vmem:[#allocation2 + $0x12c] sm:$0xf] }
 0x3be   : > { %14111 = vmatprep.mubr.bf16.mxu0 %v12593_v19  ;;  %v17870_v16 = vadd.f32 %v17561_v61, %v17540_v44  ;;  %v9943_v40 = vor.u32 %v9941_v33, %v9940_v17  ;;  %v9951_v24 = vshrl.u32 %v17848_v6, 16  ;;  %v9960_v49 = vshrl.u32 %v17857_v51, 16  ;;  %v9732_v7 = vld [vmem:[#allocation2 + $0x13c] sm:$0x8] }
 0x3bf   : > { %14064 = vmatmul.mubr.bf16.gmra.mxu1 %v12570_v45  ;;  %v9935_v19 = vsel %vm14892_vm2, %v12555_v55, %v9934_v35  ;;  %v17882_v22 = vadd.f32 %v17571_v23, %v17544_v13  ;;  %v12556_v44 = vrot.slane %v9946_v43, 11  ;;  %v9954_v61 = vshll.u32 %v17848_v6, 16  ;;  %v17887_v4 = vpop.f32.mrf.mxu1 }
 0x3c0   : > { %v9944_v21 = vsel %vm14892_vm2, %v9936_v57, %v9943_v40  ;;  %v9953_v42 = vrot.slane %v9951_v24, 7  ;;  %v9962_v60 = vrot.slane %v9960_v49, 7  ;;  %v9963_v17 = vshll.u32 %v17857_v51, 16  ;;  %14144 = vmatpush3.bf16.msra.mxu1 %v14489_v32 }
 0x3c1   : > { %v12571_v55 = vcombine.low %v9935_v19, %v9944_v21  ;;  %v12594_v13 = vcombine.low %v17793_v1, %v17802_v38  ;;  %v9968_v23 = vshrl.u32 %v9729_v8, 16  ;;  %v9973_v33 = vshrl.u32 %v17874_v53, 16  ;;  %14145 = vmatprep.subr.bf16.mxu1 %v14492_v31  ;;  %v17901_v38 = vld [vmem:[#allocation2 + $0x140] sm:$0xf]  ;;  %v17903_v49 = vpop.f32.mrf.mxu1 }
 0x3c2   : > { %v9956_v45 = vor.u32 %v9954_v61, %v9953_v42  ;;  %v9958_v35 = vrot.slane %v9953_v42, 4  ;;  %v9965_v43 = vor.u32 %v9963_v17, %v9962_v60  ;;  %v9982_v56 = vshrl.u32 %v17885_v59, 16  ;;  %19225 = vst [vmem:[#allocation16_spill] sm:$0xff] %v17903_v49  ;;  %v17910_v42 = vld [vmem:[#allocation2 + $0x144] sm:$0xf] }
 0x3c3   : > { %v17896_v57 = vpop.f32.mrf.mxu0  ;;  %14067 = vmatprep.mubr.bf16.mxu1 %v12571_v55  ;;  %v12595_v32 = vcombine.low %v17826_v14, %v17835_v54  ;;  %v12557_v40 = vrot.slane %v9968_v23, 11  ;;  %v9975_v24 = vrot.slane %v9973_v33, 7  ;;  %v9976_v1 = vshll.u32 %v17874_v53, 16  ;;  %v9735_v33 = vld [vmem:[#allocation2 + $0x154] sm:$0x8] }
 0x3c4   : > { %v9957_v8 = vsel %vm14892_vm2, %v12556_v44, %v9956_v45  ;;  %v9966_v19 = vsel %vm14892_vm2, %v9958_v35, %v9965_v43  ;;  %v9984_v61 = vrot.slane %v9982_v56, 7  ;;  %v9985_v21 = vshll.u32 %v17885_v59, 16  ;;  %14146 = vmatpush3.bf16.msra.mxu1 %v14492_v31  ;;  %v17931_v35 = vld [vmem:[#allocation2 + $0x158] sm:$0xf] }
 0x3c5   : > { %14112 = vmatmul.mubr.bf16.gmra.mxu0 %v12594_v13  ;;  %v17912_v14 = vpop.f32.mrf.mxu0  ;;  %v12572_v54 = vcombine.low %v9957_v8, %v9966_v19  ;;  %v9978_v60 = vor.u32 %v9976_v1, %v9975_v24  ;;  %v9980_v17 = vrot.slane %v9975_v24, 4  ;;  %v17916_v55 = vadd.f32 %v17621_v5, %v17591_v62  ;;  %v19229_v1 = vld [vmem:[#allocation49_spill] sm:$0xff]  ;;  %v19230_v8 = vld [vmem:[#allocation38_spill] sm:$0xff] }
 0x3c6   : > { %14115 = vmatprep.mubr.bf16.mxu0 %v12595_v32  ;;  %v17920_v44 = vadd.f32 %v17577_v41, %v17551_v20  ;;  %v9987_v56 = vor.u32 %v9985_v21, %v9984_v61  ;;  %v9990_v13 = vshrl.u32 %v9732_v7, 16  ;;  %v9995_v23 = vshrl.u32 %v17901_v38, 16 }
 0x3c7   : > { %19226 = vst [vmem:[#allocation15_spill] sm:$0xff] %v17916_v55  ;;  %14068 = vmatmul.mubr.bf16.gmra.mxu1 %v12572_v54  ;;  %v17925_v31 = vadd.f32 %v17593_v46, %v17569_v0  ;;  %v9979_v45 = vsel %vm14892_vm2, %v12557_v40, %v9978_v60  ;;  %v9998_v62 = vshll.u32 %v17901_v38, 16  ;;  %v10004_v5 = vshrl.u32 %v17910_v42, 16  ;;  %v17935_v41 = vpop.f32.mrf.mxu0  ;;  %v17940_v46 = vld [vmem:[#allocation2 + $0x15c] sm:$0xf] }
 0x3c8   : > { %19227 = vst [vmem:[#allocation76_spill] sm:$0xff] %v17920_v44  ;;  %v17933_v20 = vpop.f32.mrf.mxu1  ;;  %v9988_v7 = vsel %vm14892_vm2, %v9980_v17, %v9987_v56  ;;  %v12558_v43 = vrot.slane %v9990_v13, 11  ;;  %v9997_v32 = vrot.slane %v9995_v23, 7  ;;  %v10007_v0 = vshll.u32 %v17910_v42, 16 }
 0x3c9   : > { %19228 = vst [vmem:[#allocation42_spill] sm:$0xff] %v17925_v31  ;;  %v12573_v40 = vcombine.low %v9979_v45, %v9988_v7  ;;  %v10006_v24 = vrot.slane %v10004_v5, 7  ;;  %v17944_v19 = vadd.f32 %v19230_v8, %v19229_v1  ;;  %v10012_v61 = vshrl.u32 %v9735_v33, 16  ;;  %v9738_v7 = vld [vmem:[#allocation2 + $0x16c] sm:$0x8]  ;;  %v17955_v33 = vpop.f32.mrf.mxu0  ;;  %v19234_v1 = vld [vmem:[#allocation61_spill] sm:$0xff] }
 0x3ca   : > { %v17946_v21 = vpop.f32.mrf.mxu1  ;;  %v12596_v54 = vcombine.low %v17848_v6, %v17857_v51  ;;  %v10000_v60 = vor.u32 %v9998_v62, %v9997_v32  ;;  %v10002_v17 = vrot.slane %v9997_v32, 4  ;;  %v10017_v56 = vshrl.u32 %v17931_v35, 16  ;;  %19232 = vst [vmem:[#allocation39_spill] sm:$0xff] %v17955_v33  ;;  %v19233_v32 = vld [vmem:[#allocation51_spill] sm:$0xff] }
 0x3cb   : > { %19231 = vst [vmem:[#allocation17_spill] sm:$0xff] %v17944_v19  ;;  %14071 = vmatprep.mubr.bf16.mxu1 %v12573_v40  ;;  %v10009_v13 = vor.u32 %v10007_v0, %v10006_v24  ;;  %v12597_v23 = vcombine.low %v17874_v53, %v17885_v59  ;;  %v10020_v45 = vshll.u32 %v17931_v35, 16  ;;  %v10026_v5 = vshrl.u32 %v17940_v46, 16  ;;  %v17963_v0 = vld [vmem:[#allocation2 + $0x170] sm:$0xf] }
 0x3cc   : > { %v10001_v6 = vsel %vm14892_vm2, %v12558_v43, %v10000_v60  ;;  %v12559_v51 = vrot.slane %v10012_v61, 11  ;;  %v10019_v62 = vrot.slane %v10017_v56, 7  ;;  %v17961_v40 = vadd.f32 %v19234_v1, %v19233_v32  ;;  %v17965_v53 = vld [vmem:[#allocation2 + $0x174] sm:$0xf]  ;;  %v17974_v61 = vpop.f32.mrf.mxu1 }
 0x3cd   : > { %14116 = vmatmul.mubr.bf16.gmra.mxu0 %v12596_v54  ;;  %v10010_v59 = vsel %vm14892_vm2, %v10002_v17, %v10009_v13  ;;  %v10028_v24 = vrot.slane %v10026_v5, 7  ;;  %v10029_v8 = vshll.u32 %v17940_v46, 16  ;;  %v19236_v54 = vld [vmem:[#allocation33_spill] sm:$0xff]  ;;  %v10034_v1 = vshrl.u32 %v9738_v7, 16  ;;  %v17980_v5 = vld [vmem:[#allocation2 + $0x188] sm:$0xf] }
 0x3ce   : > { %19235 = vst [vmem:[#allocation13_spill] sm:$0xff] %v17961_v40  ;;  %14119 = vmatprep.mubr.bf16.mxu0 %v12597_v23  ;;  %v17972_v43 = vadd.f32 %v17657_v26, %v19236_v54  ;;  %v12574_v60 = vcombine.low %v10001_v6, %v10010_v59  ;;  %v10022_v56 = vor.u32 %v10020_v45, %v10019_v62  ;;  %v10024_v32 = vrot.slane %v10019_v62, 4  ;;  %v9741_v23 = vld [vmem:[#allocation2 + $0x184] sm:$0x8]  ;;  %v17988_v62 = vld [vmem:[#allocation2 + $0x18c] sm:$0xf] }
 0x3cf   : > { %v10031_v33 = vor.u32 %v10029_v8, %v10028_v24  ;;  %v12598_v40 = vcombine.low %v17901_v38, %v17910_v42  ;;  %v10039_v17 = vshrl.u32 %v17963_v0, 16  ;;  %v10048_v13 = vshrl.u32 %v17965_v53, 16  ;;  %v19238_v24 = vld [vmem:[#allocation54_spill] sm:$0xff] }
 0x3d0   : > { %19237 = vst [vmem:[#allocation28_spill] sm:$0xff] %v17972_v43  ;;  %v17982_v44 = vpop.f32.mrf.mxu0  ;;  %14072 = vmatmul.mubr.bf16.gmra.mxu1 %v12574_v60  ;;  %v10023_v26 = vsel %vm14892_vm2, %v12559_v51, %v10022_v56  ;;  %v12560_v45 = vrot.slane %v10034_v1, 11  ;;  %v10042_v7 = vshll.u32 %v17963_v0, 16  ;;  %v10051_v6 = vshll.u32 %v17965_v53, 16  ;;  %v19239_v8 = vld [vmem:[#allocation58_spill] sm:$0xff]  ;;  %v17996_v60 = vpop.f32.mrf.mxu1 }
 0x3d1   : > { %v10032_v38 = vsel %vm14892_vm2, %v10024_v32, %v10031_v33  ;;  %v10041_v42 = vrot.slane %v10039_v17, 7  ;;  %v10050_v59 = vrot.slane %v10048_v13, 7  ;;  %v17994_v54 = vadd.f32 %v19239_v8, %v19238_v24  ;;  %19241 = vst [vmem:[#allocation31_spill] sm:$0xff] %v17996_v60  ;;  %v9744_v17 = vld [vmem:[#allocation2 + $0x19c] sm:$0x8] }
 0x3d2   : > { %v17998_v43 = vpop.f32.mrf.mxu0  ;;  %v12575_v51 = vcombine.low %v10023_v26, %v10032_v38  ;;  %v12599_v56 = vcombine.low %v17931_v35, %v17940_v46  ;;  %v10056_v1 = vshrl.u32 %v9741_v23, 16  ;;  %v10061_v19 = vshrl.u32 %v17980_v5, 16  ;;  %v19243_v26 = vld [vmem:[#allocation60_spill] sm:$0xff]  ;;  %v18009_v35 = vld [vmem:[#allocation2 + $0x1a0] sm:$0xf] }
 0x3d3   : > { %19240 = vst [vmem:[#allocation64_spill] sm:$0xff] %v17994_v54  ;;  %v10044_v55 = vor.u32 %v10042_v7, %v10041_v42  ;;  %v10046_v49 = vrot.slane %v10041_v42, 4  ;;  %v10053_v33 = vor.u32 %v10051_v6, %v10050_v59  ;;  %v10070_v32 = vshrl.u32 %v17988_v62, 16  ;;  %v19242_v54 = vld [vmem:[#allocation44_spill] sm:$0xff]  ;;  %v18016_v6 = vld [vmem:[#allocation2 + $0x1a4] sm:$0xf] }
 0x3d4   : > { %14075 = vmatprep.mubr.bf16.mxu1 %v12575_v51  ;;  %v12561_v13 = vrot.slane %v10056_v1, 11  ;;  %v10063_v24 = vrot.slane %v10061_v19, 7  ;;  %v10064_v8 = vshll.u32 %v17980_v5, 16  ;;  %v18007_v38 = vadd.f32 %v19243_v26, %v19242_v54  ;;  %v18020_v42 = vpop.f32.mrf.mxu0  ;;  %v19246_v1 = vld [vmem:[#allocation70_spill] sm:$0xff] }
 0x3d5   : > { %14120 = vmatmul.mubr.bf16.gmra.mxu0 %v12598_v40  ;;  %v10045_v46 = vsel %vm14892_vm2, %v12560_v45, %v10044_v55  ;;  %v10054_v23 = vsel %vm14892_vm2, %v10046_v49, %v10053_v33  ;;  %v10072_v7 = vrot.slane %v10070_v32, 7  ;;  %v10073_v40 = vshll.u32 %v17988_v62, 16  ;;  %19245 = vst [vmem:[#allocation18_spill] sm:$0xff] %v18020_v42  ;;  %v10773_v33 = vld [vmem:[#allocation2 + $0x38] sm:$0xf] }
 0x3d6   : > { %19244 = vst [vmem:[#allocation32_spill] sm:$0xff] %v18007_v38  ;;  %14123 = vmatprep.mubr.bf16.mxu0 %v12599_v56  ;;  %v18018_v19 = vpop.f32.mrf.mxu1  ;;  %v12576_v59 = vcombine.low %v10045_v46, %v10054_v23  ;;  %v10066_v54 = vor.u32 %v10064_v8, %v10063_v24  ;;  %v10068_v51 = vrot.slane %v10063_v24, 4  ;;  %v18024_v26 = vadd.f32 %v17699_v28, %v19246_v1  ;;  %v10774_v28 = vld [vmem:[#allocation2 + $0x3c] sm:$0xf]  ;;  %v19250_v1 = vld [vmem:[#allocation57_spill] sm:$0xff] }
 0x3d7   : > { %v10075_v55 = vor.u32 %v10073_v40, %v10072_v7  ;;  %v12600_v49 = vcombine.low %v17963_v0, %v17965_v53  ;;  %v10078_v45 = vshrl.u32 %v9744_v17, 16  ;;  %v10083_v56 = vshrl.u32 %v18009_v35, 16  ;;  %v10775_v40 = vld [vmem:[#allocation2 + $0x40] sm:$0x1] }
 0x3d8   : > { %19247 = vst [vmem:[#allocation37_spill] sm:$0xff] %v18024_v26  ;;  %14076 = vmatmul.mubr.bf16.gmra.mxu1 %v12576_v59  ;;  %v10067_v32 = vsel %vm14892_vm2, %v12561_v13, %v10066_v54  ;;  %v10086_v46 = vshll.u32 %v18009_v35, 16  ;;  %v10092_v24 = vshrl.u32 %v18016_v6, 16  ;;  %v10095_v8 = vshll.u32 %v18016_v6, 16  ;;  %v18034_v23 = vpop.f32.mrf.mxu1  ;;  %v18040_v59 = vpop.f32.mrf.mxu0 }
 0x3d9   : > { %19248 = vst [vmem:[#allocation19_spill] sm:$0xff] %v18034_v23  ;;  %v10076_v0 = vsel %vm14892_vm2, %v10068_v51, %v10075_v55  ;;  %v12562_v53 = vrot.slane %v10078_v45, 11  ;;  %v10085_v17 = vrot.slane %v10083_v56, 7  ;;  %v12601_v7 = vcombine.low %v17980_v5, %v17988_v62  ;;  %19249 = vst [vmem:[#allocation46_spill] sm:$0xff] %v18040_v59  ;;  %v19259_v59 = vld [vmem:[#allocation53_spill] sm:$0xff] }
 0x3da   : > { %v12577_v13 = vcombine.low %v10067_v32, %v10076_v0  ;;  %v10094_v54 = vrot.slane %v10092_v24, 7  ;;  %v18044_v26 = vadd.f32 %v17706_v18, %v19250_v1  ;;  %v10822_v38 = vshrl.u32 %v10773_v33, 16  ;;  %v18046_v62 = vpop.f32.mrf.mxu1  ;;  %v19251_v24 = vld [vmem:[#allocation59_spill] sm:$0xff] }
 0x3db   : > { %v10088_v60 = vor.u32 %v10086_v46, %v10085_v17  ;;  %v10090_v42 = vrot.slane %v10085_v17, 4  ;;  %v10825_v23 = vshll.u32 %v10773_v33, 16  ;;  %v10831_v31 = vshll.u32 %v10774_v28, 16  ;;  %v10776_v33 = vld [vmem:[#allocation2 + $0x50] sm:$0xf] }
 0x3dc   : > { %14079 = vmatprep.mubr.bf16.mxu1 %v12577_v13  ;;  %v10097_v51 = vor.u32 %v10095_v8, %v10094_v54  ;;  %v10824_v55 = vrot.slane %v10822_v38, 4  ;;  %v10835_v45 = vshrl.u32 %v10774_v28, 16  ;;  %v10841_v5 = vshll.u32 %v10775_v40, 16  ;;  %v19253_v8 = vld [vmem:[#allocation52_spill] sm:$0xff] }
 0x3dd   : > { %14124 = vmatmul.mubr.bf16.gmra.mxu0 %v12600_v49  ;;  %v10089_v56 = vsel %vm14892_vm2, %v12562_v53, %v10088_v60  ;;  %v10827_v32 = vrot.slane %v10825_v23, 5  ;;  %v10833_v18 = vrot.slane %v10831_v31, 5  ;;  %v18052_v46 = vadd.f32 %v17721_v63, %v19251_v24  ;;  %v19252_v49 = vld [vmem:[#allocation41_spill] sm:$0xff]  ;;  %v10778_v53 = vld [vmem:[#allocation2 + $0x58] sm:$0x1] }
 0x3de   : > { %14127 = vmatprep.mubr.bf16.mxu0 %v12601_v7  ;;  %v18054_v0 = vpop.f32.mrf.mxu0  ;;  %v18058_v38 = vadd.f32 %v19253_v8, %v19252_v49  ;;  %v10098_v28 = vsel %vm14892_vm2, %v10090_v42, %v10097_v51  ;;  %v10837_v17 = vrot.slane %v10835_v45, 4  ;;  %v10843_v40 = vrot.slane %v10841_v5, 5  ;;  %v10777_v60 = vld [vmem:[#allocation2 + $0x54] sm:$0xf]  ;;  %v18070_v42 = vpop.f32.mrf.mxu1 }
 0x3df   : > { %v12578_v23 = vcombine.low %v10089_v56, %v10098_v28  ;;  %v10828_v31 = vor.u32 %v10827_v32, %v10824_v55  ;;  %v18064_v63 = vadd.f32 %v17747_v3, %v17704_v29  ;;  %v12602_v7 = vcombine.low %v18009_v35, %v18016_v6  ;;  %19254 = vst [vmem:[#allocation21_spill] sm:$0xff] %v18070_v42  ;;  %v10779_v56 = vld [vmem:[#allocation2 + $0x68] sm:$0xf]  ;;  %v19255_v35 = vld [vmem:[#allocation63_spill] sm:$0xff] }
 0x3e0   : > { %v10838_v13 = vor.u32 %v10837_v17, %v10833_v18  ;;  %v7841_v54 = vadd.f32 %v17756_v11, %v17726_v25  ;;  %v10846_v1 = vshrl.u32 %v10776_v33, 16  ;;  %v10849_v10 = vshll.u32 %v10776_v33, 16  ;;  %v18072_v32 = vpop.f32.mrf.mxu0  ;;  %v10780_v25 = vld [vmem:[#allocation2 + $0x6c] sm:$0xf]  ;;  %v10781_v17 = vld [vmem:[#allocation2 + $0x70] sm:$0x1] }
 0x3e1   : > { %14080 = vmatmul.mubr.bf16.gmra.mxu1 %v12578_v23  ;;  %v10829_v51 = vrot.slane %v10828_v31, 4  ;;  %v10855_v45 = vshll.u32 %v10777_v60, 16  ;;  %v10859_v5 = vshrl.u32 %v10777_v60, 16  ;;  %v10865_v55 = vshll.u32 %v10778_v53, 16 }
 0x3e2   : > { %v10839_v29 = vrot.slane %v10838_v13, 4  ;;  %v10848_v3 = vrot.slane %v10846_v1, 4  ;;  %v10851_v24 = vrot.slane %v10849_v10, 5  ;;  %v18076_v6 = vadd.f32 %v17758_v36, %v19255_v35  ;;  %v18084_v42 = vpop.f32.mrf.mxu0 }
 0x3e3   : > { %v10834_v33 = vsel %vm15206_vm5, %v10829_v51, %v10833_v18  ;;  %v10857_v49 = vrot.slane %v10855_v45, 5  ;;  %v10861_v8 = vrot.slane %v10859_v5, 4  ;;  %v10867_v28 = vrot.slane %v10865_v55, 5  ;;  %v18082_v13 = vpop.f32.mrf.mxu1  ;;  %v19258_v55 = vld [vmem:[#allocation43_spill] sm:$0xff] }
 0x3e4   : > { %19256 = vst [vmem:[#allocation20_spill] sm:$0xff] %v18076_v6  ;;  %v10844_v60 = vsel %vm15206_vm5, %v10839_v29, %v10843_v40  ;;  %v10852_v53 = vor.u32 %v10851_v24, %v10848_v3  ;;  %v10870_v23 = vshrl.u32 %v10779_v56, 16  ;;  %v10873_v31 = vshll.u32 %v10779_v56, 16  ;;  %v19261_v29 = vld [vmem:[#allocation34_spill] sm:$0xff]  ;;  %v19262_v3 = vld [vmem:[#allocation56_spill] sm:$0xff] }
 0x3e5   : > { %14128 = vmatmul.mubr.bf16.gmra.mxu0 %v12602_v7  ;;  %v12611_v1 = vcombine.low %v10834_v33, %v10844_v60  ;;  %v10862_v36 = vor.u32 %v10861_v8, %v10857_v49  ;;  %v10879_v10 = vshll.u32 %v10780_v25, 16  ;;  %v10883_v35 = vshrl.u32 %v10780_v25, 16  ;;  %v19263_v8 = vld [vmem:[#allocation67_spill] sm:$0xff] }
 0x3e6   : > { %v10853_v18 = vrot.slane %v10852_v53, 4  ;;  %v10872_v51 = vrot.slane %v10870_v23, 4  ;;  %v10875_v45 = vrot.slane %v10873_v31, 5  ;;  %v10889_v5 = vshll.u32 %v10781_v17, 16  ;;  %v10782_v17 = vld [vmem:[#allocation2 + $0x80] sm:$0xf]  ;;  %v18100_v53 = vpop.f32.mrf.mxu1 }
 0x3e7   : > { %v18088_v6 = vadd.f32 %v19259_v59, %v19258_v55  ;;  %14147 = vmatprep.mubr.bf16.mxu1 %v12611_v1  ;;  %v10863_v40 = vrot.slane %v10862_v36, 4  ;;  %v10881_v7 = vrot.slane %v10879_v10, 5  ;;  %v10885_v56 = vrot.slane %v10883_v35, 4  ;;  %v19264_v1 = vld [vmem:[#allocation68_spill] sm:$0xff]  ;;  %v10783_v35 = vld [vmem:[#allocation2 + $0x84] sm:$0xf] }
 0x3e8   : > { %v18092_v24 = vadd.f32 %v19262_v3, %v19261_v29  ;;  %v10858_v25 = vsel %vm15206_vm5, %v10853_v18, %v10857_v49  ;;  %v10876_v33 = vor.u32 %v10875_v45, %v10872_v51  ;;  %v18098_v60 = vadd.f32 %v17779_v15, %v19263_v8  ;;  %v19265_v36 = vld [vmem:[#allocation72_spill] sm:$0xff]  ;;  %v18106_v29 = vpop.f32.mrf.mxu0  ;;  %v19267_v51 = vld [vmem:[#allocation71_spill] sm:$0xff] }
 0x3e9   : > { %19260 = vst [vmem:[#allocation23_spill] sm:$0xff] %v18088_v6  ;;  %v10868_v59 = vsel %vm15206_vm5, %v10863_v40, %v10867_v28  ;;  %v10886_v23 = vor.u32 %v10885_v56, %v10881_v7  ;;  %v10891_v31 = vrot.slane %v10889_v5, 5  ;;  %v7839_v10 = vadd.f32 %v19265_v36, %v19264_v1  ;;  %v10784_v55 = vld [vmem:[#allocation2 + $0x88] sm:$0x1]  ;;  %19266 = vst [vmem:[#allocation22_spill] sm:$0xff] %v18106_v29  ;;  %v18117_v36 = vpop.f32.mrf.mxu1 }
 0x3ea   : > { %v12612_v49 = vcombine.low %v10858_v25, %v10868_v59  ;;  %v10877_v18 = vrot.slane %v10876_v33, 4  ;;  %v7842_v15 = vadd.f32 %v17795_v9, %v19267_v51  ;;  %v18111_v45 = vadd.f32 %v17804_v47, %v7841_v54  ;;  %v10785_v56 = vld [vmem:[#allocation2 + $0x98] sm:$0xf]  ;;  %v10786_v59 = vld [vmem:[#allocation2 + $0x9c] sm:$0xf] }
 0x3eb   : > { %v10887_v3 = vrot.slane %v10886_v23, 4  ;;  %v7845_v28 = vadd.f32 %v17850_v48, %v17808_v27  ;;  %v10894_v5 = vshrl.u32 %v10782_v17, 16  ;;  %v10897_v40 = vshll.u32 %v10782_v17, 16  ;;  %v10787_v48 = vld [vmem:[#allocation2 + $0xa0] sm:$0x1] }
 0x3ec   : > { %19268 = vst [vmem:[#allocation27_spill] sm:$0xff] %v18111_v45  ;;  %14148 = vmatmul.mubr.bf16.vlgmr.msra.gmra.mxu1 %v12612_v49  ;;  %v10882_v8 = vsel %vm15206_vm5, %v10877_v18, %v10881_v7  ;;  %v10903_v1 = vshll.u32 %v10783_v35, 16  ;;  %v10907_v25 = vshrl.u32 %v10783_v35, 16  ;;  %v10913_v33 = vshll.u32 %v10784_v55, 16 }
 0x3ed   : > { %v10892_v9 = vsel %vm15206_vm5, %v10887_v3, %v10891_v31  ;;  %v10896_v47 = vrot.slane %v10894_v5, 4  ;;  %v10899_v54 = vrot.slane %v10897_v40, 5  ;;  %v18122_v27 = vadd.f32 %v17830_v39, %v7839_v10  ;;  %v18128_v39 = vpop.f32.mrf.mxu1 }
 0x3ee   : > { %v18124_v17 = vpop.f32.mrf.mxu0  ;;  %v12613_v23 = vcombine.low %v10882_v8, %v10892_v9  ;;  %v10905_v49 = vrot.slane %v10903_v1, 5  ;;  %v10909_v7 = vrot.slane %v10907_v25, 4  ;;  %v10915_v18 = vrot.slane %v10913_v33, 5  ;;  %v19269_v25 = vld [vmem:[#allocation55_spill] sm:$0xff]  ;;  %v19270_v33 = vld [vmem:[#allocation62_spill] sm:$0xff] }
 0x3ef   : > { %v10900_v35 = vor.u32 %v10899_v54, %v10896_v47  ;;  %v10918_v55 = vshrl.u32 %v10785_v56, 16  ;;  %v10921_v51 = vshll.u32 %v10785_v56, 16  ;;  %v10927_v29 = vshll.u32 %v10786_v59, 16  ;;  %v10788_v54 = vld [vmem:[#allocation2 + $0xb0] sm:$0xf] }
 0x3f0   : > { %14151 = vmatprep.mubr.bf16.mxu1 %v12613_v23  ;;  %v10910_v6 = vor.u32 %v10909_v7, %v10905_v49  ;;  %v10931_v45 = vshrl.u32 %v10786_v59, 16  ;;  %v10937_v31 = vshll.u32 %v10787_v48, 16  ;;  %v7843_v3 = vadd.f32 %v17866_v30, %v17812_v50  ;;  %v18130_v10 = vpop.f32.mrf.mxu0  ;;  %v19271_v48 = vld [vmem:[#allocation65_spill] sm:$0xff]  ;;  %v19272_v50 = vld [vmem:[#allocation66_spill] sm:$0xff] }
 0x3f1   : > { %v10901_v5 = vrot.slane %v10900_v35, 4  ;;  %v10920_v40 = vrot.slane %v10918_v55, 4  ;;  %v10923_v8 = vrot.slane %v10921_v51, 5  ;;  %v10929_v1 = vrot.slane %v10927_v29, 5  ;;  %v10789_v35 = vld [vmem:[#allocation2 + $0xb4] sm:$0xf] }
 0x3f2   : > { %v18134_v9 = vadd.f32 %v19270_v33, %v19269_v25  ;;  %v10911_v56 = vrot.slane %v10910_v6, 4  ;;  %v10933_v47 = vrot.slane %v10931_v45, 4  ;;  %v18137_v59 = vadd.f32 %v17852_v37, %v7842_v15  ;;  %v10790_v15 = vld [vmem:[#allocation2 + $0xb8] sm:$0x1]  ;;  %v18154_v25 = vpop.f32.mrf.mxu0 }
 0x3f3   : > { %v18141_v30 = vadd.f32 %v19272_v50, %v19271_v48  ;;  %v10906_v23 = vsel %vm15206_vm5, %v10901_v5, %v10905_v49  ;;  %v10924_v7 = vor.u32 %v10923_v8, %v10920_v40  ;;  %v7846_v29 = vadd.f32 %v17887_v4, %v17819_v58  ;;  %v10792_v50 = vld [vmem:[#allocation2 + $0xcc] sm:$0xf] }
 0x3f4   : > { %v10916_v6 = vsel %vm15206_vm5, %v10911_v56, %v10915_v18  ;;  %v10934_v45 = vor.u32 %v10933_v47, %v10929_v1  ;;  %v10939_v55 = vrot.slane %v10937_v31, 5  ;;  %v18150_v37 = vadd.f32 %v17896_v57, %v7845_v28  ;;  %v10791_v56 = vld [vmem:[#allocation2 + $0xc8] sm:$0xf] }
 0x3f5   : > { %v18152_v51 = vpop.f32.mrf.mxu1  ;;  %v12614_v33 = vcombine.low %v10906_v23, %v10916_v6  ;;  %v10925_v49 = vrot.slane %v10924_v7, 4  ;;  %v7849_v5 = vadd.f32 %v17933_v20, %v17840_v34  ;;  %v10942_v58 = vshrl.u32 %v10788_v54, 16  ;;  %v10793_v7 = vld [vmem:[#allocation2 + $0xd0] sm:$0x1] }
 0x3f6   : > { %19273 = vst [vmem:[#allocation24_spill] sm:$0xff] %v18150_v37  ;;  %v10935_v4 = vrot.slane %v10934_v45, 4  ;;  %v10945_v40 = vshll.u32 %v10788_v54, 16  ;;  %v10951_v8 = vshll.u32 %v10789_v35, 16  ;;  %v10955_v18 = vshrl.u32 %v10789_v35, 16  ;;  %v18167_v35 = vpop.f32.mrf.mxu0 }
 0x3f7   : > { %v18158_v31 = vpop.f32.mrf.mxu1  ;;  %14152 = vmatmul.mubr.bf16.gmra.mxu1 %v12614_v33  ;;  %v10930_v57 = vsel %vm15206_vm5, %v10925_v49, %v10929_v1  ;;  %v10944_v28 = vrot.slane %v10942_v58, 4  ;;  %v10961_v47 = vshll.u32 %v10790_v15, 16  ;;  %v18163_v48 = vadd.f32 %v17912_v14, %v7843_v3 }
 0x3f8   : > { %v10940_v34 = vsel %vm15206_vm5, %v10935_v4, %v10939_v55  ;;  %v10947_v20 = vrot.slane %v10945_v40, 5  ;;  %v10953_v54 = vrot.slane %v10951_v8, 5  ;;  %v10957_v23 = vrot.slane %v10955_v18, 4 }
 0x3f9   : > { %19274 = vst [vmem:[#allocation36_spill] sm:$0xff] %v18163_v48  ;;  %v12615_v6 = vcombine.low %v10930_v57, %v10940_v34  ;;  %v10963_v45 = vrot.slane %v10961_v47, 5  ;;  %v10966_v33 = vshrl.u32 %v10791_v56, 16  ;;  %v10969_v37 = vshll.u32 %v10791_v56, 16  ;;  %v18169_v14 = vpop.f32.mrf.mxu1  ;;  %v19275_v56 = vld [vmem:[#allocation69_spill] sm:$0xff] }
 0x3fa   : > { %v10948_v1 = vor.u32 %v10947_v20, %v10944_v28  ;;  %v10958_v49 = vor.u32 %v10957_v23, %v10953_v54  ;;  %v10975_v15 = vshll.u32 %v10792_v50, 16  ;;  %v10979_v58 = vshrl.u32 %v10792_v50, 16  ;;  %v10794_v20 = vld [vmem:[#allocation2 + $0xe0] sm:$0xf] }
 0x3fb   : > { %14155 = vmatprep.mubr.bf16.mxu1 %v12615_v6  ;;  %v10968_v3 = vrot.slane %v10966_v33, 4  ;;  %v10971_v48 = vrot.slane %v10969_v37, 5  ;;  %v10985_v55 = vshll.u32 %v10793_v7, 16  ;;  %v7847_v4 = vadd.f32 %v17946_v21, %v17870_v16  ;;  %v10795_v6 = vld [vmem:[#allocation2 + $0xe4] sm:$0xf] }
 0x3fc   : > { %v10949_v40 = vrot.slane %v10948_v1, 4  ;;  %v10959_v8 = vrot.slane %v10958_v49, 4  ;;  %v10977_v18 = vrot.slane %v10975_v15, 5  ;;  %v10981_v57 = vrot.slane %v10979_v58, 4  ;;  %v10796_v33 = vld [vmem:[#allocation2 + $0xe8] sm:$0x1] }
 0x3fd   : > { %v18173_v47 = vpop.f32.mrf.mxu0  ;;  %v18177_v28 = vadd.f32 %v17787_v52, %v19275_v56  ;;  %v10972_v50 = vor.u32 %v10971_v48, %v10968_v3  ;;  %v18180_v34 = vadd.f32 %v17935_v41, %v7846_v29  ;;  %v7850_v37 = vadd.f32 %v17974_v61, %v17882_v22  ;;  %v18188_v52 = vpop.f32.mrf.mxu1  ;;  %v19277_v48 = vld [vmem:[#allocation73_spill] sm:$0xff]  ;;  %v10797_v15 = vld [vmem:[#allocation2 + $0xf8] sm:$0xf] }
 0x3fe   : > { %v10954_v16 = vsel %vm15206_vm5, %v10949_v40, %v10953_v54  ;;  %v10964_v21 = vsel %vm15206_vm5, %v10959_v8, %v10963_v45  ;;  %v10982_v23 = vor.u32 %v10981_v57, %v10977_v18  ;;  %v10987_v7 = vrot.slane %v10985_v55, 5  ;;  %v10798_v8 = vld [vmem:[#allocation2 + $0xfc] sm:$0xf] }
 0x3ff   : > { %19276 = vst [vmem:[#allocation25_spill] sm:$0xff] %v18180_v34  ;;  %v7840_v41 = vadd.f32 %v17828_v2, %v19277_v48  ;;  %v12616_v29 = vcombine.low %v10954_v16, %v10964_v21  ;;  %v10973_v1 = vrot.slane %v10972_v50, 4  ;;  %v18193_v22 = vadd.f32 %v17982_v44, %v7849_v5  ;;  %v18197_v58 = vpop.f32.mrf.mxu0 }
 0x400   : > { %v10983_v61 = vrot.slane %v10982_v23, 4  ;;  %v7853_v54 = vadd.f32 %v18018_v19, %v17864_v12  ;;  %v10990_v49 = vshrl.u32 %v10794_v20, 16  ;;  %v10993_v45 = vshll.u32 %v10794_v20, 16  ;;  %v10799_v19 = vld [vmem:[#allocation2 + $0x100] sm:$0x1] }
 0x401   : > { %19278 = vst [vmem:[#allocation45_spill] sm:$0xff] %v18193_v22  ;;  %14156 = vmatmul.mubr.bf16.gmra.mxu1 %v12616_v29  ;;  %v10978_v3 = vsel %vm15206_vm5, %v10973_v1, %v10977_v18  ;;  %v10999_v55 = vshll.u32 %v10795_v6, 16  ;;  %v11003_v2 = vshrl.u32 %v10795_v6, 16  ;;  %v11009_v40 = vshll.u32 %v10796_v33, 16  ;;  %v18208_v48 = vpop.f32.mrf.mxu0  ;;  %v19291_v22 = vld [vmem:[#allocation76_spill] sm:$0xff] }
 0x402   : > { %v10988_v44 = vsel %vm15206_vm5, %v10983_v61, %v10987_v7  ;;  %v10992_v5 = vrot.slane %v10990_v49, 4  ;;  %v10995_v57 = vrot.slane %v10993_v45, 5  ;;  %v18204_v12 = vadd.f32 %v17998_v43, %v7847_v4  ;;  %v19280_v61 = vld [vmem:[#allocation42_spill] sm:$0xff]  ;;  %v19281_v43 = vld [vmem:[#allocation19_spill] sm:$0xff] }
 0x403   : > { %v18206_v56 = vpop.f32.mrf.mxu1  ;;  %v12617_v50 = vcombine.low %v10978_v3, %v10988_v44  ;;  %v11001_v20 = vrot.slane %v10999_v55, 5  ;;  %v11005_v16 = vrot.slane %v11003_v2, 4  ;;  %v11011_v21 = vrot.slane %v11009_v40, 5  ;;  %v19282_v40 = vld [vmem:[#allocation74_spill] sm:$0xff] }
 0x404   : > { %19279 = vst [vmem:[#allocation48_spill] sm:$0xff] %v18204_v12  ;;  %v10996_v18 = vor.u32 %v10995_v57, %v10992_v5  ;;  %v11014_v23 = vshrl.u32 %v10797_v15, 16  ;;  %v11017_v6 = vshll.u32 %v10797_v15, 16  ;;  %v11023_v33 = vshll.u32 %v10798_v8, 16  ;;  %v19283_v57 = vld [vmem:[#allocation18_spill] sm:$0xff] }
 0x405   : > { %14159 = vmatprep.mubr.bf16.mxu1 %v12617_v50  ;;  %v11006_v7 = vor.u32 %v11005_v16, %v11001_v20  ;;  %v11027_v29 = vshrl.u32 %v10798_v8, 16  ;;  %v11033_v1 = vshll.u32 %v10799_v19, 16  ;;  %v7851_v4 = vadd.f32 %v19281_v43, %v19280_v61  ;;  %v18212_v49 = vpop.f32.mrf.mxu1  ;;  %v10800_v50 = vld [vmem:[#allocation2 + $0x110] sm:$0xf]  ;;  %v19285_v8 = vld [vmem:[#allocation75_spill] sm:$0xff]  ;;  %v19286_v19 = vld [vmem:[#allocation16_spill] sm:$0xff] }
 0x406   : > { %v10997_v45 = vrot.slane %v10996_v18, 4  ;;  %v11016_v3 = vrot.slane %v11014_v23, 4  ;;  %v11019_v55 = vrot.slane %v11017_v6, 5  ;;  %v11025_v2 = vrot.slane %v11023_v33, 5  ;;  %v10801_v6 = vld [vmem:[#allocation2 + $0x114] sm:$0xf] }
 0x407   : > { %v18215_v44 = vadd.f32 %v19282_v40, %v7840_v41  ;;  %v11007_v15 = vrot.slane %v11006_v7, 4  ;;  %v11029_v5 = vrot.slane %v11027_v29, 4  ;;  %v18218_v12 = vadd.f32 %v19283_v57, %v7850_v37  ;;  %v18228_v41 = vpop.f32.mrf.mxu0  ;;  %v10802_v43 = vld [vmem:[#allocation2 + $0x118] sm:$0x1]  ;;  %v18235_v40 = vpop.f32.mrf.mxu1 }
 0x408   : > { %v18222_v16 = vadd.f32 %v19286_v19, %v19285_v8  ;;  %v11002_v61 = vsel %vm15206_vm5, %v10997_v45, %v11001_v20  ;;  %v11020_v18 = vor.u32 %v11019_v55, %v11016_v3  ;;  %v7854_v23 = vadd.f32 %v18046_v62, %v18058_v38  ;;  %v19288_v45 = vld [vmem:[#allocation15_spill] sm:$0xff] }
 0x409   : > { %19284 = vst [vmem:[#allocation40_spill] sm:$0xff] %v18218_v12  ;;  %v11012_v33 = vsel %vm15206_vm5, %v11007_v15, %v11011_v21  ;;  %v11030_v37 = vor.u32 %v11029_v5, %v11025_v2  ;;  %v11035_v7 = vrot.slane %v11033_v1, 5  ;;  %v18233_v29 = vadd.f32 %v18054_v0, %v7853_v54  ;;  %v10803_v12 = vld [vmem:[#allocation2 + $0x128] sm:$0xf]  ;;  %v10804_v15 = vld [vmem:[#allocation2 + $0x12c] sm:$0xf] }
 0x40a   : > { %v12618_v57 = vcombine.low %v11002_v61, %v11012_v33  ;;  %v11021_v20 = vrot.slane %v11020_v18, 4  ;;  %v7857_v3 = vadd.f32 %v18082_v13, %v19288_v45  ;;  %v11038_v62 = vshrl.u32 %v10800_v50, 16  ;;  %v18248_v33 = vpop.f32.mrf.mxu1 }
 0x40b   : > { %19287 = vst [vmem:[#allocation30_spill] sm:$0xff] %v18233_v29  ;;  %v11031_v38 = vrot.slane %v11030_v37, 4  ;;  %v11041_v55 = vshll.u32 %v10800_v50, 16  ;;  %v11047_v8 = vshll.u32 %v10801_v6, 16  ;;  %v11051_v19 = vshrl.u32 %v10801_v6, 16 }
 0x40c   : > { %14160 = vmatmul.mubr.bf16.gmra.mxu1 %v12618_v57  ;;  %v11026_v21 = vsel %vm15206_vm5, %v11021_v20, %v11025_v2  ;;  %v11040_v0 = vrot.slane %v11038_v62, 4  ;;  %v11057_v54 = vshll.u32 %v10802_v43, 16  ;;  %v18242_v1 = vadd.f32 %v18072_v32, %v7851_v4  ;;  %v10805_v6 = vld [vmem:[#allocation2 + $0x130] sm:$0x1] }
 0x40d   : > { %v18244_v5 = vpop.f32.mrf.mxu0  ;;  %v11036_v13 = vsel %vm15206_vm5, %v11031_v38, %v11035_v7  ;;  %v11043_v61 = vrot.slane %v11041_v55, 5  ;;  %v11049_v50 = vrot.slane %v11047_v8, 5  ;;  %v11053_v18 = vrot.slane %v11051_v19, 4  ;;  %v19290_v38 = vld [vmem:[#allocation17_spill] sm:$0xff] }
 0x40e   : > { %19289 = vst [vmem:[#allocation50_spill] sm:$0xff] %v18242_v1  ;;  %v12619_v37 = vcombine.low %v11026_v21, %v11036_v13  ;;  %v11059_v57 = vrot.slane %v11057_v54, 5  ;;  %v11062_v2 = vshrl.u32 %v10803_v12, 16  ;;  %v11065_v20 = vshll.u32 %v10803_v12, 16 }
 0x40f   : > { %v18250_v43 = vpop.f32.mrf.mxu0  ;;  %v11044_v32 = vor.u32 %v11043_v61, %v11040_v0  ;;  %v11054_v4 = vor.u32 %v11053_v18, %v11049_v50  ;;  %v11071_v45 = vshll.u32 %v10804_v15, 16  ;;  %v11075_v62 = vshrl.u32 %v10804_v15, 16  ;;  %v19292_v0 = vld [vmem:[#allocation31_spill] sm:$0xff] }
 0x410   : > { %14163 = vmatprep.mubr.bf16.mxu1 %v12619_v37  ;;  %v11064_v1 = vrot.slane %v11062_v2, 4  ;;  %v11067_v29 = vrot.slane %v11065_v20, 5  ;;  %v11081_v7 = vshll.u32 %v10805_v6, 16  ;;  %v7855_v55 = vadd.f32 %v18100_v53, %v19290_v38  ;;  %v19295_v6 = vld [vmem:[#allocation13_spill] sm:$0xff]  ;;  %v10806_v53 = vld [vmem:[#allocation2 + $0x140] sm:$0xf] }
 0x411   : > { %v18254_v8 = vpop.f32.mrf.mxu0  ;;  %v11045_v19 = vrot.slane %v11044_v32, 4  ;;  %v11055_v21 = vrot.slane %v11054_v4, 4  ;;  %v11073_v54 = vrot.slane %v11071_v45, 5  ;;  %v11077_v13 = vrot.slane %v11075_v62, 4  ;;  %v10807_v45 = vld [vmem:[#allocation2 + $0x144] sm:$0xf] }
 0x412   : > { %v18256_v12 = vpop.f32.mrf.mxu1  ;;  %v18260_v61 = vadd.f32 %v19292_v0, %v19291_v22  ;;  %v11068_v15 = vor.u32 %v11067_v29, %v11064_v1  ;;  %v18263_v18 = vadd.f32 %v18084_v42, %v7854_v23  ;;  %v7858_v37 = vadd.f32 %v18117_v36, %v19295_v6  ;;  %v10808_v62 = vld [vmem:[#allocation2 + $0x148] sm:$0x1] }
 0x413   : > { %v11050_v2 = vsel %vm15206_vm5, %v11045_v19, %v11049_v50  ;;  %v11060_v20 = vsel %vm15206_vm5, %v11055_v21, %v11059_v57  ;;  %v11078_v32 = vor.u32 %v11077_v13, %v11073_v54  ;;  %v11083_v4 = vrot.slane %v11081_v7, 5  ;;  %v18273_v29 = vpop.f32.mrf.mxu0  ;;  %v19297_v38 = vld [vmem:[#allocation28_spill] sm:$0xff]  ;;  %v10809_v21 = vld [vmem:[#allocation2 + $0x158] sm:$0xf] }
 0x414   : > { %19293 = vst [vmem:[#allocation47_spill] sm:$0xff] %v18260_v61  ;;  %19294 = vst [vmem:[#allocation35_spill] sm:$0xff] %v18263_v18  ;;  %v18271_v22 = vpop.f32.mrf.mxu1  ;;  %v12620_v42 = vcombine.low %v11050_v2, %v11060_v20  ;;  %v11069_v23 = vrot.slane %v11068_v15, 4  ;;  %v7856_v36 = vadd.f32 %v18128_v39, %v18092_v24  ;;  %v18278_v1 = vadd.f32 %v18124_v17, %v7857_v3  ;;  %v10810_v24 = vld [vmem:[#allocation2 + $0x15c] sm:$0xf] }
 0x415   : > { %v11079_v50 = vrot.slane %v11078_v32, 4  ;;  %v7861_v57 = vadd.f32 %v18152_v51, %v19297_v38  ;;  %v11086_v19 = vshrl.u32 %v10806_v53, 16  ;;  %v11089_v7 = vshll.u32 %v10806_v53, 16  ;;  %v10811_v53 = vld [vmem:[#allocation2 + $0x160] sm:$0x1] }
 0x416   : > { %19296 = vst [vmem:[#allocation29_spill] sm:$0xff] %v18278_v1  ;;  %v18282_v13 = vpop.f32.mrf.mxu1  ;;  %14164 = vmatmul.mubr.bf16.gmra.mxu1 %v12620_v42  ;;  %v11074_v0 = vsel %vm15206_vm5, %v11069_v23, %v11073_v54  ;;  %v11095_v15 = vshll.u32 %v10807_v45, 16  ;;  %v11099_v6 = vshrl.u32 %v10807_v45, 16  ;;  %v11105_v2 = vshll.u32 %v10808_v62, 16 }
 0x417   : > { %v11084_v17 = vsel %vm15206_vm5, %v11079_v50, %v11083_v4  ;;  %v11088_v39 = vrot.slane %v11086_v19, 4  ;;  %v11091_v3 = vrot.slane %v11089_v7, 5  ;;  %v18289_v51 = vadd.f32 %v18130_v10, %v7855_v55  ;;  %v19299_v19 = vld [vmem:[#allocation64_spill] sm:$0xff] }
 0x418   : > { %v18291_v20 = vpop.f32.mrf.mxu1  ;;  %v18293_v32 = vpop.f32.mrf.mxu0  ;;  %v12621_v42 = vcombine.low %v11074_v0, %v11084_v17  ;;  %v11097_v38 = vrot.slane %v11095_v15, 5  ;;  %v11101_v54 = vrot.slane %v11099_v6, 4  ;;  %v11107_v23 = vrot.slane %v11105_v2, 5 }
 0x419   : > { %19298 = vst [vmem:[#allocation26_spill] sm:$0xff] %v18289_v51  ;;  %v11092_v45 = vor.u32 %v11091_v3, %v11088_v39  ;;  %v11110_v62 = vshrl.u32 %v10809_v21, 16  ;;  %v11113_v1 = vshll.u32 %v10809_v21, 16  ;;  %v11119_v18 = vshll.u32 %v10810_v24, 16 }
 0x41a   : > { %v18295_v34 = vpop.f32.mrf.mxu1  ;;  %v18297_v4 = vpop.f32.mrf.mxu0  ;;  %14167 = vmatprep.mubr.bf16.mxu1 %v12621_v42  ;;  %v11102_v10 = vor.u32 %v11101_v54, %v11097_v38  ;;  %v11123_v55 = vshrl.u32 %v10810_v24, 16  ;;  %v11129_v50 = vshll.u32 %v10811_v53, 16  ;;  %v7859_v7 = vadd.f32 %v18158_v31, %v19299_v19  ;;  %v10812_v42 = vld [vmem:[#allocation2 + $0x170] sm:$0xf]  ;;  %v19300_v31 = vld [vmem:[#allocation32_spill] sm:$0xff] }
 0x41b   : > { %v11093_v51 = vrot.slane %v11092_v45, 4  ;;  %v11112_v0 = vrot.slane %v11110_v62, 4  ;;  %v11115_v15 = vrot.slane %v11113_v1, 5  ;;  %v11121_v6 = vrot.slane %v11119_v18, 5  ;;  %v10813_v1 = vld [vmem:[#allocation2 + $0x174] sm:$0xf] }
 0x41c   : > { %v18301_v2 = vpop.f32.mrf.mxu1  ;;  %v18303_v17 = vpop.f32.mrf.mxu0  ;;  %v11103_v21 = vrot.slane %v11102_v10, 4  ;;  %v11125_v39 = vrot.slane %v11123_v55, 4  ;;  %v11131_v3 = vrot.slane %v11129_v50, 5  ;;  %v18306_v61 = vadd.f32 %v18154_v25, %v7858_v37 }
 0x41d   : > { %v11098_v24 = vsel %vm15206_vm5, %v11093_v51, %v11097_v38  ;;  %v11116_v53 = vor.u32 %v11115_v15, %v11112_v0  ;;  %v7862_v54 = vadd.f32 %v18169_v14, %v19300_v31  ;;  %v18313_v18 = vadd.f32 %v18167_v35, %v7856_v36  ;;  %v10814_v38 = vld [vmem:[#allocation2 + $0x178] sm:$0x1]  ;;  %v19303_v35 = vld [vmem:[#allocation37_spill] sm:$0xff] }
 0x41e   : > { %v18315_v45 = vpop.f32.mrf.mxu1  ;;  %v18317_v62 = vpop.f32.mrf.mxu0  ;;  %v11108_v25 = vsel %vm15206_vm5, %v11103_v21, %v11107_v23  ;;  %v11126_v37 = vor.u32 %v11125_v39, %v11121_v6  ;;  %v7860_v10 = vadd.f32 %v18188_v52, %v18134_v9  ;;  %v18324_v51 = vadd.f32 %v18173_v47, %v7861_v57  ;;  %v10815_v21 = vld [vmem:[#allocation2 + $0x188] sm:$0xf]  ;;  %v10816_v39 = vld [vmem:[#allocation2 + $0x18c] sm:$0xf] }
 0x41f   : > { %19301 = vst [vmem:[#allocation49_spill] sm:$0xff] %v18313_v18  ;;  %v12622_v14 = vcombine.low %v11098_v24, %v11108_v25  ;;  %v11117_v55 = vrot.slane %v11116_v53, 4  ;;  %v7865_v36 = vadd.f32 %v18206_v56, %v19303_v35  ;;  %v11134_v50 = vshrl.u32 %v10812_v42, 16 }
 0x420   : > { %19302 = vst [vmem:[#allocation38_spill] sm:$0xff] %v18324_v51  ;;  %v18328_v19 = vpop.f32.mrf.mxu1  ;;  %v11127_v0 = vrot.slane %v11126_v37, 4  ;;  %v11137_v15 = vshll.u32 %v10812_v42, 16  ;;  %v11143_v31 = vshll.u32 %v10813_v1, 16  ;;  %v11147_v23 = vshrl.u32 %v10813_v1, 16 }
 0x421   : > { %14168 = vmatmul.mubr.bf16.gmra.mxu1 %v12622_v14  ;;  %v11122_v9 = vsel %vm15206_vm5, %v11117_v55, %v11121_v6  ;;  %v11136_v47 = vrot.slane %v11134_v50, 4  ;;  %v11153_v52 = vshll.u32 %v10814_v38, 16  ;;  %v18333_v57 = vadd.f32 %v18197_v58, %v7859_v7  ;;  %v10817_v37 = vld [vmem:[#allocation2 + $0x190] sm:$0x1] }
 0x422   : > { %v18335_v24 = vpop.f32.mrf.mxu0  ;;  %v18337_v56 = vpop.f32.mrf.mxu1  ;;  %v11132_v42 = vsel %vm15206_vm5, %v11127_v0, %v11131_v3  ;;  %v11139_v53 = vrot.slane %v11137_v15, 5  ;;  %v11145_v1 = vrot.slane %v11143_v31, 5  ;;  %v11149_v25 = vrot.slane %v11147_v23, 4 }
 0x423   : > { %19304 = vst [vmem:[#allocation51_spill] sm:$0xff] %v18333_v57  ;;  %19305 = vst [vmem:[#allocation61_spill] sm:$0xff] %v18335_v24  ;;  %v12623_v14 = vcombine.low %v11122_v9, %v11132_v42  ;;  %v11155_v35 = vrot.slane %v11153_v52, 5  ;;  %v11158_v6 = vshrl.u32 %v10815_v21, 16  ;;  %v11161_v55 = vshll.u32 %v10815_v21, 16 }
 0x424   : > { %v18341_v38 = vpop.f32.mrf.mxu0  ;;  %v18343_v58 = vpop.f32.mrf.mxu1  ;;  %v11140_v7 = vor.u32 %v11139_v53, %v11136_v47  ;;  %v11150_v50 = vor.u32 %v11149_v25, %v11145_v1  ;;  %v11167_v24 = vshll.u32 %v10816_v39, 16  ;;  %v11171_v57 = vshrl.u32 %v10816_v39, 16  ;;  %v10818_v25 = vld [vmem:[#allocation2 + $0x1a0] sm:$0xf] }
 0x425   : > { %14171 = vmatprep.mubr.bf16.mxu1 %v12623_v14  ;;  %v11160_v51 = vrot.slane %v11158_v6, 4  ;;  %v11163_v18 = vrot.slane %v11161_v55, 5  ;;  %v11177_v3 = vshll.u32 %v10817_v37, 16  ;;  %v7863_v0 = vadd.f32 %v18212_v49, %v18044_v26 }
 0x426   : > { %v18347_v15 = vpop.f32.mrf.mxu0  ;;  %v18349_v31 = vpop.f32.mrf.mxu1  ;;  %v11141_v23 = vrot.slane %v11140_v7, 4  ;;  %v11151_v21 = vrot.slane %v11150_v50, 4  ;;  %v11169_v9 = vrot.slane %v11167_v24, 5  ;;  %v11173_v52 = vrot.slane %v11171_v57, 4 }
 0x427   : > { %v11164_v42 = vor.u32 %v11163_v18, %v11160_v51  ;;  %v11179_v47 = vrot.slane %v11177_v3, 5  ;;  %v18352_v53 = vadd.f32 %v18208_v48, %v7862_v54  ;;  %v7866_v39 = vadd.f32 %v18235_v40, %v18052_v46  ;;  %v10819_v48 = vld [vmem:[#allocation2 + $0x1a4] sm:$0xf]  ;;  %v10820_v54 = vld [vmem:[#allocation2 + $0x1a8] sm:$0x1] }
 0x428   : > { %v18356_v37 = vpop.f32.mrf.mxu0  ;;  %v18358_v26 = vpop.f32.mrf.mxu1  ;;  %v11146_v49 = vsel %vm15206_vm5, %v11141_v23, %v11145_v1  ;;  %v11156_v24 = vsel %vm15206_vm5, %v11151_v21, %v11155_v35  ;;  %v11174_v57 = vor.u32 %v11173_v52, %v11169_v9  ;;  %v18365_v18 = vadd.f32 %v18228_v41, %v7860_v10 }
 0x429   : > { %v12624_v51 = vcombine.low %v11146_v49, %v11156_v24  ;;  %v11165_v14 = vrot.slane %v11164_v42, 4  ;;  %v7864_v46 = vadd.f32 %v18248_v33, %v18141_v30  ;;  %v18370_v40 = vadd.f32 %v18244_v5, %v7865_v36  ;;  %v19306_v24 = vld [vmem:[#allocation20_spill] sm:$0xff] }
 0x42a   : > { %v13965_v6 = vpop.f32.mrf.mxu1  ;;  %v11175_v55 = vrot.slane %v11174_v57, 4  ;;  %v7869_v1 = vadd.f32 %v18256_v12, %v18064_v63  ;;  %v11182_v35 = vshrl.u32 %v10818_v25, 16  ;;  %v11185_v7 = vshll.u32 %v10818_v25, 16 }
 0x42b   : > { %14172 = vmatmul.mubr.bf16.gmra.mxu1 %v12624_v51  ;;  %v11170_v41 = vsel %vm15206_vm5, %v11165_v14, %v11169_v9  ;;  %v11191_v10 = vshll.u32 %v10819_v48, 16  ;;  %v11195_v50 = vshrl.u32 %v10819_v48, 16  ;;  %v11201_v3 = vshll.u32 %v10820_v54, 16 }
 0x42c   : > { %v18376_v23 = vpop.f32.mrf.mxu0  ;;  %v8818_v30 = vpop.f32.mrf.mxu1  ;;  %v11180_v5 = vsel %vm15206_vm5, %v11175_v55, %v11179_v47  ;;  %v11184_v33 = vrot.slane %v11182_v35, 4  ;;  %v11187_v36 = vrot.slane %v11185_v7, 5  ;;  %v18381_v21 = vadd.f32 %v18250_v43, %v7863_v0 }
 0x42d   : > { %v12625_v63 = vcombine.low %v11170_v41, %v11180_v5  ;;  %v11193_v12 = vrot.slane %v11191_v10, 5  ;;  %v11197_v52 = vrot.slane %v11195_v50, 4  ;;  %v11203_v42 = vrot.slane %v11201_v3, 5  ;;  %v19312_v41 = vld [vmem:[#allocation36_spill] sm:$0xff]  ;;  %v19313_v3 = vld [vmem:[#allocation23_spill] sm:$0xff]  ;;  %v19314_v5 = vld [vmem:[#allocation21_spill] sm:$0xff] }
 0x42e   : > { %v18383_v25 = vpop.f32.mrf.mxu0  ;;  %v13966_v9 = vpop.f32.mrf.mxu1  ;;  %v11188_v49 = vor.u32 %v11187_v36, %v11184_v33  ;;  %v7867_v57 = vadd.f32 %v18271_v22, %v19306_v24  ;;  %v18388_v48 = vadd.f32 %v18254_v8, %v7866_v39  ;;  %v7870_v47 = vadd.f32 %v18282_v13, %v18098_v60  ;;  %v19307_v8 = vld [vmem:[#allocation27_spill] sm:$0xff]  ;;  %v19315_v33 = vld [vmem:[#allocation25_spill] sm:$0xff] }
 0x42f   : > { %14175 = vmatprep.mubr.bf16.mxu1 %v12625_v63  ;;  %v11198_v43 = vor.u32 %v11197_v52, %v11193_v12  ;;  %v18393_v0 = vadd.f32 %v18273_v29, %v7864_v46  ;;  %v7868_v54 = vadd.f32 %v18291_v20, %v18177_v28  ;;  %v18398_v51 = vadd.f32 %v18293_v32, %v7869_v1  ;;  %v19316_v63 = vld [vmem:[#allocation45_spill] sm:$0xff] }
 0x430   : > { %v18400_v14 = vpop.f32.mrf.mxu0  ;;  %v8821_v22 = vpop.f32.mrf.mxu1  ;;  %v11189_v55 = vrot.slane %v11188_v49, 4  ;;  %v18404_v39 = vadd.f32 %v18295_v34, %v19307_v8  ;;  %v18407_v60 = vadd.f32 %v18297_v4, %v7867_v57  ;;  %v18411_v29 = vadd.f32 %v18301_v2, %v18122_v27  ;;  %v19308_v4 = vld [vmem:[#allocation39_spill] sm:$0xff]  ;;  %v19318_v49 = vld [vmem:[#allocation22_spill] sm:$0xff]  ;;  %v19319_v57 = vld [vmem:[#allocation40_spill] sm:$0xff] }
 0x431   : > { %v11199_v13 = vrot.slane %v11198_v43, 4  ;;  %v18414_v28 = vadd.f32 %v18303_v17, %v7870_v47  ;;  %v18418_v20 = vadd.f32 %v18315_v45, %v18137_v59  ;;  %v18421_v32 = vadd.f32 %v18317_v62, %v7868_v54  ;;  %v19309_v17 = vld [vmem:[#allocation24_spill] sm:$0xff]  ;;  %v19310_v45 = vld [vmem:[#allocation47_spill] sm:$0xff]  ;;  %v19311_v62 = vld [vmem:[#allocation46_spill] sm:$0xff] }
 0x432   : > { %v18423_v34 = vpop.f32.mrf.mxu0  ;;  %v13969_v46 = vpop.f32.mrf.mxu1  ;;  %v8565_v1 = vadd.f32 %v19308_v4, %v18222_v16  ;;  %v11194_v27 = vsel %vm15206_vm5, %v11189_v55, %v11193_v12  ;;  %v18431_v2 = vadd.f32 %v18328_v19, %v18215_v44  ;;  %v18435_v59 = vadd.f32 %v18337_v56, %v19309_v17  ;;  %v19317_v12 = vld [vmem:[#allocation48_spill] sm:$0xff]  ;;  %v19320_v55 = vld [vmem:[#allocation30_spill] sm:$0xff] }
 0x433   : > { %v8569_v35 = vadd.f32 %v19311_v62, %v19310_v45  ;;  %v11204_v7 = vsel %vm15206_vm5, %v11199_v13, %v11203_v42  ;;  %v18443_v16 = vadd.f32 %v18343_v58, %v19312_v41  ;;  %v7852_v44 = vadd.f32 %v19314_v5, %v19313_v3  ;;  %v19324_v41 = vld [vmem:[#allocation26_spill] sm:$0xff] }
 0x434   : > { %v14013_v10 = vpop.f32.mrf.mxu0  ;;  %v8834_v50 = vpop.f32.mrf.mxu1  ;;  %v12626_v19 = vcombine.low %v11194_v27, %v11204_v7  ;;  %v18449_v56 = vadd.f32 %v18349_v31, %v19315_v33  ;;  %v18452_v36 = vadd.f32 %v18358_v26, %v8565_v1  ;;  %v8923_v11 = vadd.f32 %v13965_v6, %v19316_v63  ;;  %v19321_v26 = vld [vmem:[#allocation50_spill] sm:$0xff]  ;;  %v19325_v63 = vld [vmem:[#allocation49_spill] sm:$0xff] }
 0x435   : > { %v8921_v52 = vadd.f32 %v8818_v30, %v19317_v12  ;;  %v8573_v24 = vadd.f32 %v19318_v49, %v7852_v44  ;;  %v8924_v47 = vadd.f32 %v13966_v9, %v19319_v57  ;;  %v8922_v43 = vadd.f32 %v8821_v22, %v8569_v35  ;;  %v19322_v30 = vld [vmem:[#allocation35_spill] sm:$0xff]  ;;  %v19323_v9 = vld [vmem:[#allocation29_spill] sm:$0xff] }
 0x436   : > { %v9571_v42 = vpop.f32.mrf.mxu0  ;;  %v13970_v58 = vpop.f32.mrf.mxu1  ;;  %14176 = vmatmul.mubr.bf16.gmra.mxu1 %v12626_v19  ;;  %v18458_v54 = vadd.f32 %v14013_v10, %v8923_v11  ;;  %v8927_v31 = vadd.f32 %v13969_v46, %v19320_v55  ;;  %v8925_v13 = vadd.f32 %v8834_v50, %v19321_v26 }
 0x437   : > { %v18461_v8 = vadd.f32 %v9571_v42, %v8921_v52  ;;  %v8928_v27 = vadd.f32 %v13970_v58, %v19322_v30  ;;  %v19326_v58 = vld [vmem:[#allocation38_spill] sm:$0xff] }
 0x438   : > { %v14014_v4 = vpop.f32.mrf.mxu0  ;;  %v8837_v6 = vpop.f32.mrf.mxu1 }
 0x439   : > { %v18464_v1 = vadd.f32 %v14014_v4, %v8924_v47  ;;  %v8926_v17 = vadd.f32 %v8837_v6, %v8573_v24 }
 0x43a   : > { %v9574_v45 = vpop.f32.mrf.mxu0  ;;  %v13973_v62 = vpop.f32.mrf.mxu1 }
 0x43b   : > { %v18467_v7 = vadd.f32 %v9574_v45, %v8922_v43  ;;  %v8931_v22 = vadd.f32 %v13973_v62, %v19323_v9  ;;  %v19327_v43 = vld [vmem:[#allocation51_spill] sm:$0xff] }
 0x43c   : > { %v8850_v35 = vpop.f32.mrf.mxu1 }
 0x43d   : > { %v8929_v46 = vadd.f32 %v8850_v35, %v19324_v41 }
 0x43e   : > { %v14017_v10 = vpop.f32.mrf.mxu0  ;;  %v13974_v3 = vpop.f32.mrf.mxu1 }
 0x43f   : > { %v18471_v5 = vadd.f32 %v14017_v10, %v8927_v31  ;;  %v8932_v50 = vadd.f32 %v13974_v3, %v18306_v61 }
 0x440   : > { %v9587_v44 = vpop.f32.mrf.mxu0  ;;  %v8853_v19 = vpop.f32.mrf.mxu1 }
 0x441   : > { %v18474_v33 = vadd.f32 %v9587_v44, %v8925_v13  ;;  %v8930_v11 = vadd.f32 %v8853_v19, %v19325_v63 }
 0x442   : > { %v14018_v12 = vpop.f32.mrf.mxu0  ;;  %v13977_v52 = vpop.f32.mrf.mxu1 }
 0x443   : > { %v18477_v42 = vadd.f32 %v14018_v12, %v8928_v27  ;;  %v8935_v49 = vadd.f32 %v13977_v52, %v19326_v58 }
 0x444   : > { %v9590_v24 = vpop.f32.mrf.mxu0  ;;  %v8866_v57 = vpop.f32.mrf.mxu1 }
 0x445   : > { %v18480_v47 = vadd.f32 %v9590_v24, %v8926_v17  ;;  %v8933_v55 = vadd.f32 %v8866_v57, %v19327_v43 }
 0x446   : > { %v14021_v31 = vpop.f32.mrf.mxu0  ;;  %v13978_v61 = vpop.f32.mrf.mxu1 }
 0x447   : > { %v18483_v26 = vadd.f32 %v14021_v31, %v8931_v22  ;;  %v8936_v13 = vadd.f32 %v13978_v61, %v18352_v53 }
 0x448   : > { %v9603_v4 = vpop.f32.mrf.mxu0  ;;  %v8869_v6 = vpop.f32.mrf.mxu1 }
 0x449   : > { %v18486_v30 = vadd.f32 %v9603_v4, %v8929_v46  ;;  %v8934_v27 = vadd.f32 %v8869_v6, %v18365_v18 }
 0x44a   : > { %v14022_v45 = vpop.f32.mrf.mxu0  ;;  %v13981_v62 = vpop.f32.mrf.mxu1 }
 0x44b   : > { %v18489_v9 = vadd.f32 %v14022_v45, %v8932_v50  ;;  %v8939_v17 = vadd.f32 %v13981_v62, %v18370_v40 }
 0x44c   : > { %v9606_v35 = vpop.f32.mrf.mxu0  ;;  %v8882_v41 = vpop.f32.mrf.mxu1 }
 0x44d   : > { %v18492_v10 = vadd.f32 %v9606_v35, %v8930_v11  ;;  %v8937_v22 = vadd.f32 %v8882_v41, %v18381_v21 }
 0x44e   : > { %v13982_v3 = vpop.f32.mrf.mxu1 }
 0x44f   : > { %v8940_v53 = vadd.f32 %v13982_v3, %v18388_v48 }
 0x450   : > { %v14025_v44 = vpop.f32.mrf.mxu0  ;;  %v8885_v46 = vpop.f32.mrf.mxu1 }
 0x451   : > { %v18496_v19 = vadd.f32 %v14025_v44, %v8935_v49  ;;  %v8938_v18 = vadd.f32 %v8885_v46, %v18393_v0 }
 0x452   : > { %v9619_v63 = vpop.f32.mrf.mxu0  ;;  %v13985_v50 = vpop.f32.mrf.mxu1 }
 0x453   : > { %v18499_v12 = vadd.f32 %v9619_v63, %v8933_v55  ;;  %v8943_v40 = vadd.f32 %v13985_v50, %v18398_v51 }
 0x454   : > { %v14026_v52 = vpop.f32.mrf.mxu0  ;;  %v8898_v11 = vpop.f32.mrf.mxu1 }
 0x455   : > { %v18502_v58 = vadd.f32 %v14026_v52, %v8936_v13  ;;  %v8941_v21 = vadd.f32 %v8898_v11, %v18407_v60 }
 0x456   : > { %v9622_v24 = vpop.f32.mrf.mxu0  ;;  %v13986_v48 = vpop.f32.mrf.mxu1 }
 0x457   : > { %v18505_v57 = vadd.f32 %v9622_v24, %v8934_v27  ;;  %v8944_v49 = vadd.f32 %v13986_v48, %v18414_v28 }
 0x458   : > { %v14029_v43 = vpop.f32.mrf.mxu0  ;;  %v8901_v0 = vpop.f32.mrf.mxu1 }
 0x459   : > { %v18508_v31 = vadd.f32 %v14029_v43, %v8939_v17  ;;  %v8942_v55 = vadd.f32 %v8901_v0, %v18421_v32 }
 0x45a   : > { %v9635_v61 = vpop.f32.mrf.mxu0 }
 0x45b   : > { %v18511_v51 = vadd.f32 %v9635_v61, %v8937_v22 }
 0x45c   : > { %v14030_v4 = vpop.f32.mrf.mxu0 }
 0x45d   : > { %v18513_v13 = vadd.f32 %v14030_v4, %v8940_v53 }
 0x45e   : > { %v9638_v6 = vpop.f32.mrf.mxu0 }
 0x45f   : > { %v18515_v60 = vadd.f32 %v9638_v6, %v8938_v18 }
 0x465   : > { %v14033_v45 = vpop.f32.mrf.mxu0 }
 0x466   : > { %v18517_v27 = vadd.f32 %v14033_v45, %v8943_v40  ;;  %v18519_v62 = vpop.f32.mrf.mxu1 }
 0x467   : > { %v9651_v28 = vpop.f32.mrf.mxu0 }
 0x468   : > { %v18521_v35 = vadd.f32 %v9651_v28, %v8941_v21  ;;  %v18523_v17 = vpop.f32.mrf.mxu1 }
 0x469   : > { %v14034_v32 = vpop.f32.mrf.mxu0 }
 0x46a   : > { %v18525_v41 = vadd.f32 %v14034_v32, %v8944_v49  ;;  %v18527_v22 = vpop.f32.mrf.mxu1 }
 0x46b   : > { %v9654_v3 = vpop.f32.mrf.mxu0 }
 0x46c   : > { %v18529_v53 = vadd.f32 %v9654_v3, %v8942_v55  ;;  %v18531_v44 = vpop.f32.mrf.mxu1 }
 0x46d   : > { %v14101_v49 = vpop.f32.mrf.mxu0 }
 0x46e   : > { %v18533_v46 = vpop.f32.mrf.mxu1 }
 0x46f   : > { %v10614_v61 = vpop.f32.mrf.mxu0 }
 0x470   : > { %v18535_v18 = vpop.f32.mrf.mxu1 }
 0x471   : > { %v18559_v45 = vpop.f32.mrf.mxu0 }
 0x472   : > { %v18537_v63 = vpop.f32.mrf.mxu1 }
 0x473   : > { %v18567_v3 = vpop.f32.mrf.mxu0 }
 0x474   : > { %v18539_v50 = vpop.f32.mrf.mxu1 }
 0x476   : > { %v14061_v40 = vpop.f32.mrf.mxu1 }
 0x477   : > { %v18542_v52 = vadd.f32 %v14061_v40, %v18458_v54 }
 0x478   : > { %v10293_v11 = vpop.f32.mrf.mxu1 }
 0x479   : > { %v18545_v21 = vadd.f32 %v10293_v11, %v18461_v8 }
 0x47a   : > { %v14062_v24 = vpop.f32.mrf.mxu1 }
 0x47b   : > { %v18548_v48 = vadd.f32 %v14062_v24, %v18464_v1  ;;  %v18575_v24 = vpop.f32.mrf.mxu0 }
 0x47c   : > { %v10296_v43 = vpop.f32.mrf.mxu1 }
 0x47d   : > { %v18551_v0 = vadd.f32 %v10296_v43, %v18467_v7 }
 0x47f   : > { %v14065_v55 = vpop.f32.mrf.mxu1 }
 0x480   : > { %v18554_v4 = vadd.f32 %v14065_v55, %v18471_v5  ;;  %v18583_v55 = vpop.f32.mrf.mxu0 }
 0x481   : > { %v10309_v54 = vpop.f32.mrf.mxu1 }
 0x482   : > { %v18557_v6 = vadd.f32 %v10309_v54, %v18474_v33 }
 0x483   : > { %v14066_v8 = vpop.f32.mrf.mxu1 }
 0x484   : > { %v18562_v1 = vadd.f32 %v14066_v8, %v18477_v42 }
 0x485   : > { %v10312_v28 = vpop.f32.mrf.mxu1 }
 0x486   : > { %v18565_v32 = vadd.f32 %v10312_v28, %v18480_v47  ;;  %v18591_v28 = vpop.f32.mrf.mxu0 }
 0x487   : > { %v14069_v7 = vpop.f32.mrf.mxu1 }
 0x488   : > { %v18570_v5 = vadd.f32 %v14069_v7, %v18483_v26 }
 0x489   : > { %v10325_v40 = vpop.f32.mrf.mxu1 }
 0x48a   : > { %v18573_v33 = vadd.f32 %v10325_v40, %v18486_v30 }
 0x48b   : > { %v14070_v11 = vpop.f32.mrf.mxu1 }
 0x48c   : > { %v18578_v42 = vadd.f32 %v14070_v11, %v18489_v9  ;;  %v18599_v11 = vpop.f32.mrf.mxu0 }
 0x48d   : > { %v10328_v43 = vpop.f32.mrf.mxu1 }
 0x48e   : > { %v18581_v47 = vadd.f32 %v10328_v43, %v18492_v10 }
 0x490   : > { %v14073_v54 = vpop.f32.mrf.mxu1 }
 0x491   : > { %v18586_v26 = vadd.f32 %v14073_v54, %v18496_v19 }
 0x492   : > { %v10341_v8 = vpop.f32.mrf.mxu1 }
 0x493   : > { %v18589_v30 = vadd.f32 %v10341_v8, %v18499_v12  ;;  %v18607_v8 = vpop.f32.mrf.mxu0 }
 0x494   : > { %v14074_v7 = vpop.f32.mrf.mxu1 }
 0x495   : > { %19328 = vst [vmem:[#allocation33_spill] sm:$0xff] %v18589_v30  ;;  %v18594_v9 = vadd.f32 %v14074_v7, %v18502_v58 }
 0x496   : > { %v10344_v40 = vpop.f32.mrf.mxu1 }
 0x497   : > { %v18597_v10 = vadd.f32 %v10344_v40, %v18505_v57  ;;  %v18615_v40 = vpop.f32.mrf.mxu0 }
 0x498   : > { %v14077_v43 = vpop.f32.mrf.mxu1 }
 0x499   : > { %19329 = vst [vmem:[#allocation54_spill] sm:$0xff] %v18597_v10  ;;  %v18602_v19 = vadd.f32 %v14077_v43, %v18508_v31 }
 0x49a   : > { %v10357_v54 = vpop.f32.mrf.mxu1 }
 0x49b   : > { %v18605_v12 = vadd.f32 %v10357_v54, %v18511_v51  ;;  %v18620_v51 = vpop.f32.mrf.mxu0 }
 0x49c   : > { %v14078_v30 = vpop.f32.mrf.mxu1 }
 0x49d   : > { %19330 = vst [vmem:[#allocation58_spill] sm:$0xff] %v18605_v12  ;;  %v18610_v58 = vadd.f32 %v14078_v30, %v18513_v13 }
 0x49e   : > { %v10360_v7 = vpop.f32.mrf.mxu1 }
 0x49f   : > { %v18613_v57 = vadd.f32 %v10360_v7, %v18515_v60  ;;  %v19333_v60 = vld [vmem:[#allocation61_spill] sm:$0xff] }
 0x4a0   : > { %v9668_v30 = vadd.f32 %v19333_v60, %v18404_v39 }
 0x4a1   : > { %19331 = vst [vmem:[#allocation44_spill] sm:$0xff] %v18613_v57  ;;  %v14081_v10 = vpop.f32.mrf.mxu1  ;;  %v18630_v57 = vpop.f32.mrf.mxu0 }
 0x4a2   : > { %v18618_v31 = vadd.f32 %v14081_v10, %v18517_v27  ;;  %v9666_v10 = vadd.f32 %v18341_v38, %v18411_v29  ;;  %v9667_v38 = vadd.f32 %v18356_v37, %v18431_v2 }
 0x4a3   : > { %v10373_v43 = vpop.f32.mrf.mxu1  ;;  %v18642_v39 = vpop.f32.mrf.mxu0 }
 0x4a4   : > { %v18623_v54 = vadd.f32 %v10373_v43, %v18521_v35  ;;  %v10390_v35 = vadd.f32 %v18519_v62, %v9668_v30  ;;  %v9669_v43 = vadd.f32 %v18347_v15, %v18418_v20  ;;  %v12867_v20 = vld [vmem:[%s14866_s13 + $0x20] sm:$0xff]  }
 0x4a5   : > { %v14082_v12 = vpop.f32.mrf.mxu1  ;;  %v18661_v2 = vpop.f32.mrf.mxu0 }
 0x4a6   : > { %v18626_v13 = vadd.f32 %v14082_v12, %v18525_v41  ;;  %v10388_v41 = vadd.f32 %v18523_v17, %v9666_v10  ;;  %v10743_v12 = vadd.f32 %v14101_v49, %v10390_v35  ;;  %v10391_v29 = vadd.f32 %v18527_v22, %v9669_v43  ;;  %v18656_v17 = vld [vmem:[%s18934_s6] ss:$0 sm:$0xff] }
 0x4a7   : > { %v10376_v7 = vpop.f32.mrf.mxu1  ;;  %v12789_v22 = vunpack.c.l.bf16 %v12867_v20 }
 0x4a8   : > { %19332 = vst [vmem:[#allocation60_spill] sm:$0xff] %v18626_v13  ;;  %v18633_v27 = vadd.f32 %v10376_v7, %v18529_v53  ;;  %v12868_v13 = vld [vmem:[%s14866_s13 + $0x38] sm:$0xff]   ;;  %v18647_v53 = vld [vmem:[%s18933_s5] ss:$0 sm:$0xff]  ;;  %v10741_v62 = vadd.f32 %v10614_v61, %v10388_v41  ;;  %v10389_v7 = vadd.f32 %v18531_v44, %v9667_v38  ;;  %v10744_v10 = vadd.f32 %v18559_v45, %v10391_v29 }
 0x4a9   : > { %v12793_v49 = vunpack.c.l.bf16 %v12868_v13  ;;  %v9672_v44 = vadd.f32 %v18376_v23, %v18435_v59  ;;  %v12794_v38 = vunpack.c.h.bf16 %v12868_v13 }
 0x4aa   : > { %v10742_v43 = vadd.f32 %v18567_v3, %v10389_v7  ;;  %v9670_v3 = vadd.f32 %v18383_v25, %v18443_v16  ;;  %v12870_v16 = vld [vmem:[%s14866_s13 + $0x68] sm:$0xff]  }
 0x4ab   : > { %v10394_v7 = vadd.f32 %v18533_v46, %v9672_v44 }
 0x4ac   : > { %v14149_v60 = vpop.f32.mrf.mxu1 }
 0x4ad   : > { %v11496_v15 = vadd.f32 %v14149_v60, %v10743_v12  ;;  %v10747_v25 = vadd.f32 %v18575_v24, %v10394_v7 }
 0x4ae   : > { %v11367_v30 = vpop.f32.mrf.mxu1 }
 0x4af   : > { %v11535_v35 = vmul.f32 %v18647_v53, %v11496_v15  ;;  %v11494_v37 = vadd.f32 %v11367_v30, %v10741_v62 }
 0x4b0   : > { %v14150_v61 = vpop.f32.mrf.mxu1 }
 0x4b1   : > { %v11574_v41 = vadd.f32 %v18656_v17, %v11535_v35  ;;  %v11533_v12 = vmul.f32 %v18647_v53, %v11494_v37  ;;  %v11497_v60 = vadd.f32 %v14150_v61, %v10744_v10  ;;  %v18674_v35 = vpop.f32.mrf.mxu0  ;;  %v12790_v10 = vunpack.c.h.bf16 %v12867_v20 }
 0x4b2   : > { %v11370_v45 = vpop.f32.mrf.mxu1  ;;  %v10392_v61 = vadd.f32 %v18535_v18, %v9670_v3 }
 0x4b3   : > { %v11670_v29 = vadd.f32 %v12793_v49, %v11574_v41  ;;  %v11572_v62 = vadd.f32 %v18656_v17, %v11533_v12  ;;  %v11536_v15 = vmul.f32 %v18647_v53, %v11497_v60  ;;  %v11495_v30 = vadd.f32 %v11370_v45, %v10742_v43  ;;  %v18692_v24 = vpop.f32.mrf.mxu0  ;;  %v12869_v12 = vld [vmem:[%s14866_s13 + $0x50] sm:$0xff]  }
 0x4b4   : > { %v9673_v49 = vadd.f32 %v18400_v14, %v18449_v56  ;;  %v9671_v14 = vadd.f32 %v18423_v34, %v18452_v36  ;;  %v10745_v18 = vadd.f32 %v18583_v55, %v10392_v61  ;;  %v12797_v55 = vunpack.c.l.bf16 %v12869_v12 }
 0x4b5   : > { %v11702_v37 = vmax.f32 %v11670_v29, 0.0  ;;  %v11668_v23 = vadd.f32 %v12789_v22, %v11572_v62  ;;  %v11575_v59 = vadd.f32 %v18656_v17, %v11536_v15  ;;  %v11534_v13 = vmul.f32 %v18647_v53, %v11495_v30  ;;  %v18703_v3 = vpop.f32.mrf.mxu0 }
 0x4b6   : > { %v10395_v56 = vadd.f32 %v18537_v63, %v9673_v49  ;;  %v10393_v29 = vadd.f32 %v18539_v50, %v9671_v14  ;;  %v12798_v61 = vunpack.c.h.bf16 %v12869_v12  ;;  %v10749_v14 = vadd.f32 %v18615_v40, %v18545_v21  ;;  %v12871_v12 = vld [vmem:[%s14866_s13 + $0x80] sm:$0xff]  }
 0x4b7   : > { %11735 = vst.msk [vmem:[%s18683_s1 + $0x10] sm:$0xff] %vm11732_vm6, %v11702_v37  ;;  %v11700_v46 = vmax.f32 %v11668_v23, 0.0  ;;  %v11671_v20 = vadd.f32 %v12794_v38, %v11575_v59  ;;  %v11573_v22 = vadd.f32 %v18656_v17, %v11534_v13  ;;  %v14153_v43 = vpop.f32.mrf.mxu1  ;;  %v12801_v38 = vunpack.c.l.bf16 %v12870_v16 }
 0x4b8   : > { %v11500_v41 = vadd.f32 %v14153_v43, %v10747_v25  ;;  %v10748_v62 = vadd.f32 %v18591_v28, %v10395_v56  ;;  %v10746_v30 = vadd.f32 %v18599_v11, %v10393_v29  ;;  %v12802_v28 = vunpack.c.h.bf16 %v12870_v16  ;;  %v18713_v25 = vpop.f32.mrf.mxu0  ;;  %v12872_v43 = vld [vmem:[%s14866_s13 + $0x98] sm:$0xff]  }
 0x4b9   : > { %11733 = vst.msk [vmem:[%s18683_s1] sm:$0xff] %vm11732_vm6, %v11700_v46  ;;  %v11703_v60 = vmax.f32 %v11671_v20, 0.0  ;;  %v11669_v44 = vadd.f32 %v12790_v10, %v11573_v22  ;;  %v11383_v45 = vpop.f32.mrf.mxu1  ;;  %v10751_v11 = vadd.f32 %v18607_v8, %v18542_v52 }
 0x4ba   : > { %v11539_v34 = vmul.f32 %v18647_v53, %v11500_v41  ;;  %v11498_v36 = vadd.f32 %v11383_v45, %v10745_v18  ;;  %v18726_v45 = vpop.f32.mrf.mxu0 }
 0x4bb   : > { %11736 = vst.msk [vmem:[%s18683_s1 + $0x18] sm:$0xff] %vm11732_vm6, %v11703_v60  ;;  %v11701_v63 = vmax.f32 %v11669_v44, 0.0  ;;  %v14154_v15 = vpop.f32.mrf.mxu1  ;;  %v10752_v60 = vadd.f32 %v18620_v51, %v18548_v48  ;;  %v12809_v44 = vunpack.c.l.bf16 %v12872_v43 }
 0x4bc   : > { %v11578_v7 = vadd.f32 %v18656_v17, %v11539_v34  ;;  %v11537_v10 = vmul.f32 %v18647_v53, %v11498_v36  ;;  %v11501_v50 = vadd.f32 %v14154_v15, %v10748_v62  ;;  %v10750_v34 = vadd.f32 %v18630_v57, %v18551_v0 }
 0x4bd   : > { %11734 = vst.msk [vmem:[%s18683_s1 + $0x8] sm:$0xff] %vm11732_vm6, %v11701_v63  ;;  %v11386_v37 = vpop.f32.mrf.mxu1  ;;  %v12805_v36 = vunpack.c.l.bf16 %v12871_v12 }
 0x4be   : > { %v11674_v23 = vadd.f32 %v12801_v38, %v11578_v7  ;;  %v11576_v59 = vadd.f32 %v18656_v17, %v11537_v10  ;;  %v11540_v13 = vmul.f32 %v18647_v53, %v11501_v50  ;;  %v11499_v49 = vadd.f32 %v11386_v37, %v10746_v30  ;;  %v18737_v10 = vpop.f32.mrf.mxu0 }
 0x4bf   : > { %v12810_v30 = vunpack.c.h.bf16 %v12872_v43  ;;  %v12806_v37 = vunpack.c.h.bf16 %v12871_v12  ;;  %v12874_v43 = vld [vmem:[%s14866_s13 + $0xc8] sm:$0xff]  }
 0x4c0   : > { %v11706_v46 = vmax.f32 %v11674_v23, 0.0  ;;  %v11672_v20 = vadd.f32 %v12797_v55, %v11576_v59  ;;  %v11579_v16 = vadd.f32 %v18656_v17, %v11540_v13  ;;  %v11538_v22 = vmul.f32 %v18647_v53, %v11499_v49 }
 0x4c1   : > { %v14157_v56 = vpop.f32.mrf.mxu1  ;;  %v12817_v12 = vunpack.c.l.bf16 %v12874_v43 }
 0x4c2   : > { %11739 = vst.msk [vmem:[%s18683_s1 + $0x30] sm:$0xff] %vm11732_vm6, %v11706_v46  ;;  %v11704_v18 = vmax.f32 %v11672_v20, 0.0  ;;  %v11675_v41 = vadd.f32 %v12802_v28, %v11579_v16  ;;  %v11577_v52 = vadd.f32 %v18656_v17, %v11538_v22  ;;  %v11504_v8 = vadd.f32 %v14157_v56, %v10751_v11 }
 0x4c3   : > { %v11399_v38 = vpop.f32.mrf.mxu1  ;;  %v10755_v11 = vadd.f32 %v18642_v39, %v18554_v4 }
 0x4c4   : > { %11737 = vst.msk [vmem:[%s18683_s1 + $0x20] sm:$0xff] %vm11732_vm6, %v11704_v18  ;;  %v11707_v21 = vmax.f32 %v11675_v41, 0.0  ;;  %v11673_v40 = vadd.f32 %v12798_v61, %v11577_v52  ;;  %v11543_v29 = vmul.f32 %v18647_v53, %v11504_v8  ;;  %v11502_v62 = vadd.f32 %v11399_v38, %v10749_v14  ;;  %v18747_v61 = vpop.f32.mrf.mxu0  ;;  %v12873_v18 = vld [vmem:[%s14866_s13 + $0xb0] sm:$0xff]  }
 0x4c5   : > { %v14158_v63 = vpop.f32.mrf.mxu1  ;;  %v10753_v14 = vadd.f32 %v18661_v2, %v18557_v6  ;;  %v10756_v52 = vadd.f32 %v18674_v35, %v18562_v1  ;;  %v12813_v2 = vunpack.c.l.bf16 %v12873_v18  ;;  %v12818_v35 = vunpack.c.h.bf16 %v12874_v43 }
 0x4c6   : > { %11740 = vst.msk [vmem:[%s18683_s1 + $0x38] sm:$0xff] %vm11732_vm6, %v11707_v21  ;;  %v11705_v48 = vmax.f32 %v11673_v40, 0.0  ;;  %v11582_v51 = vadd.f32 %v18656_v17, %v11543_v29  ;;  %v11541_v55 = vmul.f32 %v18647_v53, %v11502_v62  ;;  %v11505_v15 = vadd.f32 %v14158_v63, %v10752_v60 }
 0x4c7   : > { %v11402_v7 = vpop.f32.mrf.mxu1  ;;  %v10754_v21 = vadd.f32 %v18692_v24, %v18565_v32  ;;  %v10759_v32 = vadd.f32 %v18703_v3, %v18570_v5 }
 0x4c8   : > { %11738 = vst.msk [vmem:[%s18683_s1 + $0x28] sm:$0xff] %vm11732_vm6, %v11705_v48  ;;  %v11678_v50 = vadd.f32 %v12809_v44, %v11582_v51  ;;  %v11580_v0 = vadd.f32 %v18656_v17, %v11541_v55  ;;  %v11544_v57 = vmul.f32 %v18647_v53, %v11505_v15  ;;  %v11503_v28 = vadd.f32 %v11402_v7, %v10750_v34  ;;  %v18761_v44 = vpop.f32.mrf.mxu0 }
 0x4c9   : > { %v12814_v51 = vunpack.c.h.bf16 %v12873_v18 }
 0x4ca   : > { %v11710_v23 = vmax.f32 %v11678_v50, 0.0  ;;  %v11676_v59 = vadd.f32 %v12805_v36, %v11580_v0  ;;  %v11583_v13 = vadd.f32 %v18656_v17, %v11544_v57  ;;  %v11542_v49 = vmul.f32 %v18647_v53, %v11503_v28  ;;  %v14122_v24 = vpop.f32.mrf.mxu0  ;;  %v12876_v50 = vld [vmem:[%s14866_s13 + $0xf8] sm:$0xff]  }
 0x4cb   : > { %v10757_v0 = vadd.f32 %v18713_v25, %v18573_v33 }
 0x4cc   : > { %11743 = vst.msk [vmem:[%s18683_s1 + $0x50] sm:$0xff] %vm11732_vm6, %v11710_v23  ;;  %v11708_v46 = vmax.f32 %v11676_v59, 0.0  ;;  %v11679_v20 = vadd.f32 %v12810_v30, %v11583_v13  ;;  %v11581_v16 = vadd.f32 %v18656_v17, %v11542_v49  ;;  %v14161_v22 = vpop.f32.mrf.mxu1  ;;  %v12875_v23 = vld [vmem:[%s14866_s13 + $0xe0] sm:$0xff]   ;;  %v10760_v59 = vadd.f32 %v18726_v45, %v18578_v42  ;;  %v10697_v13 = vpop.f32.mrf.mxu0 }
 0x4cd   : > { %v11508_v56 = vadd.f32 %v14161_v22, %v10755_v11  ;;  %v12825_v49 = vunpack.c.l.bf16 %v12876_v50  ;;  %v12821_v22 = vunpack.c.l.bf16 %v12875_v23 }
 0x4ce   : > { %11741 = vst.msk [vmem:[%s18683_s1 + $0x40] sm:$0xff] %vm11732_vm6, %v11708_v46  ;;  %v11711_v41 = vmax.f32 %v11679_v20, 0.0  ;;  %v11677_v4 = vadd.f32 %v12806_v37, %v11581_v16  ;;  %v11415_v39 = vpop.f32.mrf.mxu1  ;;  %v10758_v16 = vadd.f32 %v18737_v10, %v18581_v47  ;;  %v14125_v18 = vpop.f32.mrf.mxu0 }
 0x4cf   : > { %v11547_v8 = vmul.f32 %v18647_v53, %v11508_v56  ;;  %v11506_v60 = vadd.f32 %v11415_v39, %v10753_v14 }
 0x4d0   : > { %11744 = vst.msk [vmem:[%s18683_s1 + $0x58] sm:$0xff] %vm11732_vm6, %v11711_v41  ;;  %v11709_v6 = vmax.f32 %v11677_v4, 0.0  ;;  %v14162_v38 = vpop.f32.mrf.mxu1  ;;  %v12826_v41 = vunpack.c.h.bf16 %v12876_v50 }
 0x4d1   : > { %v11586_v40 = vadd.f32 %v18656_v17, %v11547_v8  ;;  %v11545_v29 = vmul.f32 %v18647_v53, %v11506_v60  ;;  %v11509_v1 = vadd.f32 %v14162_v38, %v10756_v52  ;;  %v12822_v8 = vunpack.c.h.bf16 %v12875_v23 }
 0x4d2   : > { %11742 = vst.msk [vmem:[%s18683_s1 + $0x48] sm:$0xff] %vm11732_vm6, %v11709_v6  ;;  %v11418_v62 = vpop.f32.mrf.mxu1  ;;  %v10763_v38 = vadd.f32 %v18747_v61, %v18586_v26 }
 0x4d3   : > { %v11682_v34 = vadd.f32 %v12817_v12, %v11586_v40  ;;  %v11584_v36 = vadd.f32 %v18656_v17, %v11545_v29  ;;  %v11548_v63 = vmul.f32 %v18647_v53, %v11509_v1  ;;  %v11507_v48 = vadd.f32 %v11418_v62, %v10754_v21  ;;  %v10710_v21 = vpop.f32.mrf.mxu0  ;;  %v12878_v62 = vld [vmem:[%s14866_s13 + $0x128] sm:$0xff]  }
 0x4d5   : > { %v11714_v55 = vmax.f32 %v11682_v34, 0.0  ;;  %v11680_v15 = vadd.f32 %v12813_v2, %v11584_v36  ;;  %v11587_v30 = vadd.f32 %v18656_v17, %v11548_v63  ;;  %v11546_v7 = vmul.f32 %v18647_v53, %v11507_v48  ;;  %v19334_v34 = vld [vmem:[#allocation33_spill] sm:$0xff] }
 0x4d6   : > { %v14165_v57 = vpop.f32.mrf.mxu1  ;;  %v10761_v36 = vadd.f32 %v18761_v44, %v19334_v34  ;;  %v12877_v48 = vld [vmem:[%s14866_s13 + $0x110] sm:$0xff]  }
 0x4d7   : > { %11747 = vst.msk [vmem:[%s18683_s1 + $0x70] sm:$0xff] %vm11732_vm6, %v11714_v55  ;;  %v11712_v28 = vmax.f32 %v11680_v15, 0.0  ;;  %v11683_v37 = vadd.f32 %v12818_v35, %v11587_v30  ;;  %v11585_v5 = vadd.f32 %v18656_v17, %v11546_v7  ;;  %v11512_v3 = vadd.f32 %v14165_v57, %v10759_v32  ;;  %v14126_v55 = vpop.f32.mrf.mxu0  ;;  %v19335_v57 = vld [vmem:[#allocation54_spill] sm:$0xff] }
 0x4d8   : > { %v11431_v11 = vpop.f32.mrf.mxu1  ;;  %v12833_v30 = vunpack.c.l.bf16 %v12878_v62 }
 0x4d9   : > { %11745 = vst.msk [vmem:[%s18683_s1 + $0x60] sm:$0xff] %vm11732_vm6, %v11712_v28  ;;  %v11715_v33 = vmax.f32 %v11683_v37, 0.0  ;;  %v11681_v25 = vadd.f32 %v12814_v51, %v11585_v5  ;;  %v11551_v46 = vmul.f32 %v18647_v53, %v11512_v3  ;;  %v11510_v20 = vadd.f32 %v11431_v11, %v10757_v0  ;;  %v10713_v23 = vpop.f32.mrf.mxu0 }
 0x4da   : > { %v14166_v43 = vpop.f32.mrf.mxu1  ;;  %v10764_v51 = vadd.f32 %v14122_v24, %v18594_v9  ;;  %v12829_v0 = vunpack.c.l.bf16 %v12877_v48  ;;  %v10762_v28 = vadd.f32 %v10697_v13, %v19335_v57  ;;  %v12834_v9 = vunpack.c.h.bf16 %v12878_v62 }
 0x4db   : > { %11748 = vst.msk [vmem:[%s18683_s1 + $0x78] sm:$0xff] %vm11732_vm6, %v11715_v33  ;;  %v11713_v14 = vmax.f32 %v11681_v25, 0.0  ;;  %v11590_v42 = vadd.f32 %v18656_v17, %v11551_v46  ;;  %v11549_v45 = vmul.f32 %v18647_v53, %v11510_v20  ;;  %v11513_v56 = vadd.f32 %v14166_v43, %v10760_v59  ;;  %v12880_v43 = vld [vmem:[%s14866_s13 + $0x158] sm:$0xff]  }
 0x4dc   : > { %v11434_v4 = vpop.f32.mrf.mxu1  ;;  %v10767_v13 = vadd.f32 %v14125_v18, %v18602_v19  ;;  %v12830_v25 = vunpack.c.h.bf16 %v12877_v48  ;;  %v12842_v34 = vunpack.c.h.bf16 %v12880_v43 }
 0x4dd   : > { %11746 = vst.msk [vmem:[%s18683_s1 + $0x68] sm:$0xff] %vm11732_vm6, %v11713_v14  ;;  %v11686_v39 = vadd.f32 %v12825_v49, %v11590_v42  ;;  %v11588_v47 = vadd.f32 %v18656_v17, %v11549_v45  ;;  %v11552_v10 = vmul.f32 %v18647_v53, %v11513_v56  ;;  %v11511_v52 = vadd.f32 %v11434_v4, %v10758_v16  ;;  %v19336_v14 = vld [vmem:[#allocation58_spill] sm:$0xff]  ;;  %v14129_v56 = vpop.f32.mrf.mxu0 }
 0x4de   : > { %v10765_v42 = vadd.f32 %v10710_v21, %v19336_v14 }
 0x4df   : > { %v11718_v12 = vmax.f32 %v11686_v39, 0.0  ;;  %v11684_v60 = vadd.f32 %v12821_v22, %v11588_v47  ;;  %v11591_v6 = vadd.f32 %v18656_v17, %v11552_v10  ;;  %v11550_v2 = vmul.f32 %v18647_v53, %v11511_v52  ;;  %v12879_v39 = vld [vmem:[%s14866_s13 + $0x140] sm:$0xff]  }
 0x4e0   : > { %v10768_v47 = vadd.f32 %v14126_v55, %v18610_v58  ;;  %v12841_v10 = vunpack.c.l.bf16 %v12880_v43  ;;  %v12837_v21 = vunpack.c.l.bf16 %v12879_v39 }
 0x4e1   : > { %11751 = vst.msk [vmem:[%s18683_s1 + $0x90] sm:$0xff] %vm11732_vm6, %v11718_v12  ;;  %v11716_v40 = vmax.f32 %v11684_v60, 0.0  ;;  %v11687_v29 = vadd.f32 %v12826_v41, %v11591_v6  ;;  %v11589_v1 = vadd.f32 %v18656_v17, %v11550_v2  ;;  %v14169_v35 = vpop.f32.mrf.mxu1  ;;  %v19337_v2 = vld [vmem:[#allocation44_spill] sm:$0xff] }
 0x4e2   : > { %v11516_v63 = vadd.f32 %v14169_v35, %v10763_v38  ;;  %v10766_v38 = vadd.f32 %v10713_v23, %v19337_v2 }
 0x4e3   : > { %11749 = vst.msk [vmem:[%s18683_s1 + $0x80] sm:$0xff] %vm11732_vm6, %v11716_v40  ;;  %v11719_v32 = vmax.f32 %v11687_v29, 0.0  ;;  %v11685_v26 = vadd.f32 %v12822_v8, %v11589_v1  ;;  %v11447_v61 = vpop.f32.mrf.mxu1  ;;  %v10726_v29 = vpop.f32.mrf.mxu0 }
 0x4e4   : > { %v11555_v15 = vmul.f32 %v18647_v53, %v11516_v63  ;;  %v11514_v7 = vadd.f32 %v11447_v61, %v10761_v36  ;;  %v12838_v61 = vunpack.c.h.bf16 %v12879_v39 }
 0x4e5   : > { %11752 = vst.msk [vmem:[%s18683_s1 + $0x98] sm:$0xff] %vm11732_vm6, %v11719_v32  ;;  %v11717_v50 = vmax.f32 %v11685_v26, 0.0  ;;  %v14170_v44 = vpop.f32.mrf.mxu1 }
 0x4e6   : > { %v11594_v37 = vadd.f32 %v18656_v17, %v11555_v15  ;;  %v11553_v5 = vmul.f32 %v18647_v53, %v11514_v7  ;;  %v11517_v3 = vadd.f32 %v14170_v44, %v10764_v51  ;;  %v14130_v51 = vpop.f32.mrf.mxu0 }
 0x4e7   : > { %11750 = vst.msk [vmem:[%s18683_s1 + $0x88] sm:$0xff] %vm11732_vm6, %v11717_v50  ;;  %v11450_v24 = vpop.f32.mrf.mxu1  ;;  %v10771_v50 = vadd.f32 %v14129_v56, %v18618_v31 }
 0x4e8   : > { %v11690_v59 = vadd.f32 %v12833_v30, %v11594_v37  ;;  %v11592_v49 = vadd.f32 %v18656_v17, %v11553_v5  ;;  %v11556_v11 = vmul.f32 %v18647_v53, %v11517_v3  ;;  %v11515_v33 = vadd.f32 %v11450_v24, %v10762_v28  ;;  %v12882_v37 = vld [vmem:[%s14866_s13 + $0x188] sm:$0xff]   ;;  %v10729_v24 = vpop.f32.mrf.mxu0 }
 0x4e9   : > { %v10769_v5 = vadd.f32 %v10726_v29, %v18623_v54 }
 0x4ea   : > { %v11722_v46 = vmax.f32 %v11690_v59, 0.0  ;;  %v11688_v20 = vadd.f32 %v12829_v0, %v11592_v49  ;;  %v11595_v16 = vadd.f32 %v18656_v17, %v11556_v11  ;;  %v11554_v22 = vmul.f32 %v18647_v53, %v11515_v33  ;;  %v19338_v49 = vld [vmem:[#allocation60_spill] sm:$0xff] }
 0x4eb   : > { %v14173_v45 = vpop.f32.mrf.mxu1  ;;  %v10772_v11 = vadd.f32 %v14130_v51, %v19338_v49 }
 0x4ec   : > { %11755 = vst.msk [vmem:[%s18683_s1 + $0xb0] sm:$0xff] %vm11732_vm6, %v11722_v46  ;;  %v11720_v41 = vmax.f32 %v11688_v20, 0.0  ;;  %v11691_v4 = vadd.f32 %v12834_v9, %v11595_v16  ;;  %v11593_v19 = vadd.f32 %v18656_v17, %v11554_v22  ;;  %v11520_v18 = vadd.f32 %v14173_v45, %v10767_v13  ;;  %v12881_v9 = vld [vmem:[%s14866_s13 + $0x170] sm:$0xff]  }
 0x4ed   : > { %v11463_v52 = vpop.f32.mrf.mxu1  ;;  %v12849_v13 = vunpack.c.l.bf16 %v12882_v37  ;;  %v12845_v20 = vunpack.c.l.bf16 %v12881_v9  ;;  %v10770_v16 = vadd.f32 %v10729_v24, %v18633_v27  ;;  %v12846_v27 = vunpack.c.h.bf16 %v12881_v9 }
 0x4ee   : > { %11753 = vst.msk [vmem:[%s18683_s1 + $0xa0] sm:$0xff] %vm11732_vm6, %v11720_v41  ;;  %v11723_v8 = vmax.f32 %v11691_v4, 0.0  ;;  %v11689_v12 = vadd.f32 %v12830_v25, %v11593_v19  ;;  %v11559_v60 = vmul.f32 %v18647_v53, %v11520_v18  ;;  %v11518_v6 = vadd.f32 %v11463_v52, %v10765_v42 }
 0x4ef   : > { %v14174_v40 = vpop.f32.mrf.mxu1  ;;  %v12850_v42 = vunpack.c.h.bf16 %v12882_v37 }
 0x4f0   : > { %11756 = vst.msk [vmem:[%s18683_s1 + $0xb8] sm:$0xff] %vm11732_vm6, %v11723_v8  ;;  %v11721_v1 = vmax.f32 %v11689_v12, 0.0  ;;  %v11598_v58 = vadd.f32 %v18656_v17, %v11559_v60  ;;  %v11557_v35 = vmul.f32 %v18647_v53, %v11518_v6  ;;  %v11521_v62 = vadd.f32 %v14174_v40, %v10768_v47 }
 0x4f1   : > { %v11466_v36 = vpop.f32.mrf.mxu1 }
 0x4f2   : > { %11754 = vst.msk [vmem:[%s18683_s1 + $0xa8] sm:$0xff] %vm11732_vm6, %v11721_v1  ;;  %v11694_v63 = vadd.f32 %v12841_v10, %v11598_v58  ;;  %v11596_v48 = vadd.f32 %v18656_v17, %v11557_v35  ;;  %v11560_v32 = vmul.f32 %v18647_v53, %v11521_v62  ;;  %v11519_v26 = vadd.f32 %v11466_v36, %v10766_v38 }
 0x4f4   : > { %v11726_v55 = vmax.f32 %v11694_v63, 0.0  ;;  %v11692_v15 = vadd.f32 %v12837_v21, %v11596_v48  ;;  %v11599_v30 = vadd.f32 %v18656_v17, %v11560_v32  ;;  %v11558_v7 = vmul.f32 %v18647_v53, %v11519_v26 }
 0x4f6   : > { %11759 = vst.msk [vmem:[%s18683_s1 + $0xd0] sm:$0xff] %vm11732_vm6, %v11726_v55  ;;  %v11724_v0 = vmax.f32 %v11692_v15, 0.0  ;;  %v11695_v44 = vadd.f32 %v12842_v34, %v11599_v30  ;;  %v11597_v57 = vadd.f32 %v18656_v17, %v11558_v7  ;;  %v14177_v28 = vpop.f32.mrf.mxu1 }
 0x4f7   : > { %v11524_v3 = vadd.f32 %v14177_v28, %v10771_v50 }
 0x4f8   : > { %11757 = vst.msk [vmem:[%s18683_s1 + $0xc0] sm:$0xff] %vm11732_vm6, %v11724_v0  ;;  %v11727_v23 = vmax.f32 %v11695_v44, 0.0  ;;  %v11693_v59 = vadd.f32 %v12838_v61, %v11597_v57  ;;  %v11479_v31 = vpop.f32.mrf.mxu1 }
 0x4f9   : > { %v11563_v33 = vmul.f32 %v18647_v53, %v11524_v3  ;;  %v11522_v25 = vadd.f32 %v11479_v31, %v10769_v5 }
 0x4fa   : > { %11760 = vst.msk [vmem:[%s18683_s1 + $0xd8] sm:$0xff] %vm11732_vm6, %v11727_v23  ;;  %v11725_v46 = vmax.f32 %v11693_v59, 0.0  ;;  %v14178_v54 = vpop.f32.mrf.mxu1 }
 0x4fb   : > { %v11602_v22 = vadd.f32 %v18656_v17, %v11563_v33  ;;  %v11561_v43 = vmul.f32 %v18647_v53, %v11522_v25  ;;  %v11525_v14 = vadd.f32 %v14178_v54, %v10772_v11 }
 0x4fc   : > { %11758 = vst.msk [vmem:[%s18683_s1 + $0xc8] sm:$0xff] %vm11732_vm6, %v11725_v46  ;;  %v11482_v45 = vpop.f32.mrf.mxu1 }
 0x4fd   : > { %v11698_v56 = vadd.f32 %v12849_v13, %v11602_v22  ;;  %v11600_v41 = vadd.f32 %v18656_v17, %v11561_v43  ;;  %v11564_v4 = vmul.f32 %v18647_v53, %v11525_v14  ;;  %v11523_v19 = vadd.f32 %v11482_v45, %v10770_v16 }
 0x4ff   : > { %v11730_v18 = vmax.f32 %v11698_v56, 0.0  ;;  %v11696_v39 = vadd.f32 %v12845_v20, %v11600_v41  ;;  %v11603_v47 = vadd.f32 %v18656_v17, %v11564_v4  ;;  %v11562_v10 = vmul.f32 %v18647_v53, %v11523_v19 }
 0x501   : > { %11763 = vst.msk [vmem:[%s18683_s1 + $0xf0] sm:$0xff] %vm11732_vm6, %v11730_v18  ;;  %v11728_v52 = vmax.f32 %v11696_v39, 0.0  ;;  %v11699_v8 = vadd.f32 %v12850_v42, %v11603_v47  ;;  %v11601_v12 = vadd.f32 %v18656_v17, %v11562_v10 }
 0x503   : > { %11761 = vst.msk [vmem:[%s18683_s1 + $0xe0] sm:$0xff] %vm11732_vm6, %v11728_v52  ;;  %v11731_v60 = vmax.f32 %v11699_v8, 0.0  ;;  %v11697_v6 = vadd.f32 %v12846_v27, %v11601_v12 }
 0x505   : > { %11764 = vst.msk [vmem:[%s18683_s1 + $0xf8] sm:$0xff] %vm11732_vm6, %v11731_v60  ;;  %v11729_v53 = vmax.f32 %v11697_v6, 0.0 }
 0x507   : > { %11762 = vst.msk [vmem:[%s18683_s1 + $0xe8] sm:$0xff] %vm11732_vm6, %v11729_v53 }
 0x508   : > { %14620 = shalt.err (!%p14617_p3)
}
 0x509   : > { %s14621_s10 = scalar_lea.hbm %s18879_s30, 4096  ;;  %s14625_s17 = scalar_lea.hbm %s18935_s7, 8192 }
 0x50a   : > { %p14622_p2 = scmp.ne.s32.totalorder %s18879_s30, %s14621_s10  ;;  %p14626_p4 = scmp.lt.s32.totalorder %s18879_s30, %s18935_s7 }
 0x50b   : > { %p14627_p6 = scmp.lt.s32.totalorder %s14625_s17, %s14621_s10 }
 0x50c   : > { %p14623_p9 = pnand %p14622_p2, %p19339_p11 }
 0x50d   : > { %p14628_p8 = por %p14627_p6, %p14626_p4 }
 0x50e   : > { %p14624_p1 = pneg %p14623_p9 }
 0x510   : > { %p14629_p5 = pnand %p14628_p8, %p14624_p1 }
 0x512   : > { %14632 = shalt.err (!%p14629_p5)
}
 0x513   : > { %s14684_s20 = smov 128   ;;  %s14685_s13 = smov 8  }
 0x514   : > { %14192 = dma.vmem_to_hbm [thread:$0]  (%p19339_p11), %s18881_s14, 4096, %s18879_s30, %s11766_s28, %s14684_s20, %s14684_s20, %s14685_s13  }
 0x515 PF: > { %s11794_s9 = sand.u32 1, %s14663_s24   ;;  %p19340_p7 = scmp.ne.s32.totalorder %s18954_s8, 0 }
 0x516   : > { %p19341_p12 = scmp.ge.s32.totalorder %s14675_s27, 2  ;;  %s11795_s18 = scalar_lea.sflag [#allocation5], %s11794_s9 }
 0x518   : > { %p14206_p13 = pnand %p19341_p12, %p19340_p7 }
 0x51a   : > { %p14207_p0 = pneg %p14206_p13 }
 0x51c   : > { %14658 = dma.done.wait (%p14207_p0), %s11795_s18, 4096  }
 0x51d   : > { %14660 = vsyncadd (%p14207_p0), %s11795_s18, 4294963200  ;;  %p21_p10 = scmp.ge.s32.totalorder %s14804_s23, 4   ;;  %s19342_s24 = smov %s14667_s25 }
 0x51e   : > { %s19343_s25 = smov %s14671_s26  ;;  %s19344_s26 = smov %s14820_s12 }
 0x51f   : > { %s19345_s27 = smov %s14804_s23  ;;  %23 = sbr.rel (!%p21_p10) target bundleno = 8 (0x8), region = 106 }
 0x524   :  { %11800 = vsyncpa [#allocation4], 1 }
 0x525   :  { %11802 = vsyncpa [#allocation4 + $0x1], 1 }
 0x526   :  { %11803 = vsyncpa [#allocation7], 1 }
 0x527   :  { %11804 = vsyncpa [#allocation5], 1 }
 0x528   :  { %11806 = vsyncpa [#allocation5 + $0x1], 1 }

</bundles_post_ra>
